<compile_context>
chip_gen: v5e
topology: v5e:2x2
jax: 0.10.0
libtpu: 0.0.40
codegen_flags: <defaults>
</compile_context>

<pallas_src>
import jax
import jax.numpy as jnp
from jax import lax
from jax.experimental import pallas as pl
from jax.experimental.pallas import tpu as pltpu

TB = 4   # images per grid step (conv1 lane-packing assumes TB*32 == 128)


# ----------------------------------------------------------------------------
# in-kernel building blocks
# ----------------------------------------------------------------------------
def _dot(a, b):
    return jnp.dot(a, b, preferred_element_type=jnp.float32)


def _row_masks(ht, h):
    """Per-image row-validity masks for dy = -1 / +1 in a (TB*h, lanes) slab."""
    r = lax.broadcasted_iota(jnp.int32, (ht, 1), 0) % h
    return r >= 1, r <= h - 2


def _dsconv(x, dwt, wbd_bf16, ss, maskm, maskp, *, C, residual):
    """Depthwise-separable conv in (TB*H, W*C) layout (images on sublanes).

    dwt : (9, W*C) depthwise taps with the column-validity mask pre-folded.
    wbd : (W*C, W*Cout) bf16 block-diagonal pointwise weight (kron(I_W, pw)).
    ss  : (2, W*Cout) folded eval-mode BN scale / shift.
    """
    HT, WC = x.shape
    # 2 row-masked vertical rolls, reused by all 6 off-centre-row taps.
    xu = jnp.where(maskm, pltpu.roll(x, shift=1, axis=0), 0.0)        # x[h-1]
    xd = jnp.where(maskp, pltpu.roll(x, shift=HT - 1, axis=0), 0.0)   # x[h+1]
    acc = None
    for dy, base in ((-1, xu), (0, x), (1, xd)):
        left = pltpu.roll(base, shift=C, axis=1)                      # x[., w-1]
        right = pltpu.roll(base, shift=WC - C, axis=1)                # x[., w+1]
        r = (dy + 1) * 3
        term = (left * dwt[r:r + 1, :] + base * dwt[r + 1:r + 2, :]
                + right * dwt[r + 2:r + 3, :])
        acc = term if acc is None else acc + term
    y = jnp.dot(acc.astype(jnp.bfloat16), wbd_bf16,
                preferred_element_type=jnp.float32)                   # pointwise (MXU)
    y = jnp.maximum(y * ss[0:1, :] + ss[1:2, :], 0.0)                 # BN + ReLU
    return y + x if residual else y                                   # residual AFTER relu


def _pool2x2(y, rsel, pe, po):
    """MaxPool2d(2,2) in (TB*H, W*C) layout; even-row select BEFORE col matmuls."""
    HT = y.shape[0]
    vm = jnp.maximum(y, pltpu.roll(y, shift=HT - 1, axis=0))  # rows (h, h+1); wrap rows are odd -> dropped
    rv = _dot(rsel, vm)                                       # keep per-image even rows
    return jnp.maximum(_dot(rv, pe), _dot(rv, po))            # cols (w, w+1)


# ----------------------------------------------------------------------------
# the fused whole-network kernel (one grid step == TB images)
# ----------------------------------------------------------------------------
def _fused_kernel(
    x_ref,                                                    # (32, TB*32) lane-packed images
    k1_ref, r1_ref, cew_ref, ab1_ref,                         # conv1 + pool
    dwt2_ref, wbd2_ref, ss2_ref, rs2_ref, peo2_ref,           # conv2 + pool
    dwt3_ref, wbd3_ref, ss3_ref, rs3_ref, peo3_ref,           # conv3 + pool
    dwtb_ref, wbdb_ref, ssb_ref,                              # 9 backbone blocks
    selh_ref, w1_ref, b1_ref, wc2_ref, bc2_ref,               # heads
    ws2_ref, bs2_ref, ws3_ref, bs3_ref, wfin_ref, bfin_ref,
    out_ref,                                                  # (TB, 128) slab
):
    f32, bf16 = jnp.float32, jnp.bfloat16

    # ---- conv1 depthwise 3x3, 4 images lane-packed as (32, 128) --------------
    x = x_ref[...]
    hrow = lax.broadcasted_iota(jnp.int32, (32, 1), 0)
    xu = jnp.where(hrow >= 1, pltpu.roll(x, shift=1, axis=0), 0.0)    # x[h-1]
    xd = jnp.where(hrow <= 30, pltpu.roll(x, shift=31, axis=0), 0.0)  # x[h+1]
    acc = _dot(xu, k1_ref[0]) + _dot(x, k1_ref[1]) + _dot(xd, k1_ref[2])

    # ---- conv1 pointwise/BN/ReLU with MaxPool2d(2,2) hoisted in front --------
    # max_window relu(a*d+b) = relu(a*max d + b) if a>=0 else relu(a*min d + b)
    nxt = pltpu.roll(acc, shift=127, axis=1)                  # acc[h, w+1] (wrap cols are odd -> dropped)
    hmax, hmin = jnp.maximum(acc, nxt), jnp.minimum(acc, nxt)
    vmax = jnp.maximum(hmax, pltpu.roll(hmax, shift=31, axis=0))
    vmin = jnp.minimum(hmin, pltpu.roll(hmin, shift=31, axis=0))
    r1 = r1_ref[...]
    cew = cew_ref[...]
    slab_max = _dot(_dot(r1, vmax), cew)                      # (16, 512)
    slab_min = _dot(_dot(r1, vmin), cew)
    ab1 = ab1_ref[...]
    a1, b1 = ab1[0:1, :], ab1[1:2, :]
    zw = jnp.maximum(jnp.where(a1 >= 0.0, slab_max, slab_min) * a1 + b1, 0.0)
    # re-spread the 4 lane-packed images onto the sublane axis: (TB*16, 128)
    z = jnp.concatenate([zw[:, t * 128:(t + 1) * 128] for t in range(TB)], axis=0)

    # ---- conv2 + pool, conv3 + pool ------------------------------------------
    mm, mp = _row_masks(TB * 16, 16)
    z = _dsconv(z, dwt2_ref[...], wbd2_ref[...], ss2_ref[...], mm, mp,
                C=8, residual=False)                          # (64, 256)
    z = _pool2x2(z, rs2_ref[...], peo2_ref[0], peo2_ref[1])   # (32, 128)

    mm, mp = _row_masks(TB * 8, 8)
    z = _dsconv(z, dwt3_ref[...], wbd3_ref[...], ss3_ref[...], mm, mp,
                C=16, residual=False)                         # (32, 256)
    z = _pool2x2(z, rs3_ref[...], peo3_ref[0], peo3_ref[1])   # (16, 128)

    # ---- backbone: 9 residual blocks at (TB*4, 4*32) --------------------------
    mm, mp = _row_masks(TB * 4, 4)                            # hoisted once for all 9 blocks
    for l in range(9):
        z = _dsconv(z, dwtb_ref[l], wbdb_ref[l], ssb_ref[l], mm, mp,
                    C=32, residual=True)                      # (16, 128)

    # ---- heads: batched (M = TB), first layers of both heads fused -----------
    feats = jnp.concatenate([_dot(selh_ref[h], z) for h in range(4)], axis=1)   # (TB, 512)
    a1h = jnp.maximum(
        jnp.dot(feats.astype(bf16), w1_ref[...], preferred_element_type=f32)
        + b1_ref[...], 0.0)                                   # (TB, 640) = [cls 128 | seg 512]
    cb, sb = a1h[:, :128], a1h[:, 128:]
    c2 = jnp.maximum(jnp.dot(cb.astype(bf16), wc2_ref[...],
                             preferred_element_type=f32) + bc2_ref[...], 0.0)   # (TB, 32)
    s2 = jnp.maximum(jnp.dot(sb.astype(bf16), ws2_ref[...],
                             preferred_element_type=f32) + bs2_ref[...], 0.0)   # (TB, 128)
    s3 = jnp.maximum(jnp.dot(s2.astype(bf16), ws3_ref[...],
                             preferred_element_type=f32) + bs3_ref[...], 0.0)   # (TB, 32)
    rawo = (jnp.dot(c2.astype(bf16), wfin_ref[0], preferred_element_type=f32)
            + jnp.dot(s3.astype(bf16), wfin_ref[1], preferred_element_type=f32)
            + bfin_ref[...])                                  # (TB, 128)
    lane = lax.broadcasted_iota(jnp.int32, (1, 128), 1)
    out_ref[...] = jnp.where(lane == 0, 1.0 / (1.0 + jnp.exp(-rawo)), rawo)


# ----------------------------------------------------------------------------
# deterministic synthetic parameters (same tensor shapes as the PyTorch module)
#   dw[kh*3+kw, c]  == torch depthwise weight (c, 1, kh, kw)
#   pw[cin, cout]   == torch pointwise weight (cout, cin, 1, 1) transposed
#   linear w[din, dout] == torch Linear.weight transposed
# ----------------------------------------------------------------------------
def init_dsconv_params(key, cin, cout):
    k = jax.random.split(key, 6)
    return {
        "dw": 0.2 * jax.random.normal(k[0], (9, cin), jnp.float32),
        "pw": 0.2 * jax.random.normal(k[1], (cin, cout), jnp.float32),
        "gamma": jax.random.uniform(k[2], (cout,), jnp.float32, 0.5, 1.5),
        "beta": 0.1 * jax.random.normal(k[3], (cout,), jnp.float32),
        "mean": 0.1 * jax.random.normal(k[4], (cout,), jnp.float32),
        "var": jax.random.uniform(k[5], (cout,), jnp.float32, 0.5, 1.5),
    }


def init_linear_params(key, din, dout):
    kw, kb = jax.random.split(key)
    w = (1.0 / jnp.sqrt(din)) * jax.random.normal(kw, (din, dout), jnp.float32)
    b = 0.05 * jax.random.normal(kb, (1, dout), jnp.float32)
    return (w, b)


def init_raw_params(key, backbone_size=9):
    keys = iter(jax.random.split(key, 3 + backbone_size + 3 + 4))
    return {
        "conv1": init_dsconv_params(next(keys), 1, 8),
        "conv2": init_dsconv_params(next(keys), 8, 16),
        "conv3": init_dsconv_params(next(keys), 16, 32),
        "backbone": [init_dsconv_params(next(keys), 32, 32)
                     for _ in range(backbone_size)],
        "classifier": [init_linear_params(next(keys), 512, 128),
                       init_linear_params(next(keys), 128, 32),
                       init_linear_params(next(keys), 32, 1)],
        "segmenter": [init_linear_params(next(keys), 512, 512),
                      init_linear_params(next(keys), 512, 128),
                      init_linear_params(next(keys), 128, 32),
                      init_linear_params(next(keys), 32, 3)],
    }


def _fold_bn(p, eps=1e-5):
    scale = p["gamma"] / jnp.sqrt(p["var"] + eps)
    shift = p["beta"] - p["mean"] * scale
    return scale, shift


def pack_params(raw):
    """Re-lay the PyTorch-shaped parameters into the forms the fused kernel eats."""
    f32, bf16 = jnp.float32, jnp.bfloat16

    # --- conv1: fold the 3 horizontal taps of each kernel row into a banded,
    #     per-image block-diagonal (kron) 128x128 matrix (right matmul).
    c1 = raw["conv1"]
    dw1 = c1["dw"][:, 0]                                      # (9,)
    band = [dw1[kh * 3 + 0] * jnp.eye(32, k=1, dtype=f32)
            + dw1[kh * 3 + 1] * jnp.eye(32, dtype=f32)
            + dw1[kh * 3 + 2] * jnp.eye(32, k=-1, dtype=f32) for kh in range(3)]
    K1 = jnp.stack([jnp.kron(jnp.eye(TB, dtype=f32), b) for b in band])        # (3,128,128)
    R1 = (jnp.arange(32)[None, :] == 2 * jnp.arange(16)[:, None]).astype(f32)  # (16,32)
    # CEW[l, tb*128 + w*8 + c] = 1 iff l == tb*32 + 2*w  (decimate cols + expand to 8 ch)
    li = jnp.arange(128)[:, None]
    o = jnp.arange(512)[None, :]
    CEW = (li == (o // 128) * 32 + 2 * ((o % 128) // 8)).astype(f32)           # (128,512)
    s1, t1 = _fold_bn(c1)
    AB1 = jnp.stack([jnp.tile(c1["pw"][0, :] * s1, TB * 16),
                     jnp.tile(t1, TB * 16)]).astype(f32)                       # (2,512)

    # --- conv2 / conv3 / backbone in (TB*H, W*C) layout
    def conv_pack(p, W):
        cin, cout = p["pw"].shape
        dwt = jnp.tile(p["dw"], (1, W))                       # (9, W*cin), lane = w*cin + c
        wl = jnp.arange(W * cin) // cin
        colmask = jnp.stack([((wl + (k % 3 - 1)) >= 0) & ((wl + (k % 3 - 1)) < W)
                             for k in range(9)]).astype(f32)  # fold col validity into taps
        wbd = jnp.kron(jnp.eye(W, dtype=f32), p["pw"]).astype(bf16)
        s, t = _fold_bn(p)
        ss = jnp.stack([jnp.tile(s, W), jnp.tile(t, W)]).astype(f32)
        return (dwt * colmask).astype(f32), wbd, ss

    def rsel_mat(ht):                                         # per-image even-row selector
        return (jnp.arange(ht)[None, :] == 2 * jnp.arange(ht // 2)[:, None]).astype(f32)

    def peo_mat(W, C):                                        # even / odd column selectors
        a = jnp.arange(W * C)
        b = jnp.arange((W // 2) * C)
        same_c = a[:, None] % C == b[None, :] % C
        pe = (same_c & (a[:, None] // C == 2 * (b[None, :] // C))).astype(f32)
        po = (same_c & (a[:, None] // C == 2 * (b[None, :] // C) + 1)).astype(f32)
        return jnp.stack([pe, po])                            # (2, W*C, W*C/2)

    DWT2, WBD2, SS2 = conv_pack(raw["conv2"], 16)
    RS2, PEO2 = rsel_mat(TB * 16), peo_mat(16, 16)
    DWT3, WBD3, SS3 = conv_pack(raw["conv3"], 8)
    RS3, PEO3 = rsel_mat(TB * 8), peo_mat(8, 32)

    bb = [conv_pack(p, 4) for p in raw["backbone"]]
    DWTB = jnp.stack([t[0] for t in bb])                      # (9, 9, 128)
    WBDB = jnp.stack([t[1] for t in bb])                      # (9, 128, 128) bf16
    SSB = jnp.stack([t[2] for t in bb])                       # (9, 2, 128)

    # --- heads: per-h row gather selectors + fused first layer (rows permuted
    #     from torch (c,h,w) feature order to kernel (h,w,c) order), bf16 weights.
    SELH = (jnp.arange(TB * 4)[None, None, :] ==
            (jnp.arange(TB)[None, :, None] * 4
             + jnp.arange(4)[:, None, None])).astype(f32)     # (4, TB, 16)

    def permute_rows(w):                                      # (512, dout)
        f = jnp.arange(512)
        h, wsp, c = f // 128, (f % 128) // 32, f % 32
        return w[c * 16 + h * 4 + wsp, :]

    (wc1, bc1), (wc2, bc2), (wc3, bc3) = raw["classifier"]
    (ws1, bs1), (ws2, bs2), (ws3, bs3), (ws4, bs4) = raw["segmenter"]
    W1CAT = jnp.concatenate([permute_rows(wc1), permute_rows(ws1)], axis=1).astype(bf16)
    B1CAT = jnp.concatenate([bc1, bs1], axis=1).astype(f32)   # (1, 640)
    WFIN = jnp.zeros((2, 32, 128), f32)
    WFIN = WFIN.at[0, :, 0].set(wc3[:, 0]).at[1, :, 1:4].set(ws4).astype(bf16)
    BFIN = jnp.zeros((1, 128), f32).at[0, 0].set(bc3[0, 0]).at[0, 1:4].set(bs4[0])

    return [
        K1, R1, CEW, AB1,
        DWT2, WBD2, SS2, RS2, PEO2,
        DWT3, WBD3, SS3, RS3, PEO3,
        DWTB, WBDB, SSB,
        SELH, W1CAT, B1CAT, wc2.astype(bf16), bc2,
        ws2.astype(bf16), bs2, ws3.astype(bf16), bs3, WFIN, BFIN,
    ]


# ----------------------------------------------------------------------------
# full forward pass: ONE pallas_call, TB images per grid step
# ----------------------------------------------------------------------------
def forward(packed, x_nchw):
    B = x_nchw.shape[0]
    Bp = ((B + TB - 1) // TB) * TB
    x = x_nchw.reshape(B, 32, 32)
    if Bp != B:
        x = jnp.pad(x, ((0, Bp - B), (0, 0), (0, 0)))
    nb = Bp // TB
    # layout plumbing only: lane-pack TB images per grid step -> (nb, 32, TB*32)
    xp = x.reshape(nb, TB, 32, 32).transpose(0, 2, 1, 3).reshape(nb, 32, TB * 32)

    in_specs = [pl.BlockSpec((None, 32, TB * 32), lambda b: (b, 0, 0))]
    in_specs += [pl.BlockSpec(a.shape, lambda b, nd=a.ndim: (0,) * nd)
                 for a in packed]                             # weights: grid-invariant

    out = pl.pallas_call(
        _fused_kernel,
        grid=(nb,),
        out_shape=jax.ShapeDtypeStruct((nb, TB, 128), jnp.float32),
        in_specs=in_specs,
        out_specs=pl.BlockSpec((None, TB, 128), lambda b: (b, 0, 0)),
        compiler_params=pltpu.CompilerParams(
            dimension_semantics=("parallel",),                # >=2 steps feed both v7x TCs
            vmem_limit_bytes=32 * 1024 * 1024),
    )(xp, *packed)

    slab = out.reshape(Bp, 128)                               # [cls | seg0..2 | pad]
    return slab[:B, 0:1], slab[:B, 1:4]


if __name__ == "__main__":
    key = jax.random.PRNGKey(0)
    kx, kp = jax.random.split(key)
    # BallPerceptor implies 32x32 single-channel inputs (3 pools -> 4x4 features).
    # batch = 8 -> 2 images-groups of TB=4 -> grid=(2,) (one step per v7x TC).
    B = 8
    x = jax.random.normal(kx, (B, 1, 32, 32), jnp.float32)    # NCHW, like PyTorch
    raw = init_raw_params(kp, backbone_size=9)
    packed = pack_params(raw)

    cls_out, seg_out = jax.jit(forward)(packed, x)
    jax.block_until_ready((cls_out, seg_out))
    assert cls_out.shape == (B, 1) and seg_out.shape == (B, 3)
    assert bool(jnp.all(jnp.isfinite(cls_out))) and bool(jnp.all(jnp.isfinite(seg_out)))
    assert bool(jnp.all((cls_out >= 0.0) & (cls_out <= 1.0)))  # sigmoid range
    print("KERNEL_OK")
</pallas_src>

<mosaic_0001>
module attributes {stable_mosaic.version = 11 : i64} {
  func.func @_fused_kernel(%arg0: i32, %arg1: memref<1x32x128xf32, #tpu.memory_space<vmem>>, %arg2: memref<3x128x128xf32, #tpu.memory_space<vmem>>, %arg3: memref<16x32xf32, #tpu.memory_space<vmem>>, %arg4: memref<128x512xf32, #tpu.memory_space<vmem>>, %arg5: memref<2x512xf32, #tpu.memory_space<vmem>>, %arg6: memref<9x128xf32, #tpu.memory_space<vmem>>, %arg7: memref<128x256xbf16, #tpu.memory_space<vmem>>, %arg8: memref<2x256xf32, #tpu.memory_space<vmem>>, %arg9: memref<32x64xf32, #tpu.memory_space<vmem>>, %arg10: memref<2x256x128xf32, #tpu.memory_space<vmem>>, %arg11: memref<9x128xf32, #tpu.memory_space<vmem>>, %arg12: memref<128x256xbf16, #tpu.memory_space<vmem>>, %arg13: memref<2x256xf32, #tpu.memory_space<vmem>>, %arg14: memref<16x32xf32, #tpu.memory_space<vmem>>, %arg15: memref<2x256x128xf32, #tpu.memory_space<vmem>>, %arg16: memref<9x9x128xf32, #tpu.memory_space<vmem>>, %arg17: memref<9x128x128xbf16, #tpu.memory_space<vmem>>, %arg18: memref<9x2x128xf32, #tpu.memory_space<vmem>>, %arg19: memref<4x4x16xf32, #tpu.memory_space<vmem>>, %arg20: memref<512x640xbf16, #tpu.memory_space<vmem>>, %arg21: memref<1x640xf32, #tpu.memory_space<vmem>>, %arg22: memref<128x32xbf16, #tpu.memory_space<vmem>>, %arg23: memref<1x32xf32, #tpu.memory_space<vmem>>, %arg24: memref<512x128xbf16, #tpu.memory_space<vmem>>, %arg25: memref<1x128xf32, #tpu.memory_space<vmem>>, %arg26: memref<128x32xbf16, #tpu.memory_space<vmem>>, %arg27: memref<1x32xf32, #tpu.memory_space<vmem>>, %arg28: memref<2x32x128xbf16, #tpu.memory_space<vmem>>, %arg29: memref<1x128xf32, #tpu.memory_space<vmem>>, %arg30: memref<1x4x128xf32, #tpu.memory_space<vmem>>) attributes {dimension_semantics = [#tpu.dimension_semantics<parallel>], iteration_bounds = array<i64: 2>, scalar_prefetch = 0 : i64, scratch_operands = 0 : i64, tpu.core_type = #tpu.core_type<tc>, window_params = [{transform_indices = @transform_0, window_bounds = array<i64: 1, 32, 128>}, {pipeline_mode = #tpu.pipeline_mode<synchronous>, transform_indices = @transform_1, window_bounds = array<i64: 3, 128, 128>}, {pipeline_mode = #tpu.pipeline_mode<synchronous>, transform_indices = @transform_2, window_bounds = array<i64: 16, 32>}, {pipeline_mode = #tpu.pipeline_mode<synchronous>, transform_indices = @transform_3, window_bounds = array<i64: 128, 512>}, {pipeline_mode = #tpu.pipeline_mode<synchronous>, transform_indices = @transform_4, window_bounds = array<i64: 2, 512>}, {pipeline_mode = #tpu.pipeline_mode<synchronous>, transform_indices = @transform_5, window_bounds = array<i64: 9, 128>}, {pipeline_mode = #tpu.pipeline_mode<synchronous>, transform_indices = @transform_6, window_bounds = array<i64: 128, 256>}, {pipeline_mode = #tpu.pipeline_mode<synchronous>, transform_indices = @transform_7, window_bounds = array<i64: 2, 256>}, {pipeline_mode = #tpu.pipeline_mode<synchronous>, transform_indices = @transform_8, window_bounds = array<i64: 32, 64>}, {pipeline_mode = #tpu.pipeline_mode<synchronous>, transform_indices = @transform_9, window_bounds = array<i64: 2, 256, 128>}, {pipeline_mode = #tpu.pipeline_mode<synchronous>, transform_indices = @transform_10, window_bounds = array<i64: 9, 128>}, {pipeline_mode = #tpu.pipeline_mode<synchronous>, transform_indices = @transform_11, window_bounds = array<i64: 128, 256>}, {pipeline_mode = #tpu.pipeline_mode<synchronous>, transform_indices = @transform_12, window_bounds = array<i64: 2, 256>}, {pipeline_mode = #tpu.pipeline_mode<synchronous>, transform_indices = @transform_13, window_bounds = array<i64: 16, 32>}, {pipeline_mode = #tpu.pipeline_mode<synchronous>, transform_indices = @transform_14, window_bounds = array<i64: 2, 256, 128>}, {pipeline_mode = #tpu.pipeline_mode<synchronous>, transform_indices = @transform_15, window_bounds = array<i64: 9, 9, 128>}, {pipeline_mode = #tpu.pipeline_mode<synchronous>, transform_indices = @transform_16, window_bounds = array<i64: 9, 128, 128>}, {pipeline_mode = #tpu.pipeline_mode<synchronous>, transform_indices = @transform_17, window_bounds = array<i64: 9, 2, 128>}, {pipeline_mode = #tpu.pipeline_mode<synchronous>, transform_indices = @transform_18, window_bounds = array<i64: 4, 4, 16>}, {pipeline_mode = #tpu.pipeline_mode<synchronous>, transform_indices = @transform_19, window_bounds = array<i64: 512, 640>}, {pipeline_mode = #tpu.pipeline_mode<synchronous>, transform_indices = @transform_20, window_bounds = array<i64: 1, 640>}, {pipeline_mode = #tpu.pipeline_mode<synchronous>, transform_indices = @transform_21, window_bounds = array<i64: 128, 32>}, {pipeline_mode = #tpu.pipeline_mode<synchronous>, transform_indices = @transform_22, window_bounds = array<i64: 1, 32>}, {pipeline_mode = #tpu.pipeline_mode<synchronous>, transform_indices = @transform_23, window_bounds = array<i64: 512, 128>}, {pipeline_mode = #tpu.pipeline_mode<synchronous>, transform_indices = @transform_24, window_bounds = array<i64: 1, 128>}, {pipeline_mode = #tpu.pipeline_mode<synchronous>, transform_indices = @transform_25, window_bounds = array<i64: 128, 32>}, {pipeline_mode = #tpu.pipeline_mode<synchronous>, transform_indices = @transform_26, window_bounds = array<i64: 1, 32>}, {pipeline_mode = #tpu.pipeline_mode<synchronous>, transform_indices = @transform_27, window_bounds = array<i64: 2, 32, 128>}, {pipeline_mode = #tpu.pipeline_mode<synchronous>, transform_indices = @transform_28, window_bounds = array<i64: 1, 128>}, {transform_indices = @transform_29, window_bounds = array<i64: 1, 4, 128>}]} {
    %c0 = arith.constant 0 : index
    %c0_0 = arith.constant 0 : index
    %c0_1 = arith.constant 0 : index
    %0 = vector.load %arg1[%c0, %c0_0, %c0_1] : memref<1x32x128xf32, #tpu.memory_space<vmem>>, vector<1x32x128xf32>
    %1 = vector.shape_cast %0 : vector<1x32x128xf32> to vector<32x128xf32>
    %2 = tpu.iota {dimensions = array<i32: 0>} : vector<32x1xi32>
    %c1_i32 = arith.constant 1 : i32
    %3 = vector.broadcast %c1_i32 : i32 to vector<32x1xi32>
    %4 = arith.cmpi sge, %2, %3 : vector<32x1xi32>
    %c1_i32_2 = arith.constant 1 : i32
    %5 = tpu.dynamic_rotate %1 by %c1_i32_2 dim 0 : vector<32x128xf32>, i32 -> vector<32x128xf32>
    %cst = arith.constant 0.000000e+00 : f32
    %6 = vector.shape_cast %4 : vector<32x1xi1> to vector<32x1xi1>
    %7 = vector.broadcast %6 : vector<32x1xi1> to vector<32x128xi1>
    %8 = vector.broadcast %cst : f32 to vector<32x128xf32>
    %9 = arith.select %7, %5, %8 : vector<32x128xi1>, vector<32x128xf32>
    %c30_i32 = arith.constant 30 : i32
    %10 = vector.broadcast %c30_i32 : i32 to vector<32x1xi32>
    %11 = arith.cmpi sle, %2, %10 : vector<32x1xi32>
    %c31_i32 = arith.constant 31 : i32
    %12 = tpu.dynamic_rotate %1 by %c31_i32 dim 0 : vector<32x128xf32>, i32 -> vector<32x128xf32>
    %cst_3 = arith.constant 0.000000e+00 : f32
    %13 = vector.shape_cast %11 : vector<32x1xi1> to vector<32x1xi1>
    %14 = vector.broadcast %13 : vector<32x1xi1> to vector<32x128xi1>
    %15 = vector.broadcast %cst_3 : f32 to vector<32x128xf32>
    %16 = arith.select %14, %12, %15 : vector<32x128xi1>, vector<32x128xf32>
    %c0_4 = arith.constant 0 : index
    %c0_5 = arith.constant 0 : index
    %c0_6 = arith.constant 0 : index
    %17 = vector.load %arg2[%c0_4, %c0_5, %c0_6] : memref<3x128x128xf32, #tpu.memory_space<vmem>>, vector<1x128x128xf32>
    %18 = vector.shape_cast %17 : vector<1x128x128xf32> to vector<128x128xf32>
    %cst_7 = arith.constant dense<0.000000e+00> : vector<32x128xf32>
    %19 = tpu.matmul %9, %18, %cst_7 {dimension_numbers = #tpu.dot_dimension_numbers<[1], [0], [0], [1], [0, 0, 1, 1], [], []>} : vector<32x128xf32>, vector<128x128xf32>, vector<32x128xf32> -> vector<32x128xf32>
    %c1 = arith.constant 1 : index
    %c0_8 = arith.constant 0 : index
    %c0_9 = arith.constant 0 : index
    %20 = vector.load %arg2[%c1, %c0_8, %c0_9] : memref<3x128x128xf32, #tpu.memory_space<vmem>>, vector<1x128x128xf32>
    %21 = vector.shape_cast %20 : vector<1x128x128xf32> to vector<128x128xf32>
    %cst_10 = arith.constant dense<0.000000e+00> : vector<32x128xf32>
    %22 = tpu.matmul %1, %21, %cst_10 {dimension_numbers = #tpu.dot_dimension_numbers<[1], [0], [0], [1], [0, 0, 1, 1], [], []>} : vector<32x128xf32>, vector<128x128xf32>, vector<32x128xf32> -> vector<32x128xf32>
    %23 = arith.addf %19, %22 : vector<32x128xf32>
    %c2 = arith.constant 2 : index
    %c0_11 = arith.constant 0 : index
    %c0_12 = arith.constant 0 : index
    %24 = vector.load %arg2[%c2, %c0_11, %c0_12] : memref<3x128x128xf32, #tpu.memory_space<vmem>>, vector<1x128x128xf32>
    %25 = vector.shape_cast %24 : vector<1x128x128xf32> to vector<128x128xf32>
    %cst_13 = arith.constant dense<0.000000e+00> : vector<32x128xf32>
    %26 = tpu.matmul %16, %25, %cst_13 {dimension_numbers = #tpu.dot_dimension_numbers<[1], [0], [0], [1], [0, 0, 1, 1], [], []>} : vector<32x128xf32>, vector<128x128xf32>, vector<32x128xf32> -> vector<32x128xf32>
    %27 = arith.addf %23, %26 : vector<32x128xf32>
    %c127_i32 = arith.constant 127 : i32
    %28 = tpu.dynamic_rotate %27 by %c127_i32 dim 1 : vector<32x128xf32>, i32 -> vector<32x128xf32>
    %29 = arith.maximumf %27, %28 : vector<32x128xf32>
    %30 = arith.minimumf %27, %28 : vector<32x128xf32>
    %c31_i32_14 = arith.constant 31 : i32
    %31 = tpu.dynamic_rotate %29 by %c31_i32_14 dim 0 : vector<32x128xf32>, i32 -> vector<32x128xf32>
    %32 = arith.maximumf %29, %31 : vector<32x128xf32>
    %c31_i32_15 = arith.constant 31 : i32
    %33 = tpu.dynamic_rotate %30 by %c31_i32_15 dim 0 : vector<32x128xf32>, i32 -> vector<32x128xf32>
    %34 = arith.minimumf %30, %33 : vector<32x128xf32>
    %c0_16 = arith.constant 0 : index
    %c0_17 = arith.constant 0 : index
    %35 = vector.load %arg3[%c0_16, %c0_17] : memref<16x32xf32, #tpu.memory_space<vmem>>, vector<16x32xf32>
    %c0_18 = arith.constant 0 : index
    %c0_19 = arith.constant 0 : index
    %36 = vector.load %arg4[%c0_18, %c0_19] : memref<128x512xf32, #tpu.memory_space<vmem>>, vector<128x512xf32>
    %cst_20 = arith.constant dense<0.000000e+00> : vector<16x128xf32>
    %37 = tpu.matmul %35, %32, %cst_20 {dimension_numbers = #tpu.dot_dimension_numbers<[1], [0], [0], [1], [0, 0, 1, 1], [], []>} : vector<16x32xf32>, vector<32x128xf32>, vector<16x128xf32> -> vector<16x128xf32>
    %cst_21 = arith.constant dense<0.000000e+00> : vector<16x512xf32>
    %38 = tpu.matmul %37, %36, %cst_21 {dimension_numbers = #tpu.dot_dimension_numbers<[1], [0], [0], [1], [0, 0, 1, 1], [], []>} : vector<16x128xf32>, vector<128x512xf32>, vector<16x512xf32> -> vector<16x512xf32>
    %cst_22 = arith.constant dense<0.000000e+00> : vector<16x128xf32>
    %39 = tpu.matmul %35, %34, %cst_22 {dimension_numbers = #tpu.dot_dimension_numbers<[1], [0], [0], [1], [0, 0, 1, 1], [], []>} : vector<16x32xf32>, vector<32x128xf32>, vector<16x128xf32> -> vector<16x128xf32>
    %cst_23 = arith.constant dense<0.000000e+00> : vector<16x512xf32>
    %40 = tpu.matmul %39, %36, %cst_23 {dimension_numbers = #tpu.dot_dimension_numbers<[1], [0], [0], [1], [0, 0, 1, 1], [], []>} : vector<16x128xf32>, vector<128x512xf32>, vector<16x512xf32> -> vector<16x512xf32>
    %c0_24 = arith.constant 0 : index
    %c0_25 = arith.constant 0 : index
    %41 = vector.load %arg5[%c0_24, %c0_25] : memref<2x512xf32, #tpu.memory_space<vmem>>, vector<2x512xf32>
    %42 = vector.extract_strided_slice %41 {offsets = [0, 0], sizes = [1, 512], strides = [1, 1]} : vector<2x512xf32> to vector<1x512xf32>
    %43 = vector.extract_strided_slice %41 {offsets = [1, 0], sizes = [1, 512], strides = [1, 1]} : vector<2x512xf32> to vector<1x512xf32>
    %cst_26 = arith.constant 0.000000e+00 : f32
    %44 = vector.broadcast %cst_26 : f32 to vector<1x512xf32>
    %45 = arith.cmpf oge, %42, %44 : vector<1x512xf32>
    %46 = vector.shape_cast %45 : vector<1x512xi1> to vector<1x512xi1>
    %47 = vector.broadcast %46 : vector<1x512xi1> to vector<16x512xi1>
    %48 = arith.select %47, %38, %40 : vector<16x512xi1>, vector<16x512xf32>
    %49 = vector.broadcast %42 : vector<1x512xf32> to vector<16x512xf32>
    %50 = arith.mulf %48, %49 : vector<16x512xf32>
    %51 = vector.broadcast %43 : vector<1x512xf32> to vector<16x512xf32>
    %52 = arith.addf %50, %51 : vector<16x512xf32>
    %cst_27 = arith.constant 0.000000e+00 : f32
    %53 = vector.broadcast %cst_27 : f32 to vector<16x512xf32>
    %54 = arith.maximumf %52, %53 : vector<16x512xf32>
    %55 = vector.extract_strided_slice %54 {offsets = [0, 0], sizes = [16, 128], strides = [1, 1]} : vector<16x512xf32> to vector<16x128xf32>
    %56 = vector.extract_strided_slice %54 {offsets = [0, 128], sizes = [16, 128], strides = [1, 1]} : vector<16x512xf32> to vector<16x128xf32>
    %57 = vector.extract_strided_slice %54 {offsets = [0, 256], sizes = [16, 128], strides = [1, 1]} : vector<16x512xf32> to vector<16x128xf32>
    %58 = vector.extract_strided_slice %54 {offsets = [0, 384], sizes = [16, 128], strides = [1, 1]} : vector<16x512xf32> to vector<16x128xf32>
    %59 = tpu.concatenate %55, %56, %57, %58 in 0 : vector<16x128xf32>, vector<16x128xf32>, vector<16x128xf32>, vector<16x128xf32> -> vector<64x128xf32>
    %60 = tpu.iota {dimensions = array<i32: 0>} : vector<64x1xi32>
    %c16_i32 = arith.constant 16 : i32
    %c0_i32 = arith.constant 0 : i32
    %61 = arith.cmpi eq, %c16_i32, %c0_i32 : i32
    %c1_i32_28 = arith.constant 1 : i32
    %62 = arith.select %61, %c1_i32_28, %c16_i32 : i32
    %63 = vector.broadcast %62 : i32 to vector<64x1xi32>
    %64 = arith.remsi %60, %63 : vector<64x1xi32>
    %c0_i32_29 = arith.constant 0 : i32
    %65 = vector.broadcast %c0_i32_29 : i32 to vector<64x1xi32>
    %66 = arith.cmpi ne, %64, %65 : vector<64x1xi32>
    %c0_i32_30 = arith.constant 0 : i32
    %67 = vector.broadcast %c0_i32_30 : i32 to vector<64x1xi32>
    %68 = arith.cmpi slt, %64, %67 : vector<64x1xi32>
    %c0_i32_31 = arith.constant 0 : i32
    %69 = arith.cmpi slt, %62, %c0_i32_31 : i32
    %70 = vector.broadcast %69 : i1 to vector<64x1xi1>
    %71 = vector.broadcast %70 : vector<64x1xi1> to vector<64x1xi1>
    %72 = arith.xori %68, %71 : vector<64x1xi1>
    %73 = arith.andi %72, %66 : vector<64x1xi1>
    %74 = vector.broadcast %62 : i32 to vector<64x1xi32>
    %75 = arith.addi %64, %74 : vector<64x1xi32>
    %76 = arith.select %73, %75, %64 : vector<64x1xi1>, vector<64x1xi32>
    %c1_i32_32 = arith.constant 1 : i32
    %77 = vector.broadcast %c1_i32_32 : i32 to vector<64x1xi32>
    %78 = arith.cmpi sge, %76, %77 : vector<64x1xi32>
    %c14_i32 = arith.constant 14 : i32
    %79 = vector.broadcast %c14_i32 : i32 to vector<64x1xi32>
    %80 = arith.cmpi sle, %76, %79 : vector<64x1xi32>
    %c0_33 = arith.constant 0 : index
    %c0_34 = arith.constant 0 : index
    %81 = vector.load %arg6[%c0_33, %c0_34] : memref<9x128xf32, #tpu.memory_space<vmem>>, vector<9x128xf32>
    %c0_35 = arith.constant 0 : index
    %c0_36 = arith.constant 0 : index
    %82 = vector.load %arg7[%c0_35, %c0_36] : memref<128x256xbf16, #tpu.memory_space<vmem>>, vector<128x256xbf16>
    %c0_37 = arith.constant 0 : index
    %c0_38 = arith.constant 0 : index
    %83 = vector.load %arg8[%c0_37, %c0_38] : memref<2x256xf32, #tpu.memory_space<vmem>>, vector<2x256xf32>
    %c1_i32_39 = arith.constant 1 : i32
    %84 = tpu.dynamic_rotate %59 by %c1_i32_39 dim 0 : vector<64x128xf32>, i32 -> vector<64x128xf32>
    %cst_40 = arith.constant 0.000000e+00 : f32
    %85 = vector.shape_cast %78 : vector<64x1xi1> to vector<64x1xi1>
    %86 = vector.broadcast %85 : vector<64x1xi1> to vector<64x128xi1>
    %87 = vector.broadcast %cst_40 : f32 to vector<64x128xf32>
    %88 = arith.select %86, %84, %87 : vector<64x128xi1>, vector<64x128xf32>
    %c63_i32 = arith.constant 63 : i32
    %89 = tpu.dynamic_rotate %59 by %c63_i32 dim 0 : vector<64x128xf32>, i32 -> vector<64x128xf32>
    %cst_41 = arith.constant 0.000000e+00 : f32
    %90 = vector.shape_cast %80 : vector<64x1xi1> to vector<64x1xi1>
    %91 = vector.broadcast %90 : vector<64x1xi1> to vector<64x128xi1>
    %92 = vector.broadcast %cst_41 : f32 to vector<64x128xf32>
    %93 = arith.select %91, %89, %92 : vector<64x128xi1>, vector<64x128xf32>
    %c8_i32 = arith.constant 8 : i32
    %94 = tpu.dynamic_rotate %88 by %c8_i32 dim 1 : vector<64x128xf32>, i32 -> vector<64x128xf32>
    %c120_i32 = arith.constant 120 : i32
    %95 = tpu.dynamic_rotate %88 by %c120_i32 dim 1 : vector<64x128xf32>, i32 -> vector<64x128xf32>
    %96 = vector.extract_strided_slice %81 {offsets = [0, 0], sizes = [1, 128], strides = [1, 1]} : vector<9x128xf32> to vector<1x128xf32>
    %97 = vector.broadcast %96 : vector<1x128xf32> to vector<64x128xf32>
    %98 = arith.mulf %94, %97 : vector<64x128xf32>
    %99 = vector.extract_strided_slice %81 {offsets = [1, 0], sizes = [1, 128], strides = [1, 1]} : vector<9x128xf32> to vector<1x128xf32>
    %100 = vector.broadcast %99 : vector<1x128xf32> to vector<64x128xf32>
    %101 = arith.mulf %88, %100 : vector<64x128xf32>
    %102 = arith.addf %98, %101 : vector<64x128xf32>
    %103 = vector.extract_strided_slice %81 {offsets = [2, 0], sizes = [1, 128], strides = [1, 1]} : vector<9x128xf32> to vector<1x128xf32>
    %104 = vector.broadcast %103 : vector<1x128xf32> to vector<64x128xf32>
    %105 = arith.mulf %95, %104 : vector<64x128xf32>
    %106 = arith.addf %102, %105 : vector<64x128xf32>
    %c8_i32_42 = arith.constant 8 : i32
    %107 = tpu.dynamic_rotate %59 by %c8_i32_42 dim 1 : vector<64x128xf32>, i32 -> vector<64x128xf32>
    %c120_i32_43 = arith.constant 120 : i32
    %108 = tpu.dynamic_rotate %59 by %c120_i32_43 dim 1 : vector<64x128xf32>, i32 -> vector<64x128xf32>
    %109 = vector.extract_strided_slice %81 {offsets = [3, 0], sizes = [1, 128], strides = [1, 1]} : vector<9x128xf32> to vector<1x128xf32>
    %110 = vector.broadcast %109 : vector<1x128xf32> to vector<64x128xf32>
    %111 = arith.mulf %107, %110 : vector<64x128xf32>
    %112 = vector.extract_strided_slice %81 {offsets = [4, 0], sizes = [1, 128], strides = [1, 1]} : vector<9x128xf32> to vector<1x128xf32>
    %113 = vector.broadcast %112 : vector<1x128xf32> to vector<64x128xf32>
    %114 = arith.mulf %59, %113 : vector<64x128xf32>
    %115 = arith.addf %111, %114 : vector<64x128xf32>
    %116 = vector.extract_strided_slice %81 {offsets = [5, 0], sizes = [1, 128], strides = [1, 1]} : vector<9x128xf32> to vector<1x128xf32>
    %117 = vector.broadcast %116 : vector<1x128xf32> to vector<64x128xf32>
    %118 = arith.mulf %108, %117 : vector<64x128xf32>
    %119 = arith.addf %115, %118 : vector<64x128xf32>
    %120 = arith.addf %106, %119 : vector<64x128xf32>
    %c8_i32_44 = arith.constant 8 : i32
    %121 = tpu.dynamic_rotate %93 by %c8_i32_44 dim 1 : vector<64x128xf32>, i32 -> vector<64x128xf32>
    %c120_i32_45 = arith.constant 120 : i32
    %122 = tpu.dynamic_rotate %93 by %c120_i32_45 dim 1 : vector<64x128xf32>, i32 -> vector<64x128xf32>
    %123 = vector.extract_strided_slice %81 {offsets = [6, 0], sizes = [1, 128], strides = [1, 1]} : vector<9x128xf32> to vector<1x128xf32>
    %124 = vector.broadcast %123 : vector<1x128xf32> to vector<64x128xf32>
    %125 = arith.mulf %121, %124 : vector<64x128xf32>
    %126 = vector.extract_strided_slice %81 {offsets = [7, 0], sizes = [1, 128], strides = [1, 1]} : vector<9x128xf32> to vector<1x128xf32>
    %127 = vector.broadcast %126 : vector<1x128xf32> to vector<64x128xf32>
    %128 = arith.mulf %93, %127 : vector<64x128xf32>
    %129 = arith.addf %125, %128 : vector<64x128xf32>
    %130 = vector.extract_strided_slice %81 {offsets = [8, 0], sizes = [1, 128], strides = [1, 1]} : vector<9x128xf32> to vector<1x128xf32>
    %131 = vector.broadcast %130 : vector<1x128xf32> to vector<64x128xf32>
    %132 = arith.mulf %122, %131 : vector<64x128xf32>
    %133 = arith.addf %129, %132 : vector<64x128xf32>
    %134 = arith.addf %120, %133 : vector<64x128xf32>
    %135 = arith.truncf %134 : vector<64x128xf32> to vector<64x128xbf16>
    %cst_46 = arith.constant dense<0.000000e+00> : vector<64x256xf32>
    %136 = tpu.matmul %135, %82, %cst_46 {dimension_numbers = #tpu.dot_dimension_numbers<[1], [0], [0], [1], [0, 0, 1, 1], [], []>} : vector<64x128xbf16>, vector<128x256xbf16>, vector<64x256xf32> -> vector<64x256xf32>
    %137 = vector.extract_strided_slice %83 {offsets = [0, 0], sizes = [1, 256], strides = [1, 1]} : vector<2x256xf32> to vector<1x256xf32>
    %138 = vector.broadcast %137 : vector<1x256xf32> to vector<64x256xf32>
    %139 = arith.mulf %136, %138 : vector<64x256xf32>
    %140 = vector.extract_strided_slice %83 {offsets = [1, 0], sizes = [1, 256], strides = [1, 1]} : vector<2x256xf32> to vector<1x256xf32>
    %141 = vector.broadcast %140 : vector<1x256xf32> to vector<64x256xf32>
    %142 = arith.addf %139, %141 : vector<64x256xf32>
    %cst_47 = arith.constant 0.000000e+00 : f32
    %143 = vector.broadcast %cst_47 : f32 to vector<64x256xf32>
    %144 = arith.maximumf %142, %143 : vector<64x256xf32>
    %c0_48 = arith.constant 0 : index
    %c0_49 = arith.constant 0 : index
    %145 = vector.load %arg9[%c0_48, %c0_49] : memref<32x64xf32, #tpu.memory_space<vmem>>, vector<32x64xf32>
    %c0_50 = arith.constant 0 : index
    %c0_51 = arith.constant 0 : index
    %c0_52 = arith.constant 0 : index
    %146 = vector.load %arg10[%c0_50, %c0_51, %c0_52] : memref<2x256x128xf32, #tpu.memory_space<vmem>>, vector<1x256x128xf32>
    %147 = vector.shape_cast %146 : vector<1x256x128xf32> to vector<256x128xf32>
    %c1_53 = arith.constant 1 : index
    %c0_54 = arith.constant 0 : index
    %c0_55 = arith.constant 0 : index
    %148 = vector.load %arg10[%c1_53, %c0_54, %c0_55] : memref<2x256x128xf32, #tpu.memory_space<vmem>>, vector<1x256x128xf32>
    %149 = vector.shape_cast %148 : vector<1x256x128xf32> to vector<256x128xf32>
    %c63_i32_56 = arith.constant 63 : i32
    %150 = tpu.dynamic_rotate %144 by %c63_i32_56 dim 0 : vector<64x256xf32>, i32 -> vector<64x256xf32>
    %151 = arith.maximumf %144, %150 : vector<64x256xf32>
    %cst_57 = arith.constant dense<0.000000e+00> : vector<32x256xf32>
    %152 = tpu.matmul %145, %151, %cst_57 {dimension_numbers = #tpu.dot_dimension_numbers<[1], [0], [0], [1], [0, 0, 1, 1], [], []>} : vector<32x64xf32>, vector<64x256xf32>, vector<32x256xf32> -> vector<32x256xf32>
    %cst_58 = arith.constant dense<0.000000e+00> : vector<32x128xf32>
    %153 = tpu.matmul %152, %147, %cst_58 {dimension_numbers = #tpu.dot_dimension_numbers<[1], [0], [0], [1], [0, 0, 1, 1], [], []>} : vector<32x256xf32>, vector<256x128xf32>, vector<32x128xf32> -> vector<32x128xf32>
    %cst_59 = arith.constant dense<0.000000e+00> : vector<32x128xf32>
    %154 = tpu.matmul %152, %149, %cst_59 {dimension_numbers = #tpu.dot_dimension_numbers<[1], [0], [0], [1], [0, 0, 1, 1], [], []>} : vector<32x256xf32>, vector<256x128xf32>, vector<32x128xf32> -> vector<32x128xf32>
    %155 = arith.maximumf %153, %154 : vector<32x128xf32>
    %156 = tpu.iota {dimensions = array<i32: 0>} : vector<32x1xi32>
    %c8_i32_60 = arith.constant 8 : i32
    %c0_i32_61 = arith.constant 0 : i32
    %157 = arith.cmpi eq, %c8_i32_60, %c0_i32_61 : i32
    %c1_i32_62 = arith.constant 1 : i32
    %158 = arith.select %157, %c1_i32_62, %c8_i32_60 : i32
    %159 = vector.broadcast %158 : i32 to vector<32x1xi32>
    %160 = arith.remsi %156, %159 : vector<32x1xi32>
    %c0_i32_63 = arith.constant 0 : i32
    %161 = vector.broadcast %c0_i32_63 : i32 to vector<32x1xi32>
    %162 = arith.cmpi ne, %160, %161 : vector<32x1xi32>
    %c0_i32_64 = arith.constant 0 : i32
    %163 = vector.broadcast %c0_i32_64 : i32 to vector<32x1xi32>
    %164 = arith.cmpi slt, %160, %163 : vector<32x1xi32>
    %c0_i32_65 = arith.constant 0 : i32
    %165 = arith.cmpi slt, %158, %c0_i32_65 : i32
    %166 = vector.broadcast %165 : i1 to vector<32x1xi1>
    %167 = vector.broadcast %166 : vector<32x1xi1> to vector<32x1xi1>
    %168 = arith.xori %164, %167 : vector<32x1xi1>
    %169 = arith.andi %168, %162 : vector<32x1xi1>
    %170 = vector.broadcast %158 : i32 to vector<32x1xi32>
    %171 = arith.addi %160, %170 : vector<32x1xi32>
    %172 = arith.select %169, %171, %160 : vector<32x1xi1>, vector<32x1xi32>
    %c1_i32_66 = arith.constant 1 : i32
    %173 = vector.broadcast %c1_i32_66 : i32 to vector<32x1xi32>
    %174 = arith.cmpi sge, %172, %173 : vector<32x1xi32>
    %c6_i32 = arith.constant 6 : i32
    %175 = vector.broadcast %c6_i32 : i32 to vector<32x1xi32>
    %176 = arith.cmpi sle, %172, %175 : vector<32x1xi32>
    %c0_67 = arith.constant 0 : index
    %c0_68 = arith.constant 0 : index
    %177 = vector.load %arg11[%c0_67, %c0_68] : memref<9x128xf32, #tpu.memory_space<vmem>>, vector<9x128xf32>
    %c0_69 = arith.constant 0 : index
    %c0_70 = arith.constant 0 : index
    %178 = vector.load %arg12[%c0_69, %c0_70] : memref<128x256xbf16, #tpu.memory_space<vmem>>, vector<128x256xbf16>
    %c0_71 = arith.constant 0 : index
    %c0_72 = arith.constant 0 : index
    %179 = vector.load %arg13[%c0_71, %c0_72] : memref<2x256xf32, #tpu.memory_space<vmem>>, vector<2x256xf32>
    %c1_i32_73 = arith.constant 1 : i32
    %180 = tpu.dynamic_rotate %155 by %c1_i32_73 dim 0 : vector<32x128xf32>, i32 -> vector<32x128xf32>
    %cst_74 = arith.constant 0.000000e+00 : f32
    %181 = vector.shape_cast %174 : vector<32x1xi1> to vector<32x1xi1>
    %182 = vector.broadcast %181 : vector<32x1xi1> to vector<32x128xi1>
    %183 = vector.broadcast %cst_74 : f32 to vector<32x128xf32>
    %184 = arith.select %182, %180, %183 : vector<32x128xi1>, vector<32x128xf32>
    %c31_i32_75 = arith.constant 31 : i32
    %185 = tpu.dynamic_rotate %155 by %c31_i32_75 dim 0 : vector<32x128xf32>, i32 -> vector<32x128xf32>
    %cst_76 = arith.constant 0.000000e+00 : f32
    %186 = vector.shape_cast %176 : vector<32x1xi1> to vector<32x1xi1>
    %187 = vector.broadcast %186 : vector<32x1xi1> to vector<32x128xi1>
    %188 = vector.broadcast %cst_76 : f32 to vector<32x128xf32>
    %189 = arith.select %187, %185, %188 : vector<32x128xi1>, vector<32x128xf32>
    %c16_i32_77 = arith.constant 16 : i32
    %190 = tpu.dynamic_rotate %184 by %c16_i32_77 dim 1 : vector<32x128xf32>, i32 -> vector<32x128xf32>
    %c112_i32 = arith.constant 112 : i32
    %191 = tpu.dynamic_rotate %184 by %c112_i32 dim 1 : vector<32x128xf32>, i32 -> vector<32x128xf32>
    %192 = vector.extract_strided_slice %177 {offsets = [0, 0], sizes = [1, 128], strides = [1, 1]} : vector<9x128xf32> to vector<1x128xf32>
    %193 = vector.broadcast %192 : vector<1x128xf32> to vector<32x128xf32>
    %194 = arith.mulf %190, %193 : vector<32x128xf32>
    %195 = vector.extract_strided_slice %177 {offsets = [1, 0], sizes = [1, 128], strides = [1, 1]} : vector<9x128xf32> to vector<1x128xf32>
    %196 = vector.broadcast %195 : vector<1x128xf32> to vector<32x128xf32>
    %197 = arith.mulf %184, %196 : vector<32x128xf32>
    %198 = arith.addf %194, %197 : vector<32x128xf32>
    %199 = vector.extract_strided_slice %177 {offsets = [2, 0], sizes = [1, 128], strides = [1, 1]} : vector<9x128xf32> to vector<1x128xf32>
    %200 = vector.broadcast %199 : vector<1x128xf32> to vector<32x128xf32>
    %201 = arith.mulf %191, %200 : vector<32x128xf32>
    %202 = arith.addf %198, %201 : vector<32x128xf32>
    %c16_i32_78 = arith.constant 16 : i32
    %203 = tpu.dynamic_rotate %155 by %c16_i32_78 dim 1 : vector<32x128xf32>, i32 -> vector<32x128xf32>
    %c112_i32_79 = arith.constant 112 : i32
    %204 = tpu.dynamic_rotate %155 by %c112_i32_79 dim 1 : vector<32x128xf32>, i32 -> vector<32x128xf32>
    %205 = vector.extract_strided_slice %177 {offsets = [3, 0], sizes = [1, 128], strides = [1, 1]} : vector<9x128xf32> to vector<1x128xf32>
    %206 = vector.broadcast %205 : vector<1x128xf32> to vector<32x128xf32>
    %207 = arith.mulf %203, %206 : vector<32x128xf32>
    %208 = vector.extract_strided_slice %177 {offsets = [4, 0], sizes = [1, 128], strides = [1, 1]} : vector<9x128xf32> to vector<1x128xf32>
    %209 = vector.broadcast %208 : vector<1x128xf32> to vector<32x128xf32>
    %210 = arith.mulf %155, %209 : vector<32x128xf32>
    %211 = arith.addf %207, %210 : vector<32x128xf32>
    %212 = vector.extract_strided_slice %177 {offsets = [5, 0], sizes = [1, 128], strides = [1, 1]} : vector<9x128xf32> to vector<1x128xf32>
    %213 = vector.broadcast %212 : vector<1x128xf32> to vector<32x128xf32>
    %214 = arith.mulf %204, %213 : vector<32x128xf32>
    %215 = arith.addf %211, %214 : vector<32x128xf32>
    %216 = arith.addf %202, %215 : vector<32x128xf32>
    %c16_i32_80 = arith.constant 16 : i32
    %217 = tpu.dynamic_rotate %189 by %c16_i32_80 dim 1 : vector<32x128xf32>, i32 -> vector<32x128xf32>
    %c112_i32_81 = arith.constant 112 : i32
    %218 = tpu.dynamic_rotate %189 by %c112_i32_81 dim 1 : vector<32x128xf32>, i32 -> vector<32x128xf32>
    %219 = vector.extract_strided_slice %177 {offsets = [6, 0], sizes = [1, 128], strides = [1, 1]} : vector<9x128xf32> to vector<1x128xf32>
    %220 = vector.broadcast %219 : vector<1x128xf32> to vector<32x128xf32>
    %221 = arith.mulf %217, %220 : vector<32x128xf32>
    %222 = vector.extract_strided_slice %177 {offsets = [7, 0], sizes = [1, 128], strides = [1, 1]} : vector<9x128xf32> to vector<1x128xf32>
    %223 = vector.broadcast %222 : vector<1x128xf32> to vector<32x128xf32>
    %224 = arith.mulf %189, %223 : vector<32x128xf32>
    %225 = arith.addf %221, %224 : vector<32x128xf32>
    %226 = vector.extract_strided_slice %177 {offsets = [8, 0], sizes = [1, 128], strides = [1, 1]} : vector<9x128xf32> to vector<1x128xf32>
    %227 = vector.broadcast %226 : vector<1x128xf32> to vector<32x128xf32>
    %228 = arith.mulf %218, %227 : vector<32x128xf32>
    %229 = arith.addf %225, %228 : vector<32x128xf32>
    %230 = arith.addf %216, %229 : vector<32x128xf32>
    %231 = arith.truncf %230 : vector<32x128xf32> to vector<32x128xbf16>
    %cst_82 = arith.constant dense<0.000000e+00> : vector<32x256xf32>
    %232 = tpu.matmul %231, %178, %cst_82 {dimension_numbers = #tpu.dot_dimension_numbers<[1], [0], [0], [1], [0, 0, 1, 1], [], []>} : vector<32x128xbf16>, vector<128x256xbf16>, vector<32x256xf32> -> vector<32x256xf32>
    %233 = vector.extract_strided_slice %179 {offsets = [0, 0], sizes = [1, 256], strides = [1, 1]} : vector<2x256xf32> to vector<1x256xf32>
    %234 = vector.broadcast %233 : vector<1x256xf32> to vector<32x256xf32>
    %235 = arith.mulf %232, %234 : vector<32x256xf32>
    %236 = vector.extract_strided_slice %179 {offsets = [1, 0], sizes = [1, 256], strides = [1, 1]} : vector<2x256xf32> to vector<1x256xf32>
    %237 = vector.broadcast %236 : vector<1x256xf32> to vector<32x256xf32>
    %238 = arith.addf %235, %237 : vector<32x256xf32>
    %cst_83 = arith.constant 0.000000e+00 : f32
    %239 = vector.broadcast %cst_83 : f32 to vector<32x256xf32>
    %240 = arith.maximumf %238, %239 : vector<32x256xf32>
    %c0_84 = arith.constant 0 : index
    %c0_85 = arith.constant 0 : index
    %241 = vector.load %arg14[%c0_84, %c0_85] : memref<16x32xf32, #tpu.memory_space<vmem>>, vector<16x32xf32>
    %c0_86 = arith.constant 0 : index
    %c0_87 = arith.constant 0 : index
    %c0_88 = arith.constant 0 : index
    %242 = vector.load %arg15[%c0_86, %c0_87, %c0_88] : memref<2x256x128xf32, #tpu.memory_space<vmem>>, vector<1x256x128xf32>
    %243 = vector.shape_cast %242 : vector<1x256x128xf32> to vector<256x128xf32>
    %c1_89 = arith.constant 1 : index
    %c0_90 = arith.constant 0 : index
    %c0_91 = arith.constant 0 : index
    %244 = vector.load %arg15[%c1_89, %c0_90, %c0_91] : memref<2x256x128xf32, #tpu.memory_space<vmem>>, vector<1x256x128xf32>
    %245 = vector.shape_cast %244 : vector<1x256x128xf32> to vector<256x128xf32>
    %c31_i32_92 = arith.constant 31 : i32
    %246 = tpu.dynamic_rotate %240 by %c31_i32_92 dim 0 : vector<32x256xf32>, i32 -> vector<32x256xf32>
    %247 = arith.maximumf %240, %246 : vector<32x256xf32>
    %cst_93 = arith.constant dense<0.000000e+00> : vector<16x256xf32>
    %248 = tpu.matmul %241, %247, %cst_93 {dimension_numbers = #tpu.dot_dimension_numbers<[1], [0], [0], [1], [0, 0, 1, 1], [], []>} : vector<16x32xf32>, vector<32x256xf32>, vector<16x256xf32> -> vector<16x256xf32>
    %cst_94 = arith.constant dense<0.000000e+00> : vector<16x128xf32>
    %249 = tpu.matmul %248, %243, %cst_94 {dimension_numbers = #tpu.dot_dimension_numbers<[1], [0], [0], [1], [0, 0, 1, 1], [], []>} : vector<16x256xf32>, vector<256x128xf32>, vector<16x128xf32> -> vector<16x128xf32>
    %cst_95 = arith.constant dense<0.000000e+00> : vector<16x128xf32>
    %250 = tpu.matmul %248, %245, %cst_95 {dimension_numbers = #tpu.dot_dimension_numbers<[1], [0], [0], [1], [0, 0, 1, 1], [], []>} : vector<16x256xf32>, vector<256x128xf32>, vector<16x128xf32> -> vector<16x128xf32>
    %251 = arith.maximumf %249, %250 : vector<16x128xf32>
    %252 = tpu.iota {dimensions = array<i32: 0>} : vector<16x1xi32>
    %c4_i32 = arith.constant 4 : i32
    %c0_i32_96 = arith.constant 0 : i32
    %253 = arith.cmpi eq, %c4_i32, %c0_i32_96 : i32
    %c1_i32_97 = arith.constant 1 : i32
    %254 = arith.select %253, %c1_i32_97, %c4_i32 : i32
    %255 = vector.broadcast %254 : i32 to vector<16x1xi32>
    %256 = arith.remsi %252, %255 : vector<16x1xi32>
    %c0_i32_98 = arith.constant 0 : i32
    %257 = vector.broadcast %c0_i32_98 : i32 to vector<16x1xi32>
    %258 = arith.cmpi ne, %256, %257 : vector<16x1xi32>
    %c0_i32_99 = arith.constant 0 : i32
    %259 = vector.broadcast %c0_i32_99 : i32 to vector<16x1xi32>
    %260 = arith.cmpi slt, %256, %259 : vector<16x1xi32>
    %c0_i32_100 = arith.constant 0 : i32
    %261 = arith.cmpi slt, %254, %c0_i32_100 : i32
    %262 = vector.broadcast %261 : i1 to vector<16x1xi1>
    %263 = vector.broadcast %262 : vector<16x1xi1> to vector<16x1xi1>
    %264 = arith.xori %260, %263 : vector<16x1xi1>
    %265 = arith.andi %264, %258 : vector<16x1xi1>
    %266 = vector.broadcast %254 : i32 to vector<16x1xi32>
    %267 = arith.addi %256, %266 : vector<16x1xi32>
    %268 = arith.select %265, %267, %256 : vector<16x1xi1>, vector<16x1xi32>
    %c1_i32_101 = arith.constant 1 : i32
    %269 = vector.broadcast %c1_i32_101 : i32 to vector<16x1xi32>
    %270 = arith.cmpi sge, %268, %269 : vector<16x1xi32>
    %c2_i32 = arith.constant 2 : i32
    %271 = vector.broadcast %c2_i32 : i32 to vector<16x1xi32>
    %272 = arith.cmpi sle, %268, %271 : vector<16x1xi32>
    %c0_102 = arith.constant 0 : index
    %c0_103 = arith.constant 0 : index
    %c0_104 = arith.constant 0 : index
    %273 = vector.load %arg16[%c0_102, %c0_103, %c0_104] : memref<9x9x128xf32, #tpu.memory_space<vmem>>, vector<1x9x128xf32>
    %274 = vector.shape_cast %273 : vector<1x9x128xf32> to vector<9x128xf32>
    %c0_105 = arith.constant 0 : index
    %c0_106 = arith.constant 0 : index
    %c0_107 = arith.constant 0 : index
    %275 = vector.load %arg17[%c0_105, %c0_106, %c0_107] : memref<9x128x128xbf16, #tpu.memory_space<vmem>>, vector<1x128x128xbf16>
    %276 = vector.shape_cast %275 : vector<1x128x128xbf16> to vector<128x128xbf16>
    %c0_108 = arith.constant 0 : index
    %c0_109 = arith.constant 0 : index
    %c0_110 = arith.constant 0 : index
    %277 = vector.load %arg18[%c0_108, %c0_109, %c0_110] : memref<9x2x128xf32, #tpu.memory_space<vmem>>, vector<1x2x128xf32>
    %278 = vector.shape_cast %277 : vector<1x2x128xf32> to vector<2x128xf32>
    %c1_i32_111 = arith.constant 1 : i32
    %279 = tpu.dynamic_rotate %251 by %c1_i32_111 dim 0 : vector<16x128xf32>, i32 -> vector<16x128xf32>
    %cst_112 = arith.constant 0.000000e+00 : f32
    %280 = vector.shape_cast %270 : vector<16x1xi1> to vector<16x1xi1>
    %281 = vector.broadcast %280 : vector<16x1xi1> to vector<16x128xi1>
    %282 = vector.broadcast %cst_112 : f32 to vector<16x128xf32>
    %283 = arith.select %281, %279, %282 : vector<16x128xi1>, vector<16x128xf32>
    %c15_i32 = arith.constant 15 : i32
    %284 = tpu.dynamic_rotate %251 by %c15_i32 dim 0 : vector<16x128xf32>, i32 -> vector<16x128xf32>
    %cst_113 = arith.constant 0.000000e+00 : f32
    %285 = vector.shape_cast %272 : vector<16x1xi1> to vector<16x1xi1>
    %286 = vector.broadcast %285 : vector<16x1xi1> to vector<16x128xi1>
    %287 = vector.broadcast %cst_113 : f32 to vector<16x128xf32>
    %288 = arith.select %286, %284, %287 : vector<16x128xi1>, vector<16x128xf32>
    %c32_i32 = arith.constant 32 : i32
    %289 = tpu.dynamic_rotate %283 by %c32_i32 dim 1 : vector<16x128xf32>, i32 -> vector<16x128xf32>
    %c96_i32 = arith.constant 96 : i32
    %290 = tpu.dynamic_rotate %283 by %c96_i32 dim 1 : vector<16x128xf32>, i32 -> vector<16x128xf32>
    %291 = vector.extract_strided_slice %274 {offsets = [0, 0], sizes = [1, 128], strides = [1, 1]} : vector<9x128xf32> to vector<1x128xf32>
    %292 = vector.broadcast %291 : vector<1x128xf32> to vector<16x128xf32>
    %293 = arith.mulf %289, %292 : vector<16x128xf32>
    %294 = vector.extract_strided_slice %274 {offsets = [1, 0], sizes = [1, 128], strides = [1, 1]} : vector<9x128xf32> to vector<1x128xf32>
    %295 = vector.broadcast %294 : vector<1x128xf32> to vector<16x128xf32>
    %296 = arith.mulf %283, %295 : vector<16x128xf32>
    %297 = arith.addf %293, %296 : vector<16x128xf32>
    %298 = vector.extract_strided_slice %274 {offsets = [2, 0], sizes = [1, 128], strides = [1, 1]} : vector<9x128xf32> to vector<1x128xf32>
    %299 = vector.broadcast %298 : vector<1x128xf32> to vector<16x128xf32>
    %300 = arith.mulf %290, %299 : vector<16x128xf32>
    %301 = arith.addf %297, %300 : vector<16x128xf32>
    %c32_i32_114 = arith.constant 32 : i32
    %302 = tpu.dynamic_rotate %251 by %c32_i32_114 dim 1 : vector<16x128xf32>, i32 -> vector<16x128xf32>
    %c96_i32_115 = arith.constant 96 : i32
    %303 = tpu.dynamic_rotate %251 by %c96_i32_115 dim 1 : vector<16x128xf32>, i32 -> vector<16x128xf32>
    %304 = vector.extract_strided_slice %274 {offsets = [3, 0], sizes = [1, 128], strides = [1, 1]} : vector<9x128xf32> to vector<1x128xf32>
    %305 = vector.broadcast %304 : vector<1x128xf32> to vector<16x128xf32>
    %306 = arith.mulf %302, %305 : vector<16x128xf32>
    %307 = vector.extract_strided_slice %274 {offsets = [4, 0], sizes = [1, 128], strides = [1, 1]} : vector<9x128xf32> to vector<1x128xf32>
    %308 = vector.broadcast %307 : vector<1x128xf32> to vector<16x128xf32>
    %309 = arith.mulf %251, %308 : vector<16x128xf32>
    %310 = arith.addf %306, %309 : vector<16x128xf32>
    %311 = vector.extract_strided_slice %274 {offsets = [5, 0], sizes = [1, 128], strides = [1, 1]} : vector<9x128xf32> to vector<1x128xf32>
    %312 = vector.broadcast %311 : vector<1x128xf32> to vector<16x128xf32>
    %313 = arith.mulf %303, %312 : vector<16x128xf32>
    %314 = arith.addf %310, %313 : vector<16x128xf32>
    %315 = arith.addf %301, %314 : vector<16x128xf32>
    %c32_i32_116 = arith.constant 32 : i32
    %316 = tpu.dynamic_rotate %288 by %c32_i32_116 dim 1 : vector<16x128xf32>, i32 -> vector<16x128xf32>
    %c96_i32_117 = arith.constant 96 : i32
    %317 = tpu.dynamic_rotate %288 by %c96_i32_117 dim 1 : vector<16x128xf32>, i32 -> vector<16x128xf32>
    %318 = vector.extract_strided_slice %274 {offsets = [6, 0], sizes = [1, 128], strides = [1, 1]} : vector<9x128xf32> to vector<1x128xf32>
    %319 = vector.broadcast %318 : vector<1x128xf32> to vector<16x128xf32>
    %320 = arith.mulf %316, %319 : vector<16x128xf32>
    %321 = vector.extract_strided_slice %274 {offsets = [7, 0], sizes = [1, 128], strides = [1, 1]} : vector<9x128xf32> to vector<1x128xf32>
    %322 = vector.broadcast %321 : vector<1x128xf32> to vector<16x128xf32>
    %323 = arith.mulf %288, %322 : vector<16x128xf32>
    %324 = arith.addf %320, %323 : vector<16x128xf32>
    %325 = vector.extract_strided_slice %274 {offsets = [8, 0], sizes = [1, 128], strides = [1, 1]} : vector<9x128xf32> to vector<1x128xf32>
    %326 = vector.broadcast %325 : vector<1x128xf32> to vector<16x128xf32>
    %327 = arith.mulf %317, %326 : vector<16x128xf32>
    %328 = arith.addf %324, %327 : vector<16x128xf32>
    %329 = arith.addf %315, %328 : vector<16x128xf32>
    %330 = arith.truncf %329 : vector<16x128xf32> to vector<16x128xbf16>
    %cst_118 = arith.constant dense<0.000000e+00> : vector<16x128xf32>
    %331 = tpu.matmul %330, %276, %cst_118 {dimension_numbers = #tpu.dot_dimension_numbers<[1], [0], [0], [1], [0, 0, 1, 1], [], []>} : vector<16x128xbf16>, vector<128x128xbf16>, vector<16x128xf32> -> vector<16x128xf32>
    %332 = vector.extract_strided_slice %278 {offsets = [0, 0], sizes = [1, 128], strides = [1, 1]} : vector<2x128xf32> to vector<1x128xf32>
    %333 = vector.broadcast %332 : vector<1x128xf32> to vector<16x128xf32>
    %334 = arith.mulf %331, %333 : vector<16x128xf32>
    %335 = vector.extract_strided_slice %278 {offsets = [1, 0], sizes = [1, 128], strides = [1, 1]} : vector<2x128xf32> to vector<1x128xf32>
    %336 = vector.broadcast %335 : vector<1x128xf32> to vector<16x128xf32>
    %337 = arith.addf %334, %336 : vector<16x128xf32>
    %cst_119 = arith.constant 0.000000e+00 : f32
    %338 = vector.broadcast %cst_119 : f32 to vector<16x128xf32>
    %339 = arith.maximumf %337, %338 : vector<16x128xf32>
    %340 = arith.addf %339, %251 : vector<16x128xf32>
    %c1_120 = arith.constant 1 : index
    %c0_121 = arith.constant 0 : index
    %c0_122 = arith.constant 0 : index
    %341 = vector.load %arg16[%c1_120, %c0_121, %c0_122] : memref<9x9x128xf32, #tpu.memory_space<vmem>>, vector<1x9x128xf32>
    %342 = vector.shape_cast %341 : vector<1x9x128xf32> to vector<9x128xf32>
    %c1_123 = arith.constant 1 : index
    %c0_124 = arith.constant 0 : index
    %c0_125 = arith.constant 0 : index
    %343 = vector.load %arg17[%c1_123, %c0_124, %c0_125] : memref<9x128x128xbf16, #tpu.memory_space<vmem>>, vector<1x128x128xbf16>
    %344 = vector.shape_cast %343 : vector<1x128x128xbf16> to vector<128x128xbf16>
    %c1_126 = arith.constant 1 : index
    %c0_127 = arith.constant 0 : index
    %c0_128 = arith.constant 0 : index
    %345 = vector.load %arg18[%c1_126, %c0_127, %c0_128] : memref<9x2x128xf32, #tpu.memory_space<vmem>>, vector<1x2x128xf32>
    %346 = vector.shape_cast %345 : vector<1x2x128xf32> to vector<2x128xf32>
    %c1_i32_129 = arith.constant 1 : i32
    %347 = tpu.dynamic_rotate %340 by %c1_i32_129 dim 0 : vector<16x128xf32>, i32 -> vector<16x128xf32>
    %cst_130 = arith.constant 0.000000e+00 : f32
    %348 = vector.shape_cast %270 : vector<16x1xi1> to vector<16x1xi1>
    %349 = vector.broadcast %348 : vector<16x1xi1> to vector<16x128xi1>
    %350 = vector.broadcast %cst_130 : f32 to vector<16x128xf32>
    %351 = arith.select %349, %347, %350 : vector<16x128xi1>, vector<16x128xf32>
    %c15_i32_131 = arith.constant 15 : i32
    %352 = tpu.dynamic_rotate %340 by %c15_i32_131 dim 0 : vector<16x128xf32>, i32 -> vector<16x128xf32>
    %cst_132 = arith.constant 0.000000e+00 : f32
    %353 = vector.shape_cast %272 : vector<16x1xi1> to vector<16x1xi1>
    %354 = vector.broadcast %353 : vector<16x1xi1> to vector<16x128xi1>
    %355 = vector.broadcast %cst_132 : f32 to vector<16x128xf32>
    %356 = arith.select %354, %352, %355 : vector<16x128xi1>, vector<16x128xf32>
    %c32_i32_133 = arith.constant 32 : i32
    %357 = tpu.dynamic_rotate %351 by %c32_i32_133 dim 1 : vector<16x128xf32>, i32 -> vector<16x128xf32>
    %c96_i32_134 = arith.constant 96 : i32
    %358 = tpu.dynamic_rotate %351 by %c96_i32_134 dim 1 : vector<16x128xf32>, i32 -> vector<16x128xf32>
    %359 = vector.extract_strided_slice %342 {offsets = [0, 0], sizes = [1, 128], strides = [1, 1]} : vector<9x128xf32> to vector<1x128xf32>
    %360 = vector.broadcast %359 : vector<1x128xf32> to vector<16x128xf32>
    %361 = arith.mulf %357, %360 : vector<16x128xf32>
    %362 = vector.extract_strided_slice %342 {offsets = [1, 0], sizes = [1, 128], strides = [1, 1]} : vector<9x128xf32> to vector<1x128xf32>
    %363 = vector.broadcast %362 : vector<1x128xf32> to vector<16x128xf32>
    %364 = arith.mulf %351, %363 : vector<16x128xf32>
    %365 = arith.addf %361, %364 : vector<16x128xf32>
    %366 = vector.extract_strided_slice %342 {offsets = [2, 0], sizes = [1, 128], strides = [1, 1]} : vector<9x128xf32> to vector<1x128xf32>
    %367 = vector.broadcast %366 : vector<1x128xf32> to vector<16x128xf32>
    %368 = arith.mulf %358, %367 : vector<16x128xf32>
    %369 = arith.addf %365, %368 : vector<16x128xf32>
    %c32_i32_135 = arith.constant 32 : i32
    %370 = tpu.dynamic_rotate %340 by %c32_i32_135 dim 1 : vector<16x128xf32>, i32 -> vector<16x128xf32>
    %c96_i32_136 = arith.constant 96 : i32
    %371 = tpu.dynamic_rotate %340 by %c96_i32_136 dim 1 : vector<16x128xf32>, i32 -> vector<16x128xf32>
    %372 = vector.extract_strided_slice %342 {offsets = [3, 0], sizes = [1, 128], strides = [1, 1]} : vector<9x128xf32> to vector<1x128xf32>
    %373 = vector.broadcast %372 : vector<1x128xf32> to vector<16x128xf32>
    %374 = arith.mulf %370, %373 : vector<16x128xf32>
    %375 = vector.extract_strided_slice %342 {offsets = [4, 0], sizes = [1, 128], strides = [1, 1]} : vector<9x128xf32> to vector<1x128xf32>
    %376 = vector.broadcast %375 : vector<1x128xf32> to vector<16x128xf32>
    %377 = arith.mulf %340, %376 : vector<16x128xf32>
    %378 = arith.addf %374, %377 : vector<16x128xf32>
    %379 = vector.extract_strided_slice %342 {offsets = [5, 0], sizes = [1, 128], strides = [1, 1]} : vector<9x128xf32> to vector<1x128xf32>
    %380 = vector.broadcast %379 : vector<1x128xf32> to vector<16x128xf32>
    %381 = arith.mulf %371, %380 : vector<16x128xf32>
    %382 = arith.addf %378, %381 : vector<16x128xf32>
    %383 = arith.addf %369, %382 : vector<16x128xf32>
    %c32_i32_137 = arith.constant 32 : i32
    %384 = tpu.dynamic_rotate %356 by %c32_i32_137 dim 1 : vector<16x128xf32>, i32 -> vector<16x128xf32>
    %c96_i32_138 = arith.constant 96 : i32
    %385 = tpu.dynamic_rotate %356 by %c96_i32_138 dim 1 : vector<16x128xf32>, i32 -> vector<16x128xf32>
    %386 = vector.extract_strided_slice %342 {offsets = [6, 0], sizes = [1, 128], strides = [1, 1]} : vector<9x128xf32> to vector<1x128xf32>
    %387 = vector.broadcast %386 : vector<1x128xf32> to vector<16x128xf32>
    %388 = arith.mulf %384, %387 : vector<16x128xf32>
    %389 = vector.extract_strided_slice %342 {offsets = [7, 0], sizes = [1, 128], strides = [1, 1]} : vector<9x128xf32> to vector<1x128xf32>
    %390 = vector.broadcast %389 : vector<1x128xf32> to vector<16x128xf32>
    %391 = arith.mulf %356, %390 : vector<16x128xf32>
    %392 = arith.addf %388, %391 : vector<16x128xf32>
    %393 = vector.extract_strided_slice %342 {offsets = [8, 0], sizes = [1, 128], strides = [1, 1]} : vector<9x128xf32> to vector<1x128xf32>
    %394 = vector.broadcast %393 : vector<1x128xf32> to vector<16x128xf32>
    %395 = arith.mulf %385, %394 : vector<16x128xf32>
    %396 = arith.addf %392, %395 : vector<16x128xf32>
    %397 = arith.addf %383, %396 : vector<16x128xf32>
    %398 = arith.truncf %397 : vector<16x128xf32> to vector<16x128xbf16>
    %cst_139 = arith.constant dense<0.000000e+00> : vector<16x128xf32>
    %399 = tpu.matmul %398, %344, %cst_139 {dimension_numbers = #tpu.dot_dimension_numbers<[1], [0], [0], [1], [0, 0, 1, 1], [], []>} : vector<16x128xbf16>, vector<128x128xbf16>, vector<16x128xf32> -> vector<16x128xf32>
    %400 = vector.extract_strided_slice %346 {offsets = [0, 0], sizes = [1, 128], strides = [1, 1]} : vector<2x128xf32> to vector<1x128xf32>
    %401 = vector.broadcast %400 : vector<1x128xf32> to vector<16x128xf32>
    %402 = arith.mulf %399, %401 : vector<16x128xf32>
    %403 = vector.extract_strided_slice %346 {offsets = [1, 0], sizes = [1, 128], strides = [1, 1]} : vector<2x128xf32> to vector<1x128xf32>
    %404 = vector.broadcast %403 : vector<1x128xf32> to vector<16x128xf32>
    %405 = arith.addf %402, %404 : vector<16x128xf32>
    %cst_140 = arith.constant 0.000000e+00 : f32
    %406 = vector.broadcast %cst_140 : f32 to vector<16x128xf32>
    %407 = arith.maximumf %405, %406 : vector<16x128xf32>
    %408 = arith.addf %407, %340 : vector<16x128xf32>
    %c2_141 = arith.constant 2 : index
    %c0_142 = arith.constant 0 : index
    %c0_143 = arith.constant 0 : index
    %409 = vector.load %arg16[%c2_141, %c0_142, %c0_143] : memref<9x9x128xf32, #tpu.memory_space<vmem>>, vector<1x9x128xf32>
    %410 = vector.shape_cast %409 : vector<1x9x128xf32> to vector<9x128xf32>
    %c2_144 = arith.constant 2 : index
    %c0_145 = arith.constant 0 : index
    %c0_146 = arith.constant 0 : index
    %411 = vector.load %arg17[%c2_144, %c0_145, %c0_146] : memref<9x128x128xbf16, #tpu.memory_space<vmem>>, vector<1x128x128xbf16>
    %412 = vector.shape_cast %411 : vector<1x128x128xbf16> to vector<128x128xbf16>
    %c2_147 = arith.constant 2 : index
    %c0_148 = arith.constant 0 : index
    %c0_149 = arith.constant 0 : index
    %413 = vector.load %arg18[%c2_147, %c0_148, %c0_149] : memref<9x2x128xf32, #tpu.memory_space<vmem>>, vector<1x2x128xf32>
    %414 = vector.shape_cast %413 : vector<1x2x128xf32> to vector<2x128xf32>
    %c1_i32_150 = arith.constant 1 : i32
    %415 = tpu.dynamic_rotate %408 by %c1_i32_150 dim 0 : vector<16x128xf32>, i32 -> vector<16x128xf32>
    %cst_151 = arith.constant 0.000000e+00 : f32
    %416 = vector.shape_cast %270 : vector<16x1xi1> to vector<16x1xi1>
    %417 = vector.broadcast %416 : vector<16x1xi1> to vector<16x128xi1>
    %418 = vector.broadcast %cst_151 : f32 to vector<16x128xf32>
    %419 = arith.select %417, %415, %418 : vector<16x128xi1>, vector<16x128xf32>
    %c15_i32_152 = arith.constant 15 : i32
    %420 = tpu.dynamic_rotate %408 by %c15_i32_152 dim 0 : vector<16x128xf32>, i32 -> vector<16x128xf32>
    %cst_153 = arith.constant 0.000000e+00 : f32
    %421 = vector.shape_cast %272 : vector<16x1xi1> to vector<16x1xi1>
    %422 = vector.broadcast %421 : vector<16x1xi1> to vector<16x128xi1>
    %423 = vector.broadcast %cst_153 : f32 to vector<16x128xf32>
    %424 = arith.select %422, %420, %423 : vector<16x128xi1>, vector<16x128xf32>
    %c32_i32_154 = arith.constant 32 : i32
    %425 = tpu.dynamic_rotate %419 by %c32_i32_154 dim 1 : vector<16x128xf32>, i32 -> vector<16x128xf32>
    %c96_i32_155 = arith.constant 96 : i32
    %426 = tpu.dynamic_rotate %419 by %c96_i32_155 dim 1 : vector<16x128xf32>, i32 -> vector<16x128xf32>
    %427 = vector.extract_strided_slice %410 {offsets = [0, 0], sizes = [1, 128], strides = [1, 1]} : vector<9x128xf32> to vector<1x128xf32>
    %428 = vector.broadcast %427 : vector<1x128xf32> to vector<16x128xf32>
    %429 = arith.mulf %425, %428 : vector<16x128xf32>
    %430 = vector.extract_strided_slice %410 {offsets = [1, 0], sizes = [1, 128], strides = [1, 1]} : vector<9x128xf32> to vector<1x128xf32>
    %431 = vector.broadcast %430 : vector<1x128xf32> to vector<16x128xf32>
    %432 = arith.mulf %419, %431 : vector<16x128xf32>
    %433 = arith.addf %429, %432 : vector<16x128xf32>
    %434 = vector.extract_strided_slice %410 {offsets = [2, 0], sizes = [1, 128], strides = [1, 1]} : vector<9x128xf32> to vector<1x128xf32>
    %435 = vector.broadcast %434 : vector<1x128xf32> to vector<16x128xf32>
    %436 = arith.mulf %426, %435 : vector<16x128xf32>
    %437 = arith.addf %433, %436 : vector<16x128xf32>
    %c32_i32_156 = arith.constant 32 : i32
    %438 = tpu.dynamic_rotate %408 by %c32_i32_156 dim 1 : vector<16x128xf32>, i32 -> vector<16x128xf32>
    %c96_i32_157 = arith.constant 96 : i32
    %439 = tpu.dynamic_rotate %408 by %c96_i32_157 dim 1 : vector<16x128xf32>, i32 -> vector<16x128xf32>
    %440 = vector.extract_strided_slice %410 {offsets = [3, 0], sizes = [1, 128], strides = [1, 1]} : vector<9x128xf32> to vector<1x128xf32>
    %441 = vector.broadcast %440 : vector<1x128xf32> to vector<16x128xf32>
    %442 = arith.mulf %438, %441 : vector<16x128xf32>
    %443 = vector.extract_strided_slice %410 {offsets = [4, 0], sizes = [1, 128], strides = [1, 1]} : vector<9x128xf32> to vector<1x128xf32>
    %444 = vector.broadcast %443 : vector<1x128xf32> to vector<16x128xf32>
    %445 = arith.mulf %408, %444 : vector<16x128xf32>
    %446 = arith.addf %442, %445 : vector<16x128xf32>
    %447 = vector.extract_strided_slice %410 {offsets = [5, 0], sizes = [1, 128], strides = [1, 1]} : vector<9x128xf32> to vector<1x128xf32>
    %448 = vector.broadcast %447 : vector<1x128xf32> to vector<16x128xf32>
    %449 = arith.mulf %439, %448 : vector<16x128xf32>
    %450 = arith.addf %446, %449 : vector<16x128xf32>
    %451 = arith.addf %437, %450 : vector<16x128xf32>
    %c32_i32_158 = arith.constant 32 : i32
    %452 = tpu.dynamic_rotate %424 by %c32_i32_158 dim 1 : vector<16x128xf32>, i32 -> vector<16x128xf32>
    %c96_i32_159 = arith.constant 96 : i32
    %453 = tpu.dynamic_rotate %424 by %c96_i32_159 dim 1 : vector<16x128xf32>, i32 -> vector<16x128xf32>
    %454 = vector.extract_strided_slice %410 {offsets = [6, 0], sizes = [1, 128], strides = [1, 1]} : vector<9x128xf32> to vector<1x128xf32>
    %455 = vector.broadcast %454 : vector<1x128xf32> to vector<16x128xf32>
    %456 = arith.mulf %452, %455 : vector<16x128xf32>
    %457 = vector.extract_strided_slice %410 {offsets = [7, 0], sizes = [1, 128], strides = [1, 1]} : vector<9x128xf32> to vector<1x128xf32>
    %458 = vector.broadcast %457 : vector<1x128xf32> to vector<16x128xf32>
    %459 = arith.mulf %424, %458 : vector<16x128xf32>
    %460 = arith.addf %456, %459 : vector<16x128xf32>
    %461 = vector.extract_strided_slice %410 {offsets = [8, 0], sizes = [1, 128], strides = [1, 1]} : vector<9x128xf32> to vector<1x128xf32>
    %462 = vector.broadcast %461 : vector<1x128xf32> to vector<16x128xf32>
    %463 = arith.mulf %453, %462 : vector<16x128xf32>
    %464 = arith.addf %460, %463 : vector<16x128xf32>
    %465 = arith.addf %451, %464 : vector<16x128xf32>
    %466 = arith.truncf %465 : vector<16x128xf32> to vector<16x128xbf16>
    %cst_160 = arith.constant dense<0.000000e+00> : vector<16x128xf32>
    %467 = tpu.matmul %466, %412, %cst_160 {dimension_numbers = #tpu.dot_dimension_numbers<[1], [0], [0], [1], [0, 0, 1, 1], [], []>} : vector<16x128xbf16>, vector<128x128xbf16>, vector<16x128xf32> -> vector<16x128xf32>
    %468 = vector.extract_strided_slice %414 {offsets = [0, 0], sizes = [1, 128], strides = [1, 1]} : vector<2x128xf32> to vector<1x128xf32>
    %469 = vector.broadcast %468 : vector<1x128xf32> to vector<16x128xf32>
    %470 = arith.mulf %467, %469 : vector<16x128xf32>
    %471 = vector.extract_strided_slice %414 {offsets = [1, 0], sizes = [1, 128], strides = [1, 1]} : vector<2x128xf32> to vector<1x128xf32>
    %472 = vector.broadcast %471 : vector<1x128xf32> to vector<16x128xf32>
    %473 = arith.addf %470, %472 : vector<16x128xf32>
    %cst_161 = arith.constant 0.000000e+00 : f32
    %474 = vector.broadcast %cst_161 : f32 to vector<16x128xf32>
    %475 = arith.maximumf %473, %474 : vector<16x128xf32>
    %476 = arith.addf %475, %408 : vector<16x128xf32>
    %c3 = arith.constant 3 : index
    %c0_162 = arith.constant 0 : index
    %c0_163 = arith.constant 0 : index
    %477 = vector.load %arg16[%c3, %c0_162, %c0_163] : memref<9x9x128xf32, #tpu.memory_space<vmem>>, vector<1x9x128xf32>
    %478 = vector.shape_cast %477 : vector<1x9x128xf32> to vector<9x128xf32>
    %c3_164 = arith.constant 3 : index
    %c0_165 = arith.constant 0 : index
    %c0_166 = arith.constant 0 : index
    %479 = vector.load %arg17[%c3_164, %c0_165, %c0_166] : memref<9x128x128xbf16, #tpu.memory_space<vmem>>, vector<1x128x128xbf16>
    %480 = vector.shape_cast %479 : vector<1x128x128xbf16> to vector<128x128xbf16>
    %c3_167 = arith.constant 3 : index
    %c0_168 = arith.constant 0 : index
    %c0_169 = arith.constant 0 : index
    %481 = vector.load %arg18[%c3_167, %c0_168, %c0_169] : memref<9x2x128xf32, #tpu.memory_space<vmem>>, vector<1x2x128xf32>
    %482 = vector.shape_cast %481 : vector<1x2x128xf32> to vector<2x128xf32>
    %c1_i32_170 = arith.constant 1 : i32
    %483 = tpu.dynamic_rotate %476 by %c1_i32_170 dim 0 : vector<16x128xf32>, i32 -> vector<16x128xf32>
    %cst_171 = arith.constant 0.000000e+00 : f32
    %484 = vector.shape_cast %270 : vector<16x1xi1> to vector<16x1xi1>
    %485 = vector.broadcast %484 : vector<16x1xi1> to vector<16x128xi1>
    %486 = vector.broadcast %cst_171 : f32 to vector<16x128xf32>
    %487 = arith.select %485, %483, %486 : vector<16x128xi1>, vector<16x128xf32>
    %c15_i32_172 = arith.constant 15 : i32
    %488 = tpu.dynamic_rotate %476 by %c15_i32_172 dim 0 : vector<16x128xf32>, i32 -> vector<16x128xf32>
    %cst_173 = arith.constant 0.000000e+00 : f32
    %489 = vector.shape_cast %272 : vector<16x1xi1> to vector<16x1xi1>
    %490 = vector.broadcast %489 : vector<16x1xi1> to vector<16x128xi1>
    %491 = vector.broadcast %cst_173 : f32 to vector<16x128xf32>
    %492 = arith.select %490, %488, %491 : vector<16x128xi1>, vector<16x128xf32>
    %c32_i32_174 = arith.constant 32 : i32
    %493 = tpu.dynamic_rotate %487 by %c32_i32_174 dim 1 : vector<16x128xf32>, i32 -> vector<16x128xf32>
    %c96_i32_175 = arith.constant 96 : i32
    %494 = tpu.dynamic_rotate %487 by %c96_i32_175 dim 1 : vector<16x128xf32>, i32 -> vector<16x128xf32>
    %495 = vector.extract_strided_slice %478 {offsets = [0, 0], sizes = [1, 128], strides = [1, 1]} : vector<9x128xf32> to vector<1x128xf32>
    %496 = vector.broadcast %495 : vector<1x128xf32> to vector<16x128xf32>
    %497 = arith.mulf %493, %496 : vector<16x128xf32>
    %498 = vector.extract_strided_slice %478 {offsets = [1, 0], sizes = [1, 128], strides = [1, 1]} : vector<9x128xf32> to vector<1x128xf32>
    %499 = vector.broadcast %498 : vector<1x128xf32> to vector<16x128xf32>
    %500 = arith.mulf %487, %499 : vector<16x128xf32>
    %501 = arith.addf %497, %500 : vector<16x128xf32>
    %502 = vector.extract_strided_slice %478 {offsets = [2, 0], sizes = [1, 128], strides = [1, 1]} : vector<9x128xf32> to vector<1x128xf32>
    %503 = vector.broadcast %502 : vector<1x128xf32> to vector<16x128xf32>
    %504 = arith.mulf %494, %503 : vector<16x128xf32>
    %505 = arith.addf %501, %504 : vector<16x128xf32>
    %c32_i32_176 = arith.constant 32 : i32
    %506 = tpu.dynamic_rotate %476 by %c32_i32_176 dim 1 : vector<16x128xf32>, i32 -> vector<16x128xf32>
    %c96_i32_177 = arith.constant 96 : i32
    %507 = tpu.dynamic_rotate %476 by %c96_i32_177 dim 1 : vector<16x128xf32>, i32 -> vector<16x128xf32>
    %508 = vector.extract_strided_slice %478 {offsets = [3, 0], sizes = [1, 128], strides = [1, 1]} : vector<9x128xf32> to vector<1x128xf32>
    %509 = vector.broadcast %508 : vector<1x128xf32> to vector<16x128xf32>
    %510 = arith.mulf %506, %509 : vector<16x128xf32>
    %511 = vector.extract_strided_slice %478 {offsets = [4, 0], sizes = [1, 128], strides = [1, 1]} : vector<9x128xf32> to vector<1x128xf32>
    %512 = vector.broadcast %511 : vector<1x128xf32> to vector<16x128xf32>
    %513 = arith.mulf %476, %512 : vector<16x128xf32>
    %514 = arith.addf %510, %513 : vector<16x128xf32>
    %515 = vector.extract_strided_slice %478 {offsets = [5, 0], sizes = [1, 128], strides = [1, 1]} : vector<9x128xf32> to vector<1x128xf32>
    %516 = vector.broadcast %515 : vector<1x128xf32> to vector<16x128xf32>
    %517 = arith.mulf %507, %516 : vector<16x128xf32>
    %518 = arith.addf %514, %517 : vector<16x128xf32>
    %519 = arith.addf %505, %518 : vector<16x128xf32>
    %c32_i32_178 = arith.constant 32 : i32
    %520 = tpu.dynamic_rotate %492 by %c32_i32_178 dim 1 : vector<16x128xf32>, i32 -> vector<16x128xf32>
    %c96_i32_179 = arith.constant 96 : i32
    %521 = tpu.dynamic_rotate %492 by %c96_i32_179 dim 1 : vector<16x128xf32>, i32 -> vector<16x128xf32>
    %522 = vector.extract_strided_slice %478 {offsets = [6, 0], sizes = [1, 128], strides = [1, 1]} : vector<9x128xf32> to vector<1x128xf32>
    %523 = vector.broadcast %522 : vector<1x128xf32> to vector<16x128xf32>
    %524 = arith.mulf %520, %523 : vector<16x128xf32>
    %525 = vector.extract_strided_slice %478 {offsets = [7, 0], sizes = [1, 128], strides = [1, 1]} : vector<9x128xf32> to vector<1x128xf32>
    %526 = vector.broadcast %525 : vector<1x128xf32> to vector<16x128xf32>
    %527 = arith.mulf %492, %526 : vector<16x128xf32>
    %528 = arith.addf %524, %527 : vector<16x128xf32>
    %529 = vector.extract_strided_slice %478 {offsets = [8, 0], sizes = [1, 128], strides = [1, 1]} : vector<9x128xf32> to vector<1x128xf32>
    %530 = vector.broadcast %529 : vector<1x128xf32> to vector<16x128xf32>
    %531 = arith.mulf %521, %530 : vector<16x128xf32>
    %532 = arith.addf %528, %531 : vector<16x128xf32>
    %533 = arith.addf %519, %532 : vector<16x128xf32>
    %534 = arith.truncf %533 : vector<16x128xf32> to vector<16x128xbf16>
    %cst_180 = arith.constant dense<0.000000e+00> : vector<16x128xf32>
    %535 = tpu.matmul %534, %480, %cst_180 {dimension_numbers = #tpu.dot_dimension_numbers<[1], [0], [0], [1], [0, 0, 1, 1], [], []>} : vector<16x128xbf16>, vector<128x128xbf16>, vector<16x128xf32> -> vector<16x128xf32>
    %536 = vector.extract_strided_slice %482 {offsets = [0, 0], sizes = [1, 128], strides = [1, 1]} : vector<2x128xf32> to vector<1x128xf32>
    %537 = vector.broadcast %536 : vector<1x128xf32> to vector<16x128xf32>
    %538 = arith.mulf %535, %537 : vector<16x128xf32>
    %539 = vector.extract_strided_slice %482 {offsets = [1, 0], sizes = [1, 128], strides = [1, 1]} : vector<2x128xf32> to vector<1x128xf32>
    %540 = vector.broadcast %539 : vector<1x128xf32> to vector<16x128xf32>
    %541 = arith.addf %538, %540 : vector<16x128xf32>
    %cst_181 = arith.constant 0.000000e+00 : f32
    %542 = vector.broadcast %cst_181 : f32 to vector<16x128xf32>
    %543 = arith.maximumf %541, %542 : vector<16x128xf32>
    %544 = arith.addf %543, %476 : vector<16x128xf32>
    %c4 = arith.constant 4 : index
    %c0_182 = arith.constant 0 : index
    %c0_183 = arith.constant 0 : index
    %545 = vector.load %arg16[%c4, %c0_182, %c0_183] : memref<9x9x128xf32, #tpu.memory_space<vmem>>, vector<1x9x128xf32>
    %546 = vector.shape_cast %545 : vector<1x9x128xf32> to vector<9x128xf32>
    %c4_184 = arith.constant 4 : index
    %c0_185 = arith.constant 0 : index
    %c0_186 = arith.constant 0 : index
    %547 = vector.load %arg17[%c4_184, %c0_185, %c0_186] : memref<9x128x128xbf16, #tpu.memory_space<vmem>>, vector<1x128x128xbf16>
    %548 = vector.shape_cast %547 : vector<1x128x128xbf16> to vector<128x128xbf16>
    %c4_187 = arith.constant 4 : index
    %c0_188 = arith.constant 0 : index
    %c0_189 = arith.constant 0 : index
    %549 = vector.load %arg18[%c4_187, %c0_188, %c0_189] : memref<9x2x128xf32, #tpu.memory_space<vmem>>, vector<1x2x128xf32>
    %550 = vector.shape_cast %549 : vector<1x2x128xf32> to vector<2x128xf32>
    %c1_i32_190 = arith.constant 1 : i32
    %551 = tpu.dynamic_rotate %544 by %c1_i32_190 dim 0 : vector<16x128xf32>, i32 -> vector<16x128xf32>
    %cst_191 = arith.constant 0.000000e+00 : f32
    %552 = vector.shape_cast %270 : vector<16x1xi1> to vector<16x1xi1>
    %553 = vector.broadcast %552 : vector<16x1xi1> to vector<16x128xi1>
    %554 = vector.broadcast %cst_191 : f32 to vector<16x128xf32>
    %555 = arith.select %553, %551, %554 : vector<16x128xi1>, vector<16x128xf32>
    %c15_i32_192 = arith.constant 15 : i32
    %556 = tpu.dynamic_rotate %544 by %c15_i32_192 dim 0 : vector<16x128xf32>, i32 -> vector<16x128xf32>
    %cst_193 = arith.constant 0.000000e+00 : f32
    %557 = vector.shape_cast %272 : vector<16x1xi1> to vector<16x1xi1>
    %558 = vector.broadcast %557 : vector<16x1xi1> to vector<16x128xi1>
    %559 = vector.broadcast %cst_193 : f32 to vector<16x128xf32>
    %560 = arith.select %558, %556, %559 : vector<16x128xi1>, vector<16x128xf32>
    %c32_i32_194 = arith.constant 32 : i32
    %561 = tpu.dynamic_rotate %555 by %c32_i32_194 dim 1 : vector<16x128xf32>, i32 -> vector<16x128xf32>
    %c96_i32_195 = arith.constant 96 : i32
    %562 = tpu.dynamic_rotate %555 by %c96_i32_195 dim 1 : vector<16x128xf32>, i32 -> vector<16x128xf32>
    %563 = vector.extract_strided_slice %546 {offsets = [0, 0], sizes = [1, 128], strides = [1, 1]} : vector<9x128xf32> to vector<1x128xf32>
    %564 = vector.broadcast %563 : vector<1x128xf32> to vector<16x128xf32>
    %565 = arith.mulf %561, %564 : vector<16x128xf32>
    %566 = vector.extract_strided_slice %546 {offsets = [1, 0], sizes = [1, 128], strides = [1, 1]} : vector<9x128xf32> to vector<1x128xf32>
    %567 = vector.broadcast %566 : vector<1x128xf32> to vector<16x128xf32>
    %568 = arith.mulf %555, %567 : vector<16x128xf32>
    %569 = arith.addf %565, %568 : vector<16x128xf32>
    %570 = vector.extract_strided_slice %546 {offsets = [2, 0], sizes = [1, 128], strides = [1, 1]} : vector<9x128xf32> to vector<1x128xf32>
    %571 = vector.broadcast %570 : vector<1x128xf32> to vector<16x128xf32>
    %572 = arith.mulf %562, %571 : vector<16x128xf32>
    %573 = arith.addf %569, %572 : vector<16x128xf32>
    %c32_i32_196 = arith.constant 32 : i32
    %574 = tpu.dynamic_rotate %544 by %c32_i32_196 dim 1 : vector<16x128xf32>, i32 -> vector<16x128xf32>
    %c96_i32_197 = arith.constant 96 : i32
    %575 = tpu.dynamic_rotate %544 by %c96_i32_197 dim 1 : vector<16x128xf32>, i32 -> vector<16x128xf32>
    %576 = vector.extract_strided_slice %546 {offsets = [3, 0], sizes = [1, 128], strides = [1, 1]} : vector<9x128xf32> to vector<1x128xf32>
    %577 = vector.broadcast %576 : vector<1x128xf32> to vector<16x128xf32>
    %578 = arith.mulf %574, %577 : vector<16x128xf32>
    %579 = vector.extract_strided_slice %546 {offsets = [4, 0], sizes = [1, 128], strides = [1, 1]} : vector<9x128xf32> to vector<1x128xf32>
    %580 = vector.broadcast %579 : vector<1x128xf32> to vector<16x128xf32>
    %581 = arith.mulf %544, %580 : vector<16x128xf32>
    %582 = arith.addf %578, %581 : vector<16x128xf32>
    %583 = vector.extract_strided_slice %546 {offsets = [5, 0], sizes = [1, 128], strides = [1, 1]} : vector<9x128xf32> to vector<1x128xf32>
    %584 = vector.broadcast %583 : vector<1x128xf32> to vector<16x128xf32>
    %585 = arith.mulf %575, %584 : vector<16x128xf32>
    %586 = arith.addf %582, %585 : vector<16x128xf32>
    %587 = arith.addf %573, %586 : vector<16x128xf32>
    %c32_i32_198 = arith.constant 32 : i32
    %588 = tpu.dynamic_rotate %560 by %c32_i32_198 dim 1 : vector<16x128xf32>, i32 -> vector<16x128xf32>
    %c96_i32_199 = arith.constant 96 : i32
    %589 = tpu.dynamic_rotate %560 by %c96_i32_199 dim 1 : vector<16x128xf32>, i32 -> vector<16x128xf32>
    %590 = vector.extract_strided_slice %546 {offsets = [6, 0], sizes = [1, 128], strides = [1, 1]} : vector<9x128xf32> to vector<1x128xf32>
    %591 = vector.broadcast %590 : vector<1x128xf32> to vector<16x128xf32>
    %592 = arith.mulf %588, %591 : vector<16x128xf32>
    %593 = vector.extract_strided_slice %546 {offsets = [7, 0], sizes = [1, 128], strides = [1, 1]} : vector<9x128xf32> to vector<1x128xf32>
    %594 = vector.broadcast %593 : vector<1x128xf32> to vector<16x128xf32>
    %595 = arith.mulf %560, %594 : vector<16x128xf32>
    %596 = arith.addf %592, %595 : vector<16x128xf32>
    %597 = vector.extract_strided_slice %546 {offsets = [8, 0], sizes = [1, 128], strides = [1, 1]} : vector<9x128xf32> to vector<1x128xf32>
    %598 = vector.broadcast %597 : vector<1x128xf32> to vector<16x128xf32>
    %599 = arith.mulf %589, %598 : vector<16x128xf32>
    %600 = arith.addf %596, %599 : vector<16x128xf32>
    %601 = arith.addf %587, %600 : vector<16x128xf32>
    %602 = arith.truncf %601 : vector<16x128xf32> to vector<16x128xbf16>
    %cst_200 = arith.constant dense<0.000000e+00> : vector<16x128xf32>
    %603 = tpu.matmul %602, %548, %cst_200 {dimension_numbers = #tpu.dot_dimension_numbers<[1], [0], [0], [1], [0, 0, 1, 1], [], []>} : vector<16x128xbf16>, vector<128x128xbf16>, vector<16x128xf32> -> vector<16x128xf32>
    %604 = vector.extract_strided_slice %550 {offsets = [0, 0], sizes = [1, 128], strides = [1, 1]} : vector<2x128xf32> to vector<1x128xf32>
    %605 = vector.broadcast %604 : vector<1x128xf32> to vector<16x128xf32>
    %606 = arith.mulf %603, %605 : vector<16x128xf32>
    %607 = vector.extract_strided_slice %550 {offsets = [1, 0], sizes = [1, 128], strides = [1, 1]} : vector<2x128xf32> to vector<1x128xf32>
    %608 = vector.broadcast %607 : vector<1x128xf32> to vector<16x128xf32>
    %609 = arith.addf %606, %608 : vector<16x128xf32>
    %cst_201 = arith.constant 0.000000e+00 : f32
    %610 = vector.broadcast %cst_201 : f32 to vector<16x128xf32>
    %611 = arith.maximumf %609, %610 : vector<16x128xf32>
    %612 = arith.addf %611, %544 : vector<16x128xf32>
    %c5 = arith.constant 5 : index
    %c0_202 = arith.constant 0 : index
    %c0_203 = arith.constant 0 : index
    %613 = vector.load %arg16[%c5, %c0_202, %c0_203] : memref<9x9x128xf32, #tpu.memory_space<vmem>>, vector<1x9x128xf32>
    %614 = vector.shape_cast %613 : vector<1x9x128xf32> to vector<9x128xf32>
    %c5_204 = arith.constant 5 : index
    %c0_205 = arith.constant 0 : index
    %c0_206 = arith.constant 0 : index
    %615 = vector.load %arg17[%c5_204, %c0_205, %c0_206] : memref<9x128x128xbf16, #tpu.memory_space<vmem>>, vector<1x128x128xbf16>
    %616 = vector.shape_cast %615 : vector<1x128x128xbf16> to vector<128x128xbf16>
    %c5_207 = arith.constant 5 : index
    %c0_208 = arith.constant 0 : index
    %c0_209 = arith.constant 0 : index
    %617 = vector.load %arg18[%c5_207, %c0_208, %c0_209] : memref<9x2x128xf32, #tpu.memory_space<vmem>>, vector<1x2x128xf32>
    %618 = vector.shape_cast %617 : vector<1x2x128xf32> to vector<2x128xf32>
    %c1_i32_210 = arith.constant 1 : i32
    %619 = tpu.dynamic_rotate %612 by %c1_i32_210 dim 0 : vector<16x128xf32>, i32 -> vector<16x128xf32>
    %cst_211 = arith.constant 0.000000e+00 : f32
    %620 = vector.shape_cast %270 : vector<16x1xi1> to vector<16x1xi1>
    %621 = vector.broadcast %620 : vector<16x1xi1> to vector<16x128xi1>
    %622 = vector.broadcast %cst_211 : f32 to vector<16x128xf32>
    %623 = arith.select %621, %619, %622 : vector<16x128xi1>, vector<16x128xf32>
    %c15_i32_212 = arith.constant 15 : i32
    %624 = tpu.dynamic_rotate %612 by %c15_i32_212 dim 0 : vector<16x128xf32>, i32 -> vector<16x128xf32>
    %cst_213 = arith.constant 0.000000e+00 : f32
    %625 = vector.shape_cast %272 : vector<16x1xi1> to vector<16x1xi1>
    %626 = vector.broadcast %625 : vector<16x1xi1> to vector<16x128xi1>
    %627 = vector.broadcast %cst_213 : f32 to vector<16x128xf32>
    %628 = arith.select %626, %624, %627 : vector<16x128xi1>, vector<16x128xf32>
    %c32_i32_214 = arith.constant 32 : i32
    %629 = tpu.dynamic_rotate %623 by %c32_i32_214 dim 1 : vector<16x128xf32>, i32 -> vector<16x128xf32>
    %c96_i32_215 = arith.constant 96 : i32
    %630 = tpu.dynamic_rotate %623 by %c96_i32_215 dim 1 : vector<16x128xf32>, i32 -> vector<16x128xf32>
    %631 = vector.extract_strided_slice %614 {offsets = [0, 0], sizes = [1, 128], strides = [1, 1]} : vector<9x128xf32> to vector<1x128xf32>
    %632 = vector.broadcast %631 : vector<1x128xf32> to vector<16x128xf32>
    %633 = arith.mulf %629, %632 : vector<16x128xf32>
    %634 = vector.extract_strided_slice %614 {offsets = [1, 0], sizes = [1, 128], strides = [1, 1]} : vector<9x128xf32> to vector<1x128xf32>
    %635 = vector.broadcast %634 : vector<1x128xf32> to vector<16x128xf32>
    %636 = arith.mulf %623, %635 : vector<16x128xf32>
    %637 = arith.addf %633, %636 : vector<16x128xf32>
    %638 = vector.extract_strided_slice %614 {offsets = [2, 0], sizes = [1, 128], strides = [1, 1]} : vector<9x128xf32> to vector<1x128xf32>
    %639 = vector.broadcast %638 : vector<1x128xf32> to vector<16x128xf32>
    %640 = arith.mulf %630, %639 : vector<16x128xf32>
    %641 = arith.addf %637, %640 : vector<16x128xf32>
    %c32_i32_216 = arith.constant 32 : i32
    %642 = tpu.dynamic_rotate %612 by %c32_i32_216 dim 1 : vector<16x128xf32>, i32 -> vector<16x128xf32>
    %c96_i32_217 = arith.constant 96 : i32
    %643 = tpu.dynamic_rotate %612 by %c96_i32_217 dim 1 : vector<16x128xf32>, i32 -> vector<16x128xf32>
    %644 = vector.extract_strided_slice %614 {offsets = [3, 0], sizes = [1, 128], strides = [1, 1]} : vector<9x128xf32> to vector<1x128xf32>
    %645 = vector.broadcast %644 : vector<1x128xf32> to vector<16x128xf32>
    %646 = arith.mulf %642, %645 : vector<16x128xf32>
    %647 = vector.extract_strided_slice %614 {offsets = [4, 0], sizes = [1, 128], strides = [1, 1]} : vector<9x128xf32> to vector<1x128xf32>
    %648 = vector.broadcast %647 : vector<1x128xf32> to vector<16x128xf32>
    %649 = arith.mulf %612, %648 : vector<16x128xf32>
    %650 = arith.addf %646, %649 : vector<16x128xf32>
    %651 = vector.extract_strided_slice %614 {offsets = [5, 0], sizes = [1, 128], strides = [1, 1]} : vector<9x128xf32> to vector<1x128xf32>
    %652 = vector.broadcast %651 : vector<1x128xf32> to vector<16x128xf32>
    %653 = arith.mulf %643, %652 : vector<16x128xf32>
    %654 = arith.addf %650, %653 : vector<16x128xf32>
    %655 = arith.addf %641, %654 : vector<16x128xf32>
    %c32_i32_218 = arith.constant 32 : i32
    %656 = tpu.dynamic_rotate %628 by %c32_i32_218 dim 1 : vector<16x128xf32>, i32 -> vector<16x128xf32>
    %c96_i32_219 = arith.constant 96 : i32
    %657 = tpu.dynamic_rotate %628 by %c96_i32_219 dim 1 : vector<16x128xf32>, i32 -> vector<16x128xf32>
    %658 = vector.extract_strided_slice %614 {offsets = [6, 0], sizes = [1, 128], strides = [1, 1]} : vector<9x128xf32> to vector<1x128xf32>
    %659 = vector.broadcast %658 : vector<1x128xf32> to vector<16x128xf32>
    %660 = arith.mulf %656, %659 : vector<16x128xf32>
    %661 = vector.extract_strided_slice %614 {offsets = [7, 0], sizes = [1, 128], strides = [1, 1]} : vector<9x128xf32> to vector<1x128xf32>
    %662 = vector.broadcast %661 : vector<1x128xf32> to vector<16x128xf32>
    %663 = arith.mulf %628, %662 : vector<16x128xf32>
    %664 = arith.addf %660, %663 : vector<16x128xf32>
    %665 = vector.extract_strided_slice %614 {offsets = [8, 0], sizes = [1, 128], strides = [1, 1]} : vector<9x128xf32> to vector<1x128xf32>
    %666 = vector.broadcast %665 : vector<1x128xf32> to vector<16x128xf32>
    %667 = arith.mulf %657, %666 : vector<16x128xf32>
    %668 = arith.addf %664, %667 : vector<16x128xf32>
    %669 = arith.addf %655, %668 : vector<16x128xf32>
    %670 = arith.truncf %669 : vector<16x128xf32> to vector<16x128xbf16>
    %cst_220 = arith.constant dense<0.000000e+00> : vector<16x128xf32>
    %671 = tpu.matmul %670, %616, %cst_220 {dimension_numbers = #tpu.dot_dimension_numbers<[1], [0], [0], [1], [0, 0, 1, 1], [], []>} : vector<16x128xbf16>, vector<128x128xbf16>, vector<16x128xf32> -> vector<16x128xf32>
    %672 = vector.extract_strided_slice %618 {offsets = [0, 0], sizes = [1, 128], strides = [1, 1]} : vector<2x128xf32> to vector<1x128xf32>
    %673 = vector.broadcast %672 : vector<1x128xf32> to vector<16x128xf32>
    %674 = arith.mulf %671, %673 : vector<16x128xf32>
    %675 = vector.extract_strided_slice %618 {offsets = [1, 0], sizes = [1, 128], strides = [1, 1]} : vector<2x128xf32> to vector<1x128xf32>
    %676 = vector.broadcast %675 : vector<1x128xf32> to vector<16x128xf32>
    %677 = arith.addf %674, %676 : vector<16x128xf32>
    %cst_221 = arith.constant 0.000000e+00 : f32
    %678 = vector.broadcast %cst_221 : f32 to vector<16x128xf32>
    %679 = arith.maximumf %677, %678 : vector<16x128xf32>
    %680 = arith.addf %679, %612 : vector<16x128xf32>
    %c6 = arith.constant 6 : index
    %c0_222 = arith.constant 0 : index
    %c0_223 = arith.constant 0 : index
    %681 = vector.load %arg16[%c6, %c0_222, %c0_223] : memref<9x9x128xf32, #tpu.memory_space<vmem>>, vector<1x9x128xf32>
    %682 = vector.shape_cast %681 : vector<1x9x128xf32> to vector<9x128xf32>
    %c6_224 = arith.constant 6 : index
    %c0_225 = arith.constant 0 : index
    %c0_226 = arith.constant 0 : index
    %683 = vector.load %arg17[%c6_224, %c0_225, %c0_226] : memref<9x128x128xbf16, #tpu.memory_space<vmem>>, vector<1x128x128xbf16>
    %684 = vector.shape_cast %683 : vector<1x128x128xbf16> to vector<128x128xbf16>
    %c6_227 = arith.constant 6 : index
    %c0_228 = arith.constant 0 : index
    %c0_229 = arith.constant 0 : index
    %685 = vector.load %arg18[%c6_227, %c0_228, %c0_229] : memref<9x2x128xf32, #tpu.memory_space<vmem>>, vector<1x2x128xf32>
    %686 = vector.shape_cast %685 : vector<1x2x128xf32> to vector<2x128xf32>
    %c1_i32_230 = arith.constant 1 : i32
    %687 = tpu.dynamic_rotate %680 by %c1_i32_230 dim 0 : vector<16x128xf32>, i32 -> vector<16x128xf32>
    %cst_231 = arith.constant 0.000000e+00 : f32
    %688 = vector.shape_cast %270 : vector<16x1xi1> to vector<16x1xi1>
    %689 = vector.broadcast %688 : vector<16x1xi1> to vector<16x128xi1>
    %690 = vector.broadcast %cst_231 : f32 to vector<16x128xf32>
    %691 = arith.select %689, %687, %690 : vector<16x128xi1>, vector<16x128xf32>
    %c15_i32_232 = arith.constant 15 : i32
    %692 = tpu.dynamic_rotate %680 by %c15_i32_232 dim 0 : vector<16x128xf32>, i32 -> vector<16x128xf32>
    %cst_233 = arith.constant 0.000000e+00 : f32
    %693 = vector.shape_cast %272 : vector<16x1xi1> to vector<16x1xi1>
    %694 = vector.broadcast %693 : vector<16x1xi1> to vector<16x128xi1>
    %695 = vector.broadcast %cst_233 : f32 to vector<16x128xf32>
    %696 = arith.select %694, %692, %695 : vector<16x128xi1>, vector<16x128xf32>
    %c32_i32_234 = arith.constant 32 : i32
    %697 = tpu.dynamic_rotate %691 by %c32_i32_234 dim 1 : vector<16x128xf32>, i32 -> vector<16x128xf32>
    %c96_i32_235 = arith.constant 96 : i32
    %698 = tpu.dynamic_rotate %691 by %c96_i32_235 dim 1 : vector<16x128xf32>, i32 -> vector<16x128xf32>
    %699 = vector.extract_strided_slice %682 {offsets = [0, 0], sizes = [1, 128], strides = [1, 1]} : vector<9x128xf32> to vector<1x128xf32>
    %700 = vector.broadcast %699 : vector<1x128xf32> to vector<16x128xf32>
    %701 = arith.mulf %697, %700 : vector<16x128xf32>
    %702 = vector.extract_strided_slice %682 {offsets = [1, 0], sizes = [1, 128], strides = [1, 1]} : vector<9x128xf32> to vector<1x128xf32>
    %703 = vector.broadcast %702 : vector<1x128xf32> to vector<16x128xf32>
    %704 = arith.mulf %691, %703 : vector<16x128xf32>
    %705 = arith.addf %701, %704 : vector<16x128xf32>
    %706 = vector.extract_strided_slice %682 {offsets = [2, 0], sizes = [1, 128], strides = [1, 1]} : vector<9x128xf32> to vector<1x128xf32>
    %707 = vector.broadcast %706 : vector<1x128xf32> to vector<16x128xf32>
    %708 = arith.mulf %698, %707 : vector<16x128xf32>
    %709 = arith.addf %705, %708 : vector<16x128xf32>
    %c32_i32_236 = arith.constant 32 : i32
    %710 = tpu.dynamic_rotate %680 by %c32_i32_236 dim 1 : vector<16x128xf32>, i32 -> vector<16x128xf32>
    %c96_i32_237 = arith.constant 96 : i32
    %711 = tpu.dynamic_rotate %680 by %c96_i32_237 dim 1 : vector<16x128xf32>, i32 -> vector<16x128xf32>
    %712 = vector.extract_strided_slice %682 {offsets = [3, 0], sizes = [1, 128], strides = [1, 1]} : vector<9x128xf32> to vector<1x128xf32>
    %713 = vector.broadcast %712 : vector<1x128xf32> to vector<16x128xf32>
    %714 = arith.mulf %710, %713 : vector<16x128xf32>
    %715 = vector.extract_strided_slice %682 {offsets = [4, 0], sizes = [1, 128], strides = [1, 1]} : vector<9x128xf32> to vector<1x128xf32>
    %716 = vector.broadcast %715 : vector<1x128xf32> to vector<16x128xf32>
    %717 = arith.mulf %680, %716 : vector<16x128xf32>
    %718 = arith.addf %714, %717 : vector<16x128xf32>
    %719 = vector.extract_strided_slice %682 {offsets = [5, 0], sizes = [1, 128], strides = [1, 1]} : vector<9x128xf32> to vector<1x128xf32>
    %720 = vector.broadcast %719 : vector<1x128xf32> to vector<16x128xf32>
    %721 = arith.mulf %711, %720 : vector<16x128xf32>
    %722 = arith.addf %718, %721 : vector<16x128xf32>
    %723 = arith.addf %709, %722 : vector<16x128xf32>
    %c32_i32_238 = arith.constant 32 : i32
    %724 = tpu.dynamic_rotate %696 by %c32_i32_238 dim 1 : vector<16x128xf32>, i32 -> vector<16x128xf32>
    %c96_i32_239 = arith.constant 96 : i32
    %725 = tpu.dynamic_rotate %696 by %c96_i32_239 dim 1 : vector<16x128xf32>, i32 -> vector<16x128xf32>
    %726 = vector.extract_strided_slice %682 {offsets = [6, 0], sizes = [1, 128], strides = [1, 1]} : vector<9x128xf32> to vector<1x128xf32>
    %727 = vector.broadcast %726 : vector<1x128xf32> to vector<16x128xf32>
    %728 = arith.mulf %724, %727 : vector<16x128xf32>
    %729 = vector.extract_strided_slice %682 {offsets = [7, 0], sizes = [1, 128], strides = [1, 1]} : vector<9x128xf32> to vector<1x128xf32>
    %730 = vector.broadcast %729 : vector<1x128xf32> to vector<16x128xf32>
    %731 = arith.mulf %696, %730 : vector<16x128xf32>
    %732 = arith.addf %728, %731 : vector<16x128xf32>
    %733 = vector.extract_strided_slice %682 {offsets = [8, 0], sizes = [1, 128], strides = [1, 1]} : vector<9x128xf32> to vector<1x128xf32>
    %734 = vector.broadcast %733 : vector<1x128xf32> to vector<16x128xf32>
    %735 = arith.mulf %725, %734 : vector<16x128xf32>
    %736 = arith.addf %732, %735 : vector<16x128xf32>
    %737 = arith.addf %723, %736 : vector<16x128xf32>
    %738 = arith.truncf %737 : vector<16x128xf32> to vector<16x128xbf16>
    %cst_240 = arith.constant dense<0.000000e+00> : vector<16x128xf32>
    %739 = tpu.matmul %738, %684, %cst_240 {dimension_numbers = #tpu.dot_dimension_numbers<[1], [0], [0], [1], [0, 0, 1, 1], [], []>} : vector<16x128xbf16>, vector<128x128xbf16>, vector<16x128xf32> -> vector<16x128xf32>
    %740 = vector.extract_strided_slice %686 {offsets = [0, 0], sizes = [1, 128], strides = [1, 1]} : vector<2x128xf32> to vector<1x128xf32>
    %741 = vector.broadcast %740 : vector<1x128xf32> to vector<16x128xf32>
    %742 = arith.mulf %739, %741 : vector<16x128xf32>
    %743 = vector.extract_strided_slice %686 {offsets = [1, 0], sizes = [1, 128], strides = [1, 1]} : vector<2x128xf32> to vector<1x128xf32>
    %744 = vector.broadcast %743 : vector<1x128xf32> to vector<16x128xf32>
    %745 = arith.addf %742, %744 : vector<16x128xf32>
    %cst_241 = arith.constant 0.000000e+00 : f32
    %746 = vector.broadcast %cst_241 : f32 to vector<16x128xf32>
    %747 = arith.maximumf %745, %746 : vector<16x128xf32>
    %748 = arith.addf %747, %680 : vector<16x128xf32>
    %c7 = arith.constant 7 : index
    %c0_242 = arith.constant 0 : index
    %c0_243 = arith.constant 0 : index
    %749 = vector.load %arg16[%c7, %c0_242, %c0_243] : memref<9x9x128xf32, #tpu.memory_space<vmem>>, vector<1x9x128xf32>
    %750 = vector.shape_cast %749 : vector<1x9x128xf32> to vector<9x128xf32>
    %c7_244 = arith.constant 7 : index
    %c0_245 = arith.constant 0 : index
    %c0_246 = arith.constant 0 : index
    %751 = vector.load %arg17[%c7_244, %c0_245, %c0_246] : memref<9x128x128xbf16, #tpu.memory_space<vmem>>, vector<1x128x128xbf16>
    %752 = vector.shape_cast %751 : vector<1x128x128xbf16> to vector<128x128xbf16>
    %c7_247 = arith.constant 7 : index
    %c0_248 = arith.constant 0 : index
    %c0_249 = arith.constant 0 : index
    %753 = vector.load %arg18[%c7_247, %c0_248, %c0_249] : memref<9x2x128xf32, #tpu.memory_space<vmem>>, vector<1x2x128xf32>
    %754 = vector.shape_cast %753 : vector<1x2x128xf32> to vector<2x128xf32>
    %c1_i32_250 = arith.constant 1 : i32
    %755 = tpu.dynamic_rotate %748 by %c1_i32_250 dim 0 : vector<16x128xf32>, i32 -> vector<16x128xf32>
    %cst_251 = arith.constant 0.000000e+00 : f32
    %756 = vector.shape_cast %270 : vector<16x1xi1> to vector<16x1xi1>
    %757 = vector.broadcast %756 : vector<16x1xi1> to vector<16x128xi1>
    %758 = vector.broadcast %cst_251 : f32 to vector<16x128xf32>
    %759 = arith.select %757, %755, %758 : vector<16x128xi1>, vector<16x128xf32>
    %c15_i32_252 = arith.constant 15 : i32
    %760 = tpu.dynamic_rotate %748 by %c15_i32_252 dim 0 : vector<16x128xf32>, i32 -> vector<16x128xf32>
    %cst_253 = arith.constant 0.000000e+00 : f32
    %761 = vector.shape_cast %272 : vector<16x1xi1> to vector<16x1xi1>
    %762 = vector.broadcast %761 : vector<16x1xi1> to vector<16x128xi1>
    %763 = vector.broadcast %cst_253 : f32 to vector<16x128xf32>
    %764 = arith.select %762, %760, %763 : vector<16x128xi1>, vector<16x128xf32>
    %c32_i32_254 = arith.constant 32 : i32
    %765 = tpu.dynamic_rotate %759 by %c32_i32_254 dim 1 : vector<16x128xf32>, i32 -> vector<16x128xf32>
    %c96_i32_255 = arith.constant 96 : i32
    %766 = tpu.dynamic_rotate %759 by %c96_i32_255 dim 1 : vector<16x128xf32>, i32 -> vector<16x128xf32>
    %767 = vector.extract_strided_slice %750 {offsets = [0, 0], sizes = [1, 128], strides = [1, 1]} : vector<9x128xf32> to vector<1x128xf32>
    %768 = vector.broadcast %767 : vector<1x128xf32> to vector<16x128xf32>
    %769 = arith.mulf %765, %768 : vector<16x128xf32>
    %770 = vector.extract_strided_slice %750 {offsets = [1, 0], sizes = [1, 128], strides = [1, 1]} : vector<9x128xf32> to vector<1x128xf32>
    %771 = vector.broadcast %770 : vector<1x128xf32> to vector<16x128xf32>
    %772 = arith.mulf %759, %771 : vector<16x128xf32>
    %773 = arith.addf %769, %772 : vector<16x128xf32>
    %774 = vector.extract_strided_slice %750 {offsets = [2, 0], sizes = [1, 128], strides = [1, 1]} : vector<9x128xf32> to vector<1x128xf32>
    %775 = vector.broadcast %774 : vector<1x128xf32> to vector<16x128xf32>
    %776 = arith.mulf %766, %775 : vector<16x128xf32>
    %777 = arith.addf %773, %776 : vector<16x128xf32>
    %c32_i32_256 = arith.constant 32 : i32
    %778 = tpu.dynamic_rotate %748 by %c32_i32_256 dim 1 : vector<16x128xf32>, i32 -> vector<16x128xf32>
    %c96_i32_257 = arith.constant 96 : i32
    %779 = tpu.dynamic_rotate %748 by %c96_i32_257 dim 1 : vector<16x128xf32>, i32 -> vector<16x128xf32>
    %780 = vector.extract_strided_slice %750 {offsets = [3, 0], sizes = [1, 128], strides = [1, 1]} : vector<9x128xf32> to vector<1x128xf32>
    %781 = vector.broadcast %780 : vector<1x128xf32> to vector<16x128xf32>
    %782 = arith.mulf %778, %781 : vector<16x128xf32>
    %783 = vector.extract_strided_slice %750 {offsets = [4, 0], sizes = [1, 128], strides = [1, 1]} : vector<9x128xf32> to vector<1x128xf32>
    %784 = vector.broadcast %783 : vector<1x128xf32> to vector<16x128xf32>
    %785 = arith.mulf %748, %784 : vector<16x128xf32>
    %786 = arith.addf %782, %785 : vector<16x128xf32>
    %787 = vector.extract_strided_slice %750 {offsets = [5, 0], sizes = [1, 128], strides = [1, 1]} : vector<9x128xf32> to vector<1x128xf32>
    %788 = vector.broadcast %787 : vector<1x128xf32> to vector<16x128xf32>
    %789 = arith.mulf %779, %788 : vector<16x128xf32>
    %790 = arith.addf %786, %789 : vector<16x128xf32>
    %791 = arith.addf %777, %790 : vector<16x128xf32>
    %c32_i32_258 = arith.constant 32 : i32
    %792 = tpu.dynamic_rotate %764 by %c32_i32_258 dim 1 : vector<16x128xf32>, i32 -> vector<16x128xf32>
    %c96_i32_259 = arith.constant 96 : i32
    %793 = tpu.dynamic_rotate %764 by %c96_i32_259 dim 1 : vector<16x128xf32>, i32 -> vector<16x128xf32>
    %794 = vector.extract_strided_slice %750 {offsets = [6, 0], sizes = [1, 128], strides = [1, 1]} : vector<9x128xf32> to vector<1x128xf32>
    %795 = vector.broadcast %794 : vector<1x128xf32> to vector<16x128xf32>
    %796 = arith.mulf %792, %795 : vector<16x128xf32>
    %797 = vector.extract_strided_slice %750 {offsets = [7, 0], sizes = [1, 128], strides = [1, 1]} : vector<9x128xf32> to vector<1x128xf32>
    %798 = vector.broadcast %797 : vector<1x128xf32> to vector<16x128xf32>
    %799 = arith.mulf %764, %798 : vector<16x128xf32>
    %800 = arith.addf %796, %799 : vector<16x128xf32>
    %801 = vector.extract_strided_slice %750 {offsets = [8, 0], sizes = [1, 128], strides = [1, 1]} : vector<9x128xf32> to vector<1x128xf32>
    %802 = vector.broadcast %801 : vector<1x128xf32> to vector<16x128xf32>
    %803 = arith.mulf %793, %802 : vector<16x128xf32>
    %804 = arith.addf %800, %803 : vector<16x128xf32>
    %805 = arith.addf %791, %804 : vector<16x128xf32>
    %806 = arith.truncf %805 : vector<16x128xf32> to vector<16x128xbf16>
    %cst_260 = arith.constant dense<0.000000e+00> : vector<16x128xf32>
    %807 = tpu.matmul %806, %752, %cst_260 {dimension_numbers = #tpu.dot_dimension_numbers<[1], [0], [0], [1], [0, 0, 1, 1], [], []>} : vector<16x128xbf16>, vector<128x128xbf16>, vector<16x128xf32> -> vector<16x128xf32>
    %808 = vector.extract_strided_slice %754 {offsets = [0, 0], sizes = [1, 128], strides = [1, 1]} : vector<2x128xf32> to vector<1x128xf32>
    %809 = vector.broadcast %808 : vector<1x128xf32> to vector<16x128xf32>
    %810 = arith.mulf %807, %809 : vector<16x128xf32>
    %811 = vector.extract_strided_slice %754 {offsets = [1, 0], sizes = [1, 128], strides = [1, 1]} : vector<2x128xf32> to vector<1x128xf32>
    %812 = vector.broadcast %811 : vector<1x128xf32> to vector<16x128xf32>
    %813 = arith.addf %810, %812 : vector<16x128xf32>
    %cst_261 = arith.constant 0.000000e+00 : f32
    %814 = vector.broadcast %cst_261 : f32 to vector<16x128xf32>
    %815 = arith.maximumf %813, %814 : vector<16x128xf32>
    %816 = arith.addf %815, %748 : vector<16x128xf32>
    %c8 = arith.constant 8 : index
    %c0_262 = arith.constant 0 : index
    %c0_263 = arith.constant 0 : index
    %817 = vector.load %arg16[%c8, %c0_262, %c0_263] : memref<9x9x128xf32, #tpu.memory_space<vmem>>, vector<1x9x128xf32>
    %818 = vector.shape_cast %817 : vector<1x9x128xf32> to vector<9x128xf32>
    %c8_264 = arith.constant 8 : index
    %c0_265 = arith.constant 0 : index
    %c0_266 = arith.constant 0 : index
    %819 = vector.load %arg17[%c8_264, %c0_265, %c0_266] : memref<9x128x128xbf16, #tpu.memory_space<vmem>>, vector<1x128x128xbf16>
    %820 = vector.shape_cast %819 : vector<1x128x128xbf16> to vector<128x128xbf16>
    %c8_267 = arith.constant 8 : index
    %c0_268 = arith.constant 0 : index
    %c0_269 = arith.constant 0 : index
    %821 = vector.load %arg18[%c8_267, %c0_268, %c0_269] : memref<9x2x128xf32, #tpu.memory_space<vmem>>, vector<1x2x128xf32>
    %822 = vector.shape_cast %821 : vector<1x2x128xf32> to vector<2x128xf32>
    %c1_i32_270 = arith.constant 1 : i32
    %823 = tpu.dynamic_rotate %816 by %c1_i32_270 dim 0 : vector<16x128xf32>, i32 -> vector<16x128xf32>
    %cst_271 = arith.constant 0.000000e+00 : f32
    %824 = vector.shape_cast %270 : vector<16x1xi1> to vector<16x1xi1>
    %825 = vector.broadcast %824 : vector<16x1xi1> to vector<16x128xi1>
    %826 = vector.broadcast %cst_271 : f32 to vector<16x128xf32>
    %827 = arith.select %825, %823, %826 : vector<16x128xi1>, vector<16x128xf32>
    %c15_i32_272 = arith.constant 15 : i32
    %828 = tpu.dynamic_rotate %816 by %c15_i32_272 dim 0 : vector<16x128xf32>, i32 -> vector<16x128xf32>
    %cst_273 = arith.constant 0.000000e+00 : f32
    %829 = vector.shape_cast %272 : vector<16x1xi1> to vector<16x1xi1>
    %830 = vector.broadcast %829 : vector<16x1xi1> to vector<16x128xi1>
    %831 = vector.broadcast %cst_273 : f32 to vector<16x128xf32>
    %832 = arith.select %830, %828, %831 : vector<16x128xi1>, vector<16x128xf32>
    %c32_i32_274 = arith.constant 32 : i32
    %833 = tpu.dynamic_rotate %827 by %c32_i32_274 dim 1 : vector<16x128xf32>, i32 -> vector<16x128xf32>
    %c96_i32_275 = arith.constant 96 : i32
    %834 = tpu.dynamic_rotate %827 by %c96_i32_275 dim 1 : vector<16x128xf32>, i32 -> vector<16x128xf32>
    %835 = vector.extract_strided_slice %818 {offsets = [0, 0], sizes = [1, 128], strides = [1, 1]} : vector<9x128xf32> to vector<1x128xf32>
    %836 = vector.broadcast %835 : vector<1x128xf32> to vector<16x128xf32>
    %837 = arith.mulf %833, %836 : vector<16x128xf32>
    %838 = vector.extract_strided_slice %818 {offsets = [1, 0], sizes = [1, 128], strides = [1, 1]} : vector<9x128xf32> to vector<1x128xf32>
    %839 = vector.broadcast %838 : vector<1x128xf32> to vector<16x128xf32>
    %840 = arith.mulf %827, %839 : vector<16x128xf32>
    %841 = arith.addf %837, %840 : vector<16x128xf32>
    %842 = vector.extract_strided_slice %818 {offsets = [2, 0], sizes = [1, 128], strides = [1, 1]} : vector<9x128xf32> to vector<1x128xf32>
    %843 = vector.broadcast %842 : vector<1x128xf32> to vector<16x128xf32>
    %844 = arith.mulf %834, %843 : vector<16x128xf32>
    %845 = arith.addf %841, %844 : vector<16x128xf32>
    %c32_i32_276 = arith.constant 32 : i32
    %846 = tpu.dynamic_rotate %816 by %c32_i32_276 dim 1 : vector<16x128xf32>, i32 -> vector<16x128xf32>
    %c96_i32_277 = arith.constant 96 : i32
    %847 = tpu.dynamic_rotate %816 by %c96_i32_277 dim 1 : vector<16x128xf32>, i32 -> vector<16x128xf32>
    %848 = vector.extract_strided_slice %818 {offsets = [3, 0], sizes = [1, 128], strides = [1, 1]} : vector<9x128xf32> to vector<1x128xf32>
    %849 = vector.broadcast %848 : vector<1x128xf32> to vector<16x128xf32>
    %850 = arith.mulf %846, %849 : vector<16x128xf32>
    %851 = vector.extract_strided_slice %818 {offsets = [4, 0], sizes = [1, 128], strides = [1, 1]} : vector<9x128xf32> to vector<1x128xf32>
    %852 = vector.broadcast %851 : vector<1x128xf32> to vector<16x128xf32>
    %853 = arith.mulf %816, %852 : vector<16x128xf32>
    %854 = arith.addf %850, %853 : vector<16x128xf32>
    %855 = vector.extract_strided_slice %818 {offsets = [5, 0], sizes = [1, 128], strides = [1, 1]} : vector<9x128xf32> to vector<1x128xf32>
    %856 = vector.broadcast %855 : vector<1x128xf32> to vector<16x128xf32>
    %857 = arith.mulf %847, %856 : vector<16x128xf32>
    %858 = arith.addf %854, %857 : vector<16x128xf32>
    %859 = arith.addf %845, %858 : vector<16x128xf32>
    %c32_i32_278 = arith.constant 32 : i32
    %860 = tpu.dynamic_rotate %832 by %c32_i32_278 dim 1 : vector<16x128xf32>, i32 -> vector<16x128xf32>
    %c96_i32_279 = arith.constant 96 : i32
    %861 = tpu.dynamic_rotate %832 by %c96_i32_279 dim 1 : vector<16x128xf32>, i32 -> vector<16x128xf32>
    %862 = vector.extract_strided_slice %818 {offsets = [6, 0], sizes = [1, 128], strides = [1, 1]} : vector<9x128xf32> to vector<1x128xf32>
    %863 = vector.broadcast %862 : vector<1x128xf32> to vector<16x128xf32>
    %864 = arith.mulf %860, %863 : vector<16x128xf32>
    %865 = vector.extract_strided_slice %818 {offsets = [7, 0], sizes = [1, 128], strides = [1, 1]} : vector<9x128xf32> to vector<1x128xf32>
    %866 = vector.broadcast %865 : vector<1x128xf32> to vector<16x128xf32>
    %867 = arith.mulf %832, %866 : vector<16x128xf32>
    %868 = arith.addf %864, %867 : vector<16x128xf32>
    %869 = vector.extract_strided_slice %818 {offsets = [8, 0], sizes = [1, 128], strides = [1, 1]} : vector<9x128xf32> to vector<1x128xf32>
    %870 = vector.broadcast %869 : vector<1x128xf32> to vector<16x128xf32>
    %871 = arith.mulf %861, %870 : vector<16x128xf32>
    %872 = arith.addf %868, %871 : vector<16x128xf32>
    %873 = arith.addf %859, %872 : vector<16x128xf32>
    %874 = arith.truncf %873 : vector<16x128xf32> to vector<16x128xbf16>
    %cst_280 = arith.constant dense<0.000000e+00> : vector<16x128xf32>
    %875 = tpu.matmul %874, %820, %cst_280 {dimension_numbers = #tpu.dot_dimension_numbers<[1], [0], [0], [1], [0, 0, 1, 1], [], []>} : vector<16x128xbf16>, vector<128x128xbf16>, vector<16x128xf32> -> vector<16x128xf32>
    %876 = vector.extract_strided_slice %822 {offsets = [0, 0], sizes = [1, 128], strides = [1, 1]} : vector<2x128xf32> to vector<1x128xf32>
    %877 = vector.broadcast %876 : vector<1x128xf32> to vector<16x128xf32>
    %878 = arith.mulf %875, %877 : vector<16x128xf32>
    %879 = vector.extract_strided_slice %822 {offsets = [1, 0], sizes = [1, 128], strides = [1, 1]} : vector<2x128xf32> to vector<1x128xf32>
    %880 = vector.broadcast %879 : vector<1x128xf32> to vector<16x128xf32>
    %881 = arith.addf %878, %880 : vector<16x128xf32>
    %cst_281 = arith.constant 0.000000e+00 : f32
    %882 = vector.broadcast %cst_281 : f32 to vector<16x128xf32>
    %883 = arith.maximumf %881, %882 : vector<16x128xf32>
    %884 = arith.addf %883, %816 : vector<16x128xf32>
    %c0_282 = arith.constant 0 : index
    %c0_283 = arith.constant 0 : index
    %c0_284 = arith.constant 0 : index
    %885 = vector.load %arg19[%c0_282, %c0_283, %c0_284] : memref<4x4x16xf32, #tpu.memory_space<vmem>>, vector<1x4x16xf32>
    %886 = vector.shape_cast %885 : vector<1x4x16xf32> to vector<4x16xf32>
    %cst_285 = arith.constant dense<0.000000e+00> : vector<4x128xf32>
    %887 = tpu.matmul %886, %884, %cst_285 {dimension_numbers = #tpu.dot_dimension_numbers<[1], [0], [0], [1], [0, 0, 1, 1], [], []>} : vector<4x16xf32>, vector<16x128xf32>, vector<4x128xf32> -> vector<4x128xf32>
    %c1_286 = arith.constant 1 : index
    %c0_287 = arith.constant 0 : index
    %c0_288 = arith.constant 0 : index
    %888 = vector.load %arg19[%c1_286, %c0_287, %c0_288] : memref<4x4x16xf32, #tpu.memory_space<vmem>>, vector<1x4x16xf32>
    %889 = vector.shape_cast %888 : vector<1x4x16xf32> to vector<4x16xf32>
    %cst_289 = arith.constant dense<0.000000e+00> : vector<4x128xf32>
    %890 = tpu.matmul %889, %884, %cst_289 {dimension_numbers = #tpu.dot_dimension_numbers<[1], [0], [0], [1], [0, 0, 1, 1], [], []>} : vector<4x16xf32>, vector<16x128xf32>, vector<4x128xf32> -> vector<4x128xf32>
    %c2_290 = arith.constant 2 : index
    %c0_291 = arith.constant 0 : index
    %c0_292 = arith.constant 0 : index
    %891 = vector.load %arg19[%c2_290, %c0_291, %c0_292] : memref<4x4x16xf32, #tpu.memory_space<vmem>>, vector<1x4x16xf32>
    %892 = vector.shape_cast %891 : vector<1x4x16xf32> to vector<4x16xf32>
    %cst_293 = arith.constant dense<0.000000e+00> : vector<4x128xf32>
    %893 = tpu.matmul %892, %884, %cst_293 {dimension_numbers = #tpu.dot_dimension_numbers<[1], [0], [0], [1], [0, 0, 1, 1], [], []>} : vector<4x16xf32>, vector<16x128xf32>, vector<4x128xf32> -> vector<4x128xf32>
    %c3_294 = arith.constant 3 : index
    %c0_295 = arith.constant 0 : index
    %c0_296 = arith.constant 0 : index
    %894 = vector.load %arg19[%c3_294, %c0_295, %c0_296] : memref<4x4x16xf32, #tpu.memory_space<vmem>>, vector<1x4x16xf32>
    %895 = vector.shape_cast %894 : vector<1x4x16xf32> to vector<4x16xf32>
    %cst_297 = arith.constant dense<0.000000e+00> : vector<4x128xf32>
    %896 = tpu.matmul %895, %884, %cst_297 {dimension_numbers = #tpu.dot_dimension_numbers<[1], [0], [0], [1], [0, 0, 1, 1], [], []>} : vector<4x16xf32>, vector<16x128xf32>, vector<4x128xf32> -> vector<4x128xf32>
    %897 = tpu.concatenate %887, %890, %893, %896 in 1 : vector<4x128xf32>, vector<4x128xf32>, vector<4x128xf32>, vector<4x128xf32> -> vector<4x512xf32>
    %898 = arith.truncf %897 : vector<4x512xf32> to vector<4x512xbf16>
    %c0_298 = arith.constant 0 : index
    %c0_299 = arith.constant 0 : index
    %899 = vector.load %arg20[%c0_298, %c0_299] : memref<512x640xbf16, #tpu.memory_space<vmem>>, vector<512x640xbf16>
    %cst_300 = arith.constant dense<0.000000e+00> : vector<4x640xf32>
    %900 = tpu.matmul %898, %899, %cst_300 {dimension_numbers = #tpu.dot_dimension_numbers<[1], [0], [0], [1], [0, 0, 1, 1], [], []>} : vector<4x512xbf16>, vector<512x640xbf16>, vector<4x640xf32> -> vector<4x640xf32>
    %c0_301 = arith.constant 0 : index
    %c0_302 = arith.constant 0 : index
    %901 = vector.load %arg21[%c0_301, %c0_302] : memref<1x640xf32, #tpu.memory_space<vmem>>, vector<1x640xf32>
    %902 = vector.broadcast %901 : vector<1x640xf32> to vector<4x640xf32>
    %903 = arith.addf %900, %902 : vector<4x640xf32>
    %cst_303 = arith.constant 0.000000e+00 : f32
    %904 = vector.broadcast %cst_303 : f32 to vector<4x640xf32>
    %905 = arith.maximumf %903, %904 : vector<4x640xf32>
    %906 = vector.extract_strided_slice %905 {offsets = [0, 0], sizes = [4, 128], strides = [1, 1]} : vector<4x640xf32> to vector<4x128xf32>
    %907 = vector.extract_strided_slice %905 {offsets = [0, 128], sizes = [4, 512], strides = [1, 1]} : vector<4x640xf32> to vector<4x512xf32>
    %908 = arith.truncf %906 : vector<4x128xf32> to vector<4x128xbf16>
    %c0_304 = arith.constant 0 : index
    %c0_305 = arith.constant 0 : index
    %909 = vector.load %arg22[%c0_304, %c0_305] : memref<128x32xbf16, #tpu.memory_space<vmem>>, vector<128x32xbf16>
    %cst_306 = arith.constant dense<0.000000e+00> : vector<4x32xf32>
    %910 = tpu.matmul %908, %909, %cst_306 {dimension_numbers = #tpu.dot_dimension_numbers<[1], [0], [0], [1], [0, 0, 1, 1], [], []>} : vector<4x128xbf16>, vector<128x32xbf16>, vector<4x32xf32> -> vector<4x32xf32>
    %c0_307 = arith.constant 0 : index
    %c0_308 = arith.constant 0 : index
    %911 = vector.load %arg23[%c0_307, %c0_308] : memref<1x32xf32, #tpu.memory_space<vmem>>, vector<1x32xf32>
    %912 = vector.broadcast %911 : vector<1x32xf32> to vector<4x32xf32>
    %913 = arith.addf %910, %912 : vector<4x32xf32>
    %cst_309 = arith.constant 0.000000e+00 : f32
    %914 = vector.broadcast %cst_309 : f32 to vector<4x32xf32>
    %915 = arith.maximumf %913, %914 : vector<4x32xf32>
    %916 = arith.truncf %907 : vector<4x512xf32> to vector<4x512xbf16>
    %c0_310 = arith.constant 0 : index
    %c0_311 = arith.constant 0 : index
    %917 = vector.load %arg24[%c0_310, %c0_311] : memref<512x128xbf16, #tpu.memory_space<vmem>>, vector<512x128xbf16>
    %cst_312 = arith.constant dense<0.000000e+00> : vector<4x128xf32>
    %918 = tpu.matmul %916, %917, %cst_312 {dimension_numbers = #tpu.dot_dimension_numbers<[1], [0], [0], [1], [0, 0, 1, 1], [], []>} : vector<4x512xbf16>, vector<512x128xbf16>, vector<4x128xf32> -> vector<4x128xf32>
    %c0_313 = arith.constant 0 : index
    %c0_314 = arith.constant 0 : index
    %919 = vector.load %arg25[%c0_313, %c0_314] : memref<1x128xf32, #tpu.memory_space<vmem>>, vector<1x128xf32>
    %920 = vector.broadcast %919 : vector<1x128xf32> to vector<4x128xf32>
    %921 = arith.addf %918, %920 : vector<4x128xf32>
    %cst_315 = arith.constant 0.000000e+00 : f32
    %922 = vector.broadcast %cst_315 : f32 to vector<4x128xf32>
    %923 = arith.maximumf %921, %922 : vector<4x128xf32>
    %924 = arith.truncf %923 : vector<4x128xf32> to vector<4x128xbf16>
    %c0_316 = arith.constant 0 : index
    %c0_317 = arith.constant 0 : index
    %925 = vector.load %arg26[%c0_316, %c0_317] : memref<128x32xbf16, #tpu.memory_space<vmem>>, vector<128x32xbf16>
    %cst_318 = arith.constant dense<0.000000e+00> : vector<4x32xf32>
    %926 = tpu.matmul %924, %925, %cst_318 {dimension_numbers = #tpu.dot_dimension_numbers<[1], [0], [0], [1], [0, 0, 1, 1], [], []>} : vector<4x128xbf16>, vector<128x32xbf16>, vector<4x32xf32> -> vector<4x32xf32>
    %c0_319 = arith.constant 0 : index
    %c0_320 = arith.constant 0 : index
    %927 = vector.load %arg27[%c0_319, %c0_320] : memref<1x32xf32, #tpu.memory_space<vmem>>, vector<1x32xf32>
    %928 = vector.broadcast %927 : vector<1x32xf32> to vector<4x32xf32>
    %929 = arith.addf %926, %928 : vector<4x32xf32>
    %cst_321 = arith.constant 0.000000e+00 : f32
    %930 = vector.broadcast %cst_321 : f32 to vector<4x32xf32>
    %931 = arith.maximumf %929, %930 : vector<4x32xf32>
    %932 = arith.truncf %915 : vector<4x32xf32> to vector<4x32xbf16>
    %c0_322 = arith.constant 0 : index
    %c0_323 = arith.constant 0 : index
    %c0_324 = arith.constant 0 : index
    %933 = vector.load %arg28[%c0_322, %c0_323, %c0_324] : memref<2x32x128xbf16, #tpu.memory_space<vmem>>, vector<1x32x128xbf16>
    %934 = vector.shape_cast %933 : vector<1x32x128xbf16> to vector<32x128xbf16>
    %cst_325 = arith.constant dense<0.000000e+00> : vector<4x128xf32>
    %935 = tpu.matmul %932, %934, %cst_325 {dimension_numbers = #tpu.dot_dimension_numbers<[1], [0], [0], [1], [0, 0, 1, 1], [], []>} : vector<4x32xbf16>, vector<32x128xbf16>, vector<4x128xf32> -> vector<4x128xf32>
    %936 = arith.truncf %931 : vector<4x32xf32> to vector<4x32xbf16>
    %c1_326 = arith.constant 1 : index
    %c0_327 = arith.constant 0 : index
    %c0_328 = arith.constant 0 : index
    %937 = vector.load %arg28[%c1_326, %c0_327, %c0_328] : memref<2x32x128xbf16, #tpu.memory_space<vmem>>, vector<1x32x128xbf16>
    %938 = vector.shape_cast %937 : vector<1x32x128xbf16> to vector<32x128xbf16>
    %cst_329 = arith.constant dense<0.000000e+00> : vector<4x128xf32>
    %939 = tpu.matmul %936, %938, %cst_329 {dimension_numbers = #tpu.dot_dimension_numbers<[1], [0], [0], [1], [0, 0, 1, 1], [], []>} : vector<4x32xbf16>, vector<32x128xbf16>, vector<4x128xf32> -> vector<4x128xf32>
    %940 = arith.addf %935, %939 : vector<4x128xf32>
    %c0_330 = arith.constant 0 : index
    %c0_331 = arith.constant 0 : index
    %941 = vector.load %arg29[%c0_330, %c0_331] : memref<1x128xf32, #tpu.memory_space<vmem>>, vector<1x128xf32>
    %942 = vector.broadcast %941 : vector<1x128xf32> to vector<4x128xf32>
    %943 = arith.addf %940, %942 : vector<4x128xf32>
    %944 = tpu.iota {dimensions = array<i32: 1>} : vector<1x128xi32>
    %c0_i32_332 = arith.constant 0 : i32
    %945 = vector.broadcast %c0_i32_332 : i32 to vector<1x128xi32>
    %946 = arith.cmpi eq, %944, %945 : vector<1x128xi32>
    %cst_333 = arith.constant 0.000000e+00 : f32
    %947 = vector.broadcast %cst_333 : f32 to vector<4x128xf32>
    %948 = arith.subf %947, %943 : vector<4x128xf32>
    %949 = math.exp %948 : vector<4x128xf32>
    %cst_334 = arith.constant 1.000000e+00 : f32
    %950 = vector.broadcast %cst_334 : f32 to vector<4x128xf32>
    %951 = arith.addf %950, %949 : vector<4x128xf32>
    %cst_335 = arith.constant 1.000000e+00 : f32
    %952 = vector.broadcast %cst_335 : f32 to vector<4x128xf32>
    %953 = arith.divf %952, %951 : vector<4x128xf32>
    %954 = vector.shape_cast %946 : vector<1x128xi1> to vector<1x128xi1>
    %955 = vector.broadcast %954 : vector<1x128xi1> to vector<4x128xi1>
    %956 = arith.select %955, %953, %943 : vector<4x128xi1>, vector<4x128xf32>
    %c0_336 = arith.constant 0 : index
    %c0_337 = arith.constant 0 : index
    %c0_338 = arith.constant 0 : index
    %957 = vector.load %arg30[%c0_336, %c0_337, %c0_338] : memref<1x4x128xf32, #tpu.memory_space<vmem>>, vector<1x4x128xf32>
    %958 = vector.shape_cast %957 : vector<1x4x128xf32> to vector<4x128xf32>
    %959 = vector.shape_cast %956 : vector<4x128xf32> to vector<1x4x128xf32>
    tpu.vector_store %arg30[%c0_336, %c0_337, %c0_338], %959 {strides = array<i32>} : memref<1x4x128xf32, #tpu.memory_space<vmem>>, vector<1x4x128xf32>,
    return
  }
  func.func @transform_0(%arg0: i32) -> (i32, i32, i32) {
    %c0_i32 = arith.constant 0 : i32
    %c0_i32_0 = arith.constant 0 : i32
    %c0_i32_1 = arith.constant 0 : i32
    return %arg0, %c0_i32, %c0_i32_0 : i32, i32, i32
  }
  func.func @transform_1(%arg0: i32) -> (i32, i32, i32) {
    %c0_i32 = arith.constant 0 : i32
    %c0_i32_0 = arith.constant 0 : i32
    %c0_i32_1 = arith.constant 0 : i32
    %c0_i32_2 = arith.constant 0 : i32
    return %c0_i32, %c0_i32_0, %c0_i32_1 : i32, i32, i32
  }
  func.func @transform_2(%arg0: i32) -> (i32, i32) {
    %c0_i32 = arith.constant 0 : i32
    %c0_i32_0 = arith.constant 0 : i32
    %c0_i32_1 = arith.constant 0 : i32
    return %c0_i32, %c0_i32_0 : i32, i32
  }
  func.func @transform_3(%arg0: i32) -> (i32, i32) {
    %c0_i32 = arith.constant 0 : i32
    %c0_i32_0 = arith.constant 0 : i32
    %c0_i32_1 = arith.constant 0 : i32
    return %c0_i32, %c0_i32_0 : i32, i32
  }
  func.func @transform_4(%arg0: i32) -> (i32, i32) {
    %c0_i32 = arith.constant 0 : i32
    %c0_i32_0 = arith.constant 0 : i32
    %c0_i32_1 = arith.constant 0 : i32
    return %c0_i32, %c0_i32_0 : i32, i32
  }
  func.func @transform_5(%arg0: i32) -> (i32, i32) {
    %c0_i32 = arith.constant 0 : i32
    %c0_i32_0 = arith.constant 0 : i32
    %c0_i32_1 = arith.constant 0 : i32
    return %c0_i32, %c0_i32_0 : i32, i32
  }
  func.func @transform_6(%arg0: i32) -> (i32, i32) {
    %c0_i32 = arith.constant 0 : i32
    %c0_i32_0 = arith.constant 0 : i32
    %c0_i32_1 = arith.constant 0 : i32
    return %c0_i32, %c0_i32_0 : i32, i32
  }
  func.func @transform_7(%arg0: i32) -> (i32, i32) {
    %c0_i32 = arith.constant 0 : i32
    %c0_i32_0 = arith.constant 0 : i32
    %c0_i32_1 = arith.constant 0 : i32
    return %c0_i32, %c0_i32_0 : i32, i32
  }
  func.func @transform_8(%arg0: i32) -> (i32, i32) {
    %c0_i32 = arith.constant 0 : i32
    %c0_i32_0 = arith.constant 0 : i32
    %c0_i32_1 = arith.constant 0 : i32
    return %c0_i32, %c0_i32_0 : i32, i32
  }
  func.func @transform_9(%arg0: i32) -> (i32, i32, i32) {
    %c0_i32 = arith.constant 0 : i32
    %c0_i32_0 = arith.constant 0 : i32
    %c0_i32_1 = arith.constant 0 : i32
    %c0_i32_2 = arith.constant 0 : i32
    return %c0_i32, %c0_i32_0, %c0_i32_1 : i32, i32, i32
  }
  func.func @transform_10(%arg0: i32) -> (i32, i32) {
    %c0_i32 = arith.constant 0 : i32
    %c0_i32_0 = arith.constant 0 : i32
    %c0_i32_1 = arith.constant 0 : i32
    return %c0_i32, %c0_i32_0 : i32, i32
  }
  func.func @transform_11(%arg0: i32) -> (i32, i32) {
    %c0_i32 = arith.constant 0 : i32
    %c0_i32_0 = arith.constant 0 : i32
    %c0_i32_1 = arith.constant 0 : i32
    return %c0_i32, %c0_i32_0 : i32, i32
  }
  func.func @transform_12(%arg0: i32) -> (i32, i32) {
    %c0_i32 = arith.constant 0 : i32
    %c0_i32_0 = arith.constant 0 : i32
    %c0_i32_1 = arith.constant 0 : i32
    return %c0_i32, %c0_i32_0 : i32, i32
  }
  func.func @transform_13(%arg0: i32) -> (i32, i32) {
    %c0_i32 = arith.constant 0 : i32
    %c0_i32_0 = arith.constant 0 : i32
    %c0_i32_1 = arith.constant 0 : i32
    return %c0_i32, %c0_i32_0 : i32, i32
  }
  func.func @transform_14(%arg0: i32) -> (i32, i32, i32) {
    %c0_i32 = arith.constant 0 : i32
    %c0_i32_0 = arith.constant 0 : i32
    %c0_i32_1 = arith.constant 0 : i32
    %c0_i32_2 = arith.constant 0 : i32
    return %c0_i32, %c0_i32_0, %c0_i32_1 : i32, i32, i32
  }
  func.func @transform_15(%arg0: i32) -> (i32, i32, i32) {
    %c0_i32 = arith.constant 0 : i32
    %c0_i32_0 = arith.constant 0 : i32
    %c0_i32_1 = arith.constant 0 : i32
    %c0_i32_2 = arith.constant 0 : i32
    return %c0_i32, %c0_i32_0, %c0_i32_1 : i32, i32, i32
  }
  func.func @transform_16(%arg0: i32) -> (i32, i32, i32) {
    %c0_i32 = arith.constant 0 : i32
    %c0_i32_0 = arith.constant 0 : i32
    %c0_i32_1 = arith.constant 0 : i32
    %c0_i32_2 = arith.constant 0 : i32
    return %c0_i32, %c0_i32_0, %c0_i32_1 : i32, i32, i32
  }
  func.func @transform_17(%arg0: i32) -> (i32, i32, i32) {
    %c0_i32 = arith.constant 0 : i32
    %c0_i32_0 = arith.constant 0 : i32
    %c0_i32_1 = arith.constant 0 : i32
    %c0_i32_2 = arith.constant 0 : i32
    return %c0_i32, %c0_i32_0, %c0_i32_1 : i32, i32, i32
  }
  func.func @transform_18(%arg0: i32) -> (i32, i32, i32) {
    %c0_i32 = arith.constant 0 : i32
    %c0_i32_0 = arith.constant 0 : i32
    %c0_i32_1 = arith.constant 0 : i32
    %c0_i32_2 = arith.constant 0 : i32
    return %c0_i32, %c0_i32_0, %c0_i32_1 : i32, i32, i32
  }
  func.func @transform_19(%arg0: i32) -> (i32, i32) {
    %c0_i32 = arith.constant 0 : i32
    %c0_i32_0 = arith.constant 0 : i32
    %c0_i32_1 = arith.constant 0 : i32
    return %c0_i32, %c0_i32_0 : i32, i32
  }
  func.func @transform_20(%arg0: i32) -> (i32, i32) {
    %c0_i32 = arith.constant 0 : i32
    %c0_i32_0 = arith.constant 0 : i32
    %c0_i32_1 = arith.constant 0 : i32
    return %c0_i32, %c0_i32_0 : i32, i32
  }
  func.func @transform_21(%arg0: i32) -> (i32, i32) {
    %c0_i32 = arith.constant 0 : i32
    %c0_i32_0 = arith.constant 0 : i32
    %c0_i32_1 = arith.constant 0 : i32
    return %c0_i32, %c0_i32_0 : i32, i32
  }
  func.func @transform_22(%arg0: i32) -> (i32, i32) {
    %c0_i32 = arith.constant 0 : i32
    %c0_i32_0 = arith.constant 0 : i32
    %c0_i32_1 = arith.constant 0 : i32
    return %c0_i32, %c0_i32_0 : i32, i32
  }
  func.func @transform_23(%arg0: i32) -> (i32, i32) {
    %c0_i32 = arith.constant 0 : i32
    %c0_i32_0 = arith.constant 0 : i32
    %c0_i32_1 = arith.constant 0 : i32
    return %c0_i32, %c0_i32_0 : i32, i32
  }
  func.func @transform_24(%arg0: i32) -> (i32, i32) {
    %c0_i32 = arith.constant 0 : i32
    %c0_i32_0 = arith.constant 0 : i32
    %c0_i32_1 = arith.constant 0 : i32
    return %c0_i32, %c0_i32_0 : i32, i32
  }
  func.func @transform_25(%arg0: i32) -> (i32, i32) {
    %c0_i32 = arith.constant 0 : i32
    %c0_i32_0 = arith.constant 0 : i32
    %c0_i32_1 = arith.constant 0 : i32
    return %c0_i32, %c0_i32_0 : i32, i32
  }
  func.func @transform_26(%arg0: i32) -> (i32, i32) {
    %c0_i32 = arith.constant 0 : i32
    %c0_i32_0 = arith.constant 0 : i32
    %c0_i32_1 = arith.constant 0 : i32
    return %c0_i32, %c0_i32_0 : i32, i32
  }
  func.func @transform_27(%arg0: i32) -> (i32, i32, i32) {
    %c0_i32 = arith.constant 0 : i32
    %c0_i32_0 = arith.constant 0 : i32
    %c0_i32_1 = arith.constant 0 : i32
    %c0_i32_2 = arith.constant 0 : i32
    return %c0_i32, %c0_i32_0, %c0_i32_1 : i32, i32, i32
  }
  func.func @transform_28(%arg0: i32) -> (i32, i32) {
    %c0_i32 = arith.constant 0 : i32
    %c0_i32_0 = arith.constant 0 : i32
    %c0_i32_1 = arith.constant 0 : i32
    return %c0_i32, %c0_i32_0 : i32, i32
  }
  func.func @transform_29(%arg0: i32) -> (i32, i32, i32) {
    %c0_i32 = arith.constant 0 : i32
    %c0_i32_0 = arith.constant 0 : i32
    %c0_i32_1 = arith.constant 0 : i32
    return %arg0, %c0_i32, %c0_i32_0 : i32, i32, i32
  }
}

</mosaic_0001>

<bundles_post_ra>
// kernel: forward.1
= control target key start
LH: loop header
LB: loop body
LE: loop exit
PB: predicated region body
PF: predicated region fallthrough
CT: control target
= control target key end

     0   :  { %s10099_s6 = smov 1   ;;  %s10100_s10 = smov 2   ;;  %s12320_s0 = inlined_call_operand.smem [shape: u32[30], index: -1, kind: input, shape index: {}] }
   0x1   :  { %s10174_s5 = sld [smem:[%s12320_s0]]   ;;  %s10101_s14 = smov 3  }
   0x2   :  { %s10179_s9 = sld [smem:[%s12320_s0 + %s10099_s6]]   ;;  %s10102_s18 = smov 4  }
   0x3   :  { %s10184_s13 = sld [smem:[%s12320_s0 + %s10100_s10]]   ;;  %s10103_s22 = smov 5  }
   0x4   :  { %s10189_s17 = sld [smem:[%s12320_s0 + %s10101_s14]]   ;;  %s10104_s26 = smov 6  }
   0x5   :  { %s10194_s21 = sld [smem:[%s12320_s0 + %s10102_s18]]   ;;  %s10105_s30 = smov 7  }
   0x6   :  { %s10199_s25 = sld [smem:[%s12320_s0 + %s10103_s22]]   ;;  %s10106_s4 = smov 8  }
   0x7   :  { %12363 = sst [smem:[#allocation45_spill]] %s10174_s5  ;;  %s10107_s10 = smov 9  }
   0x8   :  { %s10204_s29 = sld [smem:[%s12320_s0 + %s10104_s26]]   ;;  %s10108_s15 = smov 10  }
   0x9   :  { %12364 = sst [smem:[#allocation46_spill]] %s10184_s13  ;;  %s10109_s20 = smov 11  }
   0xa   :  { %s10209_s3 = sld [smem:[%s12320_s0 + %s10105_s30]]   ;;  %s10110_s26 = smov 12  }
   0xb   :  { %12365 = sst [smem:[#allocation47_spill]] %s10194_s21  ;;  %s10111_s1 = smov 13  }
   0xc   :  { %s10214_s8 = sld [smem:[%s12320_s0 + %s10106_s4]]   ;;  %s10112_s7 = smov 14  }
   0xd   :  { %s10219_s14 = sld [smem:[%s12320_s0 + %s10107_s10]]   ;;  %s10114_s22 = smov 16  }
   0xe   :  { %s10224_s19 = sld [smem:[%s12320_s0 + %s10108_s15]]   ;;  %s10113_s15 = smov 15  }
   0xf   :  { %s10229_s24 = sld [smem:[%s12320_s0 + %s10109_s20]]   ;;  %s10115_s28 = smov 17  }
  0x10   :  { %12366 = sst [smem:[#allocation48_spill]] %s10209_s3 }
  0x11   :  { %s10234_s30 = sld [smem:[%s12320_s0 + %s10110_s26]]  }
  0x12   :  { %12367 = sst [smem:[#allocation49_spill]] %s10214_s8 }
  0x13   :  { %s10239_s6 = sld [smem:[%s12320_s0 + %s10111_s1]]  }
  0x14   :  { %s10244_s12 = sld [smem:[%s12320_s0 + %s10112_s7]]   ;;  %s10116_s7 = smov 18  }
  0x15   :  { %12368 = sst [smem:[#allocation50_spill]] %s10229_s24 }
  0x16   :  { %s10249_s20 = sld [smem:[%s12320_s0 + %s10113_s15]]   ;;  %s10117_s15 = smov 19  }
  0x17   :  { %12369 = sst [smem:[#allocation51_spill]] %s10234_s30 }
  0x18   :  { %s10254_s27 = sld [smem:[%s12320_s0 + %s10114_s22]]   ;;  %s10118_s22 = smov 20  }
  0x19   :  { %12370 = sst [smem:[#allocation52_spill]] %s10239_s6 }
  0x1a   :  { %12371 = sst [smem:[#allocation53_spill]] %s10244_s12 }
  0x1b   :  { %s10259_s4 = sld [smem:[%s12320_s0 + %s10115_s28]]   ;;  %s10119_s28 = smov 21  }
  0x1c   :  { %12372 = sst [smem:[#allocation54_spill]] %s10249_s20 }
  0x1d   :  { %s10264_s30 = sld [smem:[%s12320_s0 + %s10116_s7]]   ;;  %s10120_s7 = smov 22  }
  0x1e   :  { %12373 = sst [smem:[#allocation55_spill]] %s10254_s27 }
  0x1f   :  { %s10269_s20 = sld [smem:[%s12320_s0 + %s10117_s15]]   ;;  %s10121_s15 = smov 23  }
  0x20   :  { %s10274_s27 = sld [smem:[%s12320_s0 + %s10118_s22]]   ;;  %s10122_s22 = smov 24  }
  0x21   :  { %12374 = sst [smem:[#allocation56_spill]] %s10259_s4 }
  0x22   :  { %s10279_s5 = sld [smem:[%s12320_s0 + %s10119_s28]]   ;;  %s10123_s28 = smov 25  }
  0x23   :  { %12375 = sst [smem:[#allocation57_spill]] %s10264_s30 }
  0x24   :  { %s10284_s30 = sld [smem:[%s12320_s0 + %s10120_s7]]   ;;  %s10124_s7 = smov 26  }
  0x25   :  { %s10289_s12 = sld [smem:[%s12320_s0 + %s10121_s15]]   ;;  %s10125_s15 = smov 27  }
  0x26   :  { %12376 = sst [smem:[#allocation58_spill]] %s10274_s27 }
  0x27   :  { %s10294_s27 = sld [smem:[%s12320_s0 + %s10122_s22]]   ;;  %s10126_s22 = smov 28  }
  0x28   :  { %12377 = sst [smem:[#allocation59_spill]] %s10279_s5 }
  0x29   :  { %s10299_s5 = sld [smem:[%s12320_s0 + %s10123_s28]]   ;;  %s10127_s28 = smov 29  }
  0x2a   :  { %12378 = sst [smem:[#allocation60_spill]] %s10284_s30 }
  0x2b   :  { %12379 = sst [smem:[#allocation61_spill]] %s10289_s12 }
  0x2c   :  { %s10304_s30 = sld [smem:[%s12320_s0 + %s10124_s7]]  }
  0x2d   :  { %s10309_s12 = sld [smem:[%s12320_s0 + %s10125_s15]]  }
  0x2e   :  { %s10314_s24 = sld [smem:[%s12320_s0 + %s10126_s22]]  }
  0x2f   :  { %12380 = sst [smem:[#allocation62_spill]] %s10299_s5 }
  0x30   :  { %s10319_s5 = sld [smem:[%s12320_s0 + %s10127_s28]]  }
  0x31   :  { %64 = vsyncpa [#allocation3], 0 }
  0x32   :  { %65 = vsyncpa [#allocation5], 0 }
  0x33   :  { %66 = vsyncpa [#allocation8], 0 }
  0x34   :  { %67 = vsyncpa [#allocation11], 0 }
  0x35   :  { %68 = vsyncpa [#allocation14], 0 }
  0x36   :  { %69 = vsyncpa [#allocation17], 0 }
  0x37   :  { %70 = vsyncpa [#allocation20], 0 }
  0x38   :  { %71 = vsyncpa [#allocation23], 0 }
  0x39   :  { %72 = vsyncpa [#allocation26], 0 }
  0x3a   :  { %73 = vsyncpa [#allocation29], 0 }
  0x3b   :  { %74 = vsyncpa [#allocation32], 0  ;;  %s10321_s7 = smov 0  }
  0x3c LB: > { %s12381_s8 = sld [smem:[#allocation49_spill]]  ;;  %s10327_s0 = sadd.s32 4294967295, %s10097_s7   ;;  %s10097_s7 = sphi %s10321_s7, %s80_s7  }
  0x3d   : > { %s12382_s3 = sld [smem:[#allocation48_spill]]  ;;  %p7324_p0 = scmp.ge.s32.totalorder %s10097_s7, 1 }
  0x3e   : > { %s12383_s6 = sld [smem:[#allocation52_spill]]  ;;  %p725_p1 = scmp.lt.s32.totalorder %s10097_s7, 3 }
  0x3f   : > { %s12384_s4 = sld [smem:[#allocation56_spill]]  ;;  %p9271_p2 = scmp.eq.s32.totalorder %s10327_s0, 0 }
  0x40   : > { %s12385_s21 = sld [smem:[#allocation47_spill]]  ;;  %p10333_p3 = pnand %p7324_p0, %p725_p1 }
  0x41   : > { %s12386_s13 = sld [smem:[#allocation46_spill]]  ;;  %s10128_s16 = smov [#allocation4]  }
  0x42   : > { %12387 = sst [smem:[#allocation63_spill]] %s10097_s7  ;;  %p9207_p4 = pneg %p10333_p3 }
  0x43   : > { %s752_s18 = sshll.u32 %s10128_s16, 4  ;;  %s10129_s23 = smov [#allocation7]   ;;  %s753_s18 = int_to_ptr.vmem [resolvable:$true] %s752_s18 }
  0x44   : > { %p10346_p5 = pnand %p9271_p2, %p9207_p4  ;;  %s10350_s26 = sshll.u32 %s10129_s23, 4 }
  0x45   : > { %12390 = sst [smem:[#allocation64_spill]] %s10350_s26 }
  0x46   : > { %s779_s15 = sshll.u32 %s12385_s21, 4  ;;  %p10357_p7 = pneg %p10346_p5  ;;  %s10342_s15 = int_to_ptr.hbm [resolvable:$true] %s779_s15 }
  0x47   : > { %s750_s10 = sshll.u32 %s12386_s13, 4  ;;  %s9424_s7 = scalar_lea.hbm %s12386_s13, 16  ;;  %s10337_s10 = int_to_ptr.hbm [resolvable:$true] %s750_s10 }
  0x48   : > { %s9417_s1 = sshra.s32 %s10337_s10, 4  ;;  %s9418_s1 = int_to_ptr.hbm [resolvable:$true] %s9417_s1 }
  0x49   : > { %s9419_s2 = scalar_lea.hbm %s9418_s1, 16  ;;  %p9425_p10 = scmp.lt.s32.totalorder %s9418_s1, %s12386_s13 }
  0x4a   : > { %p9420_p6 = scmp.ne.s32.totalorder %s9418_s1, %s9419_s2  ;;  %p9426_p11 = scmp.lt.s32.totalorder %s9424_s7, %s9419_s2 }
  0x4c   : > { %p9422_p8 = pnand %p10357_p7, %p9420_p6  ;;  %p9427_p12 = por %p9426_p11, %p9425_p10 }
  0x4e   : > { %p9423_p9 = pneg %p9422_p8 }
  0x50   : > { %p9428_p13 = pnand %p9427_p12, %p9423_p9 }
  0x52   : > { %9431 = shalt.err (!%p9428_p13)
}
  0x53   : > { %s12333_s23 = smov 128   ;;  %s12336_s28 = smov 8  }
  0x54   : > { %9213 = dma.hbm_to_vmem [thread:$0]  (!%p10346_p5), %s10337_s10, 256, %s753_s18, [#allocation5], %s12333_s23, %s12333_s23, %s12336_s28  }
  0x55   : > { %s9447_s26 = sshra.s32 %s10342_s15, 4  ;;  %s9454_s7 = scalar_lea.hbm %s12385_s21, 8  ;;  %s9448_s26 = int_to_ptr.hbm [resolvable:$true] %s9447_s26 }
  0x56   : > { %s9449_s1 = scalar_lea.hbm %s9448_s26, 8  ;;  %p9455_p6 = scmp.lt.s32.totalorder %s9448_s26, %s12385_s21 }
  0x57   : > { %p9450_p0 = scmp.ne.s32.totalorder %s9448_s26, %s9449_s1  ;;  %p9456_p8 = scmp.lt.s32.totalorder %s9454_s7, %s9449_s1 }
  0x59   : > { %p9452_p1 = pnand %p9450_p0, %p10357_p7  ;;  %p9457_p9 = por %p9456_p8, %p9455_p6 }
  0x5b   : > { %p9453_p4 = pneg %p9452_p1 }
  0x5d   : > { %p9458_p10 = pnand %p9457_p9, %p9453_p4 }
  0x5f   : > { %9461 = shalt.err (!%p9458_p10)
}
  0x60   : > { %s12392_s2 = sld [smem:[#allocation64_spill]]  ;;  %s12394_s10 = sshll.u32 %s10204_s29, 4  ;;  %s805_s10 = int_to_ptr.hbm [resolvable:$true] %s12394_s10 }
  0x61   : > { %s10132_s18 = smov [#allocation10]   ;;  %s830_s26 = sshll.u32 %s12381_s8, 4  ;;  %s10384_s26 = int_to_ptr.hbm [resolvable:$true] %s830_s26 }
  0x62   : > { %s806_s23 = sshll.u32 %s10132_s18, 4  ;;  %s9477_s1 = sshra.s32 %s805_s10, 4  ;;  %s807_s23 = int_to_ptr.vmem [resolvable:$true] %s806_s23  ;;  %s9478_s1 = int_to_ptr.hbm [resolvable:$true] %s9477_s1 }
  0x63   : > { %s9479_s7 = scalar_lea.hbm %s9478_s1, 128  ;;  %p9485_p0 = scmp.lt.s32.totalorder %s9478_s1, %s10204_s29 }
  0x64   : > { %p9480_p11 = scmp.ne.s32.totalorder %s9478_s1, %s9479_s7 }
  0x66   : > { %s12393_s13 = int_to_ptr.vmem [resolvable:$true] %s12392_s2  ;;  %p9482_p12 = pnand %p9480_p11, %p10357_p7 }
  0x67   : > { %9219 = dma.hbm_to_vmem [thread:$0]  (!%p10346_p5), %s10342_s15, 128, %s12393_s13, [#allocation8]  }
  0x68   : > { %p9483_p13 = pneg %p9482_p12  ;;  %s9484_s2 = scalar_lea.hbm %s10204_s29, 128 }
  0x69   : > { %p9486_p1 = scmp.lt.s32.totalorder %s9484_s2, %s9479_s7 }
  0x6b   : > { %p9487_p4 = por %p9486_p1, %p9485_p0 }
  0x6d   : > { %p9488_p6 = pnand %p9487_p4, %p9483_p13 }
  0x6f   : > { %9491 = shalt.err (!%p9488_p6)
}
  0x70   : > { %s12395_s13 = smov 128   ;;  %s858_s15 = sshll.u32 %s10224_s19, 4  ;;  %s10396_s15 = int_to_ptr.hbm [resolvable:$true] %s858_s15 }
  0x71   : > { %9225 = dma.hbm_to_vmem [thread:$0]  (!%p10346_p5), %s805_s10, 2048, %s807_s23, [#allocation11], %s12395_s13, %s12395_s13, %s12336_s28  }
  0x72   : > { %s10133_s18 = smov [#allocation13]   ;;  %s9507_s1 = sshra.s32 %s10384_s26, 4  ;;  %s9508_s1 = int_to_ptr.hbm [resolvable:$true] %s9507_s1 }
  0x73   : > { %s832_s21 = sshll.u32 %s10133_s18, 4  ;;  %s9509_s7 = scalar_lea.hbm %s9508_s1, 32  ;;  %s833_s21 = int_to_ptr.vmem [resolvable:$true] %s832_s21 }
  0x74   : > { %p9510_p8 = scmp.ne.s32.totalorder %s9508_s1, %s9509_s7  ;;  %s9514_s2 = scalar_lea.hbm %s12381_s8, 32 }
  0x75   : > { %p9515_p11 = scmp.lt.s32.totalorder %s9508_s1, %s12381_s8  ;;  %p9516_p12 = scmp.lt.s32.totalorder %s9514_s2, %s9509_s7 }
  0x76   : > { %p9512_p9 = pnand %p9510_p8, %p10357_p7 }
  0x77   : > { %p9517_p13 = por %p9516_p12, %p9515_p11 }
  0x78   : > { %p9513_p10 = pneg %p9512_p9 }
  0x7a   : > { %p9518_p0 = pnand %p9517_p13, %p9513_p10 }
  0x7c   : > { %9521 = shalt.err (!%p9518_p0)
}
  0x7d   : > { %9231 = dma.hbm_to_vmem [thread:$0]  (!%p10346_p5), %s10384_s26, 512, %s833_s21, [#allocation14], %s12395_s13, %s12395_s13, %s12336_s28  }
  0x7e   : > { %s10134_s23 = smov [#allocation16]   ;;  %s889_s18 = sshll.u32 %s12383_s6, 4  ;;  %s10410_s18 = int_to_ptr.hbm [resolvable:$true] %s889_s18 }
  0x7f   : > { %s860_s10 = sshll.u32 %s10134_s23, 4  ;;  %s9537_s1 = sshra.s32 %s10396_s15, 4  ;;  %s861_s10 = int_to_ptr.vmem [resolvable:$true] %s860_s10  ;;  %s9538_s1 = int_to_ptr.hbm [resolvable:$true] %s9537_s1 }
  0x80   : > { %s9539_s7 = scalar_lea.hbm %s9538_s1, 16  ;;  %s9544_s2 = scalar_lea.hbm %s10224_s19, 16 }
  0x81   : > { %p9540_p1 = scmp.ne.s32.totalorder %s9538_s1, %s9539_s7  ;;  %p9545_p8 = scmp.lt.s32.totalorder %s9538_s1, %s10224_s19 }
  0x82   : > { %p9546_p9 = scmp.lt.s32.totalorder %s9544_s2, %s9539_s7 }
  0x83   : > { %p9542_p4 = pnand %p9540_p1, %p10357_p7 }
  0x84   : > { %p9547_p10 = por %p9546_p9, %p9545_p8 }
  0x85   : > { %p9543_p6 = pneg %p9542_p4 }
  0x87   : > { %p9548_p11 = pnand %p9547_p10, %p9543_p6 }
  0x89   : > { %9551 = shalt.err (!%p9548_p11)
}
  0x8a   : > { %9237 = dma.hbm_to_vmem [thread:$0]  (!%p10346_p5), %s10396_s15, 256, %s861_s10, [#allocation17], %s12395_s13, %s12395_s13, %s12336_s28  }
  0x8b   : > { %s10135_s21 = smov [#allocation19]   ;;  %s923_s23 = sshll.u32 %s12384_s4, 4  ;;  %s10424_s23 = int_to_ptr.hbm [resolvable:$true] %s923_s23 }
  0x8c   : > { %s891_s26 = sshll.u32 %s10135_s21, 4  ;;  %s9567_s1 = sshra.s32 %s10410_s18, 4  ;;  %s892_s26 = int_to_ptr.vmem [resolvable:$true] %s891_s26  ;;  %s9568_s1 = int_to_ptr.hbm [resolvable:$true] %s9567_s1 }
  0x8d   : > { %s9569_s7 = scalar_lea.hbm %s9568_s1, 16  ;;  %s9574_s2 = scalar_lea.hbm %s12383_s6, 16 }
  0x8e   : > { %p9570_p12 = scmp.ne.s32.totalorder %s9568_s1, %s9569_s7  ;;  %p9575_p1 = scmp.lt.s32.totalorder %s9568_s1, %s12383_s6 }
  0x8f   : > { %p9576_p4 = scmp.lt.s32.totalorder %s9574_s2, %s9569_s7 }
  0x90   : > { %p9572_p13 = pnand %p9570_p12, %p10357_p7 }
  0x91   : > { %p9577_p6 = por %p9576_p4, %p9575_p1 }
  0x92   : > { %p9573_p0 = pneg %p9572_p13 }
  0x94   : > { %p9578_p8 = pnand %p9577_p6, %p9573_p0 }
  0x96   : > { %9581 = shalt.err (!%p9578_p8)
}
  0x97   : > { %9243 = dma.hbm_to_vmem [thread:$0]  (!%p10346_p5), %s10410_s18, 256, %s892_s26, [#allocation20], %s12395_s13, %s12395_s13, %s12336_s28  }
  0x98   : > { %s10136_s15 = smov [#allocation22]   ;;  %s951_s21 = sshll.u32 %s10269_s20, 4  ;;  %s10438_s21 = int_to_ptr.hbm [resolvable:$true] %s951_s21 }
  0x99   : > { %s925_s10 = sshll.u32 %s10136_s15, 4  ;;  %s9597_s1 = sshra.s32 %s10424_s23, 4  ;;  %s926_s10 = int_to_ptr.vmem [resolvable:$true] %s925_s10  ;;  %s9598_s1 = int_to_ptr.hbm [resolvable:$true] %s9597_s1 }
  0x9a   : > { %s9599_s7 = scalar_lea.hbm %s9598_s1, 18  ;;  %s9604_s2 = scalar_lea.hbm %s12384_s4, 18 }
  0x9b   : > { %p9600_p9 = scmp.ne.s32.totalorder %s9598_s1, %s9599_s7  ;;  %p9605_p12 = scmp.lt.s32.totalorder %s9598_s1, %s12384_s4 }
  0x9c   : > { %p9606_p13 = scmp.lt.s32.totalorder %s9604_s2, %s9599_s7 }
  0x9d   : > { %p9602_p10 = pnand %p9600_p9, %p10357_p7 }
  0x9e   : > { %p9607_p0 = por %p9606_p13, %p9605_p12 }
  0x9f   : > { %p9603_p11 = pneg %p9602_p10 }
  0xa1   : > { %p9608_p1 = pnand %p9607_p0, %p9603_p11 }
  0xa3   : > { %9611 = shalt.err (!%p9608_p1)
}
  0xa4   : > { %s10137_s18 = smov 32   ;;  %s10138_s26 = smov 2  }
  0xa5   : > { %9249 = dma.hbm_to_vmem [thread:$0]  (!%p10346_p5), %s10424_s23, 288, %s926_s10, [#allocation23], %s10137_s18, %s10137_s18, %s10138_s26  }
  0xa6   : > { %s10139_s15 = smov [#allocation25]   ;;  %s987_s1 = sshll.u32 %s10294_s27, 4  ;;  %s988_s1 = int_to_ptr.hbm [resolvable:$true] %s987_s1 }
  0xa7   : > { %s953_s28 = sshll.u32 %s10139_s15, 4  ;;  %s9627_s7 = sshra.s32 %s10438_s21, 4  ;;  %s954_s28 = int_to_ptr.vmem [resolvable:$true] %s953_s28  ;;  %s9628_s7 = int_to_ptr.hbm [resolvable:$true] %s9627_s7 }
  0xa8   : > { %s9629_s2 = scalar_lea.hbm %s9628_s7, 1280  ;;  %s9634_s4 = scalar_lea.hbm %s10269_s20, 1280 }
  0xa9   : > { %p9630_p4 = scmp.ne.s32.totalorder %s9628_s7, %s9629_s2  ;;  %p9635_p9 = scmp.lt.s32.totalorder %s9628_s7, %s10269_s20 }
  0xaa   : > { %p9636_p10 = scmp.lt.s32.totalorder %s9634_s4, %s9629_s2 }
  0xab   : > { %p9632_p6 = pnand %p9630_p4, %p10357_p7 }
  0xac   : > { %p9637_p11 = por %p9636_p10, %p9635_p9 }
  0xad   : > { %p9633_p8 = pneg %p9632_p6 }
  0xaf   : > { %p9638_p12 = pnand %p9637_p11, %p9633_p8 }
  0xb1   : > { %9641 = shalt.err (!%p9638_p12)
}
  0xb2   : > { %s10140_s6 = smov 320   ;;  %s10141_s23 = smov 20  }
  0xb3   : > { %9255 = dma.hbm_to_vmem [thread:$0]  (!%p10346_p5), %s10438_s21, 20480, %s954_s28, [#allocation26], %s10140_s6, %s10140_s6, %s10141_s23  }
  0xb4   : > { %s10142_s10 = smov [#allocation28]   ;;  %s9657_s15 = sshra.s32 %s988_s1, 4  ;;  %s9658_s15 = int_to_ptr.hbm [resolvable:$true] %s9657_s15 }
  0xb5   : > { %s989_s26 = sshll.u32 %s10142_s10, 4  ;;  %s9659_s7 = scalar_lea.hbm %s9658_s15, 1  ;;  %s990_s26 = int_to_ptr.vmem [resolvable:$true] %s989_s26 }
  0xb6   : > { %p9660_p13 = scmp.ne.s32.totalorder %s9658_s15, %s9659_s7  ;;  %s9664_s4 = scalar_lea.hbm %s10294_s27, 1 }
  0xb7   : > { %p9665_p4 = scmp.lt.s32.totalorder %s9658_s15, %s10294_s27  ;;  %p9666_p6 = scmp.lt.s32.totalorder %s9664_s4, %s9659_s7 }
  0xb8   : > { %p9662_p0 = pnand %p9660_p13, %p10357_p7 }
  0xb9   : > { %p9667_p8 = por %p9666_p6, %p9665_p4 }
  0xba   : > { %p9663_p1 = pneg %p9662_p0 }
  0xbc   : > { %p9668_p9 = pnand %p9667_p8, %p9663_p1 }
  0xbe   : > { %9671 = shalt.err (!%p9668_p9)
}
  0xbf   : > { %9261 = dma.hbm_to_vmem [thread:$0]  (!%p10346_p5), %s988_s1, 16, %s990_s26, [#allocation29]  }
  0xc0   : > { %s1013_s6 = sshll.u32 %s10309_s12, 4  ;;  %s10143_s28 = smov [#allocation31]   ;;  %s1014_s6 = int_to_ptr.hbm [resolvable:$true] %s1013_s6 }
  0xc1   : > { %s1015_s21 = sshll.u32 %s10143_s28, 4  ;;  %s736_s2 = sshll.u32 %s10179_s9, 4  ;;  %s1016_s21 = int_to_ptr.vmem [resolvable:$true] %s1015_s21  ;;  %s737_s2 = int_to_ptr.hbm [resolvable:$true] %s736_s2 }
  0xc2   : > { %s9687_s23 = sshra.s32 %s1014_s6, 4  ;;  %s9694_s15 = scalar_lea.hbm %s10309_s12, 32  ;;  %s9688_s23 = int_to_ptr.hbm [resolvable:$true] %s9687_s23 }
  0xc3   : > { %s9689_s10 = scalar_lea.hbm %s9688_s23, 32  ;;  %p9695_p13 = scmp.lt.s32.totalorder %s9688_s23, %s10309_s12 }
  0xc4   : > { %p9690_p10 = scmp.ne.s32.totalorder %s9688_s23, %s9689_s10  ;;  %p9696_p0 = scmp.lt.s32.totalorder %s9694_s15, %s9689_s10 }
  0xc6   : > { %p9692_p11 = pnand %p9690_p10, %p10357_p7  ;;  %p9697_p1 = por %p9696_p0, %p9695_p13 }
  0xc8   : > { %p9693_p12 = pneg %p9692_p11 }
  0xca   : > { %p9698_p4 = pnand %p9697_p1, %p9693_p12 }
  0xcc   : > { %9701 = shalt.err (!%p9698_p4)
}
  0xcd   : > { %s12340_s1 = smov 64   ;;  %s12341_s26 = smov 4  }
  0xce   : > { %9267 = dma.hbm_to_vmem [thread:$0]  (!%p10346_p5), %s1014_s6, 512, %s1016_s21, [#allocation32], %s12340_s1, %s12340_s1, %s12341_s26  }
  0xcf   : > { %s10146_s7 = smov [#allocation2]   ;;  %s764_s28 = sshll.u32 %s10189_s17, 4  ;;  %s10477_s28 = int_to_ptr.hbm [resolvable:$true] %s764_s28 }
  0xd0   : > { %s738_s4 = sshll.u32 %s10146_s7, 4  ;;  %s9717_s23 = sshra.s32 %s737_s2, 4  ;;  %s739_s4 = int_to_ptr.vmem [resolvable:$true] %s738_s4  ;;  %s9718_s23 = int_to_ptr.hbm [resolvable:$true] %s9717_s23 }
  0xd1   : > { %s9719_s10 = scalar_lea.hbm %s9718_s23, 384  ;;  %s9724_s15 = scalar_lea.hbm %s10179_s9, 384 }
  0xd2   : > { %p9720_p6 = scmp.ne.s32.totalorder %s9718_s23, %s9719_s10  ;;  %p9725_p10 = scmp.lt.s32.totalorder %s9718_s23, %s10179_s9 }
  0xd3   : > { %p9726_p11 = scmp.lt.s32.totalorder %s9724_s15, %s9719_s10 }
  0xd4   : > { %p9722_p8 = pnand %p9720_p6, %p10357_p7 }
  0xd5   : > { %p9727_p12 = por %p9726_p11, %p9725_p10 }
  0xd6   : > { %p9723_p9 = pneg %p9722_p8 }
  0xd8   : > { %p9728_p13 = pnand %p9727_p12, %p9723_p9 }
  0xda   : > { %9731 = shalt.err (!%p9728_p13)
}
  0xdb   : > { %s12396_s6 = smov 8   ;;  %s10147_s21 = smov [#allocation6]  }
  0xdc   : > { %9210 = dma.hbm_to_vmem [thread:$0]  (!%p10346_p5), %s737_s2, 6144, %s739_s4, [#allocation3], %s12395_s13, %s12395_s13, %s12396_s6  }
  0xdd   : > { %s766_s7 = sshll.u32 %s10147_s21, 4  ;;  %s790_s1 = sshll.u32 %s10199_s25, 4  ;;  %s767_s7 = int_to_ptr.vmem [resolvable:$true] %s766_s7  ;;  %s10489_s1 = int_to_ptr.hbm [resolvable:$true] %s790_s1 }
  0xde   : > { %s9747_s23 = sshra.s32 %s10477_s28, 4  ;;  %s9754_s15 = scalar_lea.hbm %s10189_s17, 512  ;;  %s9748_s23 = int_to_ptr.hbm [resolvable:$true] %s9747_s23 }
  0xdf   : > { %s9749_s10 = scalar_lea.hbm %s9748_s23, 512  ;;  %p9755_p6 = scmp.lt.s32.totalorder %s9748_s23, %s10189_s17 }
  0xe0   : > { %p9750_p0 = scmp.ne.s32.totalorder %s9748_s23, %s9749_s10  ;;  %p9756_p8 = scmp.lt.s32.totalorder %s9754_s15, %s9749_s10 }
  0xe2   : > { %p9752_p1 = pnand %p9750_p0, %p10357_p7  ;;  %p9757_p9 = por %p9756_p8, %p9755_p6 }
  0xe4   : > { %p9753_p4 = pneg %p9752_p1 }
  0xe6   : > { %p9758_p10 = pnand %p9757_p9, %p9753_p4 }
  0xe8   : > { %9761 = shalt.err (!%p9758_p10)
}
  0xe9   : > { %s10148_s2 = smov 512   ;;  %s819_s4 = sshll.u32 %s12382_s3, 4  ;;  %s10501_s4 = int_to_ptr.hbm [resolvable:$true] %s819_s4 }
  0xea   : > { %9216 = dma.hbm_to_vmem [thread:$0]  (!%p10346_p5), %s10477_s28, 8192, %s767_s7, [#allocation5], %s10148_s2, %s10148_s2, %s10137_s18  }
  0xeb   : > { %s10149_s21 = smov [#allocation9]   ;;  %s9777_s23 = sshra.s32 %s10489_s1, 4  ;;  %s9778_s23 = int_to_ptr.hbm [resolvable:$true] %s9777_s23 }
  0xec   : > { %s792_s26 = sshll.u32 %s10149_s21, 4  ;;  %s9779_s10 = scalar_lea.hbm %s9778_s23, 16  ;;  %s793_s26 = int_to_ptr.vmem [resolvable:$true] %s792_s26 }
  0xed   : > { %p9780_p11 = scmp.ne.s32.totalorder %s9778_s23, %s9779_s10  ;;  %s9784_s15 = scalar_lea.hbm %s10199_s25, 16 }
  0xee   : > { %p9785_p0 = scmp.lt.s32.totalorder %s9778_s23, %s10199_s25  ;;  %p9786_p1 = scmp.lt.s32.totalorder %s9784_s15, %s9779_s10 }
  0xef   : > { %p9782_p12 = pnand %p9780_p11, %p10357_p7 }
  0xf0   : > { %p9787_p4 = por %p9786_p1, %p9785_p0 }
  0xf1   : > { %p9783_p13 = pneg %p9782_p12 }
  0xf3   : > { %p9788_p6 = pnand %p9787_p4, %p9783_p13 }
  0xf5   : > { %9791 = shalt.err (!%p9788_p6)
}
  0xf6   : > { %9222 = dma.hbm_to_vmem [thread:$0]  (!%p10346_p5), %s10489_s1, 256, %s793_s26, [#allocation8], %s12395_s13, %s12395_s13, %s12396_s6  }
  0xf7   : > { %s10150_s18 = smov [#allocation12]   ;;  %s844_s7 = sshll.u32 %s10219_s14, 4  ;;  %s10515_s7 = int_to_ptr.hbm [resolvable:$true] %s844_s7 }
  0xf8   : > { %s821_s28 = sshll.u32 %s10150_s18, 4  ;;  %s9807_s2 = sshra.s32 %s10501_s4, 4  ;;  %s822_s28 = int_to_ptr.vmem [resolvable:$true] %s821_s28  ;;  %s9808_s2 = int_to_ptr.hbm [resolvable:$true] %s9807_s2 }
  0xf9   : > { %s9809_s21 = scalar_lea.hbm %s9808_s2, 4  ;;  %s9814_s23 = scalar_lea.hbm %s12382_s3, 4 }
  0xfa   : > { %p9810_p8 = scmp.ne.s32.totalorder %s9808_s2, %s9809_s21  ;;  %p9815_p11 = scmp.lt.s32.totalorder %s9808_s2, %s12382_s3 }
  0xfb   : > { %p9816_p12 = scmp.lt.s32.totalorder %s9814_s23, %s9809_s21 }
  0xfc   : > { %p9812_p9 = pnand %p9810_p8, %p10357_p7 }
  0xfd   : > { %p9817_p13 = por %p9816_p12, %p9815_p11 }
  0xfe   : > { %p9813_p10 = pneg %p9812_p9 }
 0x100   : > { %p9818_p0 = pnand %p9817_p13, %p9813_p10 }
 0x102   : > { %9821 = shalt.err (!%p9818_p0)
}
 0x103   : > { %s12397_s1 = sld [smem:[#allocation50_spill]]  ;;  %s10151_s10 = smov [#allocation15]  }
 0x104   : > { %9228 = dma.hbm_to_vmem [thread:$0]  (!%p10346_p5), %s10501_s4, 64, %s822_s28, [#allocation11]  }
 0x105   : > { %s846_s15 = sshll.u32 %s10151_s10, 4  ;;  %s9837_s18 = sshra.s32 %s10515_s7, 4  ;;  %s847_s15 = int_to_ptr.vmem [resolvable:$true] %s846_s15  ;;  %s9838_s18 = int_to_ptr.hbm [resolvable:$true] %s9837_s18 }
 0x106   : > { %s9839_s2 = scalar_lea.hbm %s9838_s18, 512  ;;  %s9844_s21 = scalar_lea.hbm %s10219_s14, 512 }
 0x107   : > { %p9840_p1 = scmp.ne.s32.totalorder %s9838_s18, %s9839_s2  ;;  %p9845_p8 = scmp.lt.s32.totalorder %s9838_s18, %s10219_s14 }
 0x108   : > { %p9846_p9 = scmp.lt.s32.totalorder %s9844_s21, %s9839_s2 }
 0x109   : > { %s872_s26 = sshll.u32 %s12397_s1, 4  ;;  %p9842_p4 = pnand %p9840_p1, %p10357_p7  ;;  %s10526_s26 = int_to_ptr.hbm [resolvable:$true] %s872_s26 }
 0x10a   : > { %p9847_p10 = por %p9846_p9, %p9845_p8 }
 0x10b   : > { %p9843_p6 = pneg %p9842_p4 }
 0x10d   : > { %p9848_p11 = pnand %p9847_p10, %p9843_p6 }
 0x10f   : > { %9851 = shalt.err (!%p9848_p11)
}
 0x110   : > { %s12398_s4 = sld [smem:[#allocation53_spill]]  ;;  %s10152_s28 = smov [#allocation18]  }
 0x111   : > { %9234 = dma.hbm_to_vmem [thread:$0]  (!%p10346_p5), %s10515_s7, 8192, %s847_s15, [#allocation14], %s12395_s13, %s12395_s13, %s12396_s6  }
 0x112   : > { %s874_s23 = sshll.u32 %s10152_s28, 4  ;;  %s9867_s18 = sshra.s32 %s10526_s26, 4  ;;  %s875_s23 = int_to_ptr.vmem [resolvable:$true] %s874_s23  ;;  %s9868_s18 = int_to_ptr.hbm [resolvable:$true] %s9867_s18 }
 0x113   : > { %s9869_s2 = scalar_lea.hbm %s9868_s18, 128  ;;  %s9874_s21 = scalar_lea.hbm %s12397_s1, 128 }
 0x114   : > { %p9870_p12 = scmp.ne.s32.totalorder %s9868_s18, %s9869_s2  ;;  %p9875_p1 = scmp.lt.s32.totalorder %s9868_s18, %s12397_s1 }
 0x115   : > { %p9876_p4 = scmp.lt.s32.totalorder %s9874_s21, %s9869_s2 }
 0x116   : > { %s903_s10 = sshll.u32 %s12398_s4, 4  ;;  %p9872_p13 = pnand %p9870_p12, %p10357_p7  ;;  %s10540_s10 = int_to_ptr.hbm [resolvable:$true] %s903_s10 }
 0x117   : > { %p9877_p6 = por %p9876_p4, %p9875_p1 }
 0x118   : > { %p9873_p0 = pneg %p9872_p13 }
 0x11a   : > { %p9878_p8 = pnand %p9877_p6, %p9873_p0 }
 0x11c   : > { %9881 = shalt.err (!%p9878_p8)
}
 0x11d   : > { %s12399_s7 = sld [smem:[#allocation57_spill]]  ;;  %s10153_s3 = smov [#allocation21]  }
 0x11e   : > { %9240 = dma.hbm_to_vmem [thread:$0]  (!%p10346_p5), %s10526_s26, 2048, %s875_s23, [#allocation17], %s12395_s13, %s12395_s13, %s12396_s6  }
 0x11f   : > { %s905_s8 = sshll.u32 %s10153_s3, 4  ;;  %s9897_s18 = sshra.s32 %s10540_s10, 4  ;;  %s906_s8 = int_to_ptr.vmem [resolvable:$true] %s905_s8  ;;  %s9898_s18 = int_to_ptr.hbm [resolvable:$true] %s9897_s18 }
 0x120   : > { %s9899_s2 = scalar_lea.hbm %s9898_s18, 512  ;;  %s9904_s21 = scalar_lea.hbm %s12398_s4, 512 }
 0x121   : > { %p9900_p9 = scmp.ne.s32.totalorder %s9898_s18, %s9899_s2  ;;  %p9905_p12 = scmp.lt.s32.totalorder %s9898_s18, %s12398_s4 }
 0x122   : > { %p9906_p13 = scmp.lt.s32.totalorder %s9904_s21, %s9899_s2 }
 0x123   : > { %s12400_s15 = smov %s12399_s7  ;;  %s937_s28 = sshll.u32 %s12399_s7, 4  ;;  %s10554_s28 = int_to_ptr.hbm [resolvable:$true] %s937_s28 }
 0x124   : > { %p9902_p10 = pnand %p9900_p9, %p10357_p7  ;;  %p9907_p0 = por %p9906_p13, %p9905_p12 }
 0x126   : > { %p9903_p11 = pneg %p9902_p10 }
 0x128   : > { %p9908_p1 = pnand %p9907_p0, %p9903_p11 }
 0x12a   : > { %9911 = shalt.err (!%p9908_p1)
}
 0x12b   : > { %s12401_s3 = sld [smem:[#allocation58_spill]]  ;;  %s10154_s26 = smov [#allocation24]  }
 0x12c   : > { %9246 = dma.hbm_to_vmem [thread:$0]  (!%p10346_p5), %s10540_s10, 8192, %s906_s8, [#allocation20], %s12395_s13, %s12395_s13, %s12396_s6  }
 0x12d   : > { %s939_s23 = sshll.u32 %s10154_s26, 4  ;;  %s9927_s18 = sshra.s32 %s10554_s28, 4  ;;  %s940_s23 = int_to_ptr.vmem [resolvable:$true] %s939_s23  ;;  %s9928_s18 = int_to_ptr.hbm [resolvable:$true] %s9927_s18 }
 0x12e   : > { %s9929_s2 = scalar_lea.hbm %s9928_s18, 16  ;;  %s9934_s21 = scalar_lea.hbm %s12400_s15, 16 }
 0x12f   : > { %p9930_p4 = scmp.ne.s32.totalorder %s9928_s18, %s9929_s2  ;;  %p9935_p9 = scmp.lt.s32.totalorder %s9928_s18, %s12400_s15 }
 0x130   : > { %p9936_p10 = scmp.lt.s32.totalorder %s9934_s21, %s9929_s2 }
 0x131   : > { %s966_s7 = sshll.u32 %s12401_s3, 4  ;;  %p9932_p6 = pnand %p9930_p4, %p10357_p7  ;;  %s10568_s7 = int_to_ptr.hbm [resolvable:$true] %s966_s7 }
 0x132   : > { %p9937_p11 = por %p9936_p10, %p9935_p9 }
 0x133   : > { %p9933_p8 = pneg %p9932_p6 }
 0x135   : > { %p9938_p12 = pnand %p9937_p11, %p9933_p8 }
 0x137   : > { %9941 = shalt.err (!%p9938_p12)
}
 0x138   : > { %s12402_s8 = smov 4   ;;  %s12403_s13 = smov 64  }
 0x139   : > { %9252 = dma.hbm_to_vmem [thread:$0]  (!%p10346_p5), %s10554_s28, 256, %s940_s23, [#allocation23], %s12403_s13, %s12403_s13, %s12402_s8  }
 0x13a   : > { %s1002_s6 = sshll.u32 %s10304_s30, 4  ;;  %s10155_s10 = smov [#allocation27]   ;;  %s10582_s6 = int_to_ptr.hbm [resolvable:$true] %s1002_s6 }
 0x13b   : > { %s968_s26 = sshll.u32 %s10155_s10, 4  ;;  %s9957_s18 = sshra.s32 %s10568_s7, 4  ;;  %s969_s26 = int_to_ptr.vmem [resolvable:$true] %s968_s26  ;;  %s9958_s18 = int_to_ptr.hbm [resolvable:$true] %s9957_s18 }
 0x13c   : > { %s9959_s2 = scalar_lea.hbm %s9958_s18, 5  ;;  %s9964_s21 = scalar_lea.hbm %s12401_s3, 5 }
 0x13d   : > { %p9960_p13 = scmp.ne.s32.totalorder %s9958_s18, %s9959_s2  ;;  %p9965_p4 = scmp.lt.s32.totalorder %s9958_s18, %s12401_s3 }
 0x13e   : > { %p9966_p6 = scmp.lt.s32.totalorder %s9964_s21, %s9959_s2 }
 0x13f   : > { %p9962_p0 = pnand %p9960_p13, %p10357_p7 }
 0x140   : > { %p9967_p8 = por %p9966_p6, %p9965_p4 }
 0x141   : > { %p9963_p1 = pneg %p9962_p0 }
 0x143   : > { %p9968_p9 = pnand %p9967_p8, %p9963_p1 }
 0x145   : > { %9971 = shalt.err (!%p9968_p9)
}
 0x146   : > { %9258 = dma.hbm_to_vmem [thread:$0]  (!%p10346_p5), %s10568_s7, 80, %s969_s26, [#allocation26]  }
 0x147   : > { %s10156_s28 = smov [#allocation30]   ;;  %s1028_s8 = sshll.u32 %s10314_s24, 4  ;;  %s1029_s8 = int_to_ptr.hbm [resolvable:$true] %s1028_s8 }
 0x148   : > { %s1004_s23 = sshll.u32 %s10156_s28, 4  ;;  %s9987_s13 = sshra.s32 %s10582_s6, 4  ;;  %s1005_s23 = int_to_ptr.vmem [resolvable:$true] %s1004_s23  ;;  %s9988_s13 = int_to_ptr.hbm [resolvable:$true] %s9987_s13 }
 0x149   : > { %s9989_s10 = scalar_lea.hbm %s9988_s13, 1  ;;  %s9994_s18 = scalar_lea.hbm %s10304_s30, 1 }
 0x14a   : > { %p9990_p10 = scmp.ne.s32.totalorder %s9988_s13, %s9989_s10  ;;  %p9995_p13 = scmp.lt.s32.totalorder %s9988_s13, %s10304_s30 }
 0x14b   : > { %p9996_p0 = scmp.lt.s32.totalorder %s9994_s18, %s9989_s10 }
 0x14c   : > { %p9992_p11 = pnand %p9990_p10, %p10357_p7 }
 0x14d   : > { %p9997_p1 = por %p9996_p0, %p9995_p13 }
 0x14e   : > { %p9993_p12 = pneg %p9992_p11 }
 0x150   : > { %p9998_p4 = pnand %p9997_p1, %p9993_p12 }
 0x152   : > { %10001 = shalt.err (!%p9998_p4)
}
 0x153   : > { %9264 = dma.hbm_to_vmem [thread:$0]  (!%p10346_p5), %s10582_s6, 16, %s1005_s23, [#allocation29]  }
 0x154   : > { %s10157_s7 = smov [#allocation33]   ;;  %s10017_s2 = sshra.s32 %s1029_s8, 4  ;;  %s10018_s2 = int_to_ptr.hbm [resolvable:$true] %s10017_s2 }
 0x155   : > { %s1030_s26 = sshll.u32 %s10157_s7, 4  ;;  %s10019_s21 = scalar_lea.hbm %s10018_s2, 1  ;;  %s1031_s26 = int_to_ptr.vmem [resolvable:$true] %s1030_s26 }
 0x156   : > { %p10020_p6 = scmp.ne.s32.totalorder %s10018_s2, %s10019_s21  ;;  %s10024_s28 = scalar_lea.hbm %s10314_s24, 1 }
 0x157   : > { %p10025_p10 = scmp.lt.s32.totalorder %s10018_s2, %s10314_s24  ;;  %p10026_p11 = scmp.lt.s32.totalorder %s10024_s28, %s10019_s21 }
 0x158   : > { %p10022_p8 = pnand %p10020_p6, %p10357_p7 }
 0x159   : > { %p10027_p12 = por %p10026_p11, %p10025_p10 }
 0x15a   : > { %p10023_p9 = pneg %p10022_p8 }
 0x15c   : > { %p10028_p13 = pnand %p10027_p12, %p10023_p9 }
 0x15e   : > { %10031 = shalt.err (!%p10028_p13)
}
 0x15f   : > { %9270 = dma.hbm_to_vmem [thread:$0]  (!%p10346_p5), %s1029_s8, 16, %s1031_s26, [#allocation32]  }
 0x160   : > { %1051 = sbr.rel (%p10333_p3) target bundleno = 5895 (0x1707), region = 136 }
 0x165   : > { %10052 = dma.done.wait (%p9271_p2), [#allocation3], 6144  }
 0x166   : > { %10054 = vsyncadd (%p9271_p2), [#allocation3], 4294961152 }
 0x167   : > { %10056 = dma.done.wait (%p9271_p2), [#allocation5], 8448  }
 0x168   : > { %10058 = vsyncadd (%p9271_p2), [#allocation5], 4294958848 }
 0x169   : > { %10060 = dma.done.wait (%p9271_p2), [#allocation8], 384  }
 0x16a   : > { %10062 = vsyncadd (%p9271_p2), [#allocation8], 4294966912 }
 0x16b   : > { %10064 = dma.done.wait (%p9271_p2), [#allocation11], 2112  }
 0x16c   : > { %10066 = vsyncadd (%p9271_p2), [#allocation11], 4294965184 }
 0x16d   : > { %10068 = dma.done.wait (%p9271_p2), [#allocation14], 8704  }
 0x16e   : > { %10070 = vsyncadd (%p9271_p2), [#allocation14], 4294958592 }
 0x16f   : > { %10072 = dma.done.wait (%p9271_p2), [#allocation17], 2304  }
 0x170   : > { %10074 = vsyncadd (%p9271_p2), [#allocation17], 4294964992 }
 0x171   : > { %10076 = dma.done.wait (%p9271_p2), [#allocation20], 8448  }
 0x172   : > { %10078 = vsyncadd (%p9271_p2), [#allocation20], 4294958848 }
 0x173   : > { %10080 = dma.done.wait (%p9271_p2), [#allocation23], 544  }
 0x174   : > { %10082 = vsyncadd (%p9271_p2), [#allocation23], 4294966752 }
 0x175   : > { %10084 = dma.done.wait (%p9271_p2), [#allocation26], 20560  }
 0x176   : > { %10086 = vsyncadd (%p9271_p2), [#allocation26], 4294946736 }
 0x177   : > { %10088 = dma.done.wait (%p9271_p2), [#allocation29], 32  }
 0x178   : > { %10090 = vsyncadd (%p9271_p2), [#allocation29], 4294967264 }
 0x179   : > { %10092 = dma.done.wait (%p9271_p2), [#allocation32], 528  }
 0x17a   : > { %10094 = vsyncadd (%p9271_p2), [#allocation32], 4294966768  ;;  %v1403_v0 = vld [vmem:[#allocation2 + $0x178] sm:$0xff]  ;;  %v1402_v1 = vld [vmem:[#allocation2 + $0x170] sm:$0xff]  ;;  %p1227_p2 = scmp.lt.s32.totalorder %s10327_s0, 1  ;;  %s12404_s11 = sld [smem:[#allocation45_spill]]  ;;  %v12344_v28 = vlaneseq }
 0x17b   : > { %v1328_v2 = vld [vmem:[#allocation2 + $0xf8] sm:$0xff]  ;;  %1404 = vmatpush.msra.mxu2 %v1403_v0  ;;  %v1327_v4 = vld [vmem:[#allocation2 + $0xf0] sm:$0xff]  ;;  %v1401_v5 = vld [vmem:[#allocation2 + $0x168] sm:$0xff]  ;;  %s10158_s6 = smov 127   ;;  %vm1543_vm4 = vcmask 261120   ;;  %s10160_s23 = smov 120  }
 0x17c   : > { %1329 = vmatpush.msra.mxu0 %v1328_v2  ;;  %v1311_v3 = vld [vmem:[#allocation2 + $0x78] sm:$0xff]  ;;  %v1310_v6 = vld [vmem:[#allocation2 + $0x70] sm:$0xff]  ;;  %v1326_v7 = vld [vmem:[#allocation2 + $0xe8] sm:$0xff]  ;;  %s12453_s0 = smov (!%p1227_p2, %s10327_s0), 1  ;;  %v10662_v37 = vshrl.u32 %v12344_v28, 7  ;;  %s10161_s8 = smov 8  }
 0x17d   : > { %1358 = vmatpush.msra.mxu1 %v1311_v3  ;;  %1405 = vmatpush.msra.mxu2 %v1402_v1  ;;  %v1309_v8 = vld [vmem:[#allocation2 + $0x68] sm:$0xff]  ;;  %v1400_v9 = vld [vmem:[#allocation2 + $0x160] sm:$0xff]  ;;  %v1399_v12 = vld [vmem:[#allocation2 + $0x158] sm:$0xff]  ;;  %s8806_s22 = sshll.u32 %s12453_s0, 5  ;;  %s10162_s13 = smov 112  }
 0x17e   : > { %1330 = vmatpush.msra.mxu0 %v1327_v4  ;;  %v1325_v10 = vld [vmem:[#allocation2 + $0xe0] sm:$0xff]  ;;  %v1324_v13 = vld [vmem:[#allocation2 + $0xd8] sm:$0xff]  ;;  %v1398_v15 = vld [vmem:[#allocation2 + $0x150] sm:$0xff]  ;;  %12405 = vst [vmem:[#allocation65_spill] sm:$0xff] %v10662_v37  ;;  %vm1279_vm0 = vcmp.lt.s32.totalorder %v10662_v37, 7  ;;  %vm1254_vm1 = vcmp.lt.s32.totalorder %v10662_v37, 1 }
 0x17f   : > { %1359 = vmatpush.msra.mxu1 %v1310_v6  ;;  %1406 = vmatpush.msra.mxu2 %v1401_v5  ;;  %v1308_v11 = vld [vmem:[#allocation2 + $0x60] sm:$0xff]  ;;  %v1307_v14 = vld [vmem:[#allocation2 + $0x58] sm:$0xff]  ;;  %v1323_v16 = vld [vmem:[#allocation2 + $0xd0] sm:$0xff]  ;;  %vm1246_vm2 = vcmp.ge.s32.totalorder %v10662_v37, 1  ;;  %v10684_v4 = vadd.s32 24, %v10662_v37  ;;  %s10163_s10 = smov 16  }
 0x180   : > { %1331 = vmatpush.msra.mxu0 %v1326_v7  ;;  %v1306_v17 = vld [vmem:[#allocation2 + $0x50] sm:$0xff]  ;;  %v1397_v18 = vld [vmem:[#allocation2 + $0x148] sm:$0xff]  ;;  %v1396_v21 = vld [vmem:[#allocation2 + $0x140] sm:$0xff]  ;;  %s10659_s16 = scalar_lea.vmem %s12404_s11, %s8806_s22  ;;  %s12435_s18 = sld [smem:[#allocation51_spill]] }
 0x181   : > { %1360 = vmatpush.msra.mxu1 %v1309_v8  ;;  %1407 = vmatpush.msra.mxu2 %v1400_v9  ;;  %v1322_v19 = vld [vmem:[#allocation2 + $0xc8] sm:$0xff]  ;;  %v1321_v22 = vld [vmem:[#allocation2 + $0xc0] sm:$0xff]  ;;  %v1395_v24 = vld [vmem:[#allocation2 + $0x138] sm:$0xff]  ;;  %12406 = vst [vmem:[#allocation66_spill] sm:$0xff] %v10684_v4  ;;  %vm1274_vm3 = vcmp.le.s32.totalorder %v10684_v4, 30  ;;  %s10164_s7 = smov 96  }
 0x182   : > { %1332 = vmatpush.msra.mxu0 %v1325_v10  ;;  %v1305_v20 = vld [vmem:[#allocation2 + $0x48] sm:$0xff]  ;;  %v1304_v23 = vld [vmem:[#allocation2 + $0x40] sm:$0xff]  ;;  %v1320_v25 = vld [vmem:[#allocation2 + $0xb8] sm:$0xff]  ;;  %s10165_s26 = smov 32   ;;  %s12440_s2 = sld [smem:[#allocation55_spill]] }
 0x183   : > { %1361 = vmatpush.msra.mxu1 %v1308_v11  ;;  %1408 = vmatpush.msra.mxu2 %v1399_v12  ;;  %v1394_v26 = vld [vmem:[#allocation2 + $0x130] sm:$0xff]  ;;  %v1303_v27 = vld [vmem:[#allocation2 + $0x38] sm:$0xff]  ;;  %v1393_v29 = vld [vmem:[#allocation2 + $0x128] sm:$0xff]  ;;  %s12445_s21 = sld [smem:[#allocation54_spill]] }
 0x184   : > { %1333 = vmatpush.msra.mxu0 %v1324_v13  ;;  %v1319_v30 = vld [vmem:[#allocation2 + $0xb0] sm:$0xff]  ;;  %v1318_v32 = vld [vmem:[#allocation2 + $0xa8] sm:$0xff]  ;;  %v1392_v34 = vld [vmem:[#allocation2 + $0x120] sm:$0xff]  ;;  %s12446_s28 = sld [smem:[#allocation59_spill]] }
 0x185   : > { %1362 = vmatpush.msra.mxu1 %v1307_v14  ;;  %1409 = vmatpush.msra.mxu2 %v1398_v15  ;;  %v1302_v31 = vld [vmem:[#allocation2 + $0x30] sm:$0xff]  ;;  %v1301_v33 = vld [vmem:[#allocation2 + $0x28] sm:$0xff]  ;;  %v1317_v35 = vld [vmem:[#allocation2 + $0xa0] sm:$0xff]  ;;  %s12447_s11 = sld [smem:[#allocation61_spill]] }
 0x186   : > { %1334 = vmatpush.msra.mxu0 %v1323_v16  ;;  %v1300_v36 = vld [vmem:[#allocation2 + $0x20] sm:$0xff]  ;;  %v1391_v38 = vld [vmem:[#allocation2 + $0x118] sm:$0xff]  ;;  %v1238_v41 = vld [vmem:[%s10659_s16 + $0x8] sm:$0xff]  ;;  %s12448_s22 = sld [smem:[#allocation60_spill]] }
 0x187   : > { %1363 = vmatpush.msra.mxu1 %v1306_v17  ;;  %1410 = vmatpush.msra.mxu2 %v1397_v18  ;;  %v1316_v39 = vld [vmem:[#allocation2 + $0x98] sm:$0xff]  ;;  %v1237_v40 = vld [vmem:[%s10659_s16] sm:$0xff]  ;;  %v1390_v44 = vld [vmem:[#allocation2 + $0x110] sm:$0xff]  ;;  %v1276_v48 = vrot.slane %v1238_v41, 1  ;;  %v1251_v61 = vrot.slane %v1238_v41, 7 }
 0x188   : > { %1335 = vmatpush.msra.mxu0 %v1322_v19  ;;  %v1299_v42 = vld [vmem:[#allocation2 + $0x18] sm:$0xff]  ;;  %v1315_v45 = vld [vmem:[#allocation2 + $0x90] sm:$0xff]  ;;  %v1275_v47 = vrot.slane %v1237_v40, 1  ;;  %v1389_v49 = vld [vmem:[#allocation2 + $0x108] sm:$0xff]  ;;  %v1250_v51 = vrot.slane %v1237_v40, 7 }
 0x189   : > { %1364 = vmatpush.msra.mxu1 %v1305_v20  ;;  %1411 = vmatpush.msra.mxu2 %v1396_v21  ;;  %v1240_v43 = vld [vmem:[%s10659_s16 + $0x18] sm:$0xff]  ;;  %v1298_v46 = vld [vmem:[#allocation2 + $0x10] sm:$0xff]  ;;  %v1314_v50 = vld [vmem:[#allocation2 + $0x88] sm:$0xff] }
 0x18a   : > { %1336 = vmatpush.msra.mxu0 %v1321_v22  ;;  %v1253_v52 = vrot.slane %v1240_v43, 7  ;;  %v1297_v53 = vld [vmem:[#allocation2 + $0x8] sm:$0xff]  ;;  %v1388_v54 = vld [vmem:[#allocation2 + $0x100] sm:$0xff]  ;;  %v1282_v56 = vsel %vm1279_vm0, %v1275_v47, %v1276_v48  ;;  %v1239_v59 = vld [vmem:[%s10659_s16 + $0x10] sm:$0xff]  ;;  %v1257_v63 = vsel %vm1254_vm1, %v1250_v51, %v1251_v61  ;;  %v1278_v0 = vrot.slane %v1240_v43, 1  ;;  %s12449_s16 = sld [smem:[#allocation62_spill]] }
 0x18b   : > { %1365 = vmatpush.msra.mxu1 %v1304_v23  ;;  %1412 = vmatpush.msra.mxu2 %v1395_v24  ;;  %v1313_v55 = vld [vmem:[#allocation2 + $0x80] sm:$0xff]  ;;  %v1277_v60 = vrot.slane %v1239_v59, 1  ;;  %v1252_v1 = vrot.slane %v1239_v59, 7  ;;  %v10900_v28 = vld [vmem:[#allocation6] sm:$0xff]  ;;  %v10904_v4 = vld [vmem:[#allocation6 + $0x98] sm:$0xff] }
 0x18c   : > { %1337 = vmatpush.msra.mxu0 %v1320_v25  ;;  %v1296_v57 = vld [vmem:[#allocation2] sm:$0xff]  ;;  %v1258_v58 = vsel %vm1254_vm1, %v1253_v52, %v1250_v51  ;;  %v1283_v5 = vsel %vm1279_vm0, %v1278_v0, %v1275_v47  ;;  %12415 = vst [vmem:[#allocation75_spill] sm:$0xff] %v10900_v28  ;;  %v1482_v37 = vld [vmem:[#allocation6 + $0x18] sm:$0xff] }
 0x18d   : > { %1366 = vmatpush.msra.mxu1 %v1303_v27  ;;  %1413 = vmatpush.msra.mxu2 %v1394_v26  ;;  %v1281_v62 = vsel %vm1279_vm0, %v1276_v48, %v1277_v60  ;;  %v1280_v2 = vsel %vm1279_vm0, %v1277_v60, %v1278_v0  ;;  %v1256_v3 = vsel %vm1254_vm1, %v1251_v61, %v1252_v1  ;;  %v10750_v60 = vld [vmem:[#allocation6 + $0x1e8] sm:$0xff]  ;;  %v10752_v61 = vld [vmem:[#allocation6 + $0x1f0] sm:$0xff] }
 0x18e   : > { %1338 = vmatpush.msra.mxu0 %v1319_v30  ;;  %v1255_v6 = vsel %vm1254_vm1, %v1252_v1, %v1253_v52  ;;  %v10760_v0 = vld [vmem:[#allocation6 + $0x1d0] sm:$0xff]  ;;  %v10764_v1 = vld [vmem:[#allocation6 + $0x140] sm:$0xff] }
 0x18f   : > { %1367 = vmatpush.msra.mxu1 %v1302_v31  ;;  %1414 = vmatpush.msra.mxu2 %v1393_v29 }
 0x190   : > { %1339 = vmatpush.msra.mxu0 %v1318_v32 }
 0x191   : > { %1368 = vmatpush.msra.mxu1 %v1301_v33  ;;  %1415 = vmatpush.msra.mxu2 %v1392_v34 }
 0x192   : > { %1340 = vmatpush.msra.mxu0 %v1317_v35 }
 0x193   : > { %1369 = vmatpush.msra.mxu1 %v1300_v36  ;;  %1416 = vmatpush.msra.mxu2 %v1391_v38 }
 0x194   : > { %1341 = vmatpush.msra.mxu0 %v1316_v39 }
 0x195   : > { %1370 = vmatpush.msra.mxu1 %v1299_v42  ;;  %1417 = vmatpush.msra.mxu2 %v1390_v44 }
 0x196   : > { %1342 = vmatpush.msra.mxu0 %v1315_v45 }
 0x197   : > { %1371 = vmatpush.msra.mxu1 %v1298_v46  ;;  %1418 = vmatpush.msra.mxu2 %v1389_v49 }
 0x198   : > { %1343 = vmatpush.msra.mxu0 %v1314_v50 }
 0x199   : > { %1372 = vmatpush.msra.mxu1 %v1297_v53  ;;  %1419 = vmatpush.msra.mxu2 %v1388_v54  ;;  %v10731_v53 = vld [vmem:[#allocation4] sm:$0xff]  ;;  %v10733_v54 = vld [vmem:[#allocation6 + $0x1e0] sm:$0xff] }
 0x19a   : > { %1344 = vmatpush.msra.mxu0 %v1313_v55  ;;  %1420 = vmatmul.f32.vlgmr.msra.gmra.mxu2 %v1282_v56  ;;  %v10737_v55 = vld [vmem:[#allocation6 + $0x1c0] sm:$0xff] }
 0x19b   : > { %1373 = vmatpush.msra.mxu1 %v1296_v57  ;;  %1345 = vmatmul.f32.vlgmr.msra.gmra.mxu0 %v1237_v40  ;;  %v10740_v56 = vld [vmem:[#allocation6 + $0x1a0] sm:$0xff] }
 0x19c   : > { %7372 = vmatmul.msk.f32.vlgmr.msra.gmra.mxu1 %vm1246_vm2, %v1258_v58  ;;  %v10743_v57 = vld [vmem:[#allocation6 + $0x180] sm:$0xff]  ;;  %v10746_v58 = vld [vmem:[#allocation4 + $0x8] sm:$0xff]  ;;  %1596 = vmatpush.msrb.mxu0 %v10750_v60 }
 0x19d   : > { %12407 = vst [vmem:[#allocation67_spill] sm:$0xff] %v10746_v58  ;;  %1619 = vmatpush.msrb.mxu1 %v10752_v61 }
 0x19f   : > { %1620 = vmatpush.msrb.mxu1 %v10760_v0 }
 0x1a2   : > { %1423 = vmatmul.f32.gmra.mxu2 %v1281_v62  ;;  %v10754_v62 = vld [vmem:[#allocation6 + $0x1f8] sm:$0xff] }
 0x1a3   : > { %1348 = vmatmul.f32.gmra.mxu0 %v1238_v41  ;;  %1642 = vmatpush.msrb.mxu2 %v10754_v62 }
 0x1a4   : > { %1377 = vmatmul.f32.gmra.mxu1 %v1257_v63  ;;  %v10758_v63 = vld [vmem:[#allocation6 + $0x1c8] sm:$0xff] }
 0x1a5   : > { %1597 = vmatpush.msrb.mxu0 %v10758_v63 }
 0x1aa   : > { %1426 = vmatmul.f32.gmra.mxu2 %v1280_v2  ;;  %v10767_v2 = vld [vmem:[#allocation6 + $0x1d8] sm:$0xff] }
 0x1ab   : > { %1351 = vmatmul.f32.gmra.mxu0 %v1239_v59  ;;  %v10748_v59 = vld [vmem:[#allocation6 + $0x160] sm:$0xff]  ;;  %1643 = vmatpush.msrb.mxu2 %v10767_v2 }
 0x1ac   : > { %1380 = vmatmul.f32.gmra.mxu1 %v1256_v3  ;;  %v10771_v3 = vld [vmem:[#allocation6 + $0x1a8] sm:$0xff] }
 0x1ad   : > { %1598 = vmatpush.msrb.mxu0 %v10771_v3 }
 0x1b2   : > { %7373 = vmatmul.msk.f32.gmra.mxu2 %vm1274_vm3, %v1283_v5  ;;  %v10773_v5 = vld [vmem:[#allocation6 + $0x1b0] sm:$0xff] }
 0x1b3   : > { %1354 = vmatmul.f32.gmra.mxu0 %v1240_v43  ;;  %1621 = vmatpush.msrb.mxu1 %v10773_v5 }
 0x1b4   : > { %1383 = vmatmul.f32.gmra.mxu1 %v1255_v6  ;;  %v10775_v6 = vld [vmem:[#allocation6 + $0x120] sm:$0xff] }
 0x218   : > { %v1346_v7 = vpop.f32.mrf.mxu0 }
 0x219   : > { %v1375_v8 = vpop.f32.mrf.mxu1 }
 0x21a   : > { %v1376_v18 = vadd.f32 %v1375_v8, %v1346_v7  ;;  %v10779_v7 = vld [vmem:[#allocation6 + $0x1b8] sm:$0xff]  ;;  %v10783_v8 = vld [vmem:[#allocation6 + $0x188] sm:$0xff] }
 0x21b   : > { %1644 = vmatpush.msrb.mxu2 %v10779_v7  ;;  %1599 = vmatpush.msrb.mxu0 %v10783_v8 }
 0x21d   : > { %v1421_v9 = vpop.f32.mrf.mxu2 }
 0x21e   : > { %v10691_v21 = vadd.f32 %v1421_v9, %v1376_v18  ;;  %v10785_v9 = vld [vmem:[#allocation6 + $0x190] sm:$0xff]  ;;  %v10811_v18 = vld [vmem:[#allocation6 + $0xc0] sm:$0xff] }
 0x21f   : > { %1622 = vmatpush.msrb.mxu1 %v10785_v9  ;;  %12409 = vst [vmem:[#allocation69_spill] sm:$0xff] %v10811_v18 }
 0x220   : > { %v1349_v10 = vpop.f32.mrf.mxu0 }
 0x221   : > { %v1378_v11 = vpop.f32.mrf.mxu1 }
 0x222   : > { %v1379_v25 = vadd.f32 %v1378_v11, %v1349_v10  ;;  %v10787_v10 = vld [vmem:[#allocation6 + $0x100] sm:$0xff]  ;;  %v10791_v11 = vld [vmem:[#allocation6 + $0x198] sm:$0xff] }
 0x223   : > { %1645 = vmatpush.msrb.mxu2 %v10791_v11 }
 0x225   : > { %v1424_v12 = vpop.f32.mrf.mxu2 }
 0x226   : > { %v10699_v27 = vadd.f32 %v1424_v12, %v1379_v25  ;;  %v10795_v12 = vld [vmem:[#allocation6 + $0x168] sm:$0xff]  ;;  %v10827_v25 = vld [vmem:[#allocation6 + $0x138] sm:$0xff] }
 0x227   : > { %1600 = vmatpush.msrb.mxu0 %v10795_v12 }
 0x228   : > { %v1352_v13 = vpop.f32.mrf.mxu0 }
 0x229   : > { %v1381_v14 = vpop.f32.mrf.mxu1 }
 0x22a   : > { %v1382_v23 = vadd.f32 %v1381_v14, %v1352_v13  ;;  %v10797_v13 = vld [vmem:[#allocation6 + $0x170] sm:$0xff]  ;;  %v10799_v14 = vld [vmem:[#allocation6 + $0xe0] sm:$0xff] }
 0x22b   : > { %12408 = vst [vmem:[#allocation68_spill] sm:$0xff] %v10799_v14  ;;  %1623 = vmatpush.msrb.mxu1 %v10797_v13 }
 0x22d   : > { %v1427_v15 = vpop.f32.mrf.mxu2 }
 0x22e   : > { %v10697_v26 = vadd.f32 %v1427_v15, %v1382_v23  ;;  %v10803_v15 = vld [vmem:[#allocation6 + $0x178] sm:$0xff]  ;;  %v10821_v23 = vld [vmem:[#allocation6 + $0x130] sm:$0xff] }
 0x22f   : > { %1646 = vmatpush.msrb.mxu2 %v10803_v15 }
 0x230   : > { %v1355_v16 = vpop.f32.mrf.mxu0  ;;  %v9393_v29 = vpack.i.bf16 %v10699_v27, %v10697_v26 }
 0x231   : > { %v1384_v17 = vpop.f32.mrf.mxu1 }
 0x232   : > { %v1385_v19 = vadd.f32 %v1384_v17, %v1355_v16  ;;  %v10807_v16 = vld [vmem:[#allocation6 + $0x148] sm:$0xff]  ;;  %v10809_v17 = vld [vmem:[#allocation6 + $0x150] sm:$0xff] }
 0x233   : > { %1601 = vmatpush.msrb.mxu0 %v10807_v16  ;;  %1624 = vmatpush.msrb.mxu1 %v10809_v17 }
 0x235   : > { %v1430_v20 = vpop.f32.mrf.mxu2  ;;  %1625 = vmatpush.msrb.mxu1 %v10821_v23 }
 0x236   : > { %v10693_v22 = vadd.f32 %v1430_v20, %v1385_v19  ;;  %v10815_v19 = vld [vmem:[#allocation6 + $0x158] sm:$0xff]  ;;  %v10819_v20 = vld [vmem:[#allocation6 + $0x128] sm:$0xff] }
 0x237   : > { %1647 = vmatpush.msrb.mxu2 %v10815_v19  ;;  %1602 = vmatpush.msrb.mxu0 %v10819_v20 }
 0x238   : > { %v9388_v24 = vpack.i.bf16 %v10693_v22, %v10691_v21 }
 0x239   : > { %1648 = vmatpush.msrb.mxu2 %v10827_v25 }
 0x23a   : > { %9389 = vrot.lane.b32.xlu0 %v9388_v24, %s10158_s6  ;;  %v10823_v24 = vld [vmem:[#allocation6 + $0xa0] sm:$0xff] }
 0x23b   : > { %12410 = vst [vmem:[#allocation70_spill] sm:$0xff] %v10823_v24 }
 0x242   : > { %9394 = vrot.lane.b32.xlu0 %v9393_v29, %s10158_s6  ;;  %s7371_s6 = sshll.u32 %s12453_s0, 2 }
 0x2ac   : > { %v10703_v30 = vpop.permute.xlu0 %9389 }
 0x2ad   : > { %v9392_v31 = vunpack.i.h.bf16 %v10703_v30  ;;  %v9391_v32 = vunpack.i.l.bf16 %v10703_v30  ;;  %v10854_v30 = vld [vmem:[#allocation6 + $0xe8] sm:$0xff] }
 0x2af   : > { %v1445_v33 = vmax.f32 %v10691_v21, %v9391_v32  ;;  %v1448_v34 = vmax.f32 %v10693_v22, %v9392_v31  ;;  %v1452_v29 = vmin.f32 %v10693_v22, %v9392_v31  ;;  %v10847_v22 = vld [vmem:[#allocation6 + $0x118] sm:$0xff]  ;;  %v10856_v31 = vld [vmem:[#allocation6 + $0xf0] sm:$0xff] }
 0x2b0   : > { %1649 = vmatpush.msrb.mxu2 %v10847_v22 }
 0x2b1   : > { %v1453_v35 = vrot.slane %v1445_v33, 1  ;;  %v1456_v36 = vrot.slane %v1448_v34, 1 }
 0x2b3   : > { %v1460_v38 = vsel %vm1279_vm0, %v1456_v36, %v1453_v35 }
 0x2b4   : > { %v10715_v39 = vpop.permute.xlu0 %9394  ;;  %v1464_v40 = vmax.f32 %v1448_v34, %v1460_v38  ;;  %v10839_v34 = vld [vmem:[#allocation6 + $0x108] sm:$0xff]  ;;  %v10862_v38 = vld [vmem:[#allocation6 + $0xf8] sm:$0xff] }
 0x2b5   : > { %v9397_v41 = vunpack.i.h.bf16 %v10715_v39  ;;  %v9396_v42 = vunpack.i.l.bf16 %v10715_v39  ;;  %1603 = vmatpush.msrb.mxu0 %v10839_v34  ;;  %1650 = vmatpush.msrb.mxu2 %v10862_v38  ;;  %v10884_v39 = vld [vmem:[#allocation6 + $0xb0] sm:$0xff] }
 0x2b6   : > { %1562 = vmatpush.msra.mxu3 %v1464_v40  ;;  %v1468_v40 = vrot.slane %v1452_v29, 1 }
 0x2b7   : > { %v1447_v43 = vmax.f32 %v10697_v26, %v9396_v42  ;;  %v1446_v44 = vmax.f32 %v10699_v27, %v9397_v41  ;;  %1604 = vmatpush.msrb.mxu0 %v10854_v30 }
 0x2b9   : > { %v1455_v45 = vrot.slane %v1447_v43, 1  ;;  %v1454_v46 = vrot.slane %v1446_v44, 1 }
 0x2bb   : > { %v1457_v47 = vsel %vm1279_vm0, %v1455_v45, %v1456_v36  ;;  %v1458_v48 = vsel %vm1279_vm0, %v1454_v46, %v1455_v45  ;;  %v1459_v50 = vsel %vm1279_vm0, %v1453_v35, %v1454_v46  ;;  %v10841_v35 = vld [vmem:[#allocation6 + $0x110] sm:$0xff]  ;;  %v10843_v36 = vld [vmem:[#allocation6 + $0x80] sm:$0xff]  ;;  %v10878_v46 = vld [vmem:[#allocation6 + $0xd8] sm:$0xff] }
 0x2bc   : > { %v1463_v49 = vmax.f32 %v1447_v43, %v1457_v47  ;;  %v1462_v51 = vmax.f32 %v1446_v44, %v1458_v48  ;;  %v1461_v52 = vmax.f32 %v1445_v33, %v1459_v50  ;;  %v10835_v33 = vmin.f32 %v10691_v21, %v9391_v32  ;;  %12411 = vst [vmem:[#allocation71_spill] sm:$0xff] %v10843_v36  ;;  %v10858_v32 = vld [vmem:[#allocation6 + $0x60] sm:$0xff]  ;;  %v10872_v44 = vld [vmem:[#allocation6 + $0xd0] sm:$0xff]  ;;  %v10890_v48 = vld [vmem:[#allocation6 + $0xb8] sm:$0xff] }
 0x2bd   : > { %v1451_v21 = vmin.f32 %v10697_v26, %v9396_v42  ;;  %12412 = vst [vmem:[#allocation72_spill] sm:$0xff] %v10858_v32  ;;  %1626 = vmatpush.msrb.mxu1 %v10841_v35  ;;  %v1450_v26 = vmin.f32 %v10699_v27, %v9397_v41  ;;  %v10870_v42 = vld [vmem:[#allocation6 + $0xc8] sm:$0xff]  ;;  %v10874_v45 = vld [vmem:[#allocation6 + $0x40] sm:$0xff]  ;;  %1651 = vmatpush.msrb.mxu2 %v10878_v46 }
 0x2be   : > { %1563 = vmatpush.msra.mxu3 %v1463_v49  ;;  %v1465_v43 = vrot.slane %v10835_v33, 1  ;;  %12413 = vst [vmem:[#allocation73_spill] sm:$0xff] %v10874_v45  ;;  %v10882_v27 = vld [vmem:[#allocation6 + $0xa8] sm:$0xff]  ;;  %v10886_v41 = vld [vmem:[#allocation6 + $0x20] sm:$0xff]  ;;  %1605 = vmatpush.msrb.mxu0 %v10870_v42 }
 0x2bf   : > { %1627 = vmatpush.msrb.mxu1 %v10856_v31  ;;  %v1467_v47 = vrot.slane %v1451_v21, 1  ;;  %12414 = vst [vmem:[#allocation74_spill] sm:$0xff] %v10886_v41  ;;  %v1466_v49 = vrot.slane %v1450_v26, 1  ;;  %1652 = vmatpush.msrb.mxu2 %v10890_v48 }
 0x2c0   : > { %1564 = vmatpush.msra.mxu3 %v1462_v51  ;;  %v1472_v50 = vsel %vm1279_vm0, %v1468_v40, %v1465_v43  ;;  %v10896_v51 = vld [vmem:[#allocation6 + $0x88] sm:$0xff]  ;;  %1606 = vmatpush.msrb.mxu0 %v10882_v27 }
 0x2c1   : > { %1628 = vmatpush.msrb.mxu1 %v10872_v44  ;;  %1653 = vmatpush.msrb.mxu2 %v10904_v4 }
 0x2c2   : > { %1565 = vmatpush.msra.mxu3 %v1461_v52  ;;  %v10898_v52 = vld [vmem:[#allocation6 + $0x90] sm:$0xff]  ;;  %1607 = vmatpush.msrb.mxu0 %v10896_v51 }
 0x2c3   : > { %7374 = vmatmul.msk.f32.vlgmr.msra.gmra.mxu3 %vm1543_vm4, %v10731_v53  ;;  %1629 = vmatpush.msrb.mxu1 %v10884_v39 }
 0x2c4   : > { %1573 = vmatpush.msrb.mxu3 %v10733_v54 }
 0x2c5   : > { %1630 = vmatpush.msrb.mxu1 %v10898_v52 }
 0x2c6   : > { %1574 = vmatpush.msrb.mxu3 %v10737_v55 }
 0x2c8   : > { %1575 = vmatpush.msrb.mxu3 %v10740_v56 }
 0x2ca   : > { %1576 = vmatpush.msrb.mxu3 %v10743_v57 }
 0x2cb   : > { %7375 = vmatmul.msk.f32.gmra.mxu3 %vm1543_vm4, %v10746_v58  ;;  %v10916_v58 = vld [vmem:[#allocation6 + $0x78] sm:$0xff] }
 0x2cc   : > { %1577 = vmatpush.msrb.mxu3 %v10748_v59  ;;  %1654 = vmatpush.msrb.mxu2 %v10916_v58 }
 0x2ce   : > { %1578 = vmatpush.msrb.mxu3 %v10764_v1 }
 0x2d0   : > { %1579 = vmatpush.msrb.mxu3 %v10775_v6 }
 0x2d2   : > { %1580 = vmatpush.msrb.mxu3 %v10787_v10 }
 0x2d4   : > { %1581 = vmatpush.msrb.mxu3 %v10799_v14  ;;  %v1471_v14 = vsel %vm1279_vm0, %v1465_v43, %v1466_v49  ;;  %v1480_v43 = vld [vmem:[#allocation6 + $0x8] sm:$0xff] }
 0x2d6   : > { %1582 = vmatpush.msrb.mxu3 %v10811_v18 }
 0x2d8   : > { %1583 = vmatpush.msrb.mxu3 %v10823_v24  ;;  %v10914_v24 = vld [vmem:[#allocation6 + $0x70] sm:$0xff] }
 0x2d9   : > { %1631 = vmatpush.msrb.mxu1 %v10914_v24 }
 0x2da   : > { %1584 = vmatpush.msrb.mxu3 %v10843_v36  ;;  %v1476_v36 = vmin.f32 %v1452_v29, %v1472_v50  ;;  %v10925_v29 = vld [vmem:[#allocation6 + $0x50] sm:$0xff]  ;;  %v10927_v50 = vld [vmem:[#allocation6 + $0x58] sm:$0xff] }
 0x2db   : > { %1632 = vmatpush.msrb.mxu1 %v10925_v29  ;;  %1655 = vmatpush.msrb.mxu2 %v10927_v50 }
 0x2dc   : > { %1585 = vmatpush.msrb.mxu3 %v10858_v32  ;;  %v10910_v32 = vld [vmem:[#allocation6 + $0x68] sm:$0xff] }
 0x2dd   : > { %1608 = vmatpush.msrb.mxu0 %v10910_v32 }
 0x2de   : > { %1586 = vmatpush.msrb.mxu3 %v10874_v45  ;;  %v1469_v45 = vsel %vm1279_vm0, %v1467_v47, %v1468_v40  ;;  %v10922_v40 = vld [vmem:[#allocation6 + $0x48] sm:$0xff] }
 0x2df   : > { %v1475_v18 = vmin.f32 %v1451_v21, %v1469_v45  ;;  %1609 = vmatpush.msrb.mxu0 %v10922_v40  ;;  %v1486_v21 = vld [vmem:[#allocation6 + $0x38] sm:$0xff]  ;;  %v1473_v45 = vmin.f32 %v10835_v33, %v1471_v14 }
 0x2e0   : > { %1587 = vmatpush.msrb.mxu3 %v10886_v41  ;;  %v1470_v41 = vsel %vm1279_vm0, %v1466_v49, %v1467_v47  ;;  %v1484_v47 = vld [vmem:[#allocation6 + $0x28] sm:$0xff]  ;;  %1656 = vmatpush.msrb.mxu2 %v1486_v21  ;;  %v1481_v49 = vld [vmem:[#allocation6 + $0x10] sm:$0xff] }
 0x2e1   : > { %1610 = vmatpush.msrb.mxu0 %v1484_v47 }
 0x2e2   : > { %1588 = vmatpush.msrb.mxu3 %v10900_v28  ;;  %v1474_v28 = vmin.f32 %v1450_v26, %v1470_v41  ;;  %1657 = vmatpush.msrb.mxu2 %v1482_v37 }
 0x2e3   : > { %1611 = vmatpush.msrb.mxu0 %v1480_v43 }
 0x2e4   : > { %1677 = vmatpush.msra.mxu3 %v1476_v36  ;;  %v1485_v36 = vld [vmem:[#allocation6 + $0x30] sm:$0xff]  ;;  %1757 = vmatpush.msra.mxu2 %v10754_v62 }
 0x2e5   : > { %1633 = vmatpush.msrb.mxu1 %v1485_v36  ;;  %1711 = vmatpush.msra.mxu0 %v10750_v60  ;;  %v12424_v60 = vld [vmem:[#allocation75_spill] sm:$0xff] }
 0x2e6   : > { %1678 = vmatpush.msra.mxu3 %v1475_v18  ;;  %1758 = vmatpush.msra.mxu2 %v10767_v2 }
 0x2e7   : > { %1634 = vmatpush.msrb.mxu1 %v1481_v49  ;;  %1712 = vmatpush.msra.mxu0 %v10758_v63 }
 0x2e8   : > { %1679 = vmatpush.msra.mxu3 %v1474_v28  ;;  %1759 = vmatpush.msra.mxu2 %v10779_v7 }
 0x2e9   : > { %1734 = vmatpush.msra.mxu1 %v10752_v61  ;;  %1713 = vmatpush.msra.mxu0 %v10771_v3 }
 0x2ea   : > { %1680 = vmatpush.msra.mxu3 %v1473_v45  ;;  %1760 = vmatpush.msra.mxu2 %v10791_v11 }
 0x2eb   : > { %1735 = vmatpush.msra.mxu1 %v10760_v0  ;;  %1714 = vmatpush.msra.mxu0 %v10783_v8 }
 0x2ec   : > { %1761 = vmatpush.msra.mxu2 %v10803_v15 }
 0x2ed   : > { %1736 = vmatpush.msra.mxu1 %v10773_v5  ;;  %1715 = vmatpush.msra.mxu0 %v10795_v12  ;;  %v10159_v5 = vmov 0  }
 0x2ee   : > { %1762 = vmatpush.msra.mxu2 %v10815_v19 }
 0x2ef   : > { %1737 = vmatpush.msra.mxu1 %v10785_v9  ;;  %1716 = vmatpush.msra.mxu0 %v10807_v16 }
 0x2f0   : > { %1763 = vmatpush.msra.mxu2 %v10827_v25 }
 0x2f1   : > { %1738 = vmatpush.msra.mxu1 %v10797_v13  ;;  %1717 = vmatpush.msra.mxu0 %v10819_v20 }
 0x2f2   : > { %1764 = vmatpush.msra.mxu2 %v10847_v22 }
 0x2f3   : > { %1739 = vmatpush.msra.mxu1 %v10809_v17  ;;  %1718 = vmatpush.msra.mxu0 %v10839_v34 }
 0x2f4   : > { %1765 = vmatpush.msra.mxu2 %v10862_v38 }
 0x2f5   : > { %1740 = vmatpush.msra.mxu1 %v10821_v23  ;;  %1719 = vmatpush.msra.mxu0 %v10854_v30 }
 0x2f6   : > { %1766 = vmatpush.msra.mxu2 %v10878_v46 }
 0x2f7   : > { %1741 = vmatpush.msra.mxu1 %v10841_v35  ;;  %1720 = vmatpush.msra.mxu0 %v10870_v42 }
 0x2f8   : > { %1767 = vmatpush.msra.mxu2 %v10890_v48 }
 0x2f9   : > { %1742 = vmatpush.msra.mxu1 %v10856_v31  ;;  %1721 = vmatpush.msra.mxu0 %v10882_v27 }
 0x2fa   : > { %1768 = vmatpush.msra.mxu2 %v10904_v4 }
 0x2fb   : > { %1743 = vmatpush.msra.mxu1 %v10872_v44  ;;  %1722 = vmatpush.msra.mxu0 %v10896_v51 }
 0x2fc   : > { %1769 = vmatpush.msra.mxu2 %v10916_v58  ;;  %v12421_v58 = vld [vmem:[#allocation72_spill] sm:$0xff] }
 0x2fd   : > { %1744 = vmatpush.msra.mxu1 %v10884_v39  ;;  %1723 = vmatpush.msra.mxu0 %v10910_v32 }
 0x2fe   : > { %1770 = vmatpush.msra.mxu2 %v10927_v50 }
 0x2ff   : > { %1745 = vmatpush.msra.mxu1 %v10898_v52  ;;  %1724 = vmatpush.msra.mxu0 %v10922_v40 }
 0x300   : > { %1771 = vmatpush.msra.mxu2 %v1486_v21 }
 0x301   : > { %1746 = vmatpush.msra.mxu1 %v10914_v24  ;;  %1725 = vmatpush.msra.mxu0 %v1484_v47 }
 0x302   : > { %1772 = vmatpush.msra.mxu2 %v1482_v37  ;;  %v12416_v37 = vld [vmem:[#allocation68_spill] sm:$0xff] }
 0x303   : > { %1747 = vmatpush.msra.mxu1 %v10925_v29  ;;  %1726 = vmatpush.msra.mxu0 %v1480_v43 }
 0x305   : > { %1748 = vmatpush.msra.mxu1 %v1485_v36 }
 0x307   : > { %1749 = vmatpush.msra.mxu1 %v1481_v49 }
 0x346   : > { %v1567_v28 = vpop.f32.mrf.mxu3 }
 0x347   : > { %1589 = vmatmul.f32.vlgmr.msrb.gmra.mxu3 %v1567_v28  ;;  %1612 = vmatmul.f32.vlgmr.msrb.gmra.mxu0 %v1567_v28 }
 0x348   : > { %1635 = vmatmul.f32.vlgmr.msrb.gmra.mxu1 %v1567_v28  ;;  %1658 = vmatmul.f32.vlgmr.msrb.gmra.mxu2 %v1567_v28 }
 0x349   : > { %1688 = vmatpush.msrb.mxu3 %v10733_v54  ;;  %v12417_v54 = vld [vmem:[#allocation69_spill] sm:$0xff] }
 0x34b   : > { %1689 = vmatpush.msrb.mxu3 %v10737_v55  ;;  %v12418_v55 = vld [vmem:[#allocation67_spill] sm:$0xff] }
 0x34d   : > { %1690 = vmatpush.msrb.mxu3 %v10740_v56  ;;  %v12419_v56 = vld [vmem:[#allocation70_spill] sm:$0xff] }
 0x34e   : > { %v1570_v4 = vpop.f32.mrf.mxu3 }
 0x34f   : > { %1592 = vmatmul.f32.gmra.mxu3 %v1570_v4  ;;  %1615 = vmatmul.f32.gmra.mxu0 %v1570_v4 }
 0x350   : > { %1638 = vmatmul.f32.gmra.mxu1 %v1570_v4  ;;  %1661 = vmatmul.f32.gmra.mxu2 %v1570_v4 }
 0x351   : > { %1691 = vmatpush.msrb.mxu3 %v10743_v57  ;;  %v12420_v57 = vld [vmem:[#allocation71_spill] sm:$0xff] }
 0x353   : > { %1692 = vmatpush.msrb.mxu3 %v10748_v59  ;;  %v12422_v59 = vld [vmem:[#allocation73_spill] sm:$0xff] }
 0x355   : > { %1693 = vmatpush.msrb.mxu3 %v10764_v1  ;;  %v11001_v1 = vld [vmem:[#allocation7] sm:$0xff] }
 0x356   : > { %vm1781_vm5 = vcmp.ge.f32.partialorder %v11001_v1, 0.0  ;;  %v1805_v12 = vperm.slane %v11001_v1, 2  ;;  %v1825_v13 = vperm.slane %v11001_v1, 3  ;;  %v1806_v16 = vperm.slane %v11001_v1, 4 }
 0x357   : > { %7376 = vmatmul.msk.f32.vlgmr.msra.gmra.mxu3 %vm1543_vm4, %v10731_v53  ;;  %v12423_v53 = vld [vmem:[#allocation74_spill] sm:$0xff]  ;;  %v1826_v33 = vperm.slane %v11001_v1, 5  ;;  %v1804_v38 = vperm.slane %v11001_v1, 0  ;;  %v1824_v39 = vperm.slane %v11001_v1, 1 }
 0x358   : > { %1694 = vmatpush.msrb.mxu3 %v10775_v6  ;;  %v11004_v6 = vsel %vm1781_vm5, 1, %v10159_v5  ;;  %v1813_v15 = vperm.slane %v1805_v12, 0  ;;  %v1833_v18 = vperm.slane %v1825_v13, 1  ;;  %v1814_v25 = vperm.slane %v1806_v16, 0 }
 0x359   : > { %v1784_v7 = vperm.slane %v11004_v6, 2  ;;  %v1785_v9 = vperm.slane %v11004_v6, 4  ;;  %v1783_v19 = vperm.slane %v11004_v6, 0  ;;  %v1834_v32 = vperm.slane %v1826_v33, 1 }
 0x35a   : > { %1695 = vmatpush.msrb.mxu3 %v10787_v10  ;;  %v1812_v27 = vperm.slane %v1804_v38, 0  ;;  %v1832_v29 = vperm.slane %v1824_v39, 1  ;;  %vm2628_vm5 = vcmask 523264  }
 0x35b   : > { %v1788_v11 = vperm.slane %v1784_v7, 0  ;;  %v1789_v14 = vperm.slane %v1785_v9, 0  ;;  %v1787_v22 = vperm.slane %v1783_v19, 0  ;;  %v1786_v9 = vperm.slane %v11004_v6, 6 }
 0x35c   : > { %1696 = vmatpush.msrb.mxu3 %v12416_v37  ;;  %v12425_v37 = vld [vmem:[#allocation65_spill] sm:$0xff]  ;;  %v1807_v6 = vperm.slane %v11001_v1, 6 }
 0x35d   : > { %vm1792_vm6 = vcmp.eq.s32.totalorder %v1788_v11, 1  ;;  %vm1793_vm7 = vcmp.eq.s32.totalorder %v1789_v14, 1  ;;  %vm1791_vm8 = vcmp.eq.s32.totalorder %v1787_v22, 1  ;;  %v1790_v14 = vperm.slane %v1786_v9, 0 }
 0x35e   : > { %1697 = vmatpush.msrb.mxu3 %v12417_v54 }
 0x35f   : > { %7377 = vmatmul.msk.f32.gmra.mxu3 %vm1543_vm4, %v12418_v55  ;;  %vm1794_vm11 = vcmp.eq.s32.totalorder %v1790_v14, 1 }
 0x360   : > { %1698 = vmatpush.msrb.mxu3 %v12419_v56 }
 0x362   : > { %1699 = vmatpush.msrb.mxu3 %v12420_v57 }
 0x364   : > { %1700 = vmatpush.msrb.mxu3 %v12421_v58 }
 0x366   : > { %1701 = vmatpush.msrb.mxu3 %v12422_v59 }
 0x368   : > { %1702 = vmatpush.msrb.mxu3 %v12423_v53 }
 0x36a   : > { %1703 = vmatpush.msrb.mxu3 %v12424_v60 }
 0x3c4   : > { %v1613_v2 = vpop.f32.mrf.mxu0 }
 0x3c5   : > { %v1636_v3 = vpop.f32.mrf.mxu1 }
 0x3ca   : > { %v1590_v61 = vpop.f32.mrf.mxu3 }
 0x3cb   : > { %v11035_v21 = vpop.f32.mrf.mxu2 }
 0x3cc   : > { %v1616_v8 = vpop.f32.mrf.mxu0 }
 0x3cd   : > { %v1639_v10 = vpop.f32.mrf.mxu1 }
 0x3d2   : > { %v10999_v62 = vpop.f32.mrf.mxu3 }
 0x3d3   : > { %v1662_v57 = vpop.f32.mrf.mxu2 }
 0x3da   : > { %v1682_v63 = vpop.f32.mrf.mxu3 }
 0x3db   : > { %1704 = vmatmul.f32.vlgmr.msrb.gmra.mxu3 %v1682_v63  ;;  %1727 = vmatmul.f32.vlgmr.msra.gmra.mxu0 %v1682_v63 }
 0x3dc   : > { %1750 = vmatmul.f32.vlgmr.msra.gmra.mxu1 %v1682_v63  ;;  %1773 = vmatmul.f32.vlgmr.msra.gmra.mxu2 %v1682_v63 }
 0x3e2   : > { %v1685_v0 = vpop.f32.mrf.mxu3 }
 0x3e3   : > { %1707 = vmatmul.f32.gmra.mxu3 %v1685_v0  ;;  %1730 = vmatmul.f32.gmra.mxu0 %v1685_v0 }
 0x3e4   : > { %1753 = vmatmul.f32.gmra.mxu1 %v1685_v0  ;;  %1776 = vmatmul.f32.gmra.mxu2 %v1685_v0 }
 0x458   : > { %v1728_v17 = vpop.f32.mrf.mxu0 }
 0x459   : > { %v1796_v20 = vsel %vm1792_vm6, %v1613_v2, %v1728_v17  ;;  %v1751_v23 = vpop.f32.mrf.mxu1 }
 0x45a   : > { %v1817_v24 = vmul.f32 %v1813_v15, %v1796_v20  ;;  %v1797_v34 = vsel %vm1793_vm7, %v1636_v3, %v1751_v23  ;;  %v1852_v3 = vadd.s32 32, %v12425_v37  ;;  %v1815_v23 = vperm.slane %v1807_v6, 0 }
 0x45b   : > { %v1818_v31 = vmul.f32 %v1814_v25, %v1797_v34 }
 0x45c   : > { %v1837_v35 = vadd.f32 %v1833_v18, %v1817_v24  ;;  %v1827_v24 = vperm.slane %v11001_v1, 7 }
 0x45d   : > { %v1838_v46 = vadd.f32 %v1834_v32, %v1818_v31 }
 0x45e   : > { %v11015_v30 = vmax.f32 %v1837_v35, 0.0  ;;  %v1705_v26 = vpop.f32.mrf.mxu3  ;;  %v1835_v35 = vperm.slane %v1827_v24, 1 }
 0x45f   : > { %v1795_v48 = vsel %vm1791_vm8, %v1590_v61, %v1705_v26  ;;  %v11025_v52 = vmax.f32 %v1838_v46, 0.0  ;;  %v1774_v0 = vpop.f32.mrf.mxu2  ;;  %v11142_v46 = vadd.s32 8, %v12425_v37 }
 0x460   : > { %2162 = vrot.lane.b32.xlu2 %v11015_v30, %s10160_s23  ;;  %2146 = vrot.lane.b32.xlu1 %v11015_v30, %s10161_s8  ;;  %v1731_v42 = vpop.f32.mrf.mxu0  ;;  %v1816_v40 = vmul.f32 %v1812_v27, %v1795_v48  ;;  %v1989_v49 = vrot.slane %v11015_v30, 7  ;;  %v2029_v58 = vrot.slane %v11015_v30, 1  ;;  %v1798_v48 = vsel %vm1794_vm11, %v11035_v21, %v1774_v0 }
 0x461   : > { %v1800_v44 = vsel %vm1792_vm6, %v1616_v8, %v1731_v42  ;;  %v1754_v47 = vpop.f32.mrf.mxu1  ;;  %v1991_v2 = vrot.slane %v11025_v52, 7  ;;  %v12426_v8 = vld [vmem:[#allocation66_spill] sm:$0xff]  ;;  %v2031_v11 = vrot.slane %v11025_v52, 1  ;;  %v1860_v42 = vand.u32 15, %v12425_v37  ;;  %12427 = vst [vmem:[#allocation68_spill] sm:$0xff] %v11142_v46 }
 0x462   : > { %v1821_v41 = vmul.f32 %v1813_v15, %v1800_v44  ;;  %v1836_v36 = vadd.f32 %v1832_v29, %v1816_v40  ;;  %v1801_v43 = vsel %vm1793_vm7, %v1639_v10, %v1754_v47  ;;  %v1888_v10 = vand.u32 15, %v1852_v3 }
 0x463   : > { %v1822_v4 = vmul.f32 %v1814_v25, %v1801_v43  ;;  %vm1952_vm12 = vcmp.ge.s32.totalorder %v1860_v42, 1  ;;  %v11162_v40 = vadd.s32 16, %v12425_v37  ;;  %v1853_v43 = vadd.s32 40, %v12425_v37 }
 0x464   : > { %v1841_v51 = vadd.f32 %v1833_v18, %v1821_v41  ;;  %v11040_v28 = vmax.f32 %v1836_v36, 0.0  ;;  %vm1956_vm10 = vcmp.ge.s32.totalorder %v1888_v10, 1  ;;  %v1867_v41 = vand.u32 15, %v11142_v46 }
 0x465   : > { %v1842_v55 = vadd.f32 %v1834_v32, %v1822_v4  ;;  %12428 = vst [vmem:[#allocation69_spill] sm:$0xff] %v11162_v40  ;;  %v1874_v36 = vand.u32 15, %v11162_v40 }
 0x466   : > { %v11027_v50 = vmax.f32 %v1841_v51, 0.0  ;;  %v1708_v60 = vpop.f32.mrf.mxu3  ;;  %v1987_v34 = vrot.slane %v11040_v28, 7  ;;  %v2027_v38 = vrot.slane %v11040_v28, 1  ;;  %vm1961_vm13 = vcmp.le.s32.totalorder %v1867_v41, 14 }
 0x467   : > { %v11056_v59 = vmax.f32 %v1842_v55, 0.0  ;;  %v1799_v63 = vsel %vm1791_vm8, %v10999_v62, %v1708_v60  ;;  %v1881_v62 = vand.u32 15, %v12426_v8  ;;  %v1777_v17 = vpop.f32.mrf.mxu2  ;;  %vm1954_vm14 = vcmp.ge.s32.totalorder %v1874_v36, 1 }
 0x468   : > { %2166 = vrot.lane.b32.xlu2 %v11025_v52, %s10160_s23  ;;  %2150 = vrot.lane.b32.xlu1 %v11025_v52, %s10161_s8  ;;  %v1990_v45 = vrot.slane %v11027_v50, 7  ;;  %v2030_v56 = vrot.slane %v11027_v50, 1  ;;  %v1820_v5 = vmul.f32 %v1812_v27, %v1799_v63  ;;  %v1802_v20 = vsel %vm1794_vm11, %v1662_v57, %v1777_v17 }
 0x469   : > { %2164 = vrot.lane.b32.xlu0 %v11027_v50, %s10160_s23  ;;  %v1992_v61 = vrot.slane %v11056_v59, 7  ;;  %vm1963_vm9 = vcmp.le.s32.totalorder %v1881_v62, 14  ;;  %v1823_v33 = vmul.f32 %v1815_v23, %v1802_v20  ;;  %v1895_v57 = vand.u32 15, %v1853_v43 }
 0x46a   : > { %v11046_v54 = vsel %vm1254_vm1, %v1989_v49, %v1990_v45  ;;  %v11062_v53 = vsel %vm1279_vm0, %v2029_v58, %v2030_v56  ;;  %v1840_v12 = vadd.f32 %v1832_v29, %v1820_v5  ;;  %v2038_v13 = vsel %vm1279_vm0, %v2030_v56, %v2031_v11 }
 0x46b   : > { %v11079_v7 = vsel %vm1254_vm1, %v1991_v2, %v1992_v61  ;;  %v1998_v15 = vsel %vm1254_vm1, %v1990_v45, %v1991_v2  ;;  %v11099_v18 = vsel %vm1963_vm9, %v2038_v13, 0.0  ;;  %v1843_v31 = vadd.f32 %v1835_v35, %v1823_v33 }
 0x46c   : > { %v11097_v16 = vmax.f32 %v1840_v12, 0.0  ;;  %v11103_v19 = vsel %vm1956_vm10, %v1998_v15, 0.0  ;;  %v1819_v29 = vmul.f32 %v1815_v23, %v1798_v48  ;;  %v2032_v56 = vrot.slane %v11056_v59, 1 }
 0x46d   : > { %v11124_v32 = vmax.f32 %v1843_v31, 0.0  ;;  %vm1965_vm15 = vcmp.le.s32.totalorder %v1895_v57, 14  ;;  %v1854_v60 = vadd.s32 48, %v12425_v37  ;;  %v1855_v12 = vadd.s32 56, %v12425_v37 }
 0x46e   : > { %v1988_v25 = vrot.slane %v11097_v16, 7  ;;  %v2028_v1 = vrot.slane %v11097_v16, 1  ;;  %v1839_v21 = vadd.f32 %v1835_v35, %v1819_v29  ;;  %v11197_v63 = vsel %vm1279_vm0, %v2031_v11, %v2032_v56 }
 0x46f   : > { %v1994_v44 = vrot.slane %v11124_v32, 7  ;;  %v1902_v2 = vand.u32 15, %v1854_v60  ;;  %v2034_v13 = vrot.slane %v11124_v32, 1  ;;  %v1909_v14 = vand.u32 15, %v1855_v12  ;;  %v8821_v12 = vld [vmem:[#allocation10 + $0x74] sm:$0xf] }
 0x470   : > { %2089 = vrot.lane.b32.xlu1 %v11046_v54, %s10160_s23  ;;  %2142 = vrot.lane.b32.xlu2 %v11040_v28, %s10161_s8  ;;  %v11115_v22 = vsel %vm1254_vm1, %v1987_v34, %v1988_v25  ;;  %v11133_v26 = vsel %vm1279_vm0, %v2027_v38, %v2028_v1  ;;  %v2040_v51 = vsel %vm1279_vm0, %v2028_v1, %v2029_v58  ;;  %v11178_v4 = vmax.f32 %v1839_v21, 0.0 }
 0x471   : > { %2073 = vrot.lane.b32.xlu0 %v11046_v54, %s10161_s8  ;;  %v2002_v27 = vsel %vm1254_vm1, %v1994_v44, %v1987_v34  ;;  %v11164_v47 = vsel %vm1961_vm13, %v2040_v51, 0.0  ;;  %v2000_v45 = vsel %vm1254_vm1, %v1988_v25, %v1989_v49  ;;  %vm1958_vm2 = vcmp.ge.s32.totalorder %v1902_v2, 1  ;;  %v1968_v34 = vld [vmem:[#allocation9] sm:$0xff] }
 0x472   : > { %v11148_v39 = vsel %vm1952_vm12, %v2002_v27, 0.0  ;;  %v11180_v55 = vsel %vm1954_vm14, %v2000_v45, 0.0  ;;  %v2033_v49 = vrot.slane %v11178_v4, 1  ;;  %v1993_v5 = vrot.slane %v11178_v4, 7 }
 0x473   : > { %vm1967_vm3 = vcmp.le.s32.totalorder %v1909_v14, 14  ;;  %v2042_v17 = vsel %vm1279_vm0, %v2034_v13, %v2027_v38  ;;  %v11264_v35 = vperm.slane %v1968_v34, 3  ;;  %v11266_v31 = vperm.slane %v1968_v34, 1  ;;  %v7438_v14 = vld [vmem:[#allocation10 + $0x78] sm:$0xf0] }
 0x474   : > { %v2036_v58 = vsel %vm1279_vm0, %v2032_v56, %v2033_v49  ;;  %v1996_v62 = vsel %vm1254_vm1, %v1992_v61, %v1993_v5  ;;  %v11220_v10 = vsel %vm1254_vm1, %v1993_v5, %v1994_v44  ;;  %v11254_v20 = vsel %vm1279_vm0, %v2033_v49, %v2034_v13 }
 0x475   : > { %v11199_v0 = vsel %vm1965_vm15, %v2036_v58, 0.0  ;;  %v11214_v9 = vsel %vm1958_vm2, %v1996_v62, 0.0  ;;  %v11256_v23 = vsel %vm1967_vm3, %v2042_v17, 0.0  ;;  %v11268_v1 = vperm.slane %v1968_v34, 4  ;;  %v7436_v62 = vld [vmem:[#allocation10 + $0x70] sm:$0xf] }
 0x476   : > { %12429 = vst [vmem:[#allocation67_spill] sm:$0xff] %v11256_v23  ;;  %v11273_v42 = vperm.slane %v1968_v34, 0  ;;  %v11277_v27 = vperm.slane %v1968_v34, 2  ;;  %v2112_v29 = vmul.f32 %v11266_v31, %v11046_v54  ;;  %v11283_v36 = vperm.slane %v1968_v34, 5  ;;  %v8822_v54 = vld [vmem:[#allocation10 + $0x74] sm:$0xf0] }
 0x477   : > { %v2187_v44 = vmul.f32 %v11268_v1, %v11027_v50  ;;  %v7437_v13 = vor.u32 %v8822_v54, %v7436_v62  ;;  %v7428_v17 = vld [vmem:[#allocation10 + $0x60] sm:$0xf]  ;;  %v8818_v62 = vld [vmem:[#allocation10 + $0x54] sm:$0xf0]  ;;  %v8817_v54 = vld [vmem:[#allocation10 + $0x54] sm:$0xf] }
 0x478   : > { %2229 = vrot.lane.b32.xlu1 %v11062_v53, %s10161_s8  ;;  %2158 = vrot.lane.b32.xlu2 %v11040_v28, %s10160_s23 }
 0x479   : > { %2245 = vrot.lane.b32.xlu0 %v11062_v53, %s10160_s23  ;;  %2392 = vmatpush.bf16.msra.mxu3 %v7437_v13 }
 0x480   : > { %2093 = vrot.lane.b32.xlu1 %v11079_v7, %s10160_s23  ;;  %2148 = vrot.lane.b32.xlu2 %v11027_v50, %s10161_s8 }
 0x481   : > { %2077 = vrot.lane.b32.xlu0 %v11079_v7, %s10161_s8 }
 0x488   : > { %2247 = vrot.lane.b32.xlu1 %v11099_v18, %s10160_s23  ;;  %2152 = vrot.lane.b32.xlu2 %v11056_v59, %s10161_s8 }
 0x489   : > { %2091 = vrot.lane.b32.xlu0 %v11103_v19, %s10160_s23 }
 0x490   : > { %2231 = vrot.lane.b32.xlu2 %v11099_v18, %s10161_s8  ;;  %2069 = vrot.lane.b32.xlu1 %v11115_v22, %s10161_s8 }
 0x491   : > { %2160 = vrot.lane.b32.xlu0 %v11097_v16, %s10160_s23 }
 0x498   : > { %2075 = vrot.lane.b32.xlu2 %v11103_v19, %s10161_s8  ;;  %2085 = vrot.lane.b32.xlu1 %v11115_v22, %s10160_s23 }
 0x499   : > { %2241 = vrot.lane.b32.xlu0 %v11133_v26, %s10160_s23 }
 0x4a0   : > { %2144 = vrot.lane.b32.xlu2 %v11097_v16, %s10161_s8  ;;  %2225 = vrot.lane.b32.xlu1 %v11133_v26, %s10161_s8 }
 0x4a1   : > { %2083 = vrot.lane.b32.xlu0 %v11148_v39, %s10160_s23 }
 0x4a8   : > { %2227 = vrot.lane.b32.xlu2 %v11164_v47, %s10161_s8  ;;  %2067 = vrot.lane.b32.xlu1 %v11148_v39, %s10161_s8 }
 0x4a9   : > { %2168 = vrot.lane.b32.xlu0 %v11056_v59, %s10160_s23 }
 0x4b0   : > { %2243 = vrot.lane.b32.xlu1 %v11164_v47, %s10160_s23  ;;  %2071 = vrot.lane.b32.xlu2 %v11180_v55, %s10161_s8 }
 0x4b1   : > { %2087 = vrot.lane.b32.xlu0 %v11180_v55, %s10160_s23 }
 0x4b8   : > { %2233 = vrot.lane.b32.xlu1 %v11197_v63, %s10161_s8  ;;  %2235 = vrot.lane.b32.xlu2 %v11199_v0, %s10161_s8 }
 0x4b9   : > { %2249 = vrot.lane.b32.xlu0 %v11197_v63, %s10160_s23 }
 0x4ba   : > { %v11207_v3 = vpop.permute.xlu2 %2162 }
 0x4c0   : > { %2251 = vrot.lane.b32.xlu1 %v11199_v0, %s10160_s23  ;;  %2079 = vrot.lane.b32.xlu2 %v11214_v9, %s10161_s8 }
 0x4c1   : > { %2081 = vrot.lane.b32.xlu0 %v11220_v10, %s10161_s8 }
 0x4c2   : > { %v11226_v11 = vpop.permute.xlu2 %2166 }
 0x4c8   : > { %2154 = vrot.lane.b32.xlu1 %v11178_v4, %s10161_s8  ;;  %2156 = vrot.lane.b32.xlu2 %v11124_v32, %s10161_s8 }
 0x4c9   : > { %2095 = vrot.lane.b32.xlu0 %v11214_v9, %s10160_s23 }
 0x4ca   : > { %v11234_v61 = vpop.permute.xlu2 %2142 }
 0x4d0   : > { %2097 = vrot.lane.b32.xlu1 %v11220_v10, %s10160_s23  ;;  %2170 = vrot.lane.b32.xlu2 %v11178_v4, %s10160_s23 }
 0x4d1   : > { %2172 = vrot.lane.b32.xlu0 %v11124_v32, %s10160_s23 }
 0x4d2   : > { %v11244_v15 = vpop.permute.xlu1 %2146  ;;  %v11246_v6 = vpop.permute.xlu2 %2158 }
 0x4d8   : > { %2237 = vrot.lane.b32.xlu1 %v11254_v20, %s10161_s8  ;;  %2239 = vrot.lane.b32.xlu2 %v11256_v23, %s10161_s8 }
 0x4d9   : > { %2253 = vrot.lane.b32.xlu0 %v11254_v20, %s10160_s23 }
 0x4da   : > { %v2151_v24 = vpop.permute.xlu1 %2150  ;;  %v2149_v25 = vpop.permute.xlu2 %2148 }
 0x4db   : > { %v2165_v33 = vpop.permute.xlu0 %2164  ;;  %v2178_v38 = vmul.f32 %v11264_v35, %v2149_v25  ;;  %v8820_v25 = vld [vmem:[#allocation10 + $0x64] sm:$0xf0] }
 0x4dc   : > { %v2204_v43 = vmul.f32 %v11283_v36, %v2165_v33  ;;  %v8819_v33 = vld [vmem:[#allocation10 + $0x64] sm:$0xf] }
 0x4dd   : > { %v2195_v21 = vadd.f32 %v2187_v44, %v2178_v38  ;;  %v7441_v38 = vor.u32 %v8821_v12, %v7438_v14  ;;  %v7430_v44 = vld [vmem:[#allocation10 + $0x68] sm:$0xf0]  ;;  %v2188_v12 = vmul.f32 %v11268_v1, %v11025_v52 }
 0x4df   : > { %v2212_v50 = vadd.f32 %v2204_v43, %v2195_v21  ;;  %2421 = vmatpush.bf16.msrb.mxu0 %v7441_v38  ;;  %v11298_v43 = vperm.slane %v1968_v34, 7 }
 0x4e0   : > { %2255 = vrot.lane.b32.xlu1 %v11256_v23, %s10160_s23  ;;  %s1235_s23 = scalar_lea.vmem %s10319_s5, %s7371_s6 }
 0x4e1   : > { %v2270_v38 = vmul.f32 %v11298_v43, %v11099_v18  ;;  %v2205_v18 = vmul.f32 %v11283_v36, %v11226_v11  ;;  %v8812_v11 = vld [vmem:[#allocation10 + $0x24] sm:$0xf0] }
 0x4e2   : > { %v2090_v41 = vpop.permute.xlu1 %2089  ;;  %v11279_v48 = vpop.permute.xlu2 %2152 }
 0x4e3   : > { %v2074_v51 = vpop.permute.xlu0 %2073  ;;  %v2129_v56 = vmul.f32 %v11277_v27, %v2090_v41 }
 0x4e4   : > { %v2103_v45 = vmul.f32 %v11273_v42, %v2074_v51  ;;  %v7429_v51 = vor.u32 %v8820_v25, %v7428_v17  ;;  %v7422_v17 = vld [vmem:[#allocation10 + $0x58] sm:$0xf0]  ;;  %v7412_v25 = vld [vmem:[#allocation10 + $0x40] sm:$0xf] }
 0x4e6   : > { %v2120_v57 = vadd.f32 %v2112_v29, %v2103_v45  ;;  %v11294_v29 = vperm.slane %v1968_v34, 6  ;;  %v7433_v45 = vor.u32 %v8819_v33, %v7430_v44  ;;  %2393 = vmatpush.bf16.msra.mxu3 %v7429_v51  ;;  %v8816_v34 = vld [vmem:[#allocation10 + $0x44] sm:$0xf0]  ;;  %v7425_v33 = vor.u32 %v8817_v54, %v7422_v17  ;;  %v7414_v44 = vld [vmem:[#allocation10 + $0x48] sm:$0xf0] }
 0x4e7   : > { %v2113_v51 = vmul.f32 %v11266_v31, %v11103_v19  ;;  %v7413_v52 = vor.u32 %v8816_v34, %v7412_v25  ;;  %v7406_v34 = vld [vmem:[#allocation10 + $0x38] sm:$0xf0] }
 0x4e8   : > { %v2137_v49 = vadd.f32 %v2129_v56, %v2120_v57  ;;  %v2179_v57 = vmul.f32 %v11264_v35, %v2151_v24  ;;  %2422 = vmatpush.bf16.msrb.mxu0 %v7433_v45  ;;  %v11307_v24 = vld [vmem:[#allocation9 + $0x8] ss:$0 sm:$0xff] }
 0x4ea   : > { %v11288_v58 = vpop.permute.xlu1 %2229  ;;  %v2220_v60 = vadd.f32 %v2212_v50, %v2137_v49  ;;  %v2232_v5 = vpop.permute.xlu2 %2231  ;;  %v7420_v49 = vld [vmem:[#allocation10 + $0x50] sm:$0xf]  ;;  %v2196_v45 = vadd.f32 %v2188_v12, %v2179_v57  ;;  %v8813_v12 = vld [vmem:[#allocation10 + $0x34] sm:$0xf] }
 0x4eb   : > { %v11290_v2 = vpop.permute.xlu0 %2245  ;;  %v2261_v50 = vmul.f32 %v11294_v29, %v2232_v5  ;;  %v7421_v14 = vor.u32 %v8818_v62, %v7420_v49  ;;  %v8815_v5 = vld [vmem:[#allocation10 + $0x44] sm:$0xf] }
 0x4ec   : > { %2423 = vmatpush.bf16.msrb.mxu0 %v7425_v33  ;;  %v7417_v40 = vor.u32 %v8815_v5, %v7414_v44  ;;  %v2213_v37 = vadd.f32 %v2205_v18, %v2196_v45  ;;  %v7409_v33 = vor.u32 %v8813_v12, %v7406_v34  ;;  %v8811_v5 = vld [vmem:[#allocation10 + $0x24] sm:$0xf]  ;;  %v7398_v44 = vld [vmem:[#allocation10 + $0x28] sm:$0xf0]  ;;  %v8810_v45 = vld [vmem:[#allocation10 + $0x14] sm:$0xf0]  ;;  %v2185_v18 = vmul.f32 %v11268_v1, %v11097_v16 }
 0x4ed   : > { %2394 = vmatpush.bf16.msra.mxu3 %v7421_v14 }
 0x4f0   : > { %2424 = vmatpush.bf16.msrb.mxu0 %v7417_v40  ;;  %v7401_v40 = vor.u32 %v8811_v5, %v7398_v44 }
 0x4f1   : > { %2395 = vmatpush.bf16.msra.mxu3 %v7413_v52  ;;  %v8809_v52 = vld [vmem:[#allocation10 + $0x14] sm:$0xf] }
 0x4f2   : > { %v11292_v41 = vpop.permute.xlu1 %2093  ;;  %v2076_v56 = vpop.permute.xlu2 %2075 }
 0x4f3   : > { %v11296_v21 = vpop.permute.xlu0 %2077  ;;  %v2104_v13 = vmul.f32 %v11273_v42, %v2076_v56  ;;  %v2278_v56 = vadd.f32 %v2270_v38, %v2261_v50  ;;  %v7404_v50 = vld [vmem:[#allocation10 + $0x30] sm:$0xf]  ;;  %v7396_v38 = vld [vmem:[#allocation10 + $0x20] sm:$0xf] }
 0x4f4   : > { %2425 = vmatpush.bf16.msrb.mxu0 %v7409_v33 }
 0x4f5   : > { %v2121_v46 = vadd.f32 %v2113_v51, %v2104_v13 }
 0x4f8   : > { %2426 = vmatpush.bf16.msrb.mxu0 %v7401_v40 }
 0x4fa   : > { %v2248_v8 = vpop.permute.xlu1 %2247  ;;  %v2145_v51 = vpop.permute.xlu2 %2144 }
 0x4fb   : > { %v2287_v49 = vmul.f32 %v11307_v24, %v2248_v8  ;;  %v2092_v62 = vpop.permute.xlu0 %2091  ;;  %v8814_v8 = vld [vmem:[#allocation10 + $0x34] sm:$0xf0] }
 0x4fc   : > { %v2130_v54 = vmul.f32 %v11277_v27, %v2092_v62  ;;  %v7405_v25 = vor.u32 %v8814_v8, %v7404_v50  ;;  %v2110_v62 = vmul.f32 %v11266_v31, %v11115_v22  ;;  %v7380_v50 = vld [vmem:[#allocation10] sm:$0xf]  ;;  %v8808_v8 = vld [vmem:[#allocation10 + $0x4] sm:$0xf0] }
 0x4fd   : > { %v2295_v17 = vadd.f32 %v2287_v49, %v2278_v56  ;;  %v7390_v49 = vld [vmem:[#allocation10 + $0x18] sm:$0xf0]  ;;  %v7381_v5 = vor.u32 %v8808_v8, %v7380_v50 }
 0x4fe   : > { %v2138_v23 = vadd.f32 %v2130_v54, %v2121_v46  ;;  %2396 = vmatpush.bf16.msra.mxu3 %v7405_v25  ;;  %v7397_v46 = vor.u32 %v8812_v11, %v7396_v38  ;;  %v7382_v25 = vld [vmem:[#allocation10 + $0x8] sm:$0xf0] }
 0x4ff   : > { %v11315_v19 = vadd.f32 %v2295_v17, %v2220_v60  ;;  %v7388_v60 = vld [vmem:[#allocation10 + $0x10] sm:$0xf]  ;;  %v7393_v17 = vor.u32 %v8809_v52, %v7390_v49  ;;  %v2189_v49 = vmul.f32 %v11268_v1, %v11056_v59 }
 0x500   : > { %v11317_v57 = vadd.f32 %v2213_v37, %v2138_v23  ;;  %v2176_v37 = vmul.f32 %v11264_v35, %v2145_v51  ;;  %v7389_v56 = vor.u32 %v8810_v45, %v7388_v60  ;;  %v2105_v60 = vmul.f32 %v11273_v42, %v11296_v21 }
 0x501   : > { %2427 = vmatpush.bf16.msrb.mxu0 %v7393_v17  ;;  %v2175_v45 = vmul.f32 %v11264_v35, %v11234_v61  ;;  %v2201_v61 = vmul.f32 %v11283_v36, %v11246_v6 }
 0x502   : > { %v2070_v14 = vpop.permute.xlu1 %2069  ;;  %2397 = vmatpush.bf16.msra.mxu3 %v7397_v46  ;;  %v2193_v34 = vadd.f32 %v2185_v18, %v2176_v37  ;;  %v2114_v37 = vmul.f32 %v11266_v31, %v11079_v7  ;;  %v2267_v7 = vmul.f32 %v11298_v43, %v11133_v26 }
 0x503   : > { %v2161_v13 = vpop.permute.xlu0 %2160  ;;  %v2101_v23 = vmul.f32 %v11273_v42, %v2070_v14  ;;  %v8807_v14 = vld [vmem:[#allocation10 + $0x4] sm:$0xf] }
 0x504   : > { %v2202_v54 = vmul.f32 %v11283_v36, %v2161_v13  ;;  %v7385_v16 = vor.u32 %v8807_v14, %v7382_v25  ;;  %v2228_v13 = vpop.permute.xlu2 %2227 }
 0x505   : > { %v2118_v38 = vadd.f32 %v2110_v62, %v2101_v23  ;;  %v2180_v23 = vmul.f32 %v11264_v35, %v11279_v48  ;;  %v2122_v62 = vadd.f32 %v2114_v37, %v2105_v60  ;;  %v2109_v48 = vmul.f32 %v11266_v31, %v11148_v39 }
 0x506   : > { %2398 = vmatpush.bf16.msra.mxu3 %v7389_v56  ;;  %v2210_v22 = vadd.f32 %v2202_v54, %v2193_v34  ;;  %2428 = vmatpush.bf16.msrb.mxu0 %v7385_v16  ;;  %v2184_v56 = vmul.f32 %v11268_v1, %v11040_v28  ;;  %v2131_v28 = vmul.f32 %v11277_v27, %v11292_v41 }
 0x507   : > { %v2197_v50 = vadd.f32 %v2189_v49, %v2180_v23  ;;  %v2177_v39 = vmul.f32 %v11264_v35, %v11244_v15  ;;  %v2186_v41 = vmul.f32 %v11268_v1, %v11015_v30  ;;  %v2268_v15 = vmul.f32 %v11298_v43, %v11164_v47 }
 0x508   : > { %v2192_v8 = vadd.f32 %v2184_v56, %v2175_v45  ;;  %v2139_v25 = vadd.f32 %v2131_v28, %v2122_v62 }
 0x509   : > { %v2194_v60 = vadd.f32 %v2186_v41, %v2177_v39 }
 0x50a   : > { %v2086_v12 = vpop.permute.xlu1 %2085  ;;  %2399 = vmatpush.bf16.msra.mxu3 %v7381_v5  ;;  %v2209_v6 = vadd.f32 %v2201_v61, %v2192_v8  ;;  %v2271_v8 = vmul.f32 %v11298_v43, %v11197_v63 }
 0x50b   : > { %v2242_v11 = vpop.permute.xlu0 %2241  ;;  %v2127_v33 = vmul.f32 %v11277_v27, %v2086_v12 }
 0x50c   : > { %v2072_v18 = vpop.permute.xlu2 %2071 }
 0x50d   : > { %v2135_v44 = vadd.f32 %v2127_v33, %v2118_v38  ;;  %v2259_v38 = vmul.f32 %v11294_v29, %v2228_v13  ;;  %v2284_v33 = vmul.f32 %v11307_v24, %v2242_v11  ;;  %v2269_v13 = vmul.f32 %v11298_v43, %v11062_v53 }
 0x50e   : > { %v2111_v11 = vmul.f32 %v11266_v31, %v11180_v55  ;;  %v2286_v55 = vmul.f32 %v11307_v24, %v11290_v2 }
 0x50f   : > { %v2218_v51 = vadd.f32 %v2210_v22, %v2135_v44  ;;  %v2260_v22 = vmul.f32 %v11294_v29, %v11288_v58  ;;  %v2102_v44 = vmul.f32 %v11273_v42, %v2072_v18  ;;  %v2276_v30 = vadd.f32 %v2268_v15, %v2259_v38 }
 0x511   : > { %v2277_v56 = vadd.f32 %v2269_v13, %v2260_v22  ;;  %v2119_v47 = vadd.f32 %v2111_v11, %v2102_v44 }
 0x512   : > { %v2226_v46 = vpop.permute.xlu1 %2225 }
 0x513   : > { %v2084_v40 = vpop.permute.xlu0 %2083  ;;  %v2258_v52 = vmul.f32 %v11294_v29, %v2226_v46 }
 0x514   : > { %v2126_v12 = vmul.f32 %v11277_v27, %v2084_v40  ;;  %v2236_v49 = vpop.permute.xlu2 %2235 }
 0x515   : > { %v2275_v14 = vadd.f32 %v2267_v7, %v2258_v52  ;;  %v2203_v52 = vmul.f32 %v11283_v36, %v11207_v3  ;;  %v2263_v2 = vmul.f32 %v11294_v29, %v2236_v49 }
 0x517   : > { %v2292_v46 = vadd.f32 %v2284_v33, %v2275_v14  ;;  %v2211_v53 = vadd.f32 %v2203_v52, %v2194_v60 }
 0x51a   : > { %v2068_v21 = vpop.permute.xlu1 %2067 }
 0x51b   : > { %v2169_v54 = vpop.permute.xlu0 %2168  ;;  %v2100_v17 = vmul.f32 %v11273_v42, %v2068_v21 }
 0x51c   : > { %v2206_v59 = vmul.f32 %v11283_v36, %v2169_v54 }
 0x51d   : > { %v2117_v26 = vadd.f32 %v2109_v48, %v2100_v17  ;;  %v2294_v48 = vadd.f32 %v2286_v55, %v2277_v56  ;;  %v2115_v56 = vmul.f32 %v11266_v31, %v11214_v9 }
 0x51e   : > { %v2214_v34 = vadd.f32 %v2206_v59, %v2197_v50 }
 0x51f   : > { %v2134_v5 = vadd.f32 %v2126_v12, %v2117_v26  ;;  %v2080_v12 = vpop.permute.xlu2 %2079 }
 0x520   : > { %v2222_v16 = vadd.f32 %v2214_v34, %v2139_v25 }
 0x521   : > { %v2217_v40 = vadd.f32 %v2209_v6, %v2134_v5 }
 0x522   : > { %v2244_v37 = vpop.permute.xlu1 %2243 }
 0x523   : > { %v2285_v23 = vmul.f32 %v11307_v24, %v2244_v37  ;;  %v2088_v58 = vpop.permute.xlu0 %2087  ;;  %v2300_v45 = vadd.f32 %v2292_v46, %v2217_v40  ;;  %v2116_v37 = vmul.f32 %v11266_v31, %v11220_v10 }
 0x524   : > { %v2128_v62 = vmul.f32 %v11277_v27, %v2088_v58 }
 0x525   : > { %v2293_v18 = vadd.f32 %v2285_v23, %v2276_v30  ;;  %v2106_v30 = vmul.f32 %v11273_v42, %v2080_v12  ;;  %v2191_v23 = vmul.f32 %v11268_v1, %v11124_v32 }
 0x526   : > { %v2136_v21 = vadd.f32 %v2128_v62, %v2119_v47 }
 0x527   : > { %v2301_v7 = vadd.f32 %v2293_v18, %v2218_v51  ;;  %v2272_v51 = vmul.f32 %v11298_v43, %v11199_v0  ;;  %v2157_v63 = vpop.permute.xlu2 %2156  ;;  %v12430_v18 = vld [vmem:[#allocation67_spill] sm:$0xff] }
 0x528   : > { %v2219_v61 = vadd.f32 %v2211_v53, %v2136_v21  ;;  %v2182_v13 = vmul.f32 %v11264_v35, %v2157_v63  ;;  %v2123_v53 = vadd.f32 %v2115_v56, %v2106_v30 }
 0x529   : > { %v2308_v54 = vpack.c.bf16 %v2301_v7, %v2300_v45  ;;  %v2280_v25 = vadd.f32 %v2272_v51, %v2263_v2 }
 0x52a   : > { %v2234_v17 = vpop.permute.xlu1 %2233  ;;  %v2302_v50 = vadd.f32 %v2294_v48, %v2219_v61  ;;  %v2199_v47 = vadd.f32 %v2191_v23, %v2182_v13 }
 0x52b   : > { %v2262_v28 = vmul.f32 %v11294_v29, %v2234_v17  ;;  %v2250_v3 = vpop.permute.xlu0 %2249  ;;  %2400 = vmatmul.bf16.vlgmr.msra.gmra.mxu3 %v2308_v54  ;;  %2429 = vmatmul.bf16.vlgmr.msrb.gmra.mxu0 %v2308_v54 }
 0x52c   : > { %v2309_v59 = vpack.c.bf16 %v11315_v19, %v2302_v50  ;;  %v2288_v26 = vmul.f32 %v11307_v24, %v2250_v3 }
 0x52d   : > { %v2279_v14 = vadd.f32 %v2271_v8, %v2262_v28 }
 0x52f   : > { %v2296_v34 = vadd.f32 %v2288_v26, %v2279_v14  ;;  %v2171_v15 = vpop.permute.xlu2 %2170 }
 0x530   : > { %v2207_v10 = vmul.f32 %v11283_v36, %v2171_v15 }
 0x531   : > { %v2304_v19 = vadd.f32 %v2296_v34, %v11317_v57  ;;  %v2190_v57 = vmul.f32 %v11268_v1, %v11178_v4 }
 0x532   : > { %v2252_v39 = vpop.permute.xlu1 %2251 }
 0x533   : > { %v2289_v6 = vmul.f32 %v11307_v24, %v2252_v39  ;;  %v2082_v38 = vpop.permute.xlu0 %2081 }
 0x534   : > { %v2107_v60 = vmul.f32 %v11273_v42, %v2082_v38 }
 0x535   : > { %v2297_v33 = vadd.f32 %v2289_v6, %v2280_v25  ;;  %v1986_v25 = vld [vmem:[#allocation12] sm:$0xf] }
 0x536   : > { %v2124_v42 = vadd.f32 %v2116_v37, %v2107_v60  ;;  %v2452_v6 = vperm.slane %v1986_v25, 2  ;;  %v2451_v38 = vperm.slane %v1986_v25, 0  ;;  %v2473_v63 = vperm.slane %v1986_v25, 1 }
 0x537   : > { %v2305_v5 = vadd.f32 %v2297_v33, %v2222_v16  ;;  %v2240_v58 = vpop.permute.xlu2 %2239 }
 0x538   : > { %v2265_v62 = vmul.f32 %v11294_v29, %v2240_v58  ;;  %v2456_v33 = vperm.slane %v2452_v6, 0 }
 0x539   : > { %v2310_v41 = vpack.c.bf16 %v2305_v5, %v2304_v19  ;;  %v2474_v19 = vperm.slane %v1986_v25, 3  ;;  %v2455_v5 = vperm.slane %v2451_v38, 0 }
 0x53a   : > { %v2155_v22 = vpop.permute.xlu1 %2154 }
 0x53b   : > { %v2096_v44 = vpop.permute.xlu0 %2095  ;;  %2405 = vmatmul.bf16.gmra.mxu3 %v2309_v59  ;;  %2434 = vmatmul.bf16.gmra.mxu0 %v2309_v59  ;;  %v2181_v40 = vmul.f32 %v11264_v35, %v2155_v22  ;;  %v2273_v35 = vmul.f32 %v11298_v43, %v11254_v20  ;;  %v2274_v20 = vmul.f32 %v11298_v43, %v12430_v18  ;;  %v2478_v15 = vperm.slane %v2474_v19, 1 }
 0x53c   : > { %v2132_v32 = vmul.f32 %v11277_v27, %v2096_v44 }
 0x53d   : > { %v2198_v45 = vadd.f32 %v2190_v57, %v2181_v40  ;;  %v2282_v31 = vadd.f32 %v2274_v20, %v2265_v62 }
 0x53e   : > { %v2140_v61 = vadd.f32 %v2132_v32, %v2123_v53 }
 0x53f   : > { %v2215_v55 = vadd.f32 %v2207_v10, %v2198_v45 }
 0x541   : > { %v2223_v17 = vadd.f32 %v2215_v55, %v2140_v61 }
 0x542   : > { %v2098_v0 = vpop.permute.xlu1 %2097 }
 0x543   : > { %v2173_v46 = vpop.permute.xlu0 %2172  ;;  %v2133_v52 = vmul.f32 %v11277_v27, %v2098_v0 }
 0x544   : > { %v2208_v4 = vmul.f32 %v11283_v36, %v2173_v46  ;;  %v11408_v46 = vperm.slane %v2473_v63, 1 }
 0x545   : > { %v2141_v21 = vadd.f32 %v2133_v52, %v2124_v42 }
 0x546   : > { %v2216_v7 = vadd.f32 %v2208_v4, %v2199_v47 }
 0x54a   : > { %v2238_v11 = vpop.permute.xlu1 %2237 }
 0x54b   : > { %v2264_v16 = vmul.f32 %v11294_v29, %v2238_v11  ;;  %2410 = vmatmul.bf16.gmra.mxu3 %v2310_v41  ;;  %2439 = vmatmul.bf16.gmra.mxu0 %v2310_v41  ;;  %v2254_v49 = vpop.permute.xlu0 %2253  ;;  %v2224_v29 = vadd.f32 %v2216_v7, %v2141_v21 }
 0x54c   : > { %v2290_v48 = vmul.f32 %v11307_v24, %v2254_v49 }
 0x54d   : > { %v2281_v1 = vadd.f32 %v2273_v35, %v2264_v16 }
 0x54f   : > { %v2298_v36 = vadd.f32 %v2290_v48, %v2281_v1 }
 0x551   : > { %v2306_v27 = vadd.f32 %v2298_v36, %v2223_v17 }
 0x552   : > { %v2256_v9 = vpop.permute.xlu1 %2255 }
 0x553   : > { %v2291_v54 = vmul.f32 %v11307_v24, %v2256_v9 }
 0x555   : > { %v2299_v50 = vadd.f32 %v2291_v54, %v2282_v31 }
 0x557   : > { %v2307_v28 = vadd.f32 %v2299_v50, %v2224_v29 }
 0x559   : > { %v2311_v3 = vpack.c.bf16 %v2307_v28, %v2306_v27 }
 0x55b   : > { %2415 = vmatmul.bf16.gmra.mxu3 %v2311_v3  ;;  %2444 = vmatmul.bf16.gmra.mxu0 %v2311_v3 }
 0x5a8   : > { %v2430_v43 = vpop.f32.mrf.mxu0 }
 0x5a9   : > { %v2458_v44 = vmul.f32 %v2456_v33, %v2430_v43 }
 0x5ab   : > { %v11410_v11 = vadd.f32 %v2478_v15, %v2458_v44 }
 0x5ad   : > { %v2496_v35 = vmax.f32 %v11410_v11, 0.0  ;;  %v2544_v11 = vld [vmem:[#allocation15 + $0xe8] sm:$0xff] }
 0x5ae   : > { %v2401_v59 = vpop.f32.mrf.mxu3 }
 0x5af   : > { %v2457_v0 = vmul.f32 %v2455_v5, %v2401_v59  ;;  %v11419_v20 = vrot.slane %v2496_v35, 1  ;;  %v12431_v59 = vld [vmem:[#allocation65_spill] sm:$0xff] }
 0x5b0   : > { %v2432_v8 = vpop.f32.mrf.mxu0 }
 0x5b1   : > { %v11413_v60 = vadd.f32 %v11408_v46, %v2457_v0  ;;  %v2460_v45 = vmul.f32 %v2456_v33, %v2432_v8 }
 0x5b3   : > { %v2495_v56 = vmax.f32 %v11413_v60, 0.0  ;;  %v11421_v53 = vadd.f32 %v2478_v15, %v2460_v45  ;;  %v2527_v60 = vld [vmem:[#allocation15 + $0x60] sm:$0xff] }
 0x5b5   : > { %v11426_v7 = vrot.slane %v2495_v56, 1 }
 0x5b6   : > { %v11406_v12 = vpop.f32.mrf.mxu3 }
 0x5b8   : > { %v2435_v2 = vpop.f32.mrf.mxu0 }
 0x5b9   : > { %v2462_v47 = vmul.f32 %v2456_v33, %v2435_v2 }
 0x5bb   : > { %v2484_v48 = vadd.f32 %v2478_v15, %v2462_v47 }
 0x5be   : > { %v2406_v14 = vpop.f32.mrf.mxu3 }
 0x5bf   : > { %v2461_v50 = vmul.f32 %v2455_v5, %v2406_v14 }
 0x5c0   : > { %v2437_v51 = vpop.f32.mrf.mxu0 }
 0x5c1   : > { %v2464_v30 = vmul.f32 %v2456_v33, %v2437_v51  ;;  %v2483_v19 = vadd.f32 %v11408_v46, %v2461_v50 }
 0x5c3   : > { %v2486_v32 = vadd.f32 %v2478_v15, %v2464_v30 }
 0x5c5   : > { %v2502_v27 = vmax.f32 %v2486_v32, 0.0 }
 0x5c6   : > { %v2408_v26 = vpop.f32.mrf.mxu3 }
 0x5c7   : > { %v2463_v9 = vmul.f32 %v2455_v5, %v2408_v26  ;;  %v2459_v26 = vmul.f32 %v2455_v5, %v11406_v12  ;;  %v2587_v63 = vrot.slane %v2502_v27, 1 }
 0x5c8   : > { %v2440_v39 = vpop.f32.mrf.mxu0 }
 0x5c9   : > { %v2466_v57 = vmul.f32 %v2456_v33, %v2440_v39  ;;  %v2500_v39 = vmax.f32 %v2484_v48, 0.0  ;;  %v2485_v25 = vadd.f32 %v11408_v46, %v2463_v9 }
 0x5cb   : > { %v2488_v10 = vadd.f32 %v2478_v15, %v2466_v57  ;;  %v2585_v0 = vrot.slane %v2500_v39, 1 }
 0x5cd   : > { %v2504_v31 = vmax.f32 %v2488_v10, 0.0  ;;  %v2605_v47 = vsel %vm1279_vm0, %v2585_v0, %v2587_v63 }
 0x5ce   : > { %v2411_v24 = vpop.f32.mrf.mxu3 }
 0x5cf   : > { %v2465_v1 = vmul.f32 %v2455_v5, %v2411_v24  ;;  %v2589_v24 = vrot.slane %v2504_v31, 1 }
 0x5d0   : > { %v2442_v34 = vpop.f32.mrf.mxu0 }
 0x5d1   : > { %v2468_v13 = vmul.f32 %v2456_v33, %v2442_v34  ;;  %v2487_v28 = vadd.f32 %v11408_v46, %v2465_v1  ;;  %v2603_v30 = vsel %vm1279_vm0, %v2587_v63, %v2589_v24  ;;  %v2523_v63 = vld [vmem:[#allocation15 + $0x40] sm:$0xff] }
 0x5d3   : > { %v2490_v23 = vadd.f32 %v2478_v15, %v2468_v13 }
 0x5d5   : > { %v2506_v18 = vmax.f32 %v2490_v23, 0.0 }
 0x5d6   : > { %v2413_v41 = vpop.f32.mrf.mxu3 }
 0x5d7   : > { %v2467_v49 = vmul.f32 %v2455_v5, %v2413_v41  ;;  %v2591_v3 = vrot.slane %v2506_v18, 1 }
 0x5d8   : > { %v2445_v22 = vpop.f32.mrf.mxu0 }
 0x5d9   : > { %v2470_v40 = vmul.f32 %v2456_v33, %v2445_v22  ;;  %v2489_v36 = vadd.f32 %v11408_v46, %v2467_v49  ;;  %v2503_v22 = vmax.f32 %v2487_v28, 0.0  ;;  %v2619_v49 = vmax.f32 %v2502_v27, %v2603_v30  ;;  %v2516_v30 = vld [vmem:[#allocation15 + $0x8] sm:$0xff] }
 0x5db   : > { %v2492_v37 = vadd.f32 %v2478_v15, %v2470_v40  ;;  %v2505_v34 = vmax.f32 %v2489_v36, 0.0  ;;  %v2501_v40 = vmax.f32 %v2485_v25, 0.0  ;;  %v2541_v25 = vld [vmem:[#allocation15 + $0xd0] sm:$0xff] }
 0x5dd   : > { %v2508_v42 = vmax.f32 %v2492_v37, 0.0  ;;  %v2590_v57 = vrot.slane %v2505_v34, 1 }
 0x5de   : > { %v2416_v16 = vpop.f32.mrf.mxu3 }
 0x5df   : > { %v2469_v52 = vmul.f32 %v2455_v5, %v2416_v16  ;;  %v2593_v54 = vrot.slane %v2508_v42, 1 }
 0x5e0   : > { %v2447_v58 = vpop.f32.mrf.mxu0 }
 0x5e1   : > { %v2472_v4 = vmul.f32 %v2456_v33, %v2447_v58  ;;  %v2491_v55 = vadd.f32 %v11408_v46, %v2469_v52  ;;  %v2599_v38 = vsel %vm1279_vm0, %v2591_v3, %v2593_v54  ;;  %v2498_v33 = vmax.f32 %v11421_v53, 0.0 }
 0x5e2   : > { %v2623_v13 = vmax.f32 %v2506_v18, %v2599_v38  ;;  %v2588_v52 = vrot.slane %v2503_v22, 1  ;;  %v2617_v53 = vmax.f32 %v2500_v39, %v2605_v47  ;;  %v2542_v39 = vld [vmem:[#allocation15 + $0xd8] sm:$0xff]  ;;  %v2561_v47 = vld [vmem:[#allocation15 + $0x168] sm:$0xff] }
 0x5e3   : > { %v2494_v62 = vadd.f32 %v2478_v15, %v2472_v4  ;;  %v2507_v43 = vmax.f32 %v2491_v55, 0.0  ;;  %v2481_v15 = vadd.f32 %v11408_v46, %v2459_v26  ;;  %v2583_v23 = vrot.slane %v2498_v33, 1  ;;  %v2529_v26 = vld [vmem:[#allocation15 + $0x70] sm:$0xff]  ;;  %v2538_v38 = vld [vmem:[#allocation15 + $0xb8] sm:$0xff] }
 0x5e4   : > { %v2600_v32 = vsel %vm1279_vm0, %v2588_v52, %v2590_v57 }
 0x5e5   : > { %v2510_v21 = vmax.f32 %v2494_v62, 0.0  ;;  %v2592_v44 = vrot.slane %v2507_v43, 1  ;;  %v2586_v62 = vrot.slane %v2501_v40, 1  ;;  %v2607_v1 = vsel %vm1279_vm0, %v2583_v23, %v2585_v0  ;;  %v2520_v0 = vld [vmem:[#allocation15 + $0x28] sm:$0xff] }
 0x5e6   : > { %v2418_v61 = vpop.f32.mrf.mxu3  ;;  %v2609_v48 = vsel %vm1279_vm0, %v11419_v20, %v2583_v23  ;;  %v2620_v9 = vmax.f32 %v2503_v22, %v2600_v32  ;;  %v2522_v22 = vld [vmem:[#allocation15 + $0x38] sm:$0xff]  ;;  %v2515_v23 = vld [vmem:[#allocation15] sm:$0xff] }
 0x5e7   : > { %v2595_v17 = vrot.slane %v2510_v21, 1  ;;  %v2471_v29 = vmul.f32 %v2455_v5, %v2418_v61  ;;  %v2601_v5 = vsel %vm1279_vm0, %v2589_v24, %v2591_v3  ;;  %v2598_v4 = vsel %vm1279_vm0, %v2590_v57, %v2592_v44  ;;  %v2545_v3 = vld [vmem:[#allocation15 + $0xf0] sm:$0xff]  ;;  %v2539_v24 = vld [vmem:[#allocation15 + $0xc0] sm:$0xff]  ;;  %v2532_v57 = vld [vmem:[#allocation15 + $0x88] sm:$0xff] }
 0x5e8   : > { %v2621_v45 = vmax.f32 %v2504_v31, %v2601_v5  ;;  %v2622_v18 = vmax.f32 %v2505_v34, %v2598_v4  ;;  %v2615_v31 = vmax.f32 %v2498_v33, %v2607_v1  ;;  %v2513_v34 = vld [vmem:[#allocation13 + $0x10] sm:$0xff]  ;;  %v2524_v33 = vld [vmem:[#allocation15 + $0x48] sm:$0xff]  ;;  %v2575_v32 = vld [vmem:[#allocation15 + $0x1d8] sm:$0xff] }
 0x5e9   : > { %v2611_v8 = vsel %vm1279_vm0, %v2595_v17, %v11419_v20  ;;  %v2493_v2 = vadd.f32 %v11408_v46, %v2471_v29  ;;  %v2597_v51 = vsel %vm1279_vm0, %v2593_v54, %v2595_v17  ;;  %v2499_v46 = vmax.f32 %v2483_v19, 0.0  ;;  %v2511_v29 = vld [vmem:[#allocation13] sm:$0xff]  ;;  %v2546_v20 = vld [vmem:[#allocation15 + $0xf8] sm:$0xff]  ;;  %v2537_v19 = vld [vmem:[#allocation15 + $0xb0] sm:$0xff] }
 0x5ea   : > { %v2627_v14 = vmax.f32 %v2510_v21, %v2611_v8  ;;  %v2625_v41 = vmax.f32 %v2508_v42, %v2597_v51  ;;  %v2497_v42 = vmax.f32 %v2481_v15, 0.0  ;;  %v2602_v21 = vsel %vm1279_vm0, %v2586_v62, %v2588_v52  ;;  %v2530_v8 = vld [vmem:[#allocation15 + $0x78] sm:$0xff]  ;;  %v2512_v51 = vld [vmem:[#allocation13 + $0x8] sm:$0xff]  ;;  %v2521_v5 = vld [vmem:[#allocation15 + $0x30] sm:$0xff] }
 0x5eb   : > { %v2509_v6 = vmax.f32 %v2493_v2, 0.0  ;;  %v2584_v55 = vrot.slane %v2499_v46, 1  ;;  %v2618_v54 = vmax.f32 %v2501_v40, %v2602_v21  ;;  %v2613_v17 = vmax.f32 %v2496_v35, %v2609_v48  ;;  %v2543_v2 = vld [vmem:[#allocation15 + $0xe0] sm:$0xff]  ;;  %v2534_v15 = vld [vmem:[#allocation15 + $0x98] sm:$0xff]  ;;  %v2533_v40 = vld [vmem:[#allocation15 + $0x90] sm:$0xff] }
 0x5ec   : > { %2678 = vmatpush.msrb.mxu2 %v2627_v14  ;;  %v2582_v61 = vrot.slane %v2497_v42, 1  ;;  %v2526_v14 = vld [vmem:[#allocation15 + $0x58] sm:$0xff]  ;;  %v2562_v52 = vld [vmem:[#allocation15 + $0x170] sm:$0xff]  ;;  %v2556_v21 = vld [vmem:[#allocation15 + $0x140] sm:$0xff] }
 0x5ed   : > { %v2594_v12 = vrot.slane %v2509_v6, 1  ;;  %v2604_v36 = vsel %vm1279_vm0, %v2584_v55, %v2586_v62  ;;  %v2578_v4 = vld [vmem:[#allocation15 + $0x1f0] sm:$0xff]  ;;  %v2559_v62 = vld [vmem:[#allocation15 + $0x158] sm:$0xff]  ;;  %v2572_v48 = vld [vmem:[#allocation15 + $0x1c0] sm:$0xff] }
 0x5ee   : > { %2679 = vmatpush.msrb.mxu2 %v2625_v41  ;;  %v2606_v50 = vsel %vm1279_vm0, %v2582_v61, %v2584_v55  ;;  %v2616_v27 = vmax.f32 %v2499_v46, %v2604_v36  ;;  %v2608_v28 = vsel %vm1279_vm0, %v11426_v7, %v2582_v61  ;;  %v2536_v41 = vld [vmem:[#allocation15 + $0xa8] sm:$0xff]  ;;  %v2579_v46 = vld [vmem:[#allocation15 + $0x1f8] sm:$0xff]  ;;  %v2558_v1 = vld [vmem:[#allocation15 + $0x150] sm:$0xff] }
 0x5ef   : > { %v2610_v16 = vsel %vm1279_vm0, %v2594_v12, %v11426_v7  ;;  %v2596_v37 = vsel %vm1279_vm0, %v2592_v44, %v2594_v12  ;;  %v2612_v35 = vmax.f32 %v2495_v56, %v2608_v28  ;;  %v2528_v7 = vld [vmem:[#allocation15 + $0x68] sm:$0xff]  ;;  %v2535_v44 = vld [vmem:[#allocation15 + $0xa0] sm:$0xff]  ;;  %v2514_v12 = vld [vmem:[#allocation13 + $0x18] sm:$0xff] }
 0x5f0   : > { %v2626_v58 = vmax.f32 %v2509_v6, %v2610_v16  ;;  %2680 = vmatpush.msrb.mxu2 %v2623_v13  ;;  %v2624_v10 = vmax.f32 %v2507_v43, %v2596_v37  ;;  %v2614_v43 = vmax.f32 %v2497_v42, %v2606_v50  ;;  %v2540_v56 = vld [vmem:[#allocation15 + $0xc8] sm:$0xff]  ;;  %v2525_v6 = vld [vmem:[#allocation15 + $0x50] sm:$0xff]  ;;  %v2519_v13 = vld [vmem:[#allocation15 + $0x20] sm:$0xff] }
 0x5f1   : > { %v2518_v16 = vld [vmem:[#allocation15 + $0x18] sm:$0xff]  ;;  %v2517_v37 = vld [vmem:[#allocation15 + $0x10] sm:$0xff]  ;;  %v2576_v42 = vld [vmem:[#allocation15 + $0x1e0] sm:$0xff] }
 0x5f2   : > { %2649 = vmatpush.msrb.mxu1 %v2626_v58  ;;  %2681 = vmatpush.msrb.mxu2 %v2621_v45  ;;  %v2531_v58 = vld [vmem:[#allocation15 + $0x80] sm:$0xff]  ;;  %v2563_v45 = vld [vmem:[#allocation15 + $0x178] sm:$0xff]  ;;  %v2573_v55 = vld [vmem:[#allocation15 + $0x1c8] sm:$0xff] }
 0x5f3   : > { %v2554_v61 = vld [vmem:[#allocation15 + $0x130] sm:$0xff]  ;;  %v2568_v50 = vld [vmem:[#allocation15 + $0x1a0] sm:$0xff] }
 0x5f4   : > { %2650 = vmatpush.msrb.mxu1 %v2624_v10  ;;  %2682 = vmatpush.msrb.mxu2 %v2619_v49  ;;  %v2577_v10 = vld [vmem:[#allocation15 + $0x1e8] sm:$0xff]  ;;  %v2560_v49 = vld [vmem:[#allocation15 + $0x160] sm:$0xff]  ;;  %v2570_v36 = vld [vmem:[#allocation15 + $0x1b0] sm:$0xff] }
 0x5f5   : > { %v2550_v28 = vld [vmem:[#allocation15 + $0x110] sm:$0xff] }
 0x5f6   : > { %2651 = vmatpush.msrb.mxu1 %v2622_v18  ;;  %2683 = vmatpush.msrb.mxu2 %v2617_v53  ;;  %v2574_v18 = vld [vmem:[#allocation15 + $0x1d0] sm:$0xff]  ;;  %v2557_v53 = vld [vmem:[#allocation15 + $0x148] sm:$0xff] }
 0x5f8   : > { %2652 = vmatpush.msrb.mxu1 %v2620_v9  ;;  %2684 = vmatpush.msrb.mxu2 %v2615_v31  ;;  %v2555_v9 = vld [vmem:[#allocation15 + $0x138] sm:$0xff] }
 0x5f9   : > { %v2571_v31 = vld [vmem:[#allocation15 + $0x1b8] sm:$0xff] }
 0x5fa   : > { %2653 = vmatpush.msrb.mxu1 %v2618_v54  ;;  %2685 = vmatpush.msrb.mxu2 %v2613_v17  ;;  %v2553_v54 = vld [vmem:[#allocation15 + $0x128] sm:$0xff] }
 0x5fb   : > { %7446 = vmatmul.msk.f32.vlgmr.msrb.gmra.mxu2 %vm2628_vm5, %v2511_v29  ;;  %v2569_v17 = vld [vmem:[#allocation15 + $0x1a8] sm:$0xff] }
 0x5fc   : > { %2654 = vmatpush.msrb.mxu1 %v2616_v27  ;;  %2728 = vmatpush.msra.mxu2 %v2546_v20  ;;  %v2551_v20 = vld [vmem:[#allocation15 + $0x118] sm:$0xff] }
 0x5fd   : > { %v2567_v27 = vld [vmem:[#allocation15 + $0x198] sm:$0xff] }
 0x5fe   : > { %2655 = vmatpush.msrb.mxu1 %v2614_v43  ;;  %2729 = vmatpush.msra.mxu2 %v2545_v3  ;;  %v2566_v3 = vld [vmem:[#allocation15 + $0x190] sm:$0xff]  ;;  %v2549_v43 = vld [vmem:[#allocation15 + $0x108] sm:$0xff] }
 0x600   : > { %2656 = vmatpush.msrb.mxu1 %v2612_v35  ;;  %2730 = vmatpush.msra.mxu2 %v2544_v11  ;;  %v2565_v11 = vld [vmem:[#allocation15 + $0x188] sm:$0xff]  ;;  %v2548_v35 = vld [vmem:[#allocation15 + $0x100] sm:$0xff] }
 0x601   : > { %7442 = vmatmul.msk.f32.vlgmr.msrb.gmra.mxu1 %vm2628_vm5, %v2511_v29  ;;  %v2552_v29 = vld [vmem:[#allocation15 + $0x120] sm:$0xff] }
 0x602   : > { %2699 = vmatpush.msra.mxu1 %v2530_v8  ;;  %2731 = vmatpush.msra.mxu2 %v2543_v2  ;;  %v2564_v8 = vld [vmem:[#allocation15 + $0x180] sm:$0xff] }
 0x603   : > { %7447 = vmatmul.msk.f32.gmra.mxu2 %vm2628_vm5, %v2512_v51 }
 0x604   : > { %2700 = vmatpush.msra.mxu1 %v2529_v26  ;;  %2732 = vmatpush.msra.mxu2 %v2542_v39 }
 0x606   : > { %2701 = vmatpush.msra.mxu1 %v2528_v7  ;;  %2733 = vmatpush.msra.mxu2 %v2541_v25 }
 0x608   : > { %2702 = vmatpush.msra.mxu1 %v2527_v60  ;;  %2734 = vmatpush.msra.mxu2 %v2540_v56 }
 0x609   : > { %7443 = vmatmul.msk.f32.gmra.mxu1 %vm2628_vm5, %v2512_v51 }
 0x60a   : > { %2703 = vmatpush.msra.mxu1 %v2526_v14  ;;  %2735 = vmatpush.msra.mxu2 %v2539_v24 }
 0x60b   : > { %7448 = vmatmul.msk.f32.gmra.mxu2 %vm2628_vm5, %v2513_v34 }
 0x60c   : > { %2704 = vmatpush.msra.mxu1 %v2525_v6  ;;  %2736 = vmatpush.msra.mxu2 %v2538_v38 }
 0x60e   : > { %2705 = vmatpush.msra.mxu1 %v2524_v33  ;;  %2737 = vmatpush.msra.mxu2 %v2537_v19 }
 0x610   : > { %2706 = vmatpush.msra.mxu1 %v2523_v63  ;;  %2738 = vmatpush.msra.mxu2 %v2536_v41 }
 0x611   : > { %7444 = vmatmul.msk.f32.gmra.mxu1 %vm2628_vm5, %v2513_v34 }
 0x612   : > { %2707 = vmatpush.msra.mxu1 %v2522_v22  ;;  %2739 = vmatpush.msra.mxu2 %v2535_v44 }
 0x613   : > { %7449 = vmatmul.msk.f32.gmra.mxu2 %vm2628_vm5, %v2514_v12 }
 0x614   : > { %2708 = vmatpush.msra.mxu1 %v2521_v5  ;;  %2740 = vmatpush.msra.mxu2 %v2534_v15 }
 0x616   : > { %2709 = vmatpush.msra.mxu1 %v2520_v0  ;;  %2741 = vmatpush.msra.mxu2 %v2533_v40 }
 0x618   : > { %2710 = vmatpush.msra.mxu1 %v2519_v13  ;;  %2742 = vmatpush.msra.mxu2 %v2532_v57  ;;  %v12432_v57 = vld [vmem:[#allocation68_spill] sm:$0xff] }
 0x619   : > { %7445 = vmatmul.msk.f32.gmra.mxu1 %vm2628_vm5, %v2514_v12 }
 0x61a   : > { %2711 = vmatpush.msra.mxu1 %v2518_v16  ;;  %2743 = vmatpush.msra.mxu2 %v2531_v58  ;;  %v2830_v16 = vand.u32 7, %v12432_v57 }
 0x61c   : > { %2712 = vmatpush.msra.mxu1 %v2517_v37  ;;  %2786 = vmatpush.msrb.mxu2 %v2579_v46  ;;  %vm2868_vm6 = vcmp.ge.s32.totalorder %v2830_v16, 1  ;;  %vm2872_vm8 = vcmp.le.s32.totalorder %v2830_v16, 6 }
 0x61e   : > { %2713 = vmatpush.msra.mxu1 %v2516_v30  ;;  %2787 = vmatpush.msrb.mxu2 %v2578_v4 }
 0x620   : > { %2714 = vmatpush.msra.mxu1 %v2515_v23  ;;  %2788 = vmatpush.msrb.mxu2 %v2577_v10  ;;  %v2823_v10 = vand.u32 7, %v12431_v59 }
 0x622   : > { %2757 = vmatpush.msrb.mxu1 %v2563_v45  ;;  %2789 = vmatpush.msrb.mxu2 %v2576_v42  ;;  %vm2871_vm7 = vcmp.le.s32.totalorder %v2823_v10, 6  ;;  %vm2867_vm10 = vcmp.ge.s32.totalorder %v2823_v10, 1 }
 0x624   : > { %2758 = vmatpush.msrb.mxu1 %v2562_v52  ;;  %2790 = vmatpush.msrb.mxu2 %v2575_v32 }
 0x626   : > { %2759 = vmatpush.msrb.mxu1 %v2561_v47  ;;  %2791 = vmatpush.msrb.mxu2 %v2574_v18 }
 0x628   : > { %2760 = vmatpush.msrb.mxu1 %v2560_v49  ;;  %2792 = vmatpush.msrb.mxu2 %v2573_v55 }
 0x62a   : > { %2761 = vmatpush.msrb.mxu1 %v2559_v62  ;;  %2793 = vmatpush.msrb.mxu2 %v2572_v48 }
 0x62c   : > { %2762 = vmatpush.msrb.mxu1 %v2558_v1  ;;  %2794 = vmatpush.msrb.mxu2 %v2571_v31  ;;  %v12433_v31 = vld [vmem:[#allocation69_spill] sm:$0xff] }
 0x62e   : > { %2763 = vmatpush.msrb.mxu1 %v2557_v53  ;;  %2795 = vmatpush.msrb.mxu2 %v2570_v36 }
 0x630   : > { %2764 = vmatpush.msrb.mxu1 %v2556_v21  ;;  %2796 = vmatpush.msrb.mxu2 %v2569_v17 }
 0x632   : > { %2765 = vmatpush.msrb.mxu1 %v2555_v9  ;;  %2797 = vmatpush.msrb.mxu2 %v2568_v50 }
 0x634   : > { %2766 = vmatpush.msrb.mxu1 %v2554_v61  ;;  %2798 = vmatpush.msrb.mxu2 %v2567_v27  ;;  %v2837_v61 = vand.u32 7, %v12433_v31  ;;  %v8828_v31 = vld [vmem:[#allocation18 + $0x24] sm:$0xf0] }
 0x636   : > { %2767 = vmatpush.msrb.mxu1 %v2553_v54  ;;  %2799 = vmatpush.msrb.mxu2 %v2566_v3  ;;  %vm2869_vm9 = vcmp.ge.s32.totalorder %v2837_v61, 1  ;;  %v12434_v3 = vld [vmem:[#allocation66_spill] sm:$0xff]  ;;  %vm2873_vm12 = vcmp.le.s32.totalorder %v2837_v61, 6 }
 0x637   : > { %v8827_v61 = vld [vmem:[#allocation18 + $0x24] sm:$0xf] }
 0x638   : > { %2768 = vmatpush.msrb.mxu1 %v2552_v29  ;;  %2800 = vmatpush.msrb.mxu2 %v2565_v11 }
 0x63a   : > { %2769 = vmatpush.msrb.mxu1 %v2551_v20  ;;  %2801 = vmatpush.msrb.mxu2 %v2564_v8 }
 0x63c   : > { %2770 = vmatpush.msrb.mxu1 %v2550_v28 }
 0x63e   : > { %2771 = vmatpush.msrb.mxu1 %v2549_v43  ;;  %v2844_v43 = vand.u32 7, %v12434_v3 }
 0x640   : > { %2772 = vmatpush.msrb.mxu1 %v2548_v35  ;;  %vm2870_vm11 = vcmp.ge.s32.totalorder %v2844_v43, 1  ;;  %vm2874_vm13 = vcmp.le.s32.totalorder %v2844_v43, 6 }
 0x67e   : > { %v2658_v2 = vpop.f32.mrf.mxu1  ;;  %v2687_v51 = vpop.f32.mrf.mxu2 }
 0x67f   : > { %2715 = vmatmul.f32.vlgmr.msra.gmra.mxu1 %v2658_v2  ;;  %2744 = vmatmul.f32.vlgmr.msra.gmra.mxu2 %v2687_v51 }
 0x686   : > { %v2661_v26 = vpop.f32.mrf.mxu1  ;;  %v2690_v39 = vpop.f32.mrf.mxu2 }
 0x687   : > { %2718 = vmatmul.f32.gmra.mxu1 %v2661_v26  ;;  %2747 = vmatmul.f32.gmra.mxu2 %v2690_v39 }
 0x68e   : > { %v2664_v7 = vpop.f32.mrf.mxu1  ;;  %v2693_v25 = vpop.f32.mrf.mxu2 }
 0x68f   : > { %2721 = vmatmul.f32.gmra.mxu1 %v2664_v7  ;;  %2750 = vmatmul.f32.gmra.mxu2 %v2693_v25 }
 0x696   : > { %v2667_v60 = vpop.f32.mrf.mxu1  ;;  %v2696_v56 = vpop.f32.mrf.mxu2 }
 0x697   : > { %2724 = vmatmul.f32.gmra.mxu1 %v2667_v60  ;;  %2753 = vmatmul.f32.gmra.mxu2 %v2696_v56 }
 0x69f   : > { %2773 = vmatmul.f32.vlgmr.msrb.gmra.mxu1 %v2658_v2  ;;  %2802 = vmatmul.f32.vlgmr.msrb.gmra.mxu2 %v2687_v51 }
 0x6a7   : > { %2776 = vmatmul.f32.gmra.mxu1 %v2661_v26  ;;  %2805 = vmatmul.f32.gmra.mxu2 %v2690_v39 }
 0x6af   : > { %2779 = vmatmul.f32.gmra.mxu1 %v2664_v7  ;;  %2808 = vmatmul.f32.gmra.mxu2 %v2693_v25 }
 0x6b7   : > { %2782 = vmatmul.f32.gmra.mxu1 %v2667_v60  ;;  %2811 = vmatmul.f32.gmra.mxu2 %v2696_v56  ;;  %v7508_v60 = vld [vmem:[#allocation18 + $0x70] sm:$0xf]  ;;  %v8838_v56 = vld [vmem:[#allocation18 + $0x74] sm:$0xf0] }
 0x6fc   : > { %v2716_v14 = vpop.f32.mrf.mxu1 }
 0x702   : > { %v2745_v24 = vpop.f32.mrf.mxu2 }
 0x703   : > { %v2746_v44 = vadd.f32 %v2745_v24, %v2716_v14  ;;  %v8837_v14 = vld [vmem:[#allocation18 + $0x74] sm:$0xf]  ;;  %v7509_v24 = vor.u32 %v8838_v56, %v7508_v60 }
 0x704   : > { %v2719_v34 = vpop.f32.mrf.mxu1 }
 0x705   : > { %3141 = vmatpush.bf16.msrb.mxu3 %v7509_v24  ;;  %v8826_v24 = vld [vmem:[#allocation18 + $0x14] sm:$0xf0] }
 0x70a   : > { %v2748_v6 = vpop.f32.mrf.mxu2 }
 0x70b   : > { %v2749_v40 = vadd.f32 %v2748_v6, %v2719_v34  ;;  %v7510_v34 = vld [vmem:[#allocation18 + $0x78] sm:$0xf0] }
 0x70c   : > { %v2722_v38 = vpop.f32.mrf.mxu1  ;;  %v7513_v6 = vor.u32 %v8837_v14, %v7510_v34  ;;  %v7460_v14 = vld [vmem:[#allocation18 + $0x10] sm:$0xf]  ;;  %v8825_v34 = vld [vmem:[#allocation18 + $0x14] sm:$0xf] }
 0x70e   : > { %3160 = vmatpush.bf16.msra.mxu0 %v7513_v6 }
 0x712   : > { %v2751_v33 = vpop.f32.mrf.mxu2 }
 0x713   : > { %v2752_v4 = vadd.f32 %v2751_v33, %v2722_v38  ;;  %v7500_v38 = vld [vmem:[#allocation18 + $0x60] sm:$0xf]  ;;  %v8836_v33 = vld [vmem:[#allocation18 + $0x64] sm:$0xf0] }
 0x714   : > { %v2725_v19 = vpop.f32.mrf.mxu1 }
 0x71a   : > { %v2754_v63 = vpop.f32.mrf.mxu2 }
 0x71b   : > { %v2755_v54 = vadd.f32 %v2754_v63, %v2725_v19  ;;  %v8835_v19 = vld [vmem:[#allocation18 + $0x64] sm:$0xf]  ;;  %v7501_v63 = vor.u32 %v8836_v33, %v7500_v38  ;;  %v7461_v33 = vor.u32 %v8826_v24, %v7460_v14 }
 0x71c   : > { %v2774_v41 = vpop.f32.mrf.mxu1 }
 0x71d   : > { %3142 = vmatpush.bf16.msrb.mxu3 %v7501_v63  ;;  %v7452_v63 = vld [vmem:[#allocation18] sm:$0xf] }
 0x722   : > { %v2803_v22 = vpop.f32.mrf.mxu2 }
 0x723   : > { %v2804_v12 = vadd.f32 %v2803_v22, %v2774_v41  ;;  %v7502_v41 = vld [vmem:[#allocation18 + $0x68] sm:$0xf0] }
 0x724   : > { %v2777_v15 = vpop.f32.mrf.mxu1  ;;  %v7505_v22 = vor.u32 %v8835_v19, %v7502_v41  ;;  %v7462_v19 = vld [vmem:[#allocation18 + $0x18] sm:$0xf0]  ;;  %v8824_v41 = vld [vmem:[#allocation18 + $0x4] sm:$0xf0] }
 0x725   : > { %v11484_v5 = vmax.f32 %v2746_v44, %v2804_v12  ;;  %v7492_v44 = vld [vmem:[#allocation18 + $0x50] sm:$0xf]  ;;  %v8834_v12 = vld [vmem:[#allocation18 + $0x54] sm:$0xf0] }
 0x726   : > { %3161 = vmatpush.bf16.msra.mxu0 %v7505_v22 }
 0x727   : > { %2981 = vrot.lane.b32.xlu2 %v11484_v5, %s10162_s13  ;;  %2973 = vrot.lane.b32.xlu1 %v11484_v5, %s10163_s10  ;;  %v2894_v30 = vrot.slane %v11484_v5, 7  ;;  %v2914_v62 = vrot.slane %v11484_v5, 1 }
 0x72a   : > { %v2806_v0 = vpop.f32.mrf.mxu2 }
 0x72b   : > { %v2807_v13 = vadd.f32 %v2806_v0, %v2777_v15  ;;  %v8833_v15 = vld [vmem:[#allocation18 + $0x54] sm:$0xf] }
 0x72c   : > { %v2780_v58 = vpop.f32.mrf.mxu1 }
 0x72d   : > { %v11491_v37 = vmax.f32 %v2749_v40, %v2807_v13  ;;  %v7493_v40 = vor.u32 %v8834_v12, %v7492_v44  ;;  %v7494_v13 = vld [vmem:[#allocation18 + $0x58] sm:$0xf0] }
 0x72e   : > { %v7497_v16 = vor.u32 %v8833_v15, %v7494_v13  ;;  %v7465_v15 = vor.u32 %v8825_v34, %v7462_v19  ;;  %v7453_v13 = vor.u32 %v8824_v41, %v7452_v63 }
 0x72f   : > { %2983 = vrot.lane.b32.xlu0 %v11491_v37, %s10162_s13  ;;  %2975 = vrot.lane.b32.xlu2 %v11491_v37, %s10163_s10  ;;  %v2895_v23 = vrot.slane %v11491_v37, 7  ;;  %v2915_v49 = vrot.slane %v11491_v37, 1 }
 0x730   : > { %3143 = vmatpush.bf16.msrb.mxu3 %v7493_v40  ;;  %3162 = vmatpush.bf16.msra.mxu0 %v7497_v16  ;;  %v7454_v40 = vld [vmem:[#allocation18 + $0x8] sm:$0xf0] }
 0x731   : > { %v2900_v45 = vsel %vm1254_vm1, %v2894_v30, %v2895_v23  ;;  %v2920_v32 = vsel %vm1279_vm0, %v2914_v62, %v2915_v49 }
 0x732   : > { %v2809_v46 = vpop.f32.mrf.mxu2  ;;  %v11501_v52 = vsel %vm2868_vm6, %v2900_v45, 0.0  ;;  %v11517_v21 = vsel %vm2871_vm7, %v2920_v32, 0.0  ;;  %v8829_v32 = vld [vmem:[#allocation18 + $0x34] sm:$0xf] }
 0x733   : > { %v2810_v47 = vadd.f32 %v2809_v46, %v2780_v58  ;;  %2944 = vrot.lane.b32.xlu1 %v11501_v52, %s10162_s13  ;;  %v8831_v58 = vld [vmem:[#allocation18 + $0x44] sm:$0xf]  ;;  %v7486_v46 = vld [vmem:[#allocation18 + $0x48] sm:$0xf0] }
 0x734   : > { %v2783_v53 = vpop.f32.mrf.mxu1 }
 0x735   : > { %v11507_v42 = vmax.f32 %v2752_v4, %v2810_v47  ;;  %v7489_v4 = vor.u32 %v8831_v58, %v7486_v46 }
 0x737   : > { %2936 = vrot.lane.b32.xlu0 %v11501_v52, %s10163_s10  ;;  %v2916_v1 = vrot.slane %v11507_v42, 1  ;;  %v2896_v36 = vrot.slane %v11507_v42, 7  ;;  %3163 = vmatpush.bf16.msra.mxu0 %v7489_v4 }
 0x739   : > { %v2919_v18 = vsel %vm1279_vm0, %v2915_v49, %v2916_v1  ;;  %v2899_v29 = vsel %vm1254_vm1, %v2895_v23, %v2896_v36  ;;  %v8832_v23 = vld [vmem:[#allocation18 + $0x44] sm:$0xf0]  ;;  %v7476_v49 = vld [vmem:[#allocation18 + $0x30] sm:$0xf] }
 0x73a   : > { %v2812_v55 = vpop.f32.mrf.mxu2  ;;  %v11519_v48 = vsel %vm2872_vm8, %v2919_v18, 0.0  ;;  %v11533_v50 = vsel %vm2869_vm9, %v2899_v29, 0.0  ;;  %v7478_v18 = vld [vmem:[#allocation18 + $0x38] sm:$0xf0]  ;;  %v7470_v29 = vld [vmem:[#allocation18 + $0x28] sm:$0xf0] }
 0x73b   : > { %v2813_v9 = vadd.f32 %v2812_v55, %v2783_v53  ;;  %3016 = vrot.lane.b32.xlu1 %v11517_v21, %s10163_s10  ;;  %3018 = vrot.lane.b32.xlu2 %v11519_v48, %s10163_s10  ;;  %v7481_v53 = vor.u32 %v8829_v32, %v7478_v18 }
 0x73d   : > { %v11527_v17 = vmax.f32 %v2755_v54, %v2813_v9  ;;  %3164 = vmatpush.bf16.msra.mxu0 %v7481_v53  ;;  %v7468_v9 = vld [vmem:[#allocation18 + $0x20] sm:$0xf] }
 0x73e   : > { %v7469_v54 = vor.u32 %v8828_v31, %v7468_v9 }
 0x73f   : > { %3024 = vrot.lane.b32.xlu0 %v11517_v21, %s10162_s13  ;;  %v2897_v20 = vrot.slane %v11527_v17, 7  ;;  %v2917_v8 = vrot.slane %v11527_v17, 1 }
 0x741   : > { %v2901_v27 = vsel %vm1254_vm1, %v2897_v20, %v2894_v30  ;;  %v2898_v11 = vsel %vm1254_vm1, %v2896_v36, %v2897_v20  ;;  %v2918_v2 = vsel %vm1279_vm0, %v2916_v1, %v2917_v8  ;;  %v2921_v26 = vsel %vm1279_vm0, %v2917_v8, %v2914_v62  ;;  %v7484_v30 = vld [vmem:[#allocation18 + $0x40] sm:$0xf]  ;;  %v8830_v62 = vld [vmem:[#allocation18 + $0x34] sm:$0xf0]  ;;  %v2875_v36 = vld [vmem:[#allocation16] sm:$0xff] }
 0x742   : > { %v11544_v28 = vsel %vm2867_vm10, %v2901_v27, 0.0  ;;  %v11555_v35 = vsel %vm2870_vm11, %v2898_v11, 0.0  ;;  %v11566_v51 = vsel %vm2873_vm12, %v2918_v2, 0.0  ;;  %v11576_v39 = vsel %vm2874_vm13, %v2921_v26, 0.0 }
 0x743   : > { %2977 = vrot.lane.b32.xlu1 %v11507_v42, %s10163_s10  ;;  %2938 = vrot.lane.b32.xlu2 %v11533_v50, %s10163_s10  ;;  %v7485_v45 = vor.u32 %v8832_v23, %v7484_v30  ;;  %v7477_v1 = vor.u32 %v8830_v62, %v7476_v49  ;;  %v11590_v20 = vperm.slane %v2875_v36, 3  ;;  %v7473_v27 = vor.u32 %v8827_v61, %v7470_v29 }
 0x744   : > { %v11592_v11 = vperm.slane %v2875_v36, 1  ;;  %v11594_v8 = vperm.slane %v2875_v36, 5  ;;  %v11596_v2 = vperm.slane %v2875_v36, 4  ;;  %v11598_v26 = vperm.slane %v2875_v36, 0 }
 0x745   : > { %3144 = vmatpush.bf16.msrb.mxu3 %v7485_v45  ;;  %3165 = vmatpush.bf16.msra.mxu0 %v7473_v27  ;;  %v11600_v60 = vperm.slane %v2875_v36, 2  ;;  %v3032_v32 = vperm.slane %v2875_v36, 6  ;;  %v3037_v61 = vperm.slane %v2875_v36, 7 }
 0x746   : > { %v2996_v6 = vmul.f32 %v11596_v2, %v11491_v37  ;;  %v2957_v22 = vmul.f32 %v11592_v11, %v11501_v52  ;;  %v2997_v53 = vmul.f32 %v11596_v2, %v11507_v42  ;;  %v2958_v9 = vmul.f32 %v11592_v11, %v11533_v50 }
 0x747   : > { %2946 = vrot.lane.b32.xlu0 %v11533_v50, %s10162_s13  ;;  %v2995_v50 = vmul.f32 %v11596_v2, %v11484_v5  ;;  %v2956_v19 = vmul.f32 %v11592_v11, %v11544_v28 }
 0x749   : > { %3145 = vmatpush.bf16.msrb.mxu3 %v7477_v1  ;;  %3166 = vmatpush.bf16.msra.mxu0 %v7465_v15 }
 0x74b   : > { %3026 = vrot.lane.b32.xlu1 %v11519_v48, %s10162_s13  ;;  %2934 = vrot.lane.b32.xlu2 %v11544_v28, %s10163_s10 }
 0x74d   : > { %3146 = vmatpush.bf16.msrb.mxu3 %v7469_v54 }
 0x74f   : > { %2942 = vrot.lane.b32.xlu0 %v11544_v28, %s10162_s13 }
 0x751   : > { %3147 = vmatpush.bf16.msrb.mxu3 %v7461_v33 }
 0x753   : > { %2979 = vrot.lane.b32.xlu2 %v11527_v17, %s10163_s10  ;;  %2948 = vrot.lane.b32.xlu1 %v11555_v35, %s10162_s13 }
 0x755   : > { %3148 = vmatpush.bf16.msrb.mxu3 %v7453_v13 }
 0x757   : > { %2987 = vrot.lane.b32.xlu0 %v11527_v17, %s10162_s13 }
 0x75b   : > { %2985 = vrot.lane.b32.xlu2 %v11507_v42, %s10162_s13  ;;  %3020 = vrot.lane.b32.xlu1 %v11566_v51, %s10163_s10  ;;  %v9399_v42 = vld [vmem:[#allocation16 + $0x8] ss:$0 sm:$0xff] }
 0x75f   : > { %2940 = vrot.lane.b32.xlu0 %v11555_v35, %s10163_s10 }
 0x763   : > { %3022 = vrot.lane.b32.xlu2 %v11576_v39, %s10163_s10  ;;  %3030 = vrot.lane.b32.xlu1 %v11576_v39, %s10162_s13 }
 0x767   : > { %3028 = vrot.lane.b32.xlu0 %v11566_v51, %s10162_s13 }
 0x781   : > { %v11584_v7 = vpop.permute.xlu2 %2981 }
 0x789   : > { %v2976_v25 = vpop.permute.xlu2 %2975 }
 0x78a   : > { %v2991_v56 = vmul.f32 %v11590_v20, %v2976_v25  ;;  %v8823_v25 = vld [vmem:[#allocation18 + $0x4] sm:$0xf] }
 0x78b   : > { %v7457_v23 = vor.u32 %v8823_v25, %v7454_v40 }
 0x78c   : > { %v3000_v16 = vadd.f32 %v2996_v6, %v2991_v56 }
 0x78d   : > { %3167 = vmatpush.bf16.msra.mxu0 %v7457_v23 }
 0x795   : > { %v11586_v0 = vpop.permute.xlu2 %3018 }
 0x796   : > { %v3034_v29 = vmul.f32 %v3032_v32, %v11586_v0 }
 0x799   : > { %v11588_v47 = vpop.permute.xlu1 %2973 }
 0x79a   : > { %v2990_v14 = vmul.f32 %v11590_v20, %v11588_v47  ;;  %v3038_v47 = vmul.f32 %v3037_v61, %v11517_v21 }
 0x79c   : > { %v2999_v63 = vadd.f32 %v2995_v50, %v2990_v14 }
 0x79d   : > { %v2939_v10 = vpop.permute.xlu2 %2938 }
 0x79e   : > { %v2953_v1 = vmul.f32 %v11598_v26, %v2939_v10  ;;  %v3039_v10 = vmul.f32 %v3037_v61, %v11519_v48 }
 0x7a0   : > { %v2962_v27 = vadd.f32 %v2958_v9, %v2953_v1  ;;  %v3043_v6 = vadd.f32 %v3039_v10, %v3034_v29 }
 0x7a1   : > { %v2984_v55 = vpop.permute.xlu0 %2983 }
 0x7a2   : > { %v3005_v44 = vmul.f32 %v11594_v8, %v2984_v55 }
 0x7a4   : > { %v3009_v46 = vadd.f32 %v3005_v44, %v3000_v16 }
 0x7a5   : > { %v2945_v3 = vpop.permute.xlu1 %2944  ;;  %v2935_v43 = vpop.permute.xlu2 %2934 }
 0x7a6   : > { %v2966_v37 = vmul.f32 %v11600_v60, %v2945_v3  ;;  %v2951_v0 = vmul.f32 %v11598_v26, %v2935_v43 }
 0x7a9   : > { %v2937_v38 = vpop.permute.xlu0 %2936 }
 0x7aa   : > { %v2952_v12 = vmul.f32 %v11598_v26, %v2937_v38 }
 0x7ac   : > { %v2961_v30 = vadd.f32 %v2957_v22, %v2952_v12  ;;  %v3004_v22 = vmul.f32 %v11594_v8, %v11584_v7  ;;  %v2960_v12 = vadd.f32 %v2956_v19, %v2951_v0 }
 0x7ad   : > { %v3017_v58 = vpop.permute.xlu1 %3016  ;;  %v2980_v45 = vpop.permute.xlu2 %2979 }
 0x7ae   : > { %v2970_v4 = vadd.f32 %v2966_v37, %v2961_v30  ;;  %v3033_v48 = vmul.f32 %v3032_v32, %v3017_v58  ;;  %v3008_v43 = vadd.f32 %v3004_v22, %v2999_v63  ;;  %v2993_v7 = vmul.f32 %v11590_v20, %v2980_v45 }
 0x7b0   : > { %v3013_v52 = vadd.f32 %v3009_v46, %v2970_v4  ;;  %v3042_v40 = vadd.f32 %v3038_v47, %v3033_v48 }
 0x7b1   : > { %v3025_v49 = vpop.permute.xlu0 %3024 }
 0x7b2   : > { %v3047_v5 = vmul.f32 %v9399_v42, %v3025_v49 }
 0x7b4   : > { %v3051_v37 = vadd.f32 %v3047_v5, %v3042_v40  ;;  %v3233_v40 = vld [vmem:[#allocation21 + $0x78] sm:$0xff] }
 0x7b5   : > { %v2978_v62 = vpop.permute.xlu1 %2977  ;;  %v2986_v55 = vpop.permute.xlu2 %2985  ;;  %3359 = vmatpush.msra.mxu3 %v3233_v40  ;;  %v3223_v40 = vld [vmem:[#allocation21 + $0x28] sm:$0xff] }
 0x7b6   : > { %v2992_v18 = vmul.f32 %v11590_v20, %v2978_v62  ;;  %v3006_v3 = vmul.f32 %v11594_v8, %v2986_v55  ;;  %v2998_v62 = vmul.f32 %v11596_v2, %v11527_v17 }
 0x7b8   : > { %v3001_v31 = vadd.f32 %v2997_v53, %v2992_v18  ;;  %v3041_v53 = vmul.f32 %v3037_v61, %v11576_v39  ;;  %v3002_v55 = vadd.f32 %v2998_v62, %v2993_v7  ;;  %v3230_v62 = vld [vmem:[#allocation21 + $0x60] sm:$0xff] }
 0x7b9   : > { %v2947_v54 = vpop.permute.xlu0 %2946 }
 0x7ba   : > { %v2967_v56 = vmul.f32 %v11600_v60, %v2947_v54  ;;  %v3010_v24 = vadd.f32 %v3006_v3, %v3001_v31 }
 0x7bc   : > { %v2971_v34 = vadd.f32 %v2967_v56, %v2962_v27 }
 0x7bd   : > { %v3027_v36 = vpop.permute.xlu1 %3026  ;;  %v3023_v46 = vpop.permute.xlu2 %3022 }
 0x7be   : > { %v3014_v38 = vadd.f32 %v3010_v24, %v2971_v34  ;;  %v3048_v33 = vmul.f32 %v9399_v42, %v3027_v36  ;;  %v3036_v4 = vmul.f32 %v3032_v32, %v3023_v46  ;;  %v2893_v34 = vld [vmem:[%s12435_s18] sm:$0xf] }
 0x7bf   : > { %v3181_v50 = vperm.slane %v2893_v34, 2  ;;  %v3194_v48 = vperm.slane %v2893_v34, 1 }
 0x7c0   : > { %v3052_v41 = vadd.f32 %v3048_v33, %v3043_v6  ;;  %v3045_v54 = vadd.f32 %v3041_v53, %v3036_v4  ;;  %v3195_v6 = vperm.slane %v2893_v34, 3  ;;  %v3247_v4 = vld [vmem:[#allocation21 + $0xe8] sm:$0xff] }
 0x7c1   : > { %v2943_v44 = vpop.permute.xlu0 %2942  ;;  %v3185_v36 = vperm.slane %v3181_v50, 0 }
 0x7c2   : > { %v3056_v15 = vadd.f32 %v3052_v41, %v3013_v52  ;;  %v2965_v25 = vmul.f32 %v11600_v60, %v2943_v44  ;;  %v2959_v52 = vmul.f32 %v11592_v11, %v11555_v35  ;;  %v3040_v11 = vmul.f32 %v3037_v61, %v11566_v51 }
 0x7c3   : > { %v3180_v51 = vperm.slane %v2893_v34, 0  ;;  %v3199_v19 = vperm.slane %v3195_v6, 1  ;;  %v3226_v6 = vld [vmem:[#allocation21 + $0x40] sm:$0xff] }
 0x7c4   : > { %v2969_v13 = vadd.f32 %v2965_v25, %v2960_v12  ;;  %v3198_v12 = vperm.slane %v3194_v48, 1  ;;  %v3216_v48 = vld [vmem:[#allocation19] sm:$0xff] }
 0x7c5   : > { %v2949_v16 = vpop.permute.xlu1 %2948 }
 0x7c6   : > { %v3012_v28 = vadd.f32 %v3008_v43, %v2969_v13  ;;  %v2968_v9 = vmul.f32 %v11600_v60, %v2949_v16  ;;  %v3249_v13 = vld [vmem:[#allocation21 + $0xf8] sm:$0xff] }
 0x7c7   : > { %3382 = vmatpush.msrb.mxu0 %v3249_v13  ;;  %v3280_v13 = vld [vmem:[#allocation21 + $0x1e8] sm:$0xff] }
 0x7c8   : > { %v3055_v30 = vadd.f32 %v3051_v37, %v3012_v28  ;;  %v3232_v37 = vld [vmem:[#allocation21 + $0x70] sm:$0xff] }
 0x7c9   : > { %v2988_v23 = vpop.permute.xlu0 %2987  ;;  %v3248_v28 = vld [vmem:[#allocation21 + $0xf0] sm:$0xff]  ;;  %3360 = vmatpush.msra.mxu3 %v3232_v37  ;;  %v3239_v37 = vld [vmem:[#allocation21 + $0xa8] sm:$0xff] }
 0x7ca   : > { %v3059_v58 = vpack.c.bf16 %v3056_v15, %v3055_v30  ;;  %v3007_v1 = vmul.f32 %v11594_v8, %v2988_v23  ;;  %3383 = vmatpush.msrb.mxu0 %v3248_v28  ;;  %v3266_v28 = vld [vmem:[#allocation21 + $0x178] sm:$0xff] }
 0x7cc   : > { %3149 = vmatmul.bf16.vlgmr.msrb.gmra.mxu3 %v3059_v58  ;;  %3168 = vmatmul.bf16.vlgmr.msra.gmra.mxu0 %v3059_v58  ;;  %v3011_v45 = vadd.f32 %v3007_v1, %v3002_v55  ;;  %v3246_v1 = vld [vmem:[#allocation21 + $0xe0] sm:$0xff] }
 0x7cd   : > { %v3021_v21 = vpop.permute.xlu1 %3020  ;;  %3384 = vmatpush.msrb.mxu0 %v3247_v4  ;;  %v3221_v4 = vld [vmem:[#allocation21 + $0x18] sm:$0xff] }
 0x7ce   : > { %v3035_v29 = vmul.f32 %v3032_v32, %v3021_v21  ;;  %v3231_v21 = vld [vmem:[#allocation21 + $0x68] sm:$0xff] }
 0x7cf   : > { %3361 = vmatpush.msra.mxu3 %v3231_v21  ;;  %3385 = vmatpush.msrb.mxu0 %v3246_v1  ;;  %v3265_v21 = vld [vmem:[#allocation21 + $0x170] sm:$0xff] }
 0x7d0   : > { %v3044_v3 = vadd.f32 %v3040_v11, %v3035_v29  ;;  %v3220_v1 = vld [vmem:[#allocation21 + $0x10] sm:$0xff] }
 0x7d1   : > { %v2941_v49 = vpop.permute.xlu0 %2940  ;;  %3362 = vmatpush.msra.mxu3 %v3230_v62  ;;  %v3237_v62 = vld [vmem:[#allocation21 + $0x98] sm:$0xff] }
 0x7d2   : > { %v2954_v18 = vmul.f32 %v11598_v26, %v2941_v49 }
 0x7d4   : > { %v2963_v31 = vadd.f32 %v2959_v52, %v2954_v18 }
 0x7d5   : > { %v3031_v20 = vpop.permute.xlu1 %3030 }
 0x7d6   : > { %v2972_v27 = vadd.f32 %v2968_v9, %v2963_v31  ;;  %v3050_v35 = vmul.f32 %v9399_v42, %v3031_v20  ;;  %v3229_v20 = vld [vmem:[#allocation21 + $0x58] sm:$0xff] }
 0x7d7   : > { %3363 = vmatpush.msra.mxu3 %v3229_v20  ;;  %v3235_v20 = vld [vmem:[#allocation21 + $0x88] sm:$0xff] }
 0x7d8   : > { %v3054_v17 = vadd.f32 %v3050_v35, %v3045_v54  ;;  %v3015_v2 = vadd.f32 %v3011_v45, %v2972_v27  ;;  %v3245_v45 = vld [vmem:[#allocation21 + $0xd8] sm:$0xff] }
 0x7d9   : > { %v3029_v8 = vpop.permute.xlu0 %3028  ;;  %3386 = vmatpush.msrb.mxu0 %v3245_v45  ;;  %v3261_v45 = vld [vmem:[#allocation21 + $0x150] sm:$0xff] }
 0x7da   : > { %v3049_v26 = vmul.f32 %v9399_v42, %v3029_v8  ;;  %v3058_v56 = vadd.f32 %v3054_v17, %v3015_v2  ;;  %v3184_v42 = vperm.slane %v3180_v51, 0  ;;  %v3228_v8 = vld [vmem:[#allocation21 + $0x50] sm:$0xff]  ;;  %v3242_v51 = vld [vmem:[#allocation21 + $0xc0] sm:$0xff] }
 0x7db   : > { %3364 = vmatpush.msra.mxu3 %v3228_v8  ;;  %v3271_v8 = vld [vmem:[#allocation21 + $0x1a0] sm:$0xff] }
 0x7dc   : > { %v3053_v39 = vadd.f32 %v3049_v26, %v3044_v3  ;;  %v3244_v26 = vld [vmem:[#allocation21 + $0xd0] sm:$0xff] }
 0x7dd   : > { %3387 = vmatpush.msrb.mxu0 %v3244_v26  ;;  %v3270_v26 = vld [vmem:[#allocation21 + $0x198] sm:$0xff] }
 0x7de   : > { %v3057_v10 = vadd.f32 %v3053_v39, %v3014_v38 }
 0x7e0   : > { %v3060_v14 = vpack.c.bf16 %v3058_v56, %v3057_v10 }
 0x7e2   : > { %3154 = vmatmul.bf16.gmra.mxu3 %v3060_v14  ;;  %3173 = vmatmul.bf16.gmra.mxu0 %v3060_v14  ;;  %v3227_v14 = vld [vmem:[#allocation21 + $0x48] sm:$0xff] }
 0x7e3   : > { %3365 = vmatpush.msra.mxu3 %v3227_v14  ;;  %v3268_v14 = vld [vmem:[#allocation21 + $0x188] sm:$0xff] }
 0x7e5   : > { %3366 = vmatpush.msra.mxu3 %v3226_v6  ;;  %v3267_v6 = vld [vmem:[#allocation21 + $0x180] sm:$0xff] }
 0x849   : > { %v3169_v60 = vpop.f32.mrf.mxu0 }
 0x84a   : > { %v3187_v33 = vmul.f32 %v3185_v36, %v3169_v60 }
 0x84c   : > { %v11642_v38 = vadd.f32 %v3199_v19, %v3187_v33 }
 0x84e   : > { %v3209_v16 = vmax.f32 %v11642_v38, 0.0  ;;  %v3281_v38 = vld [vmem:[#allocation21 + $0x1f0] sm:$0xff] }
 0x84f   : > { %v3150_v24 = vpop.f32.mrf.mxu3 }
 0x850   : > { %v3186_v44 = vmul.f32 %v3184_v42, %v3150_v24  ;;  %v3284_v18 = vrot.slane %v3209_v16, 1  ;;  %v3243_v24 = vld [vmem:[#allocation21 + $0xc8] sm:$0xff] }
 0x851   : > { %v3171_v32 = vpop.f32.mrf.mxu0  ;;  %3388 = vmatpush.msrb.mxu0 %v3243_v24  ;;  %v3253_v24 = vld [vmem:[#allocation21 + $0x110] sm:$0xff] }
 0x852   : > { %v3189_v41 = vmul.f32 %v3185_v36, %v3171_v32  ;;  %v11647_v46 = vadd.f32 %v3198_v12, %v3186_v44 }
 0x853   : > { %3389 = vmatpush.msrb.mxu0 %v3242_v51 }
 0x854   : > { %v11644_v5 = vadd.f32 %v3199_v19, %v3189_v41  ;;  %v3208_v29 = vmax.f32 %v11647_v46, 0.0  ;;  %v3225_v41 = vld [vmem:[#allocation21 + $0x38] sm:$0xff] }
 0x855   : > { %3367 = vmatpush.msra.mxu3 %v3225_v41  ;;  %v3278_v46 = vld [vmem:[#allocation21 + $0x1d8] sm:$0xff] }
 0x856   : > { %v3211_v7 = vmax.f32 %v11644_v5, 0.0  ;;  %v3283_v34 = vrot.slane %v3208_v29, 1  ;;  %v3224_v5 = vld [vmem:[#allocation21 + $0x30] sm:$0xff] }
 0x857   : > { %v3152_v0 = vpop.f32.mrf.mxu3  ;;  %3368 = vmatpush.msra.mxu3 %v3224_v5 }
 0x858   : > { %v3188_v30 = vmul.f32 %v3184_v42, %v3152_v0  ;;  %v3286_v27 = vrot.slane %v3211_v7, 1 }
 0x859   : > { %3369 = vmatpush.msra.mxu3 %v3223_v40 }
 0x85a   : > { %v3202_v55 = vadd.f32 %v3198_v12, %v3188_v30  ;;  %v3279_v30 = vld [vmem:[#allocation21 + $0x1e0] sm:$0xff] }
 0x85c   : > { %v3210_v56 = vmax.f32 %v3202_v55, 0.0  ;;  %v3236_v55 = vld [vmem:[#allocation21 + $0x90] sm:$0xff] }
 0x85f   : > { %v3174_v61 = vpop.f32.mrf.mxu0 }
 0x860   : > { %v3191_v63 = vmul.f32 %v3185_v36, %v3174_v61  ;;  %v3285_v61 = vrot.slane %v3210_v56, 1 }
 0x862   : > { %v3205_v22 = vadd.f32 %v3199_v19, %v3191_v63 }
 0x864   : > { %v3213_v23 = vmax.f32 %v3205_v22, 0.0  ;;  %v3282_v22 = vld [vmem:[#allocation21 + $0x1f8] sm:$0xff] }
 0x865   : > { %v3155_v47 = vpop.f32.mrf.mxu3 }
 0x866   : > { %v3190_v25 = vmul.f32 %v3184_v42, %v3155_v47  ;;  %v3288_v9 = vrot.slane %v3213_v23, 1 }
 0x867   : > { %v3176_v15 = vpop.f32.mrf.mxu0 }
 0x868   : > { %v3193_v43 = vmul.f32 %v3185_v36, %v3176_v15  ;;  %v3204_v49 = vadd.f32 %v3198_v12, %v3190_v25  ;;  %v3294_v10 = vsel %vm1279_vm0, %v3286_v27, %v3288_v9  ;;  %v3296_v36 = vsel %vm1279_vm0, %v3284_v18, %v3286_v27  ;;  %v3260_v27 = vld [vmem:[#allocation21 + $0x148] sm:$0xff] }
 0x869   : > { %v3302_v0 = vmax.f32 %v3211_v7, %v3294_v10  ;;  %v3295_v15 = vsel %vm1279_vm0, %v3283_v34, %v3285_v61  ;;  %v3238_v7 = vld [vmem:[#allocation21 + $0xa0] sm:$0xff] }
 0x86a   : > { %v3207_v58 = vadd.f32 %v3199_v19, %v3193_v43  ;;  %v3212_v35 = vmax.f32 %v3204_v49, 0.0  ;;  %v3240_v43 = vld [vmem:[#allocation21 + $0xb0] sm:$0xff]  ;;  %v3264_v49 = vld [vmem:[#allocation21 + $0x168] sm:$0xff]  ;;  %v3255_v10 = vld [vmem:[#allocation21 + $0x120] sm:$0xff] }
 0x86c   : > { %v3215_v52 = vmax.f32 %v3207_v58, 0.0  ;;  %v3287_v32 = vrot.slane %v3212_v35, 1  ;;  %v3222_v58 = vld [vmem:[#allocation21 + $0x20] sm:$0xff] }
 0x86d   : > { %v3157_v53 = vpop.f32.mrf.mxu3  ;;  %3370 = vmatpush.msra.mxu3 %v3222_v58 }
 0x86e   : > { %v3290_v31 = vrot.slane %v3215_v52, 1  ;;  %v3192_v54 = vmul.f32 %v3184_v42, %v3157_v53  ;;  %v3300_v42 = vmax.f32 %v3209_v16, %v3296_v36  ;;  %v3293_v47 = vsel %vm1279_vm0, %v3285_v61, %v3287_v32  ;;  %v3276_v53 = vld [vmem:[#allocation21 + $0x1c8] sm:$0xff]  ;;  %v3251_v36 = vld [vmem:[#allocation21 + $0x100] sm:$0xff] }
 0x86f   : > { %v3301_v25 = vmax.f32 %v3210_v56, %v3293_v47  ;;  %v3299_v16 = vmax.f32 %v3208_v29, %v3295_v15  ;;  %3371 = vmatpush.msra.mxu3 %v3221_v4  ;;  %v3274_v29 = vld [vmem:[#allocation21 + $0x1b8] sm:$0xff]  ;;  %v3256_v56 = vld [vmem:[#allocation21 + $0x128] sm:$0xff] }
 0x870   : > { %v3298_v11 = vsel %vm1279_vm0, %v3290_v31, %v3284_v18  ;;  %v3206_v17 = vadd.f32 %v3198_v12, %v3192_v54  ;;  %v3292_v2 = vsel %vm1279_vm0, %v3288_v9, %v3290_v31  ;;  %v3241_v12 = vld [vmem:[#allocation21 + $0xb8] sm:$0xff]  ;;  %v3263_v18 = vld [vmem:[#allocation21 + $0x160] sm:$0xff]  ;;  %v3219_v54 = vld [vmem:[#allocation21 + $0x8] sm:$0xff] }
 0x871   : > { %v3306_v3 = vmax.f32 %v3215_v52, %v3298_v11  ;;  %v3304_v60 = vmax.f32 %v3213_v23, %v3292_v2  ;;  %3390 = vmatpush.msrb.mxu0 %v3241_v12  ;;  %v3217_v23 = vld [vmem:[#allocation19 + $0x8] sm:$0xff]  ;;  %v3277_v52 = vld [vmem:[#allocation21 + $0x1d0] sm:$0xff]  ;;  %v3275_v31 = vld [vmem:[#allocation21 + $0x1c0] sm:$0xff]  ;;  %3372 = vmatpush.msra.mxu3 %v3220_v1 }
 0x872   : > { %v3214_v39 = vmax.f32 %v3206_v17, 0.0  ;;  %v3262_v9 = vld [vmem:[#allocation21 + $0x158] sm:$0xff]  ;;  %v3259_v11 = vld [vmem:[#allocation21 + $0x140] sm:$0xff]  ;;  %v3272_v17 = vld [vmem:[#allocation21 + $0x1a8] sm:$0xff] }
 0x873   : > { %3348 = vmatpush.msra.mxu2 %v3306_v3  ;;  %3391 = vmatpush.msrb.mxu0 %v3240_v43  ;;  %v3258_v2 = vld [vmem:[#allocation21 + $0x138] sm:$0xff]  ;;  %v3257_v3 = vld [vmem:[#allocation21 + $0x130] sm:$0xff] }
 0x874   : > { %v3289_v50 = vrot.slane %v3214_v39, 1  ;;  %3373 = vmatpush.msra.mxu3 %v3219_v54  ;;  %v8910_v4 = vld [vmem:[%s12440_s2 + $0x238] sm:$0xff] }
 0x875   : > { %3349 = vmatpush.msra.mxu2 %v3304_v60  ;;  %3392 = vmatpush.msrb.mxu0 %v3239_v37  ;;  %v3254_v60 = vld [vmem:[#allocation21 + $0x118] sm:$0xff] }
 0x876   : > { %v3297_v33 = vsel %vm1279_vm0, %v3289_v50, %v3283_v34  ;;  %v3291_v19 = vsel %vm1279_vm0, %v3287_v32, %v3289_v50  ;;  %v3252_v34 = vld [vmem:[#allocation21 + $0x108] sm:$0xff]  ;;  %v3218_v32 = vld [vmem:[#allocation21] sm:$0xff] }
 0x877   : > { %v3305_v63 = vmax.f32 %v3214_v39, %v3297_v33  ;;  %3350 = vmatpush.msra.mxu2 %v3302_v0  ;;  %v3303_v44 = vmax.f32 %v3212_v35, %v3291_v19  ;;  %3393 = vmatpush.msrb.mxu0 %v3238_v7  ;;  %v3273_v35 = vld [vmem:[#allocation21 + $0x1b0] sm:$0xff]  ;;  %v3234_v50 = vld [vmem:[#allocation21 + $0x80] sm:$0xff] }
 0x878   : > { %v3269_v39 = vld [vmem:[#allocation21 + $0x190] sm:$0xff]  ;;  %3374 = vmatpush.msra.mxu3 %v3218_v32 }
 0x879   : > { %3325 = vmatpush.msra.mxu1 %v3305_v63  ;;  %3351 = vmatpush.msra.mxu2 %v3300_v42 }
 0x87a   : > { %7516 = vmatmul.msk.f32.vlgmr.msra.gmra.mxu2 %vm1543_vm4, %v3216_v48  ;;  %3394 = vmatpush.msrb.mxu0 %v3237_v62  ;;  %v8907_v62 = vld [vmem:[%s12440_s2 + $0x220] sm:$0xff] }
 0x87b   : > { %3326 = vmatpush.msra.mxu1 %v3303_v44  ;;  %3428 = vmatpush.msrb.mxu2 %v3282_v22 }
 0x87c   : > { %3395 = vmatpush.msrb.mxu0 %v3236_v55  ;;  %v8845_v55 = vld [vmem:[%s12440_s2 + $0x30] sm:$0xff] }
 0x87d   : > { %3327 = vmatpush.msra.mxu1 %v3301_v25  ;;  %3429 = vmatpush.msrb.mxu2 %v3281_v38  ;;  %v3464_v25 = vand.u32 3, %v12432_v57 }
 0x87e   : > { %3396 = vmatpush.msrb.mxu0 %v3235_v20  ;;  %v8842_v20 = vld [vmem:[%s12440_s2 + $0x18] sm:$0xff] }
 0x87f   : > { %3328 = vmatpush.msra.mxu1 %v3299_v16  ;;  %3430 = vmatpush.msrb.mxu2 %v3280_v13  ;;  %vm11684_vm14 = vcmp.ge.s32.totalorder %v3464_v25, 1  ;;  %vm11722_vm3 = vcmp.le.s32.totalorder %v3464_v25, 2 }
 0x880   : > { %7514 = vmatmul.msk.f32.vlgmr.msra.gmra.mxu1 %vm1543_vm4, %v3216_v48  ;;  %3397 = vmatpush.msrb.mxu0 %v3234_v50 }
 0x881   : > { %3405 = vmatpush.msrb.mxu1 %v3266_v28  ;;  %3431 = vmatpush.msrb.mxu2 %v3279_v30  ;;  %v3457_v28 = vand.u32 3, %v12431_v59  ;;  %v8908_v59 = vld [vmem:[%s12440_s2 + $0x228] sm:$0xff] }
 0x882   : > { %7517 = vmatmul.msk.f32.gmra.mxu2 %vm1543_vm4, %v3217_v23 }
 0x883   : > { %3406 = vmatpush.msrb.mxu1 %v3265_v21  ;;  %3432 = vmatpush.msrb.mxu2 %v3278_v46  ;;  %vm11700_vm15 = vcmp.ge.s32.totalorder %v3457_v28, 1  ;;  %vm11712_vm2 = vcmp.le.s32.totalorder %v3457_v28, 2 }
 0x885   : > { %3407 = vmatpush.msrb.mxu1 %v3264_v49  ;;  %3433 = vmatpush.msrb.mxu2 %v3277_v52 }
 0x887   : > { %3408 = vmatpush.msrb.mxu1 %v3263_v18  ;;  %3434 = vmatpush.msrb.mxu2 %v3276_v53  ;;  %v8846_v53 = vld [vmem:[%s12440_s2 + $0x38] sm:$0xff] }
 0x888   : > { %7515 = vmatmul.msk.f32.gmra.mxu1 %vm1543_vm4, %v3217_v23  ;;  %3636 = vmatpush.bf16.msrb.mxu3 %v8846_v53 }
 0x889   : > { %3409 = vmatpush.msrb.mxu1 %v3262_v9  ;;  %3435 = vmatpush.msrb.mxu2 %v3275_v31  ;;  %v8844_v9 = vld [vmem:[%s12440_s2 + $0x28] sm:$0xff]  ;;  %v8843_v31 = vld [vmem:[%s12440_s2 + $0x20] sm:$0xff] }
 0x88b   : > { %3410 = vmatpush.msrb.mxu1 %v3261_v45  ;;  %3436 = vmatpush.msrb.mxu2 %v3274_v29  ;;  %v8841_v45 = vld [vmem:[%s12440_s2 + $0x10] sm:$0xff] }
 0x88c   : > { %3637 = vmatpush.bf16.msrb.mxu3 %v8845_v55 }
 0x88d   : > { %3411 = vmatpush.msrb.mxu1 %v3260_v27  ;;  %3437 = vmatpush.msrb.mxu2 %v3273_v35  ;;  %v8840_v35 = vld [vmem:[%s12440_s2 + $0x8] sm:$0xff] }
 0x88f   : > { %3412 = vmatpush.msrb.mxu1 %v3259_v11  ;;  %3438 = vmatpush.msrb.mxu2 %v3272_v17  ;;  %v8839_v17 = vld [vmem:[%s12440_s2] sm:$0xff] }
 0x890   : > { %3638 = vmatpush.bf16.msrb.mxu3 %v8844_v9 }
 0x891   : > { %3413 = vmatpush.msrb.mxu1 %v3258_v2  ;;  %3439 = vmatpush.msrb.mxu2 %v3271_v8 }
 0x893   : > { %3414 = vmatpush.msrb.mxu1 %v3257_v3  ;;  %3440 = vmatpush.msrb.mxu2 %v3270_v26  ;;  %v3481_v3 = vld [vmem:[%s12445_s21] sm:$0xff] }
 0x894   : > { %3639 = vmatpush.bf16.msrb.mxu3 %v8843_v31  ;;  %v3536_v32 = vperm.slane %v3481_v3, 2  ;;  %v3552_v50 = vperm.slane %v3481_v3, 4 }
 0x895   : > { %3415 = vmatpush.msrb.mxu1 %v3256_v56  ;;  %3441 = vmatpush.msrb.mxu2 %v3269_v39  ;;  %v3531_v56 = vperm.slane %v3481_v3, 1  ;;  %v3528_v39 = vperm.slane %v3481_v3, 0 }
 0x897   : > { %3416 = vmatpush.msrb.mxu1 %v3255_v10  ;;  %3442 = vmatpush.msrb.mxu2 %v3268_v14  ;;  %v3549_v10 = vperm.slane %v3481_v3, 3 }
 0x898   : > { %3640 = vmatpush.bf16.msrb.mxu3 %v8842_v20 }
 0x899   : > { %3417 = vmatpush.msrb.mxu1 %v3254_v60  ;;  %3443 = vmatpush.msrb.mxu2 %v3267_v6  ;;  %v3575_v6 = vperm.slane %v3481_v3, 7 }
 0x89b   : > { %3418 = vmatpush.msrb.mxu1 %v3253_v24 }
 0x89c   : > { %3641 = vmatpush.bf16.msrb.mxu3 %v8841_v45 }
 0x89d   : > { %3419 = vmatpush.msrb.mxu1 %v3252_v34  ;;  %v3572_v34 = vperm.slane %v3481_v3, 6 }
 0x89f   : > { %3420 = vmatpush.msrb.mxu1 %v3251_v36 }
 0x8a0   : > { %3642 = vmatpush.bf16.msrb.mxu3 %v8840_v35 }
 0x8a4   : > { %3643 = vmatpush.bf16.msrb.mxu3 %v8839_v17 }
 0x8fd   : > { %v3330_v0 = vpop.f32.mrf.mxu1  ;;  %v3353_v51 = vpop.f32.mrf.mxu2 }
 0x8fe   : > { %3375 = vmatmul.f32.vlgmr.msra.gmra.mxu3 %v3330_v0  ;;  %3398 = vmatmul.f32.vlgmr.msrb.gmra.mxu0 %v3353_v51 }
 0x8ff   : > { %3421 = vmatmul.f32.vlgmr.msrb.gmra.mxu1 %v3330_v0  ;;  %3444 = vmatmul.f32.vlgmr.msrb.gmra.mxu2 %v3353_v51  ;;  %v3557_v0 = vperm.slane %v3481_v3, 5 }
 0x905   : > { %v3333_v61 = vpop.f32.mrf.mxu1  ;;  %v3356_v33 = vpop.f32.mrf.mxu2 }
 0x906   : > { %3378 = vmatmul.f32.gmra.mxu3 %v3333_v61  ;;  %3401 = vmatmul.f32.gmra.mxu0 %v3356_v33 }
 0x907   : > { %3424 = vmatmul.f32.gmra.mxu1 %v3333_v61  ;;  %3447 = vmatmul.f32.gmra.mxu2 %v3356_v33 }
 0x97b   : > { %v3399_v19 = vpop.f32.mrf.mxu0 }
 0x97c   : > { %v3422_v63 = vpop.f32.mrf.mxu1 }
 0x981   : > { %v3376_v42 = vpop.f32.mrf.mxu3 }
 0x982   : > { %v3400_v48 = vadd.f32 %v3399_v19, %v3376_v42  ;;  %v3445_v41 = vpop.f32.mrf.mxu2 }
 0x983   : > { %v3446_v47 = vadd.f32 %v3445_v41, %v3422_v63  ;;  %v3402_v44 = vpop.f32.mrf.mxu0 }
 0x984   : > { %v3425_v5 = vpop.f32.mrf.mxu1 }
 0x985   : > { %v11675_v22 = vmax.f32 %v3400_v48, %v3446_v47 }
 0x987   : > { %3545 = vrot.lane.b32.xlu2 %v11675_v22, %s10164_s7  ;;  %3541 = vrot.lane.b32.xlu1 %v11675_v22, %s10165_s26  ;;  %v3500_v16 = vrot.slane %v11675_v22, 7  ;;  %v3510_v46 = vrot.slane %v11675_v22, 1 }
 0x989   : > { %v3379_v12 = vpop.f32.mrf.mxu3 }
 0x98a   : > { %v3403_v15 = vadd.f32 %v3402_v44, %v3379_v12  ;;  %v3448_v38 = vpop.f32.mrf.mxu2  ;;  %v9400_v44 = vld [vmem:[%s12445_s21 + $0x8] ss:$0 sm:$0xff] }
 0x98b   : > { %v3449_v43 = vadd.f32 %v3448_v38, %v3425_v5  ;;  %v3553_v5 = vmul.f32 %v3552_v50, %v11675_v22 }
 0x98d   : > { %v11682_v40 = vmax.f32 %v3403_v15, %v3449_v43 }
 0x98f   : > { %3547 = vrot.lane.b32.xlu0 %v11682_v40, %s10164_s7  ;;  %3543 = vrot.lane.b32.xlu2 %v11682_v40, %s10165_s26  ;;  %v3501_v37 = vrot.slane %v11682_v40, 7  ;;  %v3511_v21 = vrot.slane %v11682_v40, 1  ;;  %v3554_v42 = vmul.f32 %v3552_v50, %v11682_v40 }
 0x991   : > { %v3502_v57 = vsel %vm1254_vm1, %v3500_v16, %v3501_v37  ;;  %v3503_v58 = vsel %vm1254_vm1, %v3501_v37, %v3500_v16  ;;  %v3512_v49 = vsel %vm1279_vm0, %v3510_v46, %v3511_v21  ;;  %v3513_v1 = vsel %vm1279_vm0, %v3511_v21, %v3510_v46 }
 0x992   : > { %v3509_v30 = vsel %vm11684_vm14, %v3502_v57, 0.0  ;;  %v3508_v7 = vsel %vm11700_vm15, %v3503_v58, 0.0  ;;  %v11720_v52 = vsel %vm11712_vm2, %v3512_v49, 0.0  ;;  %v3519_v18 = vsel %vm11722_vm3, %v3513_v1, 0.0 }
 0x993   : > { %3526 = vrot.lane.b32.xlu1 %v3509_v30, %s10164_s7  ;;  %v3533_v24 = vmul.f32 %v3531_v56, %v3509_v30  ;;  %v3532_v12 = vmul.f32 %v3531_v56, %v3508_v7  ;;  %v3577_v15 = vmul.f32 %v3575_v6, %v3519_v18  ;;  %v3576_v46 = vmul.f32 %v3575_v6, %v11720_v52 }
 0x997   : > { %3520 = vrot.lane.b32.xlu2 %v3508_v7, %s10165_s26  ;;  %3522 = vrot.lane.b32.xlu0 %v3509_v30, %s10165_s26 }
 0x99b   : > { %3564 = vrot.lane.b32.xlu1 %v11720_v52, %s10165_s26 }
 0x99f   : > { %3566 = vrot.lane.b32.xlu2 %v3519_v18, %s10165_s26  ;;  %3524 = vrot.lane.b32.xlu0 %v3508_v7, %s10164_s7 }
 0x9a3   : > { %3570 = vrot.lane.b32.xlu1 %v3519_v18, %s10164_s7 }
 0x9a7   : > { %3568 = vrot.lane.b32.xlu0 %v11720_v52, %s10164_s7 }
 0x9e1   : > { %v3546_v54 = vpop.permute.xlu2 %3545 }
 0x9e2   : > { %v3558_v49 = vmul.f32 %v3557_v0, %v3546_v54 }
 0x9e9   : > { %v3544_v29 = vpop.permute.xlu2 %3543 }
 0x9ea   : > { %v3551_v51 = vmul.f32 %v3549_v10, %v3544_v29 }
 0x9ec   : > { %v3556_v38 = vadd.f32 %v3554_v42, %v3551_v51  ;;  %v8852_v42 = vld [vmem:[%s12440_s2 + $0x68] sm:$0xff] }
 0x9f1   : > { %v3521_v2 = vpop.permute.xlu2 %3520 }
 0x9f2   : > { %v3529_v33 = vmul.f32 %v3528_v39, %v3521_v2 }
 0x9f4   : > { %v3534_v16 = vadd.f32 %v3532_v12, %v3529_v33 }
 0x9f9   : > { %v3542_v27 = vpop.permute.xlu1 %3541  ;;  %v3567_v36 = vpop.permute.xlu2 %3566 }
 0x9fa   : > { %v3550_v19 = vmul.f32 %v3549_v10, %v3542_v27  ;;  %v3574_v48 = vmul.f32 %v3572_v34, %v3567_v36 }
 0x9fc   : > { %v3555_v37 = vadd.f32 %v3553_v5, %v3550_v19  ;;  %v3579_v57 = vadd.f32 %v3577_v15, %v3574_v48  ;;  %v8854_v19 = vld [vmem:[%s12440_s2 + $0x78] sm:$0xff]  ;;  %v8851_v48 = vld [vmem:[%s12440_s2 + $0x60] sm:$0xff]  ;;  %v8848_v15 = vld [vmem:[%s12440_s2 + $0x48] sm:$0xff] }
 0x9fd   : > { %3810 = vmatpush.bf16.msra.mxu0 %v8854_v19 }
 0x9fe   : > { %v3560_v9 = vadd.f32 %v3558_v49, %v3555_v37  ;;  %v7550_v37 = vld [vmem:[%s12445_s21 + $0x10] sm:$0xff] }
 0xa01   : > { %v3548_v11 = vpop.permute.xlu0 %3547 }
 0xa02   : > { %v3559_v41 = vmul.f32 %v3557_v0, %v3548_v11  ;;  %v3499_v11 = vld [vmem:[#allocation22] sm:$0x3] }
 0xa03   : > { %v3650_v17 = vperm.slane %v3499_v11, 0  ;;  %v3653_v2 = vperm.slane %v3499_v11, 1 }
 0xa04   : > { %v3561_v30 = vadd.f32 %v3559_v41, %v3556_v38 }
 0xa05   : > { %v3527_v8 = vpop.permute.xlu1 %3526 }
 0xa06   : > { %v3538_v47 = vmul.f32 %v3536_v32, %v3527_v8 }
 0xa09   : > { %v3523_v26 = vpop.permute.xlu0 %3522 }
 0xa0a   : > { %v3530_v14 = vmul.f32 %v3528_v39, %v3523_v26 }
 0xa0c   : > { %v3535_v61 = vadd.f32 %v3533_v24, %v3530_v14 }
 0xa0d   : > { %v3565_v60 = vpop.permute.xlu1 %3564 }
 0xa0e   : > { %v3540_v25 = vadd.f32 %v3538_v47, %v3535_v61  ;;  %v3573_v58 = vmul.f32 %v3572_v34, %v3565_v60  ;;  %v8850_v47 = vld [vmem:[%s12440_s2 + $0x58] sm:$0xff] }
 0xa10   : > { %v3563_v53 = vadd.f32 %v3561_v30, %v3540_v25  ;;  %v3578_v31 = vadd.f32 %v3576_v46, %v3573_v58  ;;  %v8847_v25 = vld [vmem:[%s12440_s2 + $0x40] sm:$0xff]  ;;  %v3702_v30 = vperm.slane %v7550_v37, 0  ;;  %v3723_v58 = vperm.slane %v7550_v37, 3 }
 0xa11   : > { %v3525_v63 = vpop.permute.xlu0 %3524 }
 0xa12   : > { %v3537_v43 = vmul.f32 %v3536_v32, %v3525_v63  ;;  %v8853_v63 = vld [vmem:[%s12440_s2 + $0x70] sm:$0xff] }
 0xa13   : > { %3811 = vmatpush.bf16.msra.mxu0 %v8853_v63 }
 0xa14   : > { %v3539_v1 = vadd.f32 %v3537_v43, %v3534_v16 }
 0xa15   : > { %v3571_v28 = vpop.permute.xlu1 %3570 }
 0xa16   : > { %v3582_v21 = vmul.f32 %v9400_v44, %v3571_v28  ;;  %v3562_v45 = vadd.f32 %v3560_v9, %v3539_v1  ;;  %v3746_v1 = vperm.slane %v7550_v37, 6  ;;  %v3749_v9 = vperm.slane %v7550_v37, 7 }
 0xa17   : > { %3812 = vmatpush.bf16.msra.mxu0 %v8852_v42 }
 0xa18   : > { %v3584_v55 = vadd.f32 %v3582_v21, %v3579_v57  ;;  %v3705_v57 = vperm.slane %v7550_v37, 1 }
 0xa19   : > { %v3569_v7 = vpop.permute.xlu0 %3568 }
 0xa1a   : > { %v3586_v18 = vadd.f32 %v3584_v55, %v3563_v53  ;;  %v3581_v20 = vmul.f32 %v9400_v44, %v3569_v7  ;;  %v8849_v44 = vld [vmem:[%s12440_s2 + $0x50] sm:$0xff]  ;;  %v3710_v53 = vperm.slane %v7550_v37, 2  ;;  %v3726_v55 = vperm.slane %v7550_v37, 4 }
 0xa1b   : > { %3813 = vmatpush.bf16.msra.mxu0 %v8851_v48 }
 0xa1c   : > { %v3583_v29 = vadd.f32 %v3581_v20, %v3578_v31  ;;  %v3731_v31 = vperm.slane %v7550_v37, 5 }
 0xa1e   : > { %v3585_v27 = vadd.f32 %v3583_v29, %v3562_v45 }
 0xa1f   : > { %3814 = vmatpush.bf16.msra.mxu0 %v8850_v47 }
 0xa20   : > { %v3587_v35 = vpack.c.bf16 %v3586_v18, %v3585_v27 }
 0xa22   : > { %3644 = vmatmul.bf16.vlgmr.msrb.gmra.mxu3 %v3587_v35 }
 0xa23   : > { %3815 = vmatpush.bf16.msra.mxu0 %v8849_v44 }
 0xa27   : > { %3816 = vmatpush.bf16.msra.mxu0 %v8848_v15 }
 0xa2b   : > { %3817 = vmatpush.bf16.msra.mxu0 %v8847_v25 }
 0xaa5   : > { %v3645_v8 = vpop.f32.mrf.mxu3 }
 0xaa6   : > { %v3651_v3 = vmul.f32 %v3650_v17, %v3645_v8  ;;  %v9401_v8 = vld [vmem:[%s12445_s21 + $0x18] ss:$0 sm:$0xff] }
 0xaa8   : > { %v3654_v52 = vadd.f32 %v3653_v2, %v3651_v3 }
 0xaaa   : > { %v3656_v54 = vmax.f32 %v3654_v52, 0.0 }
 0xaac   : > { %v11751_v26 = vadd.f32 %v3656_v54, %v11675_v22 }
 0xaad   : > { %v3647_v56 = vpop.f32.mrf.mxu3 }
 0xaae   : > { %v3652_v39 = vmul.f32 %v3650_v17, %v3647_v56  ;;  %3719 = vrot.lane.b32.xlu2 %v11751_v26, %s10164_s7  ;;  %3715 = vrot.lane.b32.xlu1 %v11751_v26, %s10165_s26  ;;  %v3682_v22 = vrot.slane %v11751_v26, 7  ;;  %v3688_v36 = vrot.slane %v11751_v26, 1  ;;  %v3727_v52 = vmul.f32 %v3726_v55, %v11751_v26 }
 0xab0   : > { %v3655_v10 = vadd.f32 %v3653_v2, %v3652_v39 }
 0xab2   : > { %v3657_v14 = vmax.f32 %v3655_v10, 0.0 }
 0xab4   : > { %v11758_v60 = vadd.f32 %v3657_v14, %v11682_v40 }
 0xab6   : > { %3721 = vrot.lane.b32.xlu0 %v11758_v60, %s10164_s7  ;;  %3717 = vrot.lane.b32.xlu2 %v11758_v60, %s10165_s26  ;;  %v3683_v24 = vrot.slane %v11758_v60, 7  ;;  %v3689_v50 = vrot.slane %v11758_v60, 1  ;;  %v3728_v35 = vmul.f32 %v3726_v55, %v11758_v60 }
 0xab8   : > { %v3684_v34 = vsel %vm1254_vm1, %v3682_v22, %v3683_v24  ;;  %v3685_v40 = vsel %vm1254_vm1, %v3683_v24, %v3682_v22  ;;  %v3690_v0 = vsel %vm1279_vm0, %v3688_v36, %v3689_v50  ;;  %v3691_v61 = vsel %vm1279_vm0, %v3689_v50, %v3688_v36 }
 0xab9   : > { %v3687_v32 = vsel %vm11684_vm14, %v3684_v34, 0.0  ;;  %v3686_v6 = vsel %vm11700_vm15, %v3685_v40, 0.0  ;;  %v11783_v51 = vsel %vm11712_vm2, %v3690_v0, 0.0  ;;  %v3693_v33 = vsel %vm11722_vm3, %v3691_v61, 0.0 }
 0xaba   : > { %3700 = vrot.lane.b32.xlu1 %v3687_v32, %s10164_s7  ;;  %v3707_v49 = vmul.f32 %v3705_v57, %v3687_v32  ;;  %v3706_v3 = vmul.f32 %v3705_v57, %v3686_v6  ;;  %v3751_v54 = vmul.f32 %v3749_v9, %v3693_v33  ;;  %v3750_v36 = vmul.f32 %v3749_v9, %v11783_v51 }
 0xabe   : > { %3694 = vrot.lane.b32.xlu2 %v3686_v6, %s10165_s26  ;;  %3696 = vrot.lane.b32.xlu0 %v3687_v32, %s10165_s26 }
 0xac2   : > { %3738 = vrot.lane.b32.xlu1 %v11783_v51, %s10165_s26 }
 0xac6   : > { %3740 = vrot.lane.b32.xlu2 %v3693_v33, %s10165_s26  ;;  %3698 = vrot.lane.b32.xlu0 %v3686_v6, %s10164_s7 }
 0xaca   : > { %3744 = vrot.lane.b32.xlu1 %v3693_v33, %s10164_s7 }
 0xace   : > { %3742 = vrot.lane.b32.xlu0 %v11783_v51, %s10164_s7 }
 0xb08   : > { %v3720_v41 = vpop.permute.xlu2 %3719 }
 0xb09   : > { %v3732_v0 = vmul.f32 %v3731_v31, %v3720_v41 }
 0xb10   : > { %v3718_v12 = vpop.permute.xlu2 %3717 }
 0xb11   : > { %v3725_v18 = vmul.f32 %v3723_v58, %v3718_v12 }
 0xb13   : > { %v3730_v56 = vadd.f32 %v3728_v35, %v3725_v18  ;;  %v8860_v35 = vld [vmem:[%s12440_s2 + $0xa8] sm:$0xff] }
 0xb18   : > { %v3695_v43 = vpop.permute.xlu2 %3694 }
 0xb19   : > { %v3703_v45 = vmul.f32 %v3702_v30, %v3695_v43 }
 0xb1b   : > { %v3708_v14 = vadd.f32 %v3706_v3, %v3703_v45 }
 0xb20   : > { %v3716_v5 = vpop.permute.xlu1 %3715  ;;  %v3741_v7 = vpop.permute.xlu2 %3740 }
 0xb21   : > { %v3724_v29 = vmul.f32 %v3723_v58, %v3716_v5  ;;  %v3748_v11 = vmul.f32 %v3746_v1, %v3741_v7 }
 0xb23   : > { %v3729_v22 = vadd.f32 %v3727_v52, %v3724_v29  ;;  %v3753_v34 = vadd.f32 %v3751_v54, %v3748_v11  ;;  %v8862_v29 = vld [vmem:[%s12440_s2 + $0xb8] sm:$0xff]  ;;  %v8859_v11 = vld [vmem:[%s12440_s2 + $0xa0] sm:$0xff]  ;;  %v8856_v54 = vld [vmem:[%s12440_s2 + $0x88] sm:$0xff] }
 0xb24   : > { %3984 = vmatpush.bf16.msra.mxu1 %v8862_v29 }
 0xb25   : > { %v3734_v42 = vadd.f32 %v3732_v0, %v3729_v22  ;;  %v7600_v22 = vld [vmem:[%s12445_s21 + $0x20] sm:$0xff] }
 0xb28   : > { %v3722_v38 = vpop.permute.xlu0 %3721 }
 0xb29   : > { %v3733_v17 = vmul.f32 %v3731_v31, %v3722_v38  ;;  %v3681_v38 = vld [vmem:[#allocation22 + $0x2] sm:$0x3] }
 0xb2a   : > { %v3824_v25 = vperm.slane %v3681_v38, 0  ;;  %v3827_v43 = vperm.slane %v3681_v38, 1 }
 0xb2b   : > { %v3735_v32 = vadd.f32 %v3733_v17, %v3730_v56 }
 0xb2c   : > { %v3701_v16 = vpop.permute.xlu1 %3700 }
 0xb2d   : > { %v3712_v2 = vmul.f32 %v3710_v53, %v3701_v16 }
 0xb30   : > { %v3697_v28 = vpop.permute.xlu0 %3696 }
 0xb31   : > { %v3704_v21 = vmul.f32 %v3702_v30, %v3697_v28 }
 0xb33   : > { %v3709_v20 = vadd.f32 %v3707_v49, %v3704_v21 }
 0xb34   : > { %v3739_v46 = vpop.permute.xlu1 %3738 }
 0xb35   : > { %v3714_v39 = vadd.f32 %v3712_v2, %v3709_v20  ;;  %v3747_v40 = vmul.f32 %v3746_v1, %v3739_v46  ;;  %v8858_v2 = vld [vmem:[%s12440_s2 + $0x98] sm:$0xff] }
 0xb37   : > { %v3737_v19 = vadd.f32 %v3735_v32, %v3714_v39  ;;  %v3752_v48 = vadd.f32 %v3750_v36, %v3747_v40  ;;  %v8855_v39 = vld [vmem:[%s12440_s2 + $0x80] sm:$0xff]  ;;  %v3876_v32 = vperm.slane %v7600_v22, 0  ;;  %v3897_v40 = vperm.slane %v7600_v22, 3 }
 0xb38   : > { %v3699_v27 = vpop.permute.xlu0 %3698 }
 0xb39   : > { %v3711_v10 = vmul.f32 %v3710_v53, %v3699_v27  ;;  %v8861_v27 = vld [vmem:[%s12440_s2 + $0xb0] sm:$0xff] }
 0xb3a   : > { %3985 = vmatpush.bf16.msra.mxu1 %v8861_v27 }
 0xb3b   : > { %v3713_v61 = vadd.f32 %v3711_v10, %v3708_v14 }
 0xb3c   : > { %v3745_v24 = vpop.permute.xlu1 %3744 }
 0xb3d   : > { %v3756_v50 = vmul.f32 %v9401_v8, %v3745_v24  ;;  %v3736_v44 = vadd.f32 %v3734_v42, %v3713_v61  ;;  %v3920_v61 = vperm.slane %v7600_v22, 6  ;;  %v3923_v42 = vperm.slane %v7600_v22, 7 }
 0xb3e   : > { %3986 = vmatpush.bf16.msra.mxu1 %v8860_v35 }
 0xb3f   : > { %v3758_v63 = vadd.f32 %v3756_v50, %v3753_v34  ;;  %v3879_v34 = vperm.slane %v7600_v22, 1 }
 0xb40   : > { %v3743_v6 = vpop.permute.xlu0 %3742 }
 0xb41   : > { %v3760_v33 = vadd.f32 %v3758_v63, %v3737_v19  ;;  %v3755_v47 = vmul.f32 %v9401_v8, %v3743_v6  ;;  %v8857_v8 = vld [vmem:[%s12440_s2 + $0x90] sm:$0xff]  ;;  %v3884_v19 = vperm.slane %v7600_v22, 2  ;;  %v3900_v63 = vperm.slane %v7600_v22, 4 }
 0xb42   : > { %3987 = vmatpush.bf16.msra.mxu1 %v8859_v11 }
 0xb43   : > { %v3757_v12 = vadd.f32 %v3755_v47, %v3752_v48  ;;  %v3905_v48 = vperm.slane %v7600_v22, 5 }
 0xb45   : > { %v3759_v5 = vadd.f32 %v3757_v12, %v3736_v44 }
 0xb46   : > { %3988 = vmatpush.bf16.msra.mxu1 %v8858_v2 }
 0xb47   : > { %v3761_v15 = vpack.c.bf16 %v3760_v33, %v3759_v5 }
 0xb49   : > { %3818 = vmatmul.bf16.vlgmr.msra.gmra.mxu0 %v3761_v15 }
 0xb4a   : > { %3989 = vmatpush.bf16.msra.mxu1 %v8857_v8 }
 0xb4e   : > { %3990 = vmatpush.bf16.msra.mxu1 %v8856_v54 }
 0xb52   : > { %3991 = vmatpush.bf16.msra.mxu1 %v8855_v39 }
 0xbc6   : > { %v3819_v16 = vpop.f32.mrf.mxu0 }
 0xbc7   : > { %v3825_v37 = vmul.f32 %v3824_v25, %v3819_v16  ;;  %v9402_v16 = vld [vmem:[%s12445_s21 + $0x28] ss:$0 sm:$0xff] }
 0xbc9   : > { %v3828_v51 = vadd.f32 %v3827_v43, %v3825_v37 }
 0xbcb   : > { %v3830_v41 = vmax.f32 %v3828_v51, 0.0 }
 0xbcd   : > { %v11810_v28 = vadd.f32 %v3830_v41, %v11751_v26 }
 0xbce   : > { %v3821_v57 = vpop.f32.mrf.mxu0 }
 0xbcf   : > { %v3826_v30 = vmul.f32 %v3824_v25, %v3821_v57  ;;  %3893 = vrot.lane.b32.xlu2 %v11810_v28, %s10164_s7  ;;  %3889 = vrot.lane.b32.xlu1 %v11810_v28, %s10165_s26  ;;  %v3856_v26 = vrot.slane %v11810_v28, 7  ;;  %v3862_v7 = vrot.slane %v11810_v28, 1  ;;  %v3901_v51 = vmul.f32 %v3900_v63, %v11810_v28 }
 0xbd1   : > { %v3829_v58 = vadd.f32 %v3827_v43, %v3826_v30 }
 0xbd3   : > { %v3831_v21 = vmax.f32 %v3829_v58, 0.0 }
 0xbd5   : > { %v11817_v46 = vadd.f32 %v3831_v21, %v11758_v60 }
 0xbd7   : > { %3895 = vrot.lane.b32.xlu0 %v11817_v46, %s10164_s7  ;;  %3891 = vrot.lane.b32.xlu2 %v11817_v46, %s10165_s26  ;;  %v3857_v49 = vrot.slane %v11817_v46, 7  ;;  %v3863_v55 = vrot.slane %v11817_v46, 1  ;;  %v3902_v15 = vmul.f32 %v3900_v63, %v11817_v46 }
 0xbd9   : > { %v3858_v1 = vsel %vm1254_vm1, %v3856_v26, %v3857_v49  ;;  %v3859_v60 = vsel %vm1254_vm1, %v3857_v49, %v3856_v26  ;;  %v3864_v31 = vsel %vm1279_vm0, %v3862_v7, %v3863_v55  ;;  %v3865_v20 = vsel %vm1279_vm0, %v3863_v55, %v3862_v7 }
 0xbda   : > { %v3861_v53 = vsel %vm11684_vm14, %v3858_v1, 0.0  ;;  %v3860_v9 = vsel %vm11700_vm15, %v3859_v60, 0.0  ;;  %v11842_v18 = vsel %vm11712_vm2, %v3864_v31, 0.0  ;;  %v3867_v45 = vsel %vm11722_vm3, %v3865_v20, 0.0 }
 0xbdb   : > { %3874 = vrot.lane.b32.xlu1 %v3861_v53, %s10164_s7  ;;  %v3881_v0 = vmul.f32 %v3879_v34, %v3861_v53  ;;  %v3880_v37 = vmul.f32 %v3879_v34, %v3860_v9  ;;  %v3925_v41 = vmul.f32 %v3923_v42, %v3867_v45  ;;  %v3924_v7 = vmul.f32 %v3923_v42, %v11842_v18 }
 0xbdf   : > { %3868 = vrot.lane.b32.xlu2 %v3860_v9, %s10165_s26  ;;  %3870 = vrot.lane.b32.xlu0 %v3861_v53, %s10165_s26 }
 0xbe3   : > { %3912 = vrot.lane.b32.xlu1 %v11842_v18, %s10165_s26 }
 0xbe7   : > { %3914 = vrot.lane.b32.xlu2 %v3867_v45, %s10165_s26  ;;  %3872 = vrot.lane.b32.xlu0 %v3860_v9, %s10164_s7 }
 0xbeb   : > { %3918 = vrot.lane.b32.xlu1 %v3867_v45, %s10164_s7 }
 0xbef   : > { %3916 = vrot.lane.b32.xlu0 %v11842_v18, %s10164_s7 }
 0xc29   : > { %v3894_v17 = vpop.permute.xlu2 %3893 }
 0xc2a   : > { %v3906_v31 = vmul.f32 %v3905_v48, %v3894_v17 }
 0xc31   : > { %v3892_v3 = vpop.permute.xlu2 %3891 }
 0xc32   : > { %v3899_v33 = vmul.f32 %v3897_v40, %v3892_v3 }
 0xc34   : > { %v3904_v57 = vadd.f32 %v3902_v15, %v3899_v33  ;;  %v8868_v15 = vld [vmem:[%s12440_s2 + $0xe8] sm:$0xff] }
 0xc39   : > { %v3869_v10 = vpop.permute.xlu2 %3868 }
 0xc3a   : > { %v3877_v44 = vmul.f32 %v3876_v32, %v3869_v10 }
 0xc3c   : > { %v3882_v21 = vadd.f32 %v3880_v37, %v3877_v44 }
 0xc41   : > { %v3890_v52 = vpop.permute.xlu1 %3889  ;;  %v3915_v6 = vpop.permute.xlu2 %3914 }
 0xc42   : > { %v3898_v12 = vmul.f32 %v3897_v40, %v3890_v52  ;;  %v3922_v38 = vmul.f32 %v3920_v61, %v3915_v6 }
 0xc44   : > { %v3903_v26 = vadd.f32 %v3901_v51, %v3898_v12  ;;  %v3927_v1 = vadd.f32 %v3925_v41, %v3922_v38  ;;  %v8870_v12 = vld [vmem:[%s12440_s2 + $0xf8] sm:$0xff]  ;;  %v8867_v38 = vld [vmem:[%s12440_s2 + $0xe0] sm:$0xff]  ;;  %v8864_v41 = vld [vmem:[%s12440_s2 + $0xc8] sm:$0xff] }
 0xc45   : > { %4158 = vmatpush.bf16.msra.mxu2 %v8870_v12 }
 0xc46   : > { %v3908_v35 = vadd.f32 %v3906_v31, %v3903_v26  ;;  %v7650_v26 = vld [vmem:[%s12445_s21 + $0x30] sm:$0xff] }
 0xc49   : > { %v3896_v56 = vpop.permute.xlu0 %3895 }
 0xc4a   : > { %v3907_v25 = vmul.f32 %v3905_v48, %v3896_v56  ;;  %v3855_v56 = vld [vmem:[#allocation22 + $0x4] sm:$0x3] }
 0xc4b   : > { %v3998_v39 = vperm.slane %v3855_v56, 0  ;;  %v4001_v10 = vperm.slane %v3855_v56, 1 }
 0xc4c   : > { %v3909_v53 = vadd.f32 %v3907_v25, %v3904_v57 }
 0xc4d   : > { %v3875_v14 = vpop.permute.xlu1 %3874 }
 0xc4e   : > { %v3886_v43 = vmul.f32 %v3884_v19, %v3875_v14 }
 0xc51   : > { %v3871_v24 = vpop.permute.xlu0 %3870 }
 0xc52   : > { %v3878_v50 = vmul.f32 %v3876_v32, %v3871_v24 }
 0xc54   : > { %v3883_v47 = vadd.f32 %v3881_v0, %v3878_v50 }
 0xc55   : > { %v3913_v36 = vpop.permute.xlu1 %3912 }
 0xc56   : > { %v3888_v30 = vadd.f32 %v3886_v43, %v3883_v47  ;;  %v3921_v60 = vmul.f32 %v3920_v61, %v3913_v36  ;;  %v8866_v43 = vld [vmem:[%s12440_s2 + $0xd8] sm:$0xff] }
 0xc58   : > { %v3911_v29 = vadd.f32 %v3909_v53, %v3888_v30  ;;  %v3926_v11 = vadd.f32 %v3924_v7, %v3921_v60  ;;  %v8863_v30 = vld [vmem:[%s12440_s2 + $0xc0] sm:$0xff]  ;;  %v4050_v53 = vperm.slane %v7650_v26, 0  ;;  %v4071_v60 = vperm.slane %v7650_v26, 3 }
 0xc59   : > { %v3873_v5 = vpop.permute.xlu0 %3872 }
 0xc5a   : > { %v3885_v58 = vmul.f32 %v3884_v19, %v3873_v5  ;;  %v8869_v5 = vld [vmem:[%s12440_s2 + $0xf0] sm:$0xff] }
 0xc5b   : > { %4159 = vmatpush.bf16.msra.mxu2 %v8869_v5 }
 0xc5c   : > { %v3887_v20 = vadd.f32 %v3885_v58, %v3882_v21 }
 0xc5d   : > { %v3919_v49 = vpop.permute.xlu1 %3918 }
 0xc5e   : > { %v3930_v55 = vmul.f32 %v9402_v16, %v3919_v49  ;;  %v3910_v8 = vadd.f32 %v3908_v35, %v3887_v20  ;;  %v4094_v20 = vperm.slane %v7650_v26, 6  ;;  %v4097_v35 = vperm.slane %v7650_v26, 7 }
 0xc5f   : > { %4160 = vmatpush.bf16.msra.mxu2 %v8868_v15 }
 0xc60   : > { %v3932_v27 = vadd.f32 %v3930_v55, %v3927_v1  ;;  %v4053_v1 = vperm.slane %v7650_v26, 1 }
 0xc61   : > { %v3917_v9 = vpop.permute.xlu0 %3916 }
 0xc62   : > { %v3934_v45 = vadd.f32 %v3932_v27, %v3911_v29  ;;  %v3929_v2 = vmul.f32 %v9402_v16, %v3917_v9  ;;  %v8865_v16 = vld [vmem:[%s12440_s2 + $0xd0] sm:$0xff]  ;;  %v4058_v29 = vperm.slane %v7650_v26, 2  ;;  %v4074_v27 = vperm.slane %v7650_v26, 4 }
 0xc63   : > { %4161 = vmatpush.bf16.msra.mxu2 %v8867_v38 }
 0xc64   : > { %v3931_v3 = vadd.f32 %v3929_v2, %v3926_v11  ;;  %v4079_v11 = vperm.slane %v7650_v26, 5 }
 0xc66   : > { %v3933_v52 = vadd.f32 %v3931_v3, %v3910_v8 }
 0xc67   : > { %4162 = vmatpush.bf16.msra.mxu2 %v8866_v43 }
 0xc68   : > { %v3935_v54 = vpack.c.bf16 %v3934_v45, %v3933_v52 }
 0xc6a   : > { %3992 = vmatmul.bf16.vlgmr.msra.gmra.mxu1 %v3935_v54 }
 0xc6b   : > { %4163 = vmatpush.bf16.msra.mxu2 %v8865_v16 }
 0xc6f   : > { %4164 = vmatpush.bf16.msra.mxu2 %v8864_v41 }
 0xc73   : > { %4165 = vmatpush.bf16.msra.mxu2 %v8863_v30 }
 0xce7   : > { %v3993_v14 = vpop.f32.mrf.mxu1 }
 0xce8   : > { %v3999_v22 = vmul.f32 %v3998_v39, %v3993_v14  ;;  %v9403_v14 = vld [vmem:[%s12445_s21 + $0x38] ss:$0 sm:$0xff] }
 0xcea   : > { %v4002_v18 = vadd.f32 %v4001_v10, %v3999_v22 }
 0xcec   : > { %v4004_v17 = vmax.f32 %v4002_v18, 0.0 }
 0xcee   : > { %v11869_v24 = vadd.f32 %v4004_v17, %v11810_v28 }
 0xcef   : > { %v3995_v34 = vpop.f32.mrf.mxu1 }
 0xcf0   : > { %v4000_v32 = vmul.f32 %v3998_v39, %v3995_v34  ;;  %4067 = vrot.lane.b32.xlu2 %v11869_v24, %s10164_s7  ;;  %4063 = vrot.lane.b32.xlu1 %v11869_v24, %s10165_s26  ;;  %v4030_v28 = vrot.slane %v11869_v24, 7  ;;  %v4036_v6 = vrot.slane %v11869_v24, 1  ;;  %v4075_v18 = vmul.f32 %v4074_v27, %v11869_v24 }
 0xcf2   : > { %v4003_v40 = vadd.f32 %v4001_v10, %v4000_v32 }
 0xcf4   : > { %v4005_v50 = vmax.f32 %v4003_v40, 0.0 }
 0xcf6   : > { %v11876_v36 = vadd.f32 %v4005_v50, %v11817_v46 }
 0xcf8   : > { %4069 = vrot.lane.b32.xlu0 %v11876_v36, %s10164_s7  ;;  %4065 = vrot.lane.b32.xlu2 %v11876_v36, %s10165_s26  ;;  %v4031_v0 = vrot.slane %v11876_v36, 7  ;;  %v4037_v63 = vrot.slane %v11876_v36, 1  ;;  %v4076_v54 = vmul.f32 %v4074_v27, %v11876_v36 }
 0xcfa   : > { %v4032_v61 = vsel %vm1254_vm1, %v4030_v28, %v4031_v0  ;;  %v4033_v46 = vsel %vm1254_vm1, %v4031_v0, %v4030_v28  ;;  %v4038_v48 = vsel %vm1279_vm0, %v4036_v6, %v4037_v63  ;;  %v4039_v47 = vsel %vm1279_vm0, %v4037_v63, %v4036_v6 }
 0xcfb   : > { %v4035_v19 = vsel %vm11684_vm14, %v4032_v61, 0.0  ;;  %v4034_v42 = vsel %vm11700_vm15, %v4033_v46, 0.0  ;;  %v11901_v33 = vsel %vm11712_vm2, %v4038_v48, 0.0  ;;  %v4041_v44 = vsel %vm11722_vm3, %v4039_v47, 0.0 }
 0xcfc   : > { %4048 = vrot.lane.b32.xlu1 %v4035_v19, %s10164_s7  ;;  %v4055_v31 = vmul.f32 %v4053_v1, %v4035_v19  ;;  %v4054_v22 = vmul.f32 %v4053_v1, %v4034_v42  ;;  %v4099_v17 = vmul.f32 %v4097_v35, %v4041_v44  ;;  %v4098_v6 = vmul.f32 %v4097_v35, %v11901_v33 }
 0xd00   : > { %4042 = vrot.lane.b32.xlu2 %v4034_v42, %s10165_s26  ;;  %4044 = vrot.lane.b32.xlu0 %v4035_v19, %s10165_s26 }
 0xd04   : > { %4086 = vrot.lane.b32.xlu1 %v11901_v33, %s10165_s26 }
 0xd08   : > { %4088 = vrot.lane.b32.xlu2 %v4041_v44, %s10165_s26  ;;  %4046 = vrot.lane.b32.xlu0 %v4034_v42, %s10164_s7 }
 0xd0c   : > { %4092 = vrot.lane.b32.xlu1 %v4041_v44, %s10164_s7 }
 0xd10   : > { %4090 = vrot.lane.b32.xlu0 %v11901_v33, %s10164_s7 }
 0xd4a   : > { %v4068_v25 = vpop.permute.xlu2 %4067 }
 0xd4b   : > { %v4080_v48 = vmul.f32 %v4079_v11, %v4068_v25 }
 0xd52   : > { %v4066_v37 = vpop.permute.xlu2 %4065 }
 0xd53   : > { %v4073_v45 = vmul.f32 %v4071_v60, %v4066_v37 }
 0xd55   : > { %v4078_v34 = vadd.f32 %v4076_v54, %v4073_v45  ;;  %v8876_v54 = vld [vmem:[%s12440_s2 + $0x128] sm:$0xff] }
 0xd5a   : > { %v4043_v58 = vpop.permute.xlu2 %4042 }
 0xd5b   : > { %v4051_v8 = vmul.f32 %v4050_v53, %v4043_v58 }
 0xd5d   : > { %v4056_v50 = vadd.f32 %v4054_v22, %v4051_v8 }
 0xd62   : > { %v4064_v51 = vpop.permute.xlu1 %4063  ;;  %v4089_v9 = vpop.permute.xlu2 %4088 }
 0xd63   : > { %v4072_v3 = vmul.f32 %v4071_v60, %v4064_v51  ;;  %v4096_v56 = vmul.f32 %v4094_v20, %v4089_v9 }
 0xd65   : > { %v4077_v28 = vadd.f32 %v4075_v18, %v4072_v3  ;;  %v4101_v61 = vadd.f32 %v4099_v17, %v4096_v56  ;;  %v8878_v3 = vld [vmem:[%s12440_s2 + $0x138] sm:$0xff]  ;;  %v8875_v56 = vld [vmem:[%s12440_s2 + $0x120] sm:$0xff]  ;;  %v8872_v17 = vld [vmem:[%s12440_s2 + $0x108] sm:$0xff] }
 0xd66   : > { %4332 = vmatpush.bf16.msra.mxu3 %v8878_v3 }
 0xd67   : > { %v4082_v15 = vadd.f32 %v4080_v48, %v4077_v28  ;;  %v7700_v28 = vld [vmem:[%s12445_s21 + $0x40] sm:$0xff] }
 0xd6a   : > { %v4070_v57 = vpop.permute.xlu0 %4069 }
 0xd6b   : > { %v4081_v39 = vmul.f32 %v4079_v11, %v4070_v57  ;;  %v4029_v57 = vld [vmem:[#allocation22 + $0x6] sm:$0x3] }
 0xd6c   : > { %v4172_v30 = vperm.slane %v4029_v57, 0  ;;  %v4175_v58 = vperm.slane %v4029_v57, 1 }
 0xd6d   : > { %v4083_v19 = vadd.f32 %v4081_v39, %v4078_v34 }
 0xd6e   : > { %v4049_v21 = vpop.permute.xlu1 %4048 }
 0xd6f   : > { %v4060_v10 = vmul.f32 %v4058_v29, %v4049_v21 }
 0xd72   : > { %v4045_v49 = vpop.permute.xlu0 %4044 }
 0xd73   : > { %v4052_v55 = vmul.f32 %v4050_v53, %v4045_v49 }
 0xd75   : > { %v4057_v2 = vadd.f32 %v4055_v31, %v4052_v55 }
 0xd76   : > { %v4087_v7 = vpop.permute.xlu1 %4086 }
 0xd77   : > { %v4062_v32 = vadd.f32 %v4060_v10, %v4057_v2  ;;  %v4095_v46 = vmul.f32 %v4094_v20, %v4087_v7  ;;  %v8874_v10 = vld [vmem:[%s12440_s2 + $0x118] sm:$0xff] }
 0xd79   : > { %v4085_v12 = vadd.f32 %v4083_v19, %v4062_v32  ;;  %v4100_v38 = vadd.f32 %v4098_v6, %v4095_v46  ;;  %v8871_v32 = vld [vmem:[%s12440_s2 + $0x100] sm:$0xff]  ;;  %v4224_v19 = vperm.slane %v7700_v28, 0  ;;  %v4245_v46 = vperm.slane %v7700_v28, 3 }
 0xd7a   : > { %v4047_v52 = vpop.permute.xlu0 %4046 }
 0xd7b   : > { %v4059_v40 = vmul.f32 %v4058_v29, %v4047_v52  ;;  %v8877_v52 = vld [vmem:[%s12440_s2 + $0x130] sm:$0xff] }
 0xd7c   : > { %4333 = vmatpush.bf16.msra.mxu3 %v8877_v52 }
 0xd7d   : > { %v4061_v47 = vadd.f32 %v4059_v40, %v4056_v50 }
 0xd7e   : > { %v4093_v0 = vpop.permute.xlu1 %4092 }
 0xd7f   : > { %v4104_v63 = vmul.f32 %v9403_v14, %v4093_v0  ;;  %v4084_v16 = vadd.f32 %v4082_v15, %v4061_v47  ;;  %v4268_v47 = vperm.slane %v7700_v28, 6  ;;  %v4271_v15 = vperm.slane %v7700_v28, 7 }
 0xd80   : > { %4334 = vmatpush.bf16.msra.mxu3 %v8876_v54 }
 0xd81   : > { %v4106_v5 = vadd.f32 %v4104_v63, %v4101_v61  ;;  %v4227_v61 = vperm.slane %v7700_v28, 1 }
 0xd82   : > { %v4091_v42 = vpop.permute.xlu0 %4090 }
 0xd83   : > { %v4108_v44 = vadd.f32 %v4106_v5, %v4085_v12  ;;  %v4103_v43 = vmul.f32 %v9403_v14, %v4091_v42  ;;  %v8873_v14 = vld [vmem:[%s12440_s2 + $0x110] sm:$0xff]  ;;  %v4232_v12 = vperm.slane %v7700_v28, 2  ;;  %v4248_v5 = vperm.slane %v7700_v28, 4 }
 0xd84   : > { %4335 = vmatpush.bf16.msra.mxu3 %v8875_v56 }
 0xd85   : > { %v4105_v37 = vadd.f32 %v4103_v43, %v4100_v38  ;;  %v4253_v38 = vperm.slane %v7700_v28, 5 }
 0xd87   : > { %v4107_v51 = vadd.f32 %v4105_v37, %v4084_v16 }
 0xd88   : > { %4336 = vmatpush.bf16.msra.mxu3 %v8874_v10 }
 0xd89   : > { %v4109_v41 = vpack.c.bf16 %v4108_v44, %v4107_v51 }
 0xd8b   : > { %4166 = vmatmul.bf16.vlgmr.msra.gmra.mxu2 %v4109_v41 }
 0xd8c   : > { %4337 = vmatpush.bf16.msra.mxu3 %v8873_v14 }
 0xd90   : > { %4338 = vmatpush.bf16.msra.mxu3 %v8872_v17 }
 0xd94   : > { %4339 = vmatpush.bf16.msra.mxu3 %v8871_v32 }
 0xd98   : > { %5028 = vmatpush.bf16.msrb.mxu3 %v8910_v4 }
 0xe0e   : > { %v4167_v21 = vpop.f32.mrf.mxu2 }
 0xe0f   : > { %v4173_v26 = vmul.f32 %v4172_v30, %v4167_v21  ;;  %v9404_v21 = vld [vmem:[%s12445_s21 + $0x48] ss:$0 sm:$0xff] }
 0xe11   : > { %v4176_v33 = vadd.f32 %v4175_v58, %v4173_v26 }
 0xe13   : > { %v4178_v25 = vmax.f32 %v4176_v33, 0.0 }
 0xe15   : > { %v11928_v49 = vadd.f32 %v4178_v25, %v11869_v24 }
 0xe16   : > { %v4169_v1 = vpop.f32.mrf.mxu2 }
 0xe17   : > { %v4174_v53 = vmul.f32 %v4172_v30, %v4169_v1  ;;  %4241 = vrot.lane.b32.xlu2 %v11928_v49, %s10164_s7  ;;  %4237 = vrot.lane.b32.xlu1 %v11928_v49, %s10165_s26  ;;  %v4204_v24 = vrot.slane %v11928_v49, 7  ;;  %v4210_v9 = vrot.slane %v11928_v49, 1  ;;  %v4249_v33 = vmul.f32 %v4248_v5, %v11928_v49 }
 0xe19   : > { %v4177_v60 = vadd.f32 %v4175_v58, %v4174_v53 }
 0xe1b   : > { %v4179_v55 = vmax.f32 %v4177_v60, 0.0 }
 0xe1d   : > { %v11935_v7 = vadd.f32 %v4179_v55, %v11876_v36 }
 0xe1f   : > { %4243 = vrot.lane.b32.xlu0 %v11935_v7, %s10164_s7  ;;  %4239 = vrot.lane.b32.xlu2 %v11935_v7, %s10165_s26  ;;  %v4205_v31 = vrot.slane %v11935_v7, 7  ;;  %v4211_v27 = vrot.slane %v11935_v7, 1  ;;  %v4250_v41 = vmul.f32 %v4248_v5, %v11935_v7 }
 0xe21   : > { %v4206_v20 = vsel %vm1254_vm1, %v4204_v24, %v4205_v31  ;;  %v4207_v36 = vsel %vm1254_vm1, %v4205_v31, %v4204_v24  ;;  %v4212_v11 = vsel %vm1279_vm0, %v4210_v9, %v4211_v27  ;;  %v4213_v2 = vsel %vm1279_vm0, %v4211_v27, %v4210_v9 }
 0xe22   : > { %v4209_v29 = vsel %vm11684_vm14, %v4206_v20, 0.0  ;;  %v4208_v35 = vsel %vm11700_vm15, %v4207_v36, 0.0  ;;  %v11960_v45 = vsel %vm11712_vm2, %v4212_v11, 0.0  ;;  %v4215_v8 = vsel %vm11722_vm3, %v4213_v2, 0.0 }
 0xe23   : > { %4222 = vrot.lane.b32.xlu1 %v4209_v29, %s10164_s7  ;;  %v4229_v48 = vmul.f32 %v4227_v61, %v4209_v29  ;;  %v4228_v26 = vmul.f32 %v4227_v61, %v4208_v35  ;;  %v4273_v25 = vmul.f32 %v4271_v15, %v4215_v8  ;;  %v4272_v9 = vmul.f32 %v4271_v15, %v11960_v45 }
 0xe27   : > { %4216 = vrot.lane.b32.xlu2 %v4208_v35, %s10165_s26  ;;  %4218 = vrot.lane.b32.xlu0 %v4209_v29, %s10165_s26 }
 0xe2b   : > { %4260 = vrot.lane.b32.xlu1 %v11960_v45, %s10165_s26 }
 0xe2f   : > { %4262 = vrot.lane.b32.xlu2 %v4215_v8, %s10165_s26  ;;  %4220 = vrot.lane.b32.xlu0 %v4208_v35, %s10164_s7 }
 0xe33   : > { %4266 = vrot.lane.b32.xlu1 %v4215_v8, %s10164_s7 }
 0xe37   : > { %4264 = vrot.lane.b32.xlu0 %v11960_v45, %s10164_s7 }
 0xe71   : > { %v4242_v39 = vpop.permute.xlu2 %4241 }
 0xe72   : > { %v4254_v11 = vmul.f32 %v4253_v38, %v4242_v39 }
 0xe79   : > { %v4240_v22 = vpop.permute.xlu2 %4239 }
 0xe7a   : > { %v4247_v44 = vmul.f32 %v4245_v46, %v4240_v22 }
 0xe7c   : > { %v4252_v1 = vadd.f32 %v4250_v41, %v4247_v44  ;;  %v8884_v41 = vld [vmem:[%s12440_s2 + $0x168] sm:$0xff] }
 0xe81   : > { %v4217_v40 = vpop.permute.xlu2 %4216 }
 0xe82   : > { %v4225_v16 = vmul.f32 %v4224_v19, %v4217_v40 }
 0xe84   : > { %v4230_v55 = vadd.f32 %v4228_v26, %v4225_v16 }
 0xe89   : > { %v4238_v18 = vpop.permute.xlu1 %4237  ;;  %v4263_v42 = vpop.permute.xlu2 %4262 }
 0xe8a   : > { %v4246_v37 = vmul.f32 %v4245_v46, %v4238_v18  ;;  %v4270_v57 = vmul.f32 %v4268_v47, %v4263_v42 }
 0xe8c   : > { %v4251_v24 = vadd.f32 %v4249_v33, %v4246_v37  ;;  %v4275_v20 = vadd.f32 %v4273_v25, %v4270_v57  ;;  %v8886_v37 = vld [vmem:[%s12440_s2 + $0x178] sm:$0xff]  ;;  %v8883_v57 = vld [vmem:[%s12440_s2 + $0x160] sm:$0xff]  ;;  %v8880_v25 = vld [vmem:[%s12440_s2 + $0x148] sm:$0xff] }
 0xe8d   : > { %4506 = vmatpush.bf16.msrb.mxu0 %v8886_v37 }
 0xe8e   : > { %v4256_v54 = vadd.f32 %v4254_v11, %v4251_v24  ;;  %v7750_v24 = vld [vmem:[%s12445_s21 + $0x50] sm:$0xff] }
 0xe91   : > { %v4244_v34 = vpop.permute.xlu0 %4243 }
 0xe92   : > { %v4255_v30 = vmul.f32 %v4253_v38, %v4244_v34  ;;  %v4203_v34 = vld [vmem:[#allocation22 + $0x8] sm:$0x3] }
 0xe93   : > { %v4346_v32 = vperm.slane %v4203_v34, 0  ;;  %v4349_v40 = vperm.slane %v4203_v34, 1 }
 0xe94   : > { %v4257_v29 = vadd.f32 %v4255_v30, %v4252_v1 }
 0xe95   : > { %v4223_v50 = vpop.permute.xlu1 %4222 }
 0xe96   : > { %v4234_v58 = vmul.f32 %v4232_v12, %v4223_v50 }
 0xe99   : > { %v4219_v0 = vpop.permute.xlu0 %4218 }
 0xe9a   : > { %v4226_v63 = vmul.f32 %v4224_v19, %v4219_v0 }
 0xe9c   : > { %v4231_v43 = vadd.f32 %v4229_v48, %v4226_v63 }
 0xe9d   : > { %v4261_v6 = vpop.permute.xlu1 %4260 }
 0xe9e   : > { %v4236_v53 = vadd.f32 %v4234_v58, %v4231_v43  ;;  %v4269_v36 = vmul.f32 %v4268_v47, %v4261_v6  ;;  %v8882_v58 = vld [vmem:[%s12440_s2 + $0x158] sm:$0xff] }
 0xea0   : > { %v4259_v3 = vadd.f32 %v4257_v29, %v4236_v53  ;;  %v4274_v56 = vadd.f32 %v4272_v9, %v4269_v36  ;;  %v8879_v53 = vld [vmem:[%s12440_s2 + $0x140] sm:$0xff]  ;;  %v4398_v29 = vperm.slane %v7750_v24, 0  ;;  %v4419_v36 = vperm.slane %v7750_v24, 3 }
 0xea1   : > { %v4221_v51 = vpop.permute.xlu0 %4220 }
 0xea2   : > { %v4233_v60 = vmul.f32 %v4232_v12, %v4221_v51  ;;  %v8885_v51 = vld [vmem:[%s12440_s2 + $0x170] sm:$0xff] }
 0xea3   : > { %4507 = vmatpush.bf16.msrb.mxu0 %v8885_v51 }
 0xea4   : > { %v4235_v2 = vadd.f32 %v4233_v60, %v4230_v55 }
 0xea5   : > { %v4267_v31 = vpop.permute.xlu1 %4266 }
 0xea6   : > { %v4278_v27 = vmul.f32 %v9404_v21, %v4267_v31  ;;  %v4258_v14 = vadd.f32 %v4256_v54, %v4235_v2  ;;  %v4442_v2 = vperm.slane %v7750_v24, 6  ;;  %v4445_v54 = vperm.slane %v7750_v24, 7 }
 0xea7   : > { %4508 = vmatpush.bf16.msrb.mxu0 %v8884_v41 }
 0xea8   : > { %v4280_v52 = vadd.f32 %v4278_v27, %v4275_v20  ;;  %v4401_v20 = vperm.slane %v7750_v24, 1 }
 0xea9   : > { %v4265_v35 = vpop.permute.xlu0 %4264 }
 0xeaa   : > { %v4282_v8 = vadd.f32 %v4280_v52, %v4259_v3  ;;  %v4277_v10 = vmul.f32 %v9404_v21, %v4265_v35  ;;  %v8881_v21 = vld [vmem:[%s12440_s2 + $0x150] sm:$0xff]  ;;  %v4406_v3 = vperm.slane %v7750_v24, 2  ;;  %v4422_v52 = vperm.slane %v7750_v24, 4 }
 0xeab   : > { %4509 = vmatpush.bf16.msrb.mxu0 %v8883_v57 }
 0xeac   : > { %v4279_v22 = vadd.f32 %v4277_v10, %v4274_v56  ;;  %v4427_v56 = vperm.slane %v7750_v24, 5 }
 0xeae   : > { %v4281_v18 = vadd.f32 %v4279_v22, %v4258_v14 }
 0xeaf   : > { %4510 = vmatpush.bf16.msrb.mxu0 %v8882_v58 }
 0xeb0   : > { %v4283_v17 = vpack.c.bf16 %v4282_v8, %v4281_v18 }
 0xeb2   : > { %4340 = vmatmul.bf16.vlgmr.msra.gmra.mxu3 %v4283_v17 }
 0xeb3   : > { %4511 = vmatpush.bf16.msrb.mxu0 %v8881_v21 }
 0xeb7   : > { %4512 = vmatpush.bf16.msrb.mxu0 %v8880_v25 }
 0xebb   : > { %4513 = vmatpush.bf16.msrb.mxu0 %v8879_v53 }
 0xf35   : > { %v4341_v50 = vpop.f32.mrf.mxu3 }
 0xf36   : > { %v4347_v28 = vmul.f32 %v4346_v32, %v4341_v50  ;;  %v9405_v50 = vld [vmem:[%s12445_s21 + $0x58] ss:$0 sm:$0xff] }
 0xf38   : > { %v4350_v45 = vadd.f32 %v4349_v40, %v4347_v28 }
 0xf3a   : > { %v4352_v39 = vmax.f32 %v4350_v45, 0.0 }
 0xf3c   : > { %v11987_v0 = vadd.f32 %v4352_v39, %v11928_v49 }
 0xf3d   : > { %v4343_v61 = vpop.f32.mrf.mxu3 }
 0xf3e   : > { %v4348_v19 = vmul.f32 %v4346_v32, %v4343_v61  ;;  %4415 = vrot.lane.b32.xlu2 %v11987_v0, %s10164_s7  ;;  %4411 = vrot.lane.b32.xlu1 %v11987_v0, %s10165_s26  ;;  %v4378_v49 = vrot.slane %v11987_v0, 7  ;;  %v4384_v42 = vrot.slane %v11987_v0, 1  ;;  %v4423_v45 = vmul.f32 %v4422_v52, %v11987_v0 }
 0xf40   : > { %v4351_v46 = vadd.f32 %v4349_v40, %v4348_v19 }
 0xf42   : > { %v4353_v63 = vmax.f32 %v4351_v46, 0.0 }
 0xf44   : > { %v11994_v6 = vadd.f32 %v4353_v63, %v11935_v7 }
 0xf46   : > { %4417 = vrot.lane.b32.xlu0 %v11994_v6, %s10164_s7  ;;  %4413 = vrot.lane.b32.xlu2 %v11994_v6, %s10165_s26  ;;  %v4379_v48 = vrot.slane %v11994_v6, 7  ;;  %v4385_v5 = vrot.slane %v11994_v6, 1  ;;  %v4424_v17 = vmul.f32 %v4422_v52, %v11994_v6 }
 0xf48   : > { %v4380_v47 = vsel %vm1254_vm1, %v4378_v49, %v4379_v48  ;;  %v4381_v7 = vsel %vm1254_vm1, %v4379_v48, %v4378_v49  ;;  %v4386_v38 = vsel %vm1279_vm0, %v4384_v42, %v4385_v5  ;;  %v4387_v43 = vsel %vm1279_vm0, %v4385_v5, %v4384_v42 }
 0xf49   : > { %v4383_v12 = vsel %vm11684_vm14, %v4380_v47, 0.0  ;;  %v4382_v15 = vsel %vm11700_vm15, %v4381_v7, 0.0  ;;  %v12019_v44 = vsel %vm11712_vm2, %v4386_v38, 0.0  ;;  %v4389_v16 = vsel %vm11722_vm3, %v4387_v43, 0.0 }
 0xf4a   : > { %4396 = vrot.lane.b32.xlu1 %v4383_v12, %s10164_s7  ;;  %v4403_v11 = vmul.f32 %v4401_v20, %v4383_v12  ;;  %v4402_v28 = vmul.f32 %v4401_v20, %v4382_v15  ;;  %v4447_v39 = vmul.f32 %v4445_v54, %v4389_v16  ;;  %v4446_v42 = vmul.f32 %v4445_v54, %v12019_v44 }
 0xf4e   : > { %4390 = vrot.lane.b32.xlu2 %v4382_v15, %s10165_s26  ;;  %4392 = vrot.lane.b32.xlu0 %v4383_v12, %s10165_s26 }
 0xf52   : > { %4434 = vrot.lane.b32.xlu1 %v12019_v44, %s10165_s26 }
 0xf56   : > { %4436 = vrot.lane.b32.xlu2 %v4389_v16, %s10165_s26  ;;  %4394 = vrot.lane.b32.xlu0 %v4382_v15, %s10164_s7 }
 0xf5a   : > { %4440 = vrot.lane.b32.xlu1 %v4389_v16, %s10164_s7 }
 0xf5e   : > { %4438 = vrot.lane.b32.xlu0 %v12019_v44, %s10164_s7 }
 0xf98   : > { %v4416_v30 = vpop.permute.xlu2 %4415 }
 0xf99   : > { %v4428_v38 = vmul.f32 %v4427_v56, %v4416_v30 }
 0xfa0   : > { %v4414_v26 = vpop.permute.xlu2 %4413 }
 0xfa1   : > { %v4421_v8 = vmul.f32 %v4419_v36, %v4414_v26 }
 0xfa3   : > { %v4426_v61 = vadd.f32 %v4424_v17, %v4421_v8  ;;  %v8892_v17 = vld [vmem:[%s12440_s2 + $0x1a8] sm:$0xff] }
 0xfa8   : > { %v4391_v60 = vpop.permute.xlu2 %4390 }
 0xfa9   : > { %v4399_v14 = vmul.f32 %v4398_v29, %v4391_v60 }
 0xfab   : > { %v4404_v63 = vadd.f32 %v4402_v28, %v4399_v14 }
 0xfb0   : > { %v4412_v33 = vpop.permute.xlu1 %4411  ;;  %v4437_v35 = vpop.permute.xlu2 %4436 }
 0xfb1   : > { %v4420_v22 = vmul.f32 %v4419_v36, %v4412_v33  ;;  %v4444_v34 = vmul.f32 %v4442_v2, %v4437_v35 }
 0xfb3   : > { %v4425_v49 = vadd.f32 %v4423_v45, %v4420_v22  ;;  %v4449_v47 = vadd.f32 %v4447_v39, %v4444_v34  ;;  %v8894_v22 = vld [vmem:[%s12440_s2 + $0x1b8] sm:$0xff]  ;;  %v8891_v34 = vld [vmem:[%s12440_s2 + $0x1a0] sm:$0xff]  ;;  %v8888_v39 = vld [vmem:[%s12440_s2 + $0x188] sm:$0xff] }
 0xfb4   : > { %4680 = vmatpush.bf16.msrb.mxu1 %v8894_v22 }
 0xfb5   : > { %v4430_v41 = vadd.f32 %v4428_v38, %v4425_v49  ;;  %v7800_v49 = vld [vmem:[%s12445_s21 + $0x60] sm:$0xff] }
 0xfb6   : > { %v4616_v38 = vperm.slane %v7800_v49, 6 }
 0xfb8   : > { %v4418_v1 = vpop.permute.xlu0 %4417 }
 0xfb9   : > { %v4429_v32 = vmul.f32 %v4427_v56, %v4418_v1  ;;  %v4377_v1 = vld [vmem:[#allocation22 + $0xa] sm:$0x3] }
 0xfba   : > { %v4520_v53 = vperm.slane %v4377_v1, 0  ;;  %v4523_v60 = vperm.slane %v4377_v1, 1 }
 0xfbb   : > { %v4431_v12 = vadd.f32 %v4429_v32, %v4426_v61 }
 0xfbc   : > { %v4397_v55 = vpop.permute.xlu1 %4396 }
 0xfbd   : > { %v4408_v40 = vmul.f32 %v4406_v3, %v4397_v55 }
 0xfc0   : > { %v4393_v31 = vpop.permute.xlu0 %4392 }
 0xfc1   : > { %v4400_v27 = vmul.f32 %v4398_v29, %v4393_v31 }
 0xfc3   : > { %v4405_v10 = vadd.f32 %v4403_v11, %v4400_v27 }
 0xfc4   : > { %v4435_v9 = vpop.permute.xlu1 %4434 }
 0xfc5   : > { %v4410_v19 = vadd.f32 %v4408_v40, %v4405_v10  ;;  %v4443_v7 = vmul.f32 %v4442_v2, %v4435_v9  ;;  %v8890_v40 = vld [vmem:[%s12440_s2 + $0x198] sm:$0xff] }
 0xfc7   : > { %v4433_v37 = vadd.f32 %v4431_v12, %v4410_v19  ;;  %v4448_v57 = vadd.f32 %v4446_v42, %v4443_v7  ;;  %v8887_v19 = vld [vmem:[%s12440_s2 + $0x180] sm:$0xff]  ;;  %v4575_v12 = vperm.slane %v7800_v49, 1  ;;  %v4593_v7 = vperm.slane %v7800_v49, 3 }
 0xfc8   : > { %v4395_v18 = vpop.permute.xlu0 %4394 }
 0xfc9   : > { %v4407_v46 = vmul.f32 %v4406_v3, %v4395_v18  ;;  %v8893_v18 = vld [vmem:[%s12440_s2 + $0x1b0] sm:$0xff] }
 0xfca   : > { %4681 = vmatpush.bf16.msrb.mxu1 %v8893_v18 }
 0xfcb   : > { %v4409_v43 = vadd.f32 %v4407_v46, %v4404_v63 }
 0xfcc   : > { %v4441_v48 = vpop.permute.xlu1 %4440 }
 0xfcd   : > { %v4452_v5 = vmul.f32 %v9405_v50, %v4441_v48  ;;  %v4432_v21 = vadd.f32 %v4430_v41, %v4409_v43  ;;  %v4580_v43 = vperm.slane %v7800_v49, 2  ;;  %v4601_v41 = vperm.slane %v7800_v49, 5 }
 0xfce   : > { %4682 = vmatpush.bf16.msrb.mxu1 %v8892_v17 }
 0xfcf   : > { %v4454_v51 = vadd.f32 %v4452_v5, %v4449_v47  ;;  %v4572_v47 = vperm.slane %v7800_v49, 0 }
 0xfd0   : > { %v4439_v15 = vpop.permute.xlu0 %4438 }
 0xfd1   : > { %v4456_v16 = vadd.f32 %v4454_v51, %v4433_v37  ;;  %v4451_v58 = vmul.f32 %v9405_v50, %v4439_v15  ;;  %v8889_v50 = vld [vmem:[%s12440_s2 + $0x190] sm:$0xff]  ;;  %v4596_v51 = vperm.slane %v7800_v49, 4 }
 0xfd2   : > { %4683 = vmatpush.bf16.msrb.mxu1 %v8891_v34 }
 0xfd3   : > { %v4453_v26 = vadd.f32 %v4451_v58, %v4448_v57 }
 0xfd5   : > { %v4455_v33 = vadd.f32 %v4453_v26, %v4432_v21 }
 0xfd6   : > { %4684 = vmatpush.bf16.msrb.mxu1 %v8890_v40 }
 0xfd7   : > { %v4457_v25 = vpack.c.bf16 %v4456_v16, %v4455_v33  ;;  %v4619_v16 = vperm.slane %v7800_v49, 7 }
 0xfd9   : > { %4514 = vmatmul.bf16.vlgmr.msrb.gmra.mxu0 %v4457_v25 }
 0xfda   : > { %4685 = vmatpush.bf16.msrb.mxu1 %v8889_v50 }
 0xfde   : > { %4686 = vmatpush.bf16.msrb.mxu1 %v8888_v39 }
 0xfe2   : > { %4687 = vmatpush.bf16.msrb.mxu1 %v8887_v19 }
0x1056   : > { %v4515_v55 = vpop.f32.mrf.mxu0 }
0x1057   : > { %v4521_v24 = vmul.f32 %v4520_v53, %v4515_v55  ;;  %v9406_v55 = vld [vmem:[%s12445_s21 + $0x68] ss:$0 sm:$0xff] }
0x1059   : > { %v4524_v44 = vadd.f32 %v4523_v60, %v4521_v24 }
0x105b   : > { %v4526_v30 = vmax.f32 %v4524_v44, 0.0 }
0x105d   : > { %v12046_v31 = vadd.f32 %v4526_v30, %v11987_v0 }
0x105e   : > { %v4517_v20 = vpop.f32.mrf.mxu0 }
0x105f   : > { %v4522_v29 = vmul.f32 %v4520_v53, %v4517_v20  ;;  %4589 = vrot.lane.b32.xlu2 %v12046_v31, %s10164_s7  ;;  %4585 = vrot.lane.b32.xlu1 %v12046_v31, %s10165_s26  ;;  %v4552_v0 = vrot.slane %v12046_v31, 7  ;;  %v4558_v35 = vrot.slane %v12046_v31, 1  ;;  %v4597_v44 = vmul.f32 %v4596_v51, %v12046_v31 }
0x1061   : > { %v4525_v36 = vadd.f32 %v4523_v60, %v4522_v29 }
0x1063   : > { %v4527_v27 = vmax.f32 %v4525_v36, 0.0 }
0x1065   : > { %v12053_v9 = vadd.f32 %v4527_v27, %v11994_v6 }
0x1067   : > { %4591 = vrot.lane.b32.xlu0 %v12053_v9, %s10164_s7  ;;  %4587 = vrot.lane.b32.xlu2 %v12053_v9, %s10165_s26  ;;  %v4553_v11 = vrot.slane %v12053_v9, 7  ;;  %v4559_v52 = vrot.slane %v12053_v9, 1  ;;  %v4598_v25 = vmul.f32 %v4596_v51, %v12053_v9 }
0x1069   : > { %v4554_v2 = vsel %vm1254_vm1, %v4552_v0, %v4553_v11  ;;  %v4555_v6 = vsel %vm1254_vm1, %v4553_v11, %v4552_v0  ;;  %v4560_v56 = vsel %vm1279_vm0, %v4558_v35, %v4559_v52  ;;  %v4561_v10 = vsel %vm1279_vm0, %v4559_v52, %v4558_v35 }
0x106a   : > { %v4557_v3 = vsel %vm11684_vm14, %v4554_v2, 0.0  ;;  %v4556_v54 = vsel %vm11700_vm15, %v4555_v6, 0.0  ;;  %v12078_v8 = vsel %vm11712_vm2, %v4560_v56, 0.0  ;;  %v4563_v14 = vsel %vm11722_vm3, %v4561_v10, 0.0 }
0x106b   : > { %4570 = vrot.lane.b32.xlu1 %v4557_v3, %s10164_s7  ;;  %v4577_v37 = vmul.f32 %v4575_v12, %v4557_v3  ;;  %v4576_v24 = vmul.f32 %v4575_v12, %v4556_v54  ;;  %v4621_v20 = vmul.f32 %v4619_v16, %v4563_v14  ;;  %v4620_v35 = vmul.f32 %v4619_v16, %v12078_v8 }
0x106f   : > { %4564 = vrot.lane.b32.xlu2 %v4556_v54, %s10165_s26  ;;  %4566 = vrot.lane.b32.xlu0 %v4557_v3, %s10165_s26 }
0x1073   : > { %4608 = vrot.lane.b32.xlu1 %v12078_v8, %s10165_s26 }
0x1077   : > { %4610 = vrot.lane.b32.xlu2 %v4563_v14, %s10165_s26  ;;  %4568 = vrot.lane.b32.xlu0 %v4556_v54, %s10164_s7 }
0x107b   : > { %4614 = vrot.lane.b32.xlu1 %v4563_v14, %s10164_s7 }
0x107f   : > { %4612 = vrot.lane.b32.xlu0 %v12078_v8, %s10164_s7 }
0x10b9   : > { %v4590_v32 = vpop.permute.xlu2 %4589 }
0x10ba   : > { %v4602_v56 = vmul.f32 %v4601_v41, %v4590_v32 }
0x10c1   : > { %v4588_v28 = vpop.permute.xlu2 %4587 }
0x10c2   : > { %v4595_v57 = vmul.f32 %v4593_v7, %v4588_v28 }
0x10c4   : > { %v4600_v30 = vadd.f32 %v4598_v25, %v4595_v57  ;;  %v8900_v25 = vld [vmem:[%s12440_s2 + $0x1e8] sm:$0xff] }
0x10c9   : > { %v4565_v46 = vpop.permute.xlu2 %4564 }
0x10ca   : > { %v4573_v21 = vmul.f32 %v4572_v47, %v4565_v46 }
0x10cc   : > { %v4578_v27 = vadd.f32 %v4576_v24, %v4573_v21 }
0x10d1   : > { %v4586_v45 = vpop.permute.xlu1 %4585  ;;  %v4611_v15 = vpop.permute.xlu2 %4610 }
0x10d2   : > { %v4594_v26 = vmul.f32 %v4593_v7, %v4586_v45  ;;  %v4618_v1 = vmul.f32 %v4616_v38, %v4611_v15 }
0x10d4   : > { %v4599_v0 = vadd.f32 %v4597_v44, %v4594_v26  ;;  %v4623_v2 = vadd.f32 %v4621_v20, %v4618_v1  ;;  %v8902_v26 = vld [vmem:[%s12440_s2 + $0x1f8] sm:$0xff]  ;;  %v8899_v1 = vld [vmem:[%s12440_s2 + $0x1e0] sm:$0xff] }
0x10d5   : > { %4854 = vmatpush.bf16.msrb.mxu2 %v8902_v26 }
0x10d6   : > { %v4604_v17 = vadd.f32 %v4602_v56, %v4599_v0  ;;  %v7850_v0 = vld [vmem:[%s12445_s21 + $0x70] sm:$0xff] }
0x10d7   : > { %v4790_v56 = vperm.slane %v7850_v0, 6 }
0x10d9   : > { %v4592_v61 = vpop.permute.xlu0 %4591 }
0x10da   : > { %v4603_v53 = vmul.f32 %v4601_v41, %v4592_v61  ;;  %v4551_v61 = vld [vmem:[#allocation22 + $0xc] sm:$0x3] }
0x10db   : > { %v4694_v19 = vperm.slane %v4551_v61, 0  ;;  %v4697_v46 = vperm.slane %v4551_v61, 1 }
0x10dc   : > { %v4605_v3 = vadd.f32 %v4603_v53, %v4600_v30  ;;  %v8896_v30 = vld [vmem:[%s12440_s2 + $0x1c8] sm:$0xff] }
0x10dd   : > { %v4571_v63 = vpop.permute.xlu1 %4570 }
0x10de   : > { %v4582_v60 = vmul.f32 %v4580_v43, %v4571_v63 }
0x10e1   : > { %v4567_v48 = vpop.permute.xlu0 %4566 }
0x10e2   : > { %v4574_v5 = vmul.f32 %v4572_v47, %v4567_v48 }
0x10e4   : > { %v4579_v58 = vadd.f32 %v4577_v37, %v4574_v5 }
0x10e5   : > { %v4609_v42 = vpop.permute.xlu1 %4608 }
0x10e6   : > { %v4584_v29 = vadd.f32 %v4582_v60, %v4579_v58  ;;  %v4617_v6 = vmul.f32 %v4616_v38, %v4609_v42  ;;  %v8898_v60 = vld [vmem:[%s12440_s2 + $0x1d8] sm:$0xff] }
0x10e8   : > { %v4607_v22 = vadd.f32 %v4605_v3, %v4584_v29  ;;  %v4622_v34 = vadd.f32 %v4620_v35, %v4617_v6  ;;  %v8895_v29 = vld [vmem:[%s12440_s2 + $0x1c0] sm:$0xff]  ;;  %v4749_v3 = vperm.slane %v7850_v0, 1  ;;  %v4767_v6 = vperm.slane %v7850_v0, 3 }
0x10e9   : > { %v4569_v33 = vpop.permute.xlu0 %4568 }
0x10ea   : > { %v4581_v36 = vmul.f32 %v4580_v43, %v4569_v33  ;;  %v8901_v33 = vld [vmem:[%s12440_s2 + $0x1f0] sm:$0xff] }
0x10eb   : > { %4855 = vmatpush.bf16.msrb.mxu2 %v8901_v33 }
0x10ec   : > { %v4583_v10 = vadd.f32 %v4581_v36, %v4578_v27 }
0x10ed   : > { %v4615_v11 = vpop.permute.xlu1 %4614 }
0x10ee   : > { %v4626_v52 = vmul.f32 %v9406_v55, %v4615_v11  ;;  %v4606_v50 = vadd.f32 %v4604_v17, %v4583_v10  ;;  %v4754_v10 = vperm.slane %v7850_v0, 2  ;;  %v4775_v17 = vperm.slane %v7850_v0, 5 }
0x10ef   : > { %4856 = vmatpush.bf16.msrb.mxu2 %v8900_v25 }
0x10f0   : > { %v4628_v18 = vadd.f32 %v4626_v52, %v4623_v2  ;;  %v4746_v2 = vperm.slane %v7850_v0, 0 }
0x10f1   : > { %v4613_v54 = vpop.permute.xlu0 %4612 }
0x10f2   : > { %v4630_v40 = vadd.f32 %v4628_v18, %v4607_v22  ;;  %v4625_v14 = vmul.f32 %v9406_v55, %v4613_v54  ;;  %v8897_v55 = vld [vmem:[%s12440_s2 + $0x1d0] sm:$0xff]  ;;  %v4770_v18 = vperm.slane %v7850_v0, 4 }
0x10f3   : > { %4857 = vmatpush.bf16.msrb.mxu2 %v8899_v1 }
0x10f4   : > { %v4627_v28 = vadd.f32 %v4625_v14, %v4622_v34 }
0x10f6   : > { %v4629_v45 = vadd.f32 %v4627_v28, %v4606_v50 }
0x10f7   : > { %4858 = vmatpush.bf16.msrb.mxu2 %v8898_v60 }
0x10f8   : > { %v4631_v39 = vpack.c.bf16 %v4630_v40, %v4629_v45  ;;  %v4793_v40 = vperm.slane %v7850_v0, 7 }
0x10fa   : > { %4688 = vmatmul.bf16.vlgmr.msrb.gmra.mxu1 %v4631_v39 }
0x10fb   : > { %4859 = vmatpush.bf16.msrb.mxu2 %v8897_v55 }
0x10ff   : > { %4860 = vmatpush.bf16.msrb.mxu2 %v8896_v30 }
0x1103   : > { %4861 = vmatpush.bf16.msrb.mxu2 %v8895_v29 }
0x1177   : > { %v4689_v63 = vpop.f32.mrf.mxu1 }
0x1178   : > { %v4695_v49 = vmul.f32 %v4694_v19, %v4689_v63  ;;  %v9407_v63 = vld [vmem:[%s12445_s21 + $0x78] ss:$0 sm:$0xff] }
0x117a   : > { %v4698_v8 = vadd.f32 %v4697_v46, %v4695_v49 }
0x117c   : > { %v4700_v32 = vmax.f32 %v4698_v8, 0.0 }
0x117e   : > { %v12105_v48 = vadd.f32 %v4700_v32, %v12046_v31 }
0x117f   : > { %v4691_v47 = vpop.f32.mrf.mxu1 }
0x1180   : > { %v4696_v12 = vmul.f32 %v4694_v19, %v4691_v47  ;;  %4763 = vrot.lane.b32.xlu2 %v12105_v48, %s10164_s7  ;;  %4759 = vrot.lane.b32.xlu1 %v12105_v48, %s10165_s26  ;;  %v4726_v31 = vrot.slane %v12105_v48, 7  ;;  %v4732_v15 = vrot.slane %v12105_v48, 1  ;;  %v4771_v8 = vmul.f32 %v4770_v18, %v12105_v48 }
0x1182   : > { %v4699_v7 = vadd.f32 %v4697_v46, %v4696_v12 }
0x1184   : > { %v4701_v5 = vmax.f32 %v4699_v7, 0.0 }
0x1186   : > { %v12112_v42 = vadd.f32 %v4701_v5, %v12053_v9 }
0x1188   : > { %4765 = vrot.lane.b32.xlu0 %v12112_v42, %s10164_s7  ;;  %4761 = vrot.lane.b32.xlu2 %v12112_v42, %s10165_s26  ;;  %v4727_v38 = vrot.slane %v12112_v42, 7  ;;  %v4733_v51 = vrot.slane %v12112_v42, 1  ;;  %v4772_v39 = vmul.f32 %v4770_v18, %v12112_v42 }
0x118a   : > { %v4728_v43 = vsel %vm1254_vm1, %v4726_v31, %v4727_v38  ;;  %v4729_v9 = vsel %vm1254_vm1, %v4727_v38, %v4726_v31  ;;  %v4734_v57 = vsel %vm1279_vm0, %v4732_v15, %v4733_v51  ;;  %v4735_v58 = vsel %vm1279_vm0, %v4733_v51, %v4732_v15 }
0x118b   : > { %v4731_v37 = vsel %vm11684_vm14, %v4728_v43, 0.0  ;;  %v4730_v41 = vsel %vm11700_vm15, %v4729_v9, 0.0  ;;  %v12137_v16 = vsel %vm11712_vm2, %v4734_v57, 0.0  ;;  %v4737_v21 = vsel %vm11722_vm3, %v4735_v58, 0.0 }
0x118c   : > { %4744 = vrot.lane.b32.xlu1 %v4731_v37, %s10164_s7  ;;  %v4751_v22 = vmul.f32 %v4749_v3, %v4731_v37  ;;  %v4750_v49 = vmul.f32 %v4749_v3, %v4730_v41  ;;  %v4795_v47 = vmul.f32 %v4793_v40, %v4737_v21  ;;  %v4794_v15 = vmul.f32 %v4793_v40, %v12137_v16 }
0x1190   : > { %4738 = vrot.lane.b32.xlu2 %v4730_v41, %s10165_s26  ;;  %4740 = vrot.lane.b32.xlu0 %v4731_v37, %s10165_s26 }
0x1194   : > { %4782 = vrot.lane.b32.xlu1 %v12137_v16, %s10165_s26 }
0x1198   : > { %4784 = vrot.lane.b32.xlu2 %v4737_v21, %s10165_s26  ;;  %4742 = vrot.lane.b32.xlu0 %v4730_v41, %s10164_s7 }
0x119c   : > { %4788 = vrot.lane.b32.xlu1 %v4737_v21, %s10164_s7 }
0x11a0   : > { %4786 = vrot.lane.b32.xlu0 %v12137_v16, %s10164_s7 }
0x11da   : > { %v4764_v53 = vpop.permute.xlu2 %4763 }
0x11db   : > { %v4776_v57 = vmul.f32 %v4775_v17, %v4764_v53 }
0x11e2   : > { %v4762_v24 = vpop.permute.xlu2 %4761 }
0x11e3   : > { %v4769_v34 = vmul.f32 %v4767_v6, %v4762_v24 }
0x11e5   : > { %v4774_v32 = vadd.f32 %v4772_v39, %v4769_v34 }
0x11ea   : > { %v4739_v36 = vpop.permute.xlu2 %4738 }
0x11eb   : > { %v4747_v50 = vmul.f32 %v4746_v2, %v4739_v36 }
0x11ed   : > { %v4752_v5 = vadd.f32 %v4750_v49, %v4747_v50 }
0x11f2   : > { %v4760_v44 = vpop.permute.xlu1 %4759  ;;  %v4785_v54 = vpop.permute.xlu2 %4784 }
0x11f3   : > { %v4768_v28 = vmul.f32 %v4767_v6, %v4760_v44  ;;  %v4792_v61 = vmul.f32 %v4790_v56, %v4785_v54 }
0x11f5   : > { %v4773_v31 = vadd.f32 %v4771_v8, %v4768_v28  ;;  %v4797_v43 = vadd.f32 %v4795_v47, %v4792_v61  ;;  %v8906_v28 = vld [vmem:[%s12440_s2 + $0x218] sm:$0xff] }
0x11f7   : > { %v4778_v25 = vadd.f32 %v4776_v57, %v4773_v31 }
0x11fa   : > { %v4766_v20 = vpop.permute.xlu0 %4765 }
0x11fb   : > { %v4777_v19 = vmul.f32 %v4775_v17, %v4766_v20  ;;  %v4725_v20 = vld [vmem:[#allocation22 + $0xe] sm:$0x3] }
0x11fc   : > { %v4868_v29 = vperm.slane %v4725_v20, 0  ;;  %v4871_v36 = vperm.slane %v4725_v20, 1 }
0x11fd   : > { %v4779_v37 = vadd.f32 %v4777_v19, %v4774_v32  ;;  %v8904_v19 = vld [vmem:[%s12440_s2 + $0x208] sm:$0xff]  ;;  %v7900_v32 = vld [vmem:[%s12445_s21 + $0x80] sm:$0xff] }
0x11fe   : > { %v4745_v27 = vpop.permute.xlu1 %4744  ;;  %v4949_v57 = vperm.slane %v7900_v32, 5 }
0x11ff   : > { %v4756_v46 = vmul.f32 %v4754_v10, %v4745_v27 }
0x1202   : > { %v4741_v11 = vpop.permute.xlu0 %4740 }
0x1203   : > { %v4748_v52 = vmul.f32 %v4746_v2, %v4741_v11 }
0x1205   : > { %v4753_v14 = vadd.f32 %v4751_v22, %v4748_v52 }
0x1206   : > { %v4783_v35 = vpop.permute.xlu1 %4782 }
0x1207   : > { %v4758_v12 = vadd.f32 %v4756_v46, %v4753_v14  ;;  %v4791_v9 = vmul.f32 %v4790_v56, %v4783_v35  ;;  %v8909_v14 = vld [vmem:[%s12440_s2 + $0x230] sm:$0xff] }
0x1208   : > { %5029 = vmatpush.bf16.msrb.mxu3 %v8909_v14 }
0x1209   : > { %v4781_v26 = vadd.f32 %v4779_v37, %v4758_v12  ;;  %v4796_v1 = vadd.f32 %v4794_v15, %v4791_v9  ;;  %v4920_v12 = vperm.slane %v7900_v32, 0  ;;  %v4928_v37 = vperm.slane %v7900_v32, 2 }
0x120a   : > { %v4743_v45 = vpop.permute.xlu0 %4742 }
0x120b   : > { %v4755_v7 = vmul.f32 %v4754_v10, %v4743_v45  ;;  %v8905_v45 = vld [vmem:[%s12440_s2 + $0x210] sm:$0xff] }
0x120c   : > { %5030 = vmatpush.bf16.msrb.mxu3 %v8908_v59 }
0x120d   : > { %v4757_v58 = vadd.f32 %v4755_v7, %v4752_v5  ;;  %v4923_v7 = vperm.slane %v7900_v32, 1  ;;  %v4941_v5 = vperm.slane %v7900_v32, 3 }
0x120e   : > { %v4789_v38 = vpop.permute.xlu1 %4788 }
0x120f   : > { %v4800_v51 = vmul.f32 %v9407_v63, %v4789_v38  ;;  %v4780_v55 = vadd.f32 %v4778_v25, %v4757_v58 }
0x1210   : > { %5031 = vmatpush.bf16.msrb.mxu3 %v8907_v62 }
0x1211   : > { %v4802_v33 = vadd.f32 %v4800_v51, %v4797_v43  ;;  %v4964_v43 = vperm.slane %v7900_v32, 6  ;;  %v4944_v51 = vperm.slane %v7900_v32, 4 }
0x1212   : > { %v4787_v41 = vpop.permute.xlu0 %4786 }
0x1213   : > { %v4804_v60 = vadd.f32 %v4802_v33, %v4781_v26  ;;  %v4799_v21 = vmul.f32 %v9407_v63, %v4787_v41  ;;  %v8903_v63 = vld [vmem:[%s12440_s2 + $0x200] sm:$0xff]  ;;  %v4967_v26 = vperm.slane %v7900_v32, 7 }
0x1214   : > { %5032 = vmatpush.bf16.msrb.mxu3 %v8906_v28  ;;  %v4899_v28 = vld [vmem:[#allocation22 + $0x10] sm:$0x3]  ;;  %v8256_v32 = vld [vmem:[#allocation25 + $0x258] sm:$0xf] }
0x1215   : > { %v4801_v24 = vadd.f32 %v4799_v21, %v4796_v1 }
0x1217   : > { %v4803_v44 = vadd.f32 %v4801_v24, %v4780_v55 }
0x1218   : > { %5033 = vmatpush.bf16.msrb.mxu3 %v8905_v45 }
0x1219   : > { %v4805_v30 = vpack.c.bf16 %v4804_v60, %v4803_v44  ;;  %v9408_v44 = vld [vmem:[%s12445_s21 + $0x88] ss:$0 sm:$0xff] }
0x121b   : > { %4862 = vmatmul.bf16.vlgmr.msrb.gmra.mxu2 %v4805_v30 }
0x121c   : > { %5034 = vmatpush.bf16.msrb.mxu3 %v8904_v19  ;;  %v8948_v19 = vld [vmem:[#allocation25 + $0x128] sm:$0xf0] }
0x1220   : > { %5035 = vmatpush.bf16.msrb.mxu3 %v8903_v63  ;;  %v8076_v63 = vld [vmem:[#allocation25 + $0xf0] sm:$0xf] }
0x129e   : > { %v4863_v27 = vpop.f32.mrf.mxu2 }
0x129f   : > { %v4869_v0 = vmul.f32 %v4868_v29, %v4863_v27 }
0x12a1   : > { %v4872_v16 = vadd.f32 %v4871_v36, %v4869_v0 }
0x12a3   : > { %v4874_v53 = vmax.f32 %v4872_v16, 0.0 }
0x12a5   : > { %v12164_v11 = vadd.f32 %v4874_v53, %v12105_v48 }
0x12a6   : > { %v4865_v2 = vpop.f32.mrf.mxu2 }
0x12a7   : > { %v4870_v3 = vmul.f32 %v4868_v29, %v4865_v2  ;;  %4937 = vrot.lane.b32.xlu2 %v12164_v11, %s10164_s7  ;;  %4933 = vrot.lane.b32.xlu1 %v12164_v11, %s10165_s26  ;;  %v4900_v48 = vrot.slane %v12164_v11, 7  ;;  %v4906_v54 = vrot.slane %v12164_v11, 1  ;;  %v4945_v20 = vmul.f32 %v4944_v51, %v12164_v11 }
0x12a9   : > { %v4873_v6 = vadd.f32 %v4871_v36, %v4870_v3 }
0x12ab   : > { %v4875_v52 = vmax.f32 %v4873_v6, 0.0 }
0x12ad   : > { %v12171_v35 = vadd.f32 %v4875_v52, %v12112_v42 }
0x12af   : > { %4939 = vrot.lane.b32.xlu0 %v12171_v35, %s10164_s7  ;;  %4935 = vrot.lane.b32.xlu2 %v12171_v35, %s10165_s26  ;;  %v4901_v56 = vrot.slane %v12171_v35, 7  ;;  %v4907_v18 = vrot.slane %v12171_v35, 1  ;;  %v4946_v60 = vmul.f32 %v4944_v51, %v12171_v35 }
0x12b1   : > { %v4902_v10 = vsel %vm1254_vm1, %v4900_v48, %v4901_v56  ;;  %v4903_v42 = vsel %vm1254_vm1, %v4901_v56, %v4900_v48  ;;  %v4908_v13 = vsel %vm1279_vm0, %v4906_v54, %v4907_v18  ;;  %v4909_v23 = vsel %vm1279_vm0, %v4907_v18, %v4906_v54 }
0x12b2   : > { %v4905_v22 = vsel %vm11684_vm14, %v4902_v10, 0.0  ;;  %v4904_v17 = vsel %vm11700_vm15, %v4903_v42, 0.0  ;;  %v12196_v34 = vsel %vm11712_vm2, %v4908_v13, 0.0  ;;  %v4911_v40 = vsel %vm11722_vm3, %v4909_v23, 0.0 }
0x12b3   : > { %4918 = vrot.lane.b32.xlu1 %v4905_v22, %s10164_s7  ;;  %v4925_v9 = vmul.f32 %v4923_v7, %v4905_v22  ;;  %v4924_v30 = vmul.f32 %v4923_v7, %v4904_v17  ;;  %v4969_v36 = vmul.f32 %v4967_v26, %v4911_v40  ;;  %v4968_v56 = vmul.f32 %v4967_v26, %v12196_v34  ;;  %v8938_v7 = vld [vmem:[#allocation25 + $0xd8] sm:$0xf0] }
0x12b4   : > { %vm5053_vm0 = vcmask 130048  }
0x12b7   : > { %4912 = vrot.lane.b32.xlu2 %v4904_v17, %s10165_s26  ;;  %4914 = vrot.lane.b32.xlu0 %v4905_v22, %s10165_s26 }
0x12bb   : > { %4956 = vrot.lane.b32.xlu1 %v12196_v34, %s10165_s26 }
0x12bf   : > { %4958 = vrot.lane.b32.xlu2 %v4911_v40, %s10165_s26  ;;  %4916 = vrot.lane.b32.xlu0 %v4904_v17, %s10164_s7 }
0x12c3   : > { %4962 = vrot.lane.b32.xlu1 %v4911_v40, %s10164_s7 }
0x12c7   : > { %4960 = vrot.lane.b32.xlu0 %v12196_v34, %s10164_s7 }
0x1301   : > { %v4938_v50 = vpop.permute.xlu2 %4937 }
0x1302   : > { %v4950_v10 = vmul.f32 %v4949_v57, %v4938_v50  ;;  %v5045_v50 = vperm.slane %v4899_v28, 1 }
0x1309   : > { %v4936_v39 = vpop.permute.xlu2 %4935 }
0x130a   : > { %v4943_v58 = vmul.f32 %v4941_v5, %v4936_v39  ;;  %v5042_v39 = vperm.slane %v4899_v28, 0  ;;  %v7976_v28 = vld [vmem:[#allocation25 + $0x28] sm:$0xf] }
0x130c   : > { %v4948_v29 = vadd.f32 %v4946_v60, %v4943_v58  ;;  %v8933_v60 = vld [vmem:[#allocation25 + $0xb0] sm:$0xf0] }
0x1311   : > { %v4913_v49 = vpop.permute.xlu2 %4912 }
0x1312   : > { %v4921_v41 = vmul.f32 %v4920_v12, %v4913_v49  ;;  %v8943_v49 = vld [vmem:[#allocation25 + $0x100] sm:$0xf0] }
0x1314   : > { %v4926_v16 = vadd.f32 %v4924_v30, %v4921_v41  ;;  %v9068_v41 = vld [vmem:[#allocation25 + $0x4e8] sm:$0xf0]  ;;  %v5128_v30 = vld [vmem:[#allocation24 + $0xc] sm:$0xf] }
0x1319   : > { %v4934_v61 = vpop.permute.xlu1 %4933  ;;  %v4959_v15 = vpop.permute.xlu2 %4958 }
0x131a   : > { %v4942_v25 = vmul.f32 %v4941_v5, %v4934_v61  ;;  %v4966_v21 = vmul.f32 %v4964_v43, %v4959_v15  ;;  %v8096_v61 = vld [vmem:[#allocation25 + $0x118] sm:$0xf]  ;;  %v8988_v5 = vld [vmem:[#allocation25 + $0x268] sm:$0xf0] }
0x131c   : > { %v4947_v53 = vadd.f32 %v4945_v20, %v4942_v25  ;;  %v4971_v3 = vadd.f32 %v4969_v36, %v4966_v21  ;;  %v8036_v25 = vld [vmem:[#allocation25 + $0xa0] sm:$0xf]  ;;  %v8216_v21 = vld [vmem:[#allocation25 + $0x208] sm:$0xf]  ;;  %v9063_v36 = vld [vmem:[#allocation25 + $0x4c0] sm:$0xf0] }
0x131e   : > { %v4952_v17 = vadd.f32 %v4950_v10, %v4947_v53  ;;  %v8196_v53 = vld [vmem:[#allocation25 + $0x1e0] sm:$0xf]  ;;  %v7996_v10 = vld [vmem:[#allocation25 + $0x50] sm:$0xf] }
0x1321   : > { %v4940_v46 = vpop.permute.xlu0 %4939 }
0x1322   : > { %v4951_v55 = vmul.f32 %v4949_v57, %v4940_v46  ;;  %v8097_v46 = vor.u32 %v8948_v19, %v8096_v61  ;;  %v8156_v61 = vld [vmem:[#allocation25 + $0x190] sm:$0xf]  ;;  %v8963_v19 = vld [vmem:[#allocation25 + $0x1a0] sm:$0xf0] }
0x1324   : > { %v4953_v6 = vadd.f32 %v4951_v55, %v4948_v29  ;;  %6192 = vmatpush.bf16.msra.mxu2 %v8097_v46  ;;  %v8978_v55 = vld [vmem:[#allocation25 + $0x218] sm:$0xf0]  ;;  %v8556_v29 = vld [vmem:[#allocation25 + $0x4b0] sm:$0xf] }
0x1325   : > { %v4919_v8 = vpop.permute.xlu1 %4918 }
0x1326   : > { %v4930_v24 = vmul.f32 %v4928_v37, %v4919_v8  ;;  %v8077_v8 = vor.u32 %v8943_v49, %v8076_v63  ;;  %v9048_v63 = vld [vmem:[#allocation25 + $0x448] sm:$0xf0] }
0x1328   : > { %6193 = vmatpush.bf16.msra.mxu2 %v8077_v8  ;;  %v8376_v8 = vld [vmem:[#allocation25 + $0x348] sm:$0xf] }
0x1329   : > { %v4915_v47 = vpop.permute.xlu0 %4914 }
0x132a   : > { %v4922_v31 = vmul.f32 %v4920_v12, %v4915_v47  ;;  %v8056_v12 = vld [vmem:[#allocation25 + $0xc8] sm:$0xf] }
0x132b   : > { %v8057_v15 = vor.u32 %v8938_v7, %v8056_v12  ;;  %v8913_v12 = vld [vmem:[#allocation25 + $0x10] sm:$0xf0]  ;;  %v8157_v7 = vor.u32 %v8963_v19, %v8156_v61  ;;  %v8558_v19 = vld [vmem:[#allocation25 + $0x4c4] sm:$0xf0] }
0x132c   : > { %v4927_v33 = vadd.f32 %v4925_v9, %v4922_v31  ;;  %v8983_v9 = vld [vmem:[#allocation25 + $0x240] sm:$0xf0]  ;;  %v9061_v61 = vld [vmem:[#allocation25 + $0x4b4] sm:$0xf] }
0x132d   : > { %v4957_v38 = vpop.permute.xlu1 %4956  ;;  %6194 = vmatpush.bf16.msra.mxu2 %v8057_v15 }
0x132e   : > { %v4932_v27 = vadd.f32 %v4930_v24, %v4927_v33  ;;  %v4965_v52 = vmul.f32 %v4964_v43, %v4957_v38  ;;  %v8257_v43 = vor.u32 %v8988_v5, %v8256_v32  ;;  %v8576_v33 = vld [vmem:[#allocation25 + $0x4d8] sm:$0xf]  ;;  %v9018_v32 = vld [vmem:[#allocation25 + $0x358] sm:$0xf0] }
0x132f   : > { %v8577_v20 = vor.u32 %v9068_v41, %v8576_v33  ;;  %v8946_v5 = vld [vmem:[#allocation25 + $0x11c] sm:$0xf]  ;;  %v8377_v15 = vor.u32 %v9018_v32, %v8376_v8  ;;  %v9013_v33 = vld [vmem:[#allocation25 + $0x330] sm:$0xf0]  ;;  %v8971_v8 = vld [vmem:[#allocation25 + $0x1e4] sm:$0xf] }
0x1330   : > { %v4955_v42 = vadd.f32 %v4953_v6, %v4932_v27  ;;  %v4970_v13 = vadd.f32 %v4968_v56, %v4965_v52  ;;  %6205 = vmatpush.bf16.msra.mxu3 %v8257_v43  ;;  %v8037_v27 = vor.u32 %v8933_v60, %v8036_v25  ;;  %v9058_v6 = vld [vmem:[#allocation25 + $0x498] sm:$0xf0]  ;;  %v9028_v56 = vld [vmem:[#allocation25 + $0x3a8] sm:$0xf0]  ;;  %v8078_v60 = vld [vmem:[#allocation25 + $0x104] sm:$0xf0] }
0x1331   : > { %v4917_v1 = vpop.permute.xlu0 %4916  ;;  %v8958_v43 = vld [vmem:[#allocation25 + $0x178] sm:$0xf0]  ;;  %v8198_v32 = vld [vmem:[#allocation25 + $0x1f4] sm:$0xf0] }
0x1332   : > { %v4929_v0 = vmul.f32 %v4928_v37, %v4917_v1  ;;  %v8236_v37 = vld [vmem:[#allocation25 + $0x230] sm:$0xf]  ;;  %6195 = vmatpush.bf16.msra.mxu2 %v8037_v27  ;;  %v8336_v27 = vld [vmem:[#allocation25 + $0x2f8] sm:$0xf] }
0x1333   : > { %v8237_v57 = vor.u32 %v8983_v9, %v8236_v37  ;;  %v5103_v37 = vld [vmem:[#allocation24 + $0x8] sm:$0xf] }
0x1334   : > { %v4931_v22 = vadd.f32 %v4929_v0, %v4926_v16  ;;  %v8217_v0 = vor.u32 %v8978_v55, %v8216_v21  ;;  %v8928_v16 = vld [vmem:[#allocation25 + $0x88] sm:$0xf0]  ;;  %v8116_v21 = vld [vmem:[#allocation25 + $0x140] sm:$0xf]  ;;  %v8953_v55 = vld [vmem:[#allocation25 + $0x150] sm:$0xf0] }
0x1335   : > { %v4963_v2 = vpop.permute.xlu1 %4962  ;;  %6206 = vmatpush.bf16.msra.mxu3 %v8237_v57  ;;  %v9043_v57 = vld [vmem:[#allocation25 + $0x420] sm:$0xf0] }
0x1336   : > { %v4974_v48 = vmul.f32 %v9408_v44, %v4963_v2  ;;  %v4954_v4 = vadd.f32 %v4952_v17, %v4931_v22  ;;  %v8557_v2 = vor.u32 %v9063_v36, %v8556_v29  ;;  %v8923_v22 = vld [vmem:[#allocation25 + $0x60] sm:$0xf0]  ;;  %v5078_v17 = vld [vmem:[#allocation24 + $0x4] sm:$0xf]  ;;  %v8258_v29 = vld [vmem:[#allocation25 + $0x26c] sm:$0xf0] }
0x1337   : > { %v9038_v36 = vld [vmem:[#allocation25 + $0x3f8] sm:$0xf0] }
0x1338   : > { %v4976_v18 = vadd.f32 %v4974_v48, %v4971_v3  ;;  %v8536_v3 = vld [vmem:[#allocation25 + $0x488] sm:$0xf]  ;;  %v8416_v48 = vld [vmem:[#allocation25 + $0x398] sm:$0xf] }
0x1339   : > { %v4961_v54 = vpop.permute.xlu0 %4960  ;;  %6207 = vmatpush.bf16.msra.mxu3 %v8217_v0  ;;  %v9008_v0 = vld [vmem:[#allocation25 + $0x308] sm:$0xf0] }
0x133a   : > { %v4978_v23 = vadd.f32 %v4976_v18, %v4955_v42  ;;  %v4973_v40 = vmul.f32 %v9408_v44, %v4961_v54  ;;  %v5052_v44 = vld [vmem:[#allocation24] sm:$0xf]  ;;  %v8176_v18 = vld [vmem:[#allocation25 + $0x1b8] sm:$0xf]  ;;  %v8968_v54 = vld [vmem:[#allocation25 + $0x1c8] sm:$0xf0] }
0x133c   : > { %v4975_v14 = vadd.f32 %v4973_v40, %v4970_v13  ;;  %v8537_v13 = vor.u32 %v9058_v6, %v8536_v3  ;;  %v8417_v40 = vor.u32 %v9028_v56, %v8416_v48  ;;  %v8436_v6 = vld [vmem:[#allocation25 + $0x3c0] sm:$0xf]  ;;  %v8981_v48 = vld [vmem:[#allocation25 + $0x234] sm:$0xf]  ;;  %v8238_v56 = vld [vmem:[#allocation25 + $0x244] sm:$0xf0] }
0x133e   : > { %v4977_v59 = vadd.f32 %v4975_v14, %v4954_v4  ;;  %v9053_v4 = vld [vmem:[#allocation25 + $0x470] sm:$0xf0]  ;;  %v7997_v14 = vor.u32 %v8923_v22, %v7996_v10  ;;  %v8316_v22 = vld [vmem:[#allocation25 + $0x2d0] sm:$0xf] }
0x133f   : > { %v9033_v10 = vld [vmem:[#allocation25 + $0x3d0] sm:$0xf0] }
0x1340   : > { %v4979_v62 = vpack.c.bf16 %v4978_v23, %v4977_v59  ;;  %v8516_v23 = vld [vmem:[#allocation25 + $0x460] sm:$0xf]  ;;  %v8396_v59 = vld [vmem:[#allocation25 + $0x370] sm:$0xf] }
0x1342   : > { %5036 = vmatmul.bf16.vlgmr.msrb.gmra.mxu3 %v4979_v62  ;;  %v9023_v62 = vld [vmem:[#allocation25 + $0x380] sm:$0xf0] }
0x1343   : > { %v8397_v46 = vor.u32 %v9023_v62, %v8396_v59  ;;  %v8976_v59 = vld [vmem:[#allocation25 + $0x20c] sm:$0xf]  ;;  %v8218_v62 = vld [vmem:[#allocation25 + $0x21c] sm:$0xf0] }
0x13c5   : > { %v5037_v45 = vpop.f32.mrf.mxu3 }
0x13c6   : > { %v5043_v34 = vmul.f32 %v5042_v39, %v5037_v45  ;;  %v8918_v45 = vld [vmem:[#allocation25 + $0x38] sm:$0xf0] }
0x13c7   : > { %v7977_v49 = vor.u32 %v8918_v45, %v7976_v28  ;;  %v8296_v45 = vld [vmem:[#allocation25 + $0x2a8] sm:$0xf] }
0x13c8   : > { %v5046_v31 = vadd.f32 %v5045_v50, %v5043_v34  ;;  %v8517_v34 = vor.u32 %v9053_v4, %v8516_v23  ;;  %v8038_v23 = vld [vmem:[#allocation25 + $0xb4] sm:$0xf0]  ;;  %v8437_v4 = vor.u32 %v9033_v10, %v8436_v6  ;;  %v8911_v10 = vld [vmem:[#allocation25 + $0x4] sm:$0xf] }
0x13ca   : > { %v5048_v58 = vmax.f32 %v5046_v31, 0.0  ;;  %v8098_v31 = vld [vmem:[#allocation25 + $0x12c] sm:$0xf0] }
0x13cb   : > { %v8101_v41 = vor.u32 %v8946_v5, %v8098_v31  ;;  %v8993_v5 = vld [vmem:[#allocation25 + $0x290] sm:$0xf0]  ;;  %v8538_v31 = vld [vmem:[#allocation25 + $0x49c] sm:$0xf0] }
0x13cc   : > { %v5050_v24 = vadd.f32 %v5048_v58, %v12164_v11  ;;  %v8973_v11 = vld [vmem:[#allocation25 + $0x1f0] sm:$0xf0] }
0x13cd   : > { %v5039_v47 = vpop.f32.mrf.mxu3  ;;  %v8197_v42 = vor.u32 %v8973_v11, %v8196_v53  ;;  %v8936_v53 = vld [vmem:[#allocation25 + $0xcc] sm:$0xf]  ;;  %v8058_v11 = vld [vmem:[#allocation25 + $0xdc] sm:$0xf0] }
0x13ce   : > { %v5044_v38 = vmul.f32 %v5042_v39, %v5039_v47  ;;  %v8177_v39 = vor.u32 %v8968_v54, %v8176_v18  ;;  %v7956_v47 = vld [vmem:[#allocation25] sm:$0xf]  ;;  %v9066_v18 = vld [vmem:[#allocation25 + $0x4dc] sm:$0xf]  ;;  %v8578_v54 = vld [vmem:[#allocation25 + $0x4ec] sm:$0xf0] }
0x13cf   : > { %6208 = vmatpush.bf16.msra.mxu3 %v8197_v42  ;;  %v7957_v58 = vor.u32 %v8913_v12, %v7956_v47  ;;  %v9003_v42 = vld [vmem:[#allocation25 + $0x2e0] sm:$0xf0]  ;;  %v8581_v28 = vor.u32 %v9066_v18, %v8578_v54  ;;  %v8561_v47 = vor.u32 %v9061_v61, %v8558_v19  ;;  %v9056_v12 = vld [vmem:[#allocation25 + $0x48c] sm:$0xf]  ;;  %v8158_v54 = vld [vmem:[#allocation25 + $0x1a4] sm:$0xf0] }
0x13d0   : > { %v5047_v51 = vadd.f32 %v5045_v50, %v5044_v38  ;;  %v8496_v50 = vld [vmem:[#allocation25 + $0x438] sm:$0xf]  ;;  %v8136_v38 = vld [vmem:[#allocation25 + $0x168] sm:$0xf]  ;;  %v8338_v61 = vld [vmem:[#allocation25 + $0x30c] sm:$0xf0] }
0x13d1   : > { %v8497_v9 = vor.u32 %v9048_v63, %v8496_v50  ;;  %v8137_v25 = vor.u32 %v8958_v43, %v8136_v38  ;;  %v8926_v50 = vld [vmem:[#allocation25 + $0x7c] sm:$0xf]  ;;  %v8221_v63 = vor.u32 %v8976_v59, %v8218_v62  ;;  %v8956_v62 = vld [vmem:[#allocation25 + $0x16c] sm:$0xf] }
0x13d2   : > { %v5049_v26 = vmax.f32 %v5047_v51, 0.0  ;;  %v8476_v51 = vld [vmem:[#allocation25 + $0x410] sm:$0xf]  ;;  %v9026_v43 = vld [vmem:[#allocation25 + $0x39c] sm:$0xf] }
0x13d3   : > { %6209 = vmatpush.bf16.msra.mxu3 %v8177_v39  ;;  %v8998_v39 = vld [vmem:[#allocation25 + $0x2b8] sm:$0xf0] }
0x13d4   : > { %v5051_v1 = vadd.f32 %v5049_v26, %v12171_v35  ;;  %v8016_v35 = vld [vmem:[#allocation25 + $0x78] sm:$0xf]  ;;  %v8356_v26 = vld [vmem:[#allocation25 + $0x320] sm:$0xf] }
0x13d5   : > { %v8017_v52 = vor.u32 %v8928_v16, %v8016_v35  ;;  %v8117_v16 = vor.u32 %v8953_v55, %v8116_v21  ;;  %v9021_v21 = vld [vmem:[#allocation25 + $0x374] sm:$0xf]  ;;  %v8398_v55 = vld [vmem:[#allocation25 + $0x384] sm:$0xf0] }
0x13d6   : > { %5071 = vmatpush.msra.mxu0 %v5051_v1  ;;  %5146 = vmatpush.msra.mxu1 %v5051_v1 }
0x13d7   : > { %6196 = vmatpush.bf16.msra.mxu2 %v8017_v52  ;;  %6210 = vmatpush.bf16.msra.mxu3 %v8157_v7  ;;  %v8337_v52 = vor.u32 %v9008_v0, %v8336_v27  ;;  %v8276_v7 = vld [vmem:[#allocation25 + $0x280] sm:$0xf]  ;;  %v8498_v27 = vld [vmem:[#allocation25 + $0x44c] sm:$0xf0] }
0x13d8   : > { %5072 = vmatpush.msra.mxu0 %v5050_v24  ;;  %5147 = vmatpush.msra.mxu1 %v5050_v24 }
0x13d9   : > { %7950 = vmatmul.msk.f32.vlgmr.msra.gmra.mxu0 %vm5053_vm0, %v5052_v44  ;;  %7953 = vmatmul.msk.f32.vlgmr.msra.gmra.mxu1 %vm5053_vm0, %v5128_v30  ;;  %v8456_v44 = vld [vmem:[#allocation25 + $0x3e8] sm:$0xf]  ;;  %v8357_v30 = vor.u32 %v9013_v33, %v8356_v26  ;;  %v8178_v26 = vld [vmem:[#allocation25 + $0x1cc] sm:$0xf0]  ;;  %v8541_v33 = vor.u32 %v9056_v12, %v8538_v31 }
0x13da   : > { %5096 = vmatpush.msrb.mxu0 %v5051_v1  ;;  %6231 = vmatpush.bf16.msrb.mxu1 %v8577_v20  ;;  %v8986_v20 = vld [vmem:[#allocation25 + $0x25c] sm:$0xf]  ;;  %v8457_v3 = vor.u32 %v9038_v36, %v8456_v44  ;;  %v7978_v44 = vld [vmem:[#allocation25 + $0x3c] sm:$0xf0]  ;;  %v8401_v36 = vor.u32 %v9021_v21, %v8398_v55 }
0x13db   : > { %6197 = vmatpush.bf16.msra.mxu2 %v7997_v14  ;;  %6211 = vmatpush.bf16.msra.mxu3 %v8137_v25  ;;  %v8317_v14 = vor.u32 %v9003_v42, %v8316_v22  ;;  %v7958_v22 = vld [vmem:[#allocation25 + $0x14] sm:$0xf0]  ;;  %v8961_v42 = vld [vmem:[#allocation25 + $0x194] sm:$0xf] }
0x13dc   : > { %5097 = vmatpush.msrb.mxu0 %v5050_v24  ;;  %v7961_v18 = vor.u32 %v8911_v10, %v7958_v22 }
0x13de   : > { %5121 = vmatpush.msra.mxu0 %v5051_v1  ;;  %6232 = vmatpush.bf16.msrb.mxu1 %v8557_v2  ;;  %v8941_v1 = vld [vmem:[#allocation25 + $0xf4] sm:$0xf]  ;;  %v8261_v2 = vor.u32 %v8986_v20, %v8258_v29  ;;  %v9046_v29 = vld [vmem:[#allocation25 + $0x43c] sm:$0xf] }
0x13df   : > { %6198 = vmatpush.bf16.msra.mxu2 %v7977_v49  ;;  %v8081_v35 = vor.u32 %v8941_v1, %v8078_v60  ;;  %6212 = vmatpush.bf16.msra.mxu3 %v8117_v16  ;;  %v8297_v49 = vor.u32 %v8998_v39, %v8296_v45  ;;  %v8518_v1 = vld [vmem:[#allocation25 + $0x474] sm:$0xf0]  ;;  %v8378_v16 = vld [vmem:[#allocation25 + $0x35c] sm:$0xf0]  ;;  %v9006_v45 = vld [vmem:[#allocation25 + $0x2fc] sm:$0xf] }
0x13e0   : > { %5122 = vmatpush.msra.mxu0 %v5050_v24  ;;  %v8477_v24 = vor.u32 %v9043_v57, %v8476_v51  ;;  %v7998_v51 = vld [vmem:[#allocation25 + $0x64] sm:$0xf0]  ;;  %v8277_v57 = vor.u32 %v8993_v5, %v8276_v7  ;;  %v8341_v19 = vor.u32 %v9006_v45, %v8338_v61  ;;  %v8991_v7 = vld [vmem:[#allocation25 + $0x284] sm:$0xf]  ;;  %v8278_v5 = vld [vmem:[#allocation25 + $0x294] sm:$0xf0] }
0x13e1   : > { %7951 = vmatmul.msk.f32.vlgmr.msrb.gmra.mxu0 %vm5053_vm0, %v5078_v17  ;;  %v8061_v17 = vor.u32 %v8936_v53, %v8058_v11  ;;  %v8501_v53 = vor.u32 %v9046_v29, %v8498_v27  ;;  %v8281_v31 = vor.u32 %v8991_v7, %v8278_v5  ;;  %v8544_v29 = vld [vmem:[#allocation25 + $0x490] sm:$0xf]  ;;  %v8924_v61 = vld [vmem:[#allocation25 + $0x68] sm:$0xf0]  ;;  %v8919_v5 = vld [vmem:[#allocation25 + $0x40] sm:$0xf0] }
0x13e2   : > { %6233 = vmatpush.bf16.msrb.mxu1 %v8537_v13  ;;  %6218 = vmatpush.bf16.msrb.mxu0 %v8417_v40  ;;  %v8931_v13 = vld [vmem:[#allocation25 + $0xa4] sm:$0xf]  ;;  %v8241_v40 = vor.u32 %v8981_v48, %v8238_v56  ;;  %v8458_v48 = vld [vmem:[#allocation25 + $0x3fc] sm:$0xf0]  ;;  %v7984_v7 = vld [vmem:[#allocation25 + $0x30] sm:$0xf] }
0x13e3   : > { %6199 = vmatpush.bf16.msra.mxu2 %v7957_v58  ;;  %6257 = vmatpush.bf16.msrb.mxu3 %v8261_v2  ;;  %v8966_v58 = vld [vmem:[#allocation25 + $0x1bc] sm:$0xf]  ;;  %v9041_v2 = vld [vmem:[#allocation25 + $0x414] sm:$0xf] }
0x13e6   : > { %6234 = vmatpush.bf16.msrb.mxu1 %v8517_v34  ;;  %6219 = vmatpush.bf16.msrb.mxu0 %v8397_v46  ;;  %v8041_v34 = vor.u32 %v8931_v13, %v8038_v23  ;;  %v8018_v46 = vld [vmem:[#allocation25 + $0x8c] sm:$0xf0]  ;;  %v8358_v13 = vld [vmem:[#allocation25 + $0x334] sm:$0xf0]  ;;  %v8161_v23 = vor.u32 %v8961_v42, %v8158_v54  ;;  %v8024_v42 = vld [vmem:[#allocation25 + $0x80] sm:$0xf] }
0x13e7   : > { %6244 = vmatpush.bf16.msrb.mxu2 %v8101_v41  ;;  %6258 = vmatpush.bf16.msrb.mxu3 %v8241_v40  ;;  %v8021_v38 = vor.u32 %v8926_v50, %v8018_v46  ;;  %v9051_v41 = vld [vmem:[#allocation25 + $0x464] sm:$0xf]  ;;  %v8118_v50 = vld [vmem:[#allocation25 + $0x154] sm:$0xf0]  ;;  %v9001_v46 = vld [vmem:[#allocation25 + $0x2d4] sm:$0xf] }
0x13e8   : > { %v8521_v20 = vor.u32 %v9051_v41, %v8518_v1  ;;  %v8564_v1 = vld [vmem:[#allocation25 + $0x4b8] sm:$0xf]  ;;  %v8224_v54 = vld [vmem:[#allocation25 + $0x210] sm:$0xf] }
0x13e9   : > { %7952 = vmatmul.msk.f32.vlgmr.msra.gmra.mxu0 %vm5053_vm0, %v5103_v37  ;;  %v8418_v37 = vld [vmem:[#allocation25 + $0x3ac] sm:$0xf0] }
0x13ea   : > { %6235 = vmatpush.bf16.msrb.mxu1 %v8497_v9  ;;  %6220 = vmatpush.bf16.msrb.mxu0 %v8377_v15  ;;  %v8921_v9 = vld [vmem:[#allocation25 + $0x54] sm:$0xf]  ;;  %v8201_v15 = vor.u32 %v8971_v8, %v8198_v32  ;;  %v8421_v25 = vor.u32 %v9026_v43, %v8418_v37  ;;  %v8996_v32 = vld [vmem:[#allocation25 + $0x2ac] sm:$0xf]  ;;  %v8584_v37 = vld [vmem:[#allocation25 + $0x4e0] sm:$0xf] }
0x13eb   : > { %6245 = vmatpush.bf16.msrb.mxu2 %v8081_v35  ;;  %6259 = vmatpush.bf16.msrb.mxu3 %v8221_v63  ;;  %v8001_v60 = vor.u32 %v8921_v9, %v7998_v51  ;;  %v9016_v35 = vld [vmem:[#allocation25 + $0x34c] sm:$0xf]  ;;  %v8949_v43 = vld [vmem:[#allocation25 + $0x130] sm:$0xf0] }
0x13ec   : > { %v8381_v11 = vor.u32 %v9016_v35, %v8378_v16  ;;  %v9069_v9 = vld [vmem:[#allocation25 + $0x4f0] sm:$0xf0]  ;;  %v8044_v16 = vld [vmem:[#allocation25 + $0xa8] sm:$0xf] }
0x13ee   : > { %6236 = vmatpush.bf16.msrb.mxu1 %v8477_v24  ;;  %6221 = vmatpush.bf16.msrb.mxu0 %v8357_v30  ;;  %v8916_v24 = vld [vmem:[#allocation25 + $0x2c] sm:$0xf]  ;;  %v8181_v30 = vor.u32 %v8966_v58, %v8178_v26  ;;  %v8585_v58 = vor.u32 %v9069_v9, %v8584_v37  ;;  %v8084_v26 = vld [vmem:[#allocation25 + $0xf8] sm:$0xf]  ;;  %v8384_v37 = vld [vmem:[#allocation25 + $0x350] sm:$0xf] }
0x13ef   : > { %6246 = vmatpush.bf16.msrb.mxu2 %v8061_v17  ;;  %6260 = vmatpush.bf16.msrb.mxu3 %v8201_v15  ;;  %v7981_v0 = vor.u32 %v8916_v24, %v7978_v44  ;;  %v9011_v17 = vld [vmem:[#allocation25 + $0x324] sm:$0xf]  ;;  %v8064_v24 = vld [vmem:[#allocation25 + $0xd0] sm:$0xf] }
0x13f0   : > { %v8361_v40 = vor.u32 %v9011_v17, %v8358_v13  ;;  %v8939_v44 = vld [vmem:[#allocation25 + $0xe0] sm:$0xf0]  ;;  %v8424_v13 = vld [vmem:[#allocation25 + $0x3a0] sm:$0xf] }
0x13f1   : > { %v8979_v17 = vld [vmem:[#allocation25 + $0x220] sm:$0xf0] }
0x13f2   : > { %6237 = vmatpush.bf16.msrb.mxu1 %v8457_v3  ;;  %6222 = vmatpush.bf16.msrb.mxu0 %v8337_v52  ;;  %v8478_v3 = vld [vmem:[#allocation25 + $0x424] sm:$0xf0]  ;;  %v9036_v52 = vld [vmem:[#allocation25 + $0x3ec] sm:$0xf]  ;;  %v9019_v9 = vld [vmem:[#allocation25 + $0x360] sm:$0xf0] }
0x13f3   : > { %6247 = vmatpush.bf16.msrb.mxu2 %v8041_v34  ;;  %6261 = vmatpush.bf16.msrb.mxu3 %v8181_v30  ;;  %v8481_v6 = vor.u32 %v9041_v2, %v8478_v3  ;;  %v8461_v56 = vor.u32 %v9036_v52, %v8458_v48  ;;  %v8951_v34 = vld [vmem:[#allocation25 + $0x144] sm:$0xf]  ;;  %v8264_v30 = vld [vmem:[#allocation25 + $0x260] sm:$0xf]  ;;  %v8934_v2 = vld [vmem:[#allocation25 + $0xb8] sm:$0xf0] }
0x13f4   : > { %v8121_v63 = vor.u32 %v8951_v34, %v8118_v50  ;;  %v8244_v3 = vld [vmem:[#allocation25 + $0x238] sm:$0xf]  ;;  %v8524_v52 = vld [vmem:[#allocation25 + $0x468] sm:$0xf]  ;;  %v9054_v48 = vld [vmem:[#allocation25 + $0x478] sm:$0xf0] }
0x13f5   : > { %v8525_v22 = vor.u32 %v9054_v48, %v8524_v52  ;;  %v8974_v50 = vld [vmem:[#allocation25 + $0x1f8] sm:$0xf0]  ;;  %v8959_v52 = vld [vmem:[#allocation25 + $0x180] sm:$0xf0]  ;;  %v8344_v48 = vld [vmem:[#allocation25 + $0x300] sm:$0xf] }
0x13f6   : > { %6238 = vmatpush.bf16.msrb.mxu1 %v8437_v4  ;;  %6223 = vmatpush.bf16.msrb.mxu0 %v8317_v14  ;;  %v9031_v4 = vld [vmem:[#allocation25 + $0x3c4] sm:$0xf]  ;;  %v8438_v14 = vld [vmem:[#allocation25 + $0x3d4] sm:$0xf0] }
0x13f7   : > { %6248 = vmatpush.bf16.msrb.mxu2 %v8021_v38  ;;  %v8441_v59 = vor.u32 %v9031_v4, %v8438_v14  ;;  %6262 = vmatpush.bf16.msrb.mxu3 %v8161_v23  ;;  %v8104_v38 = vld [vmem:[#allocation25 + $0x120] sm:$0xf]  ;;  %v9029_v23 = vld [vmem:[#allocation25 + $0x3b0] sm:$0xf0] }
0x13f8   : > { %v9049_v4 = vld [vmem:[#allocation25 + $0x450] sm:$0xf0]  ;;  %v8425_v45 = vor.u32 %v9029_v23, %v8424_v13  ;;  %v8124_v23 = vld [vmem:[#allocation25 + $0x148] sm:$0xf] }
0x13fa   : > { %6283 = vmatpush.bf16.msra.mxu1 %v8581_v28  ;;  %6224 = vmatpush.bf16.msrb.mxu0 %v8297_v49  ;;  %v8138_v28 = vld [vmem:[#allocation25 + $0x17c] sm:$0xf0]  ;;  %v8318_v49 = vld [vmem:[#allocation25 + $0x2e4] sm:$0xf0] }
0x13fb   : > { %6249 = vmatpush.bf16.msrb.mxu2 %v8001_v60  ;;  %v8141_v39 = vor.u32 %v8956_v62, %v8138_v28  ;;  %v8321_v8 = vor.u32 %v9001_v46, %v8318_v49  ;;  %v9064_v60 = vld [vmem:[#allocation25 + $0x4c8] sm:$0xf0]  ;;  %v8225_v28 = vor.u32 %v8979_v17, %v8224_v54  ;;  %v8404_v46 = vld [vmem:[#allocation25 + $0x378] sm:$0xf]  ;;  %v8566_v54 = vld [vmem:[#allocation25 + $0x4cc] sm:$0xf0] }
0x13fc   : > { %v8565_v55 = vor.u32 %v9064_v60, %v8564_v1  ;;  %v8484_v49 = vld [vmem:[#allocation25 + $0x418] sm:$0xf]  ;;  %v8914_v1 = vld [vmem:[#allocation25 + $0x18] sm:$0xf0] }
0x13fd   : > { %6263 = vmatpush.bf16.msrb.mxu3 %v8141_v39  ;;  %v8004_v39 = vld [vmem:[#allocation25 + $0x58] sm:$0xf] }
0x13fe   : > { %6284 = vmatpush.bf16.msra.mxu1 %v8561_v47  ;;  %6225 = vmatpush.bf16.msrb.mxu0 %v8277_v57  ;;  %v8298_v47 = vld [vmem:[#allocation25 + $0x2bc] sm:$0xf0]  ;;  %v8105_v57 = vor.u32 %v8949_v43, %v8104_v38  ;;  %v8969_v43 = vld [vmem:[#allocation25 + $0x1d0] sm:$0xf0]  ;;  %v8164_v60 = vld [vmem:[#allocation25 + $0x198] sm:$0xf] }
0x13ff   : > { %6250 = vmatpush.bf16.msrb.mxu2 %v7981_v0  ;;  %v8301_v12 = vor.u32 %v8996_v32, %v8298_v47  ;;  %v8065_v0 = vor.u32 %v8939_v44, %v8064_v24  ;;  %v8005_v32 = vor.u32 %v8924_v61, %v8004_v39  ;;  %v8364_v24 = vld [vmem:[#allocation25 + $0x328] sm:$0xf]  ;;  %v9014_v44 = vld [vmem:[#allocation25 + $0x338] sm:$0xf0]  ;;  %v8987_v61 = vld [vmem:[#allocation25 + $0x264] sm:$0xf] }
0x1400   : > { %v8066_v39 = vld [vmem:[#allocation25 + $0xe4] sm:$0xf0] }
0x1401   : > { %6264 = vmatpush.bf16.msrb.mxu3 %v8121_v63  ;;  %v9024_v63 = vld [vmem:[#allocation25 + $0x388] sm:$0xf0] }
0x1402   : > { %6285 = vmatpush.bf16.msra.mxu1 %v8541_v33  ;;  %6270 = vmatpush.bf16.msra.mxu0 %v8421_v25  ;;  %v8944_v25 = vld [vmem:[#allocation25 + $0x108] sm:$0xf0] }
0x1403   : > { %6251 = vmatpush.bf16.msrb.mxu2 %v7961_v18  ;;  %v8085_v21 = vor.u32 %v8944_v25, %v8084_v26  ;;  %v8929_v18 = vld [vmem:[#allocation25 + $0x90] sm:$0xf0]  ;;  %v8385_v25 = vor.u32 %v9019_v9, %v8384_v37  ;;  %v8526_v37 = vld [vmem:[#allocation25 + $0x47c] sm:$0xf0] }
0x1406   : > { %6286 = vmatpush.bf16.msra.mxu1 %v8521_v20  ;;  %6271 = vmatpush.bf16.msra.mxu0 %v8401_v36  ;;  %v8989_v20 = vld [vmem:[#allocation25 + $0x270] sm:$0xf0]  ;;  %v9059_v36 = vld [vmem:[#allocation25 + $0x4a0] sm:$0xf0] }
0x1407   : > { %v8265_v35 = vor.u32 %v8989_v20, %v8264_v30  ;;  %v8444_v30 = vld [vmem:[#allocation25 + $0x3c8] sm:$0xf]  ;;  %v9034_v20 = vld [vmem:[#allocation25 + $0x3d8] sm:$0xf0] }
0x140a   : > { %6287 = vmatpush.bf16.msra.mxu1 %v8501_v53  ;;  %6272 = vmatpush.bf16.msra.mxu0 %v8381_v11  ;;  %v8545_v11 = vor.u32 %v9059_v36, %v8544_v29  ;;  %v8947_v29 = vld [vmem:[#allocation25 + $0x124] sm:$0xf]  ;;  %v8106_v36 = vld [vmem:[#allocation25 + $0x134] sm:$0xf0] }
0x140e   : > { %6288 = vmatpush.bf16.msra.mxu1 %v8481_v6  ;;  %6273 = vmatpush.bf16.msra.mxu0 %v8361_v40  ;;  %v8984_v6 = vld [vmem:[#allocation25 + $0x248] sm:$0xf0]  ;;  %v8504_v40 = vld [vmem:[#allocation25 + $0x440] sm:$0xf] }
0x140f   : > { %v8245_v10 = vor.u32 %v8984_v6, %v8244_v3  ;;  %v8505_v34 = vor.u32 %v9049_v4, %v8504_v40  ;;  %v8445_v3 = vor.u32 %v9034_v20, %v8444_v30  ;;  %v8109_v6 = vor.u32 %v8947_v29, %v8106_v36  ;;  %v8954_v40 = vld [vmem:[#allocation25 + $0x158] sm:$0xf0]  ;;  %v8506_v30 = vld [vmem:[#allocation25 + $0x454] sm:$0xf0] }
0x1412   : > { %6289 = vmatpush.bf16.msra.mxu1 %v8461_v56  ;;  %6274 = vmatpush.bf16.msra.mxu0 %v8341_v19  ;;  %v8045_v56 = vor.u32 %v8934_v2, %v8044_v16  ;;  %v8204_v19 = vld [vmem:[#allocation25 + $0x1e8] sm:$0xf]  ;;  %v8144_v2 = vld [vmem:[#allocation25 + $0x170] sm:$0xf] }
0x1413   : > { %v8205_v47 = vor.u32 %v8974_v50, %v8204_v19  ;;  %v8145_v17 = vor.u32 %v8959_v52, %v8144_v2  ;;  %v8266_v19 = vld [vmem:[#allocation25 + $0x274] sm:$0xf0]  ;;  %v8546_v50 = vld [vmem:[#allocation25 + $0x4a4] sm:$0xf0]  ;;  %v8206_v2 = vld [vmem:[#allocation25 + $0x1fc] sm:$0xf0] }
0x1414   : > { %v9042_v52 = vld [vmem:[#allocation25 + $0x41c] sm:$0xf] }
0x1416   : > { %6290 = vmatpush.bf16.msra.mxu1 %v8441_v59  ;;  %6275 = vmatpush.bf16.msra.mxu0 %v8321_v8  ;;  %v8025_v59 = vor.u32 %v8929_v18, %v8024_v42  ;;  %v9044_v8 = vld [vmem:[#allocation25 + $0x428] sm:$0xf0]  ;;  %v8086_v42 = vld [vmem:[#allocation25 + $0x10c] sm:$0xf0]  ;;  %v9062_v18 = vld [vmem:[#allocation25 + $0x4bc] sm:$0xf] }
0x1417   : > { %v8485_v38 = vor.u32 %v9044_v8, %v8484_v49  ;;  %v8269_v8 = vor.u32 %v8987_v61, %v8266_v19  ;;  %v8962_v61 = vld [vmem:[#allocation25 + $0x19c] sm:$0xf] }
0x141a   : > { %6276 = vmatpush.bf16.msra.mxu0 %v8301_v12  ;;  %v8405_v12 = vor.u32 %v9024_v63, %v8404_v46  ;;  %v8125_v46 = vor.u32 %v8954_v40, %v8124_v23  ;;  %v9017_v23 = vld [vmem:[#allocation25 + $0x354] sm:$0xf]  ;;  %v8386_v40 = vld [vmem:[#allocation25 + $0x364] sm:$0xf0] }
0x141b   : > { %v8389_v19 = vor.u32 %v9017_v23, %v8386_v40  ;;  %v9055_v23 = vld [vmem:[#allocation25 + $0x480] sm:$0xf0] }
0x141e   : > { %6277 = vmatpush.bf16.msra.mxu0 %v8281_v31  ;;  %v8184_v31 = vld [vmem:[#allocation25 + $0x1c0] sm:$0xf] }
0x141f   : > { %v8185_v26 = vor.u32 %v8969_v43, %v8184_v31  ;;  %v8982_v31 = vld [vmem:[#allocation25 + $0x23c] sm:$0xf]  ;;  %v9052_v43 = vld [vmem:[#allocation25 + $0x46c] sm:$0xf] }
0x1456   : > { %v5074_v51 = vpop.f32.mrf.mxu0  ;;  %v5149_v15 = vpop.f32.mrf.mxu1 }
0x1457   : > { %v12228_v33 = vpack.c.bf16 %v5074_v51, %v5074_v51  ;;  %v12230_v41 = vpack.c.bf16 %v5149_v15, %v5149_v15  ;;  %v8464_v51 = vld [vmem:[#allocation25 + $0x3f0] sm:$0xf]  ;;  %v9039_v15 = vld [vmem:[#allocation25 + $0x400] sm:$0xf0] }
0x1459   : > { %6200 = vmatmul.bf16.vlgmr.msra.gmra.mxu2 %v12228_v33  ;;  %6239 = vmatmul.bf16.vlgmr.msrb.gmra.mxu1 %v12230_v41 }
0x145a   : > { %6296 = vmatpush.bf16.msra.mxu2 %v8105_v57  ;;  %6335 = vmatpush.bf16.msrb.mxu1 %v8585_v58  ;;  %v7985_v57 = vor.u32 %v8919_v5, %v7984_v7  ;;  %v7964_v58 = vld [vmem:[#allocation25 + $0x8] sm:$0xf]  ;;  %v8046_v5 = vld [vmem:[#allocation25 + $0xbc] sm:$0xf0] }
0x145e   : > { %6297 = vmatpush.bf16.msra.mxu2 %v8085_v21  ;;  %6336 = vmatpush.bf16.msrb.mxu1 %v8565_v55  ;;  %v5099_v27 = vpop.f32.mrf.mxu0  ;;  %v8964_v21 = vld [vmem:[#allocation25 + $0x1a8] sm:$0xf0]  ;;  %v8465_v55 = vor.u32 %v9039_v15, %v8464_v51  ;;  %v8284_v51 = vld [vmem:[#allocation25 + $0x288] sm:$0xf] }
0x145f   : > { %v12234_v53 = vpack.c.bf16 %v5099_v27, %v5099_v27  ;;  %v7965_v27 = vor.u32 %v8914_v1, %v7964_v58  ;;  %v8165_v16 = vor.u32 %v8964_v21, %v8164_v60  ;;  %v8994_v58 = vld [vmem:[#allocation25 + $0x298] sm:$0xf0]  ;;  %v8529_v1 = vor.u32 %v9052_v43, %v8526_v37  ;;  %v8977_v60 = vld [vmem:[#allocation25 + $0x214] sm:$0xf]  ;;  %v8226_v21 = vld [vmem:[#allocation25 + $0x224] sm:$0xf0] }
0x1460   : > { %v8285_v20 = vor.u32 %v8994_v58, %v8284_v51  ;;  %v8229_v36 = vor.u32 %v8977_v60, %v8226_v21  ;;  %v8957_v37 = vld [vmem:[#allocation25 + $0x174] sm:$0xf]  ;;  %v8346_v58 = vld [vmem:[#allocation25 + $0x314] sm:$0xf0] }
0x1461   : > { %6213 = vmatmul.bf16.vlgmr.msra.gmra.mxu3 %v12234_v53  ;;  %v9065_v60 = vld [vmem:[#allocation25 + $0x4d0] sm:$0xf0] }
0x1462   : > { %6298 = vmatpush.bf16.msra.mxu2 %v8065_v0  ;;  %6309 = vmatpush.bf16.msra.mxu3 %v8265_v35  ;;  %v9067_v0 = vld [vmem:[#allocation25 + $0x4e4] sm:$0xf]  ;;  %v8586_v35 = vld [vmem:[#allocation25 + $0x4f4] sm:$0xf0] }
0x1463   : > { %6337 = vmatpush.bf16.msrb.mxu1 %v8545_v11  ;;  %v8365_v11 = vor.u32 %v9014_v44, %v8364_v24  ;;  %v8426_v24 = vld [vmem:[#allocation25 + $0x3b4] sm:$0xf0]  ;;  %v9047_v44 = vld [vmem:[#allocation25 + $0x444] sm:$0xf] }
0x1466   : > { %6299 = vmatpush.bf16.msra.mxu2 %v8045_v56  ;;  %6310 = vmatpush.bf16.msra.mxu3 %v8245_v10  ;;  %v5124_v14 = vpop.f32.mrf.mxu0  ;;  %v9009_v56 = vld [vmem:[#allocation25 + $0x310] sm:$0xf0]  ;;  %v8589_v10 = vor.u32 %v9067_v0, %v8586_v35  ;;  %v8006_v0 = vld [vmem:[#allocation25 + $0x6c] sm:$0xf0] }
0x1467   : > { %6338 = vmatpush.bf16.msrb.mxu1 %v8525_v22  ;;  %v12237_v62 = vpack.c.bf16 %v5124_v14, %v5124_v14  ;;  %v8942_v22 = vld [vmem:[#allocation25 + $0xfc] sm:$0xf]  ;;  %v8345_v13 = vor.u32 %v9009_v56, %v8344_v48  ;;  %v8324_v14 = vld [vmem:[#allocation25 + $0x2d8] sm:$0xf]  ;;  %v8486_v48 = vld [vmem:[#allocation25 + $0x42c] sm:$0xf0] }
0x1468   : > { %v8089_v4 = vor.u32 %v8942_v22, %v8086_v42  ;;  %v8917_v22 = vld [vmem:[#allocation25 + $0x34] sm:$0xf]  ;;  %v7986_v42 = vld [vmem:[#allocation25 + $0x44] sm:$0xf0] }
0x1469   : > { %6226 = vmatmul.bf16.vlgmr.msrb.gmra.mxu0 %v12237_v62  ;;  %6252 = vmatmul.bf16.vlgmr.msrb.gmra.mxu2 %v12228_v33 }
0x146a   : > { %6291 = vmatmul.bf16.vlgmr.msra.gmra.mxu1 %v12230_v41  ;;  %6300 = vmatpush.bf16.msra.mxu2 %v8025_v59  ;;  %v9004_v59 = vld [vmem:[#allocation25 + $0x2e8] sm:$0xf0] }
0x146b   : > { %6311 = vmatpush.bf16.msra.mxu3 %v8225_v28  ;;  %6322 = vmatpush.bf16.msrb.mxu0 %v8425_v45  ;;  %v8937_v28 = vld [vmem:[#allocation25 + $0xd4] sm:$0xf]  ;;  %v8569_v45 = vor.u32 %v9062_v18, %v8566_v54  ;;  %v8325_v63 = vor.u32 %v9004_v59, %v8324_v14  ;;  %v8489_v54 = vor.u32 %v9042_v52, %v8486_v48  ;;  %v8466_v14 = vld [vmem:[#allocation25 + $0x404] sm:$0xf0] }
0x146c   : > { %6339 = vmatpush.bf16.msrb.mxu1 %v8505_v34  ;;  %v9057_v34 = vld [vmem:[#allocation25 + $0x494] sm:$0xf]  ;;  %v8069_v49 = vor.u32 %v8937_v28, %v8066_v39  ;;  %v7989_v59 = vor.u32 %v8917_v22, %v7986_v42  ;;  %v7966_v39 = vld [vmem:[#allocation25 + $0x1c] sm:$0xf0]  ;;  %v8052_v42 = vld [vmem:[#allocation25 + $0xb0] sm:$0xf] }
0x146d   : > { %v8549_v7 = vor.u32 %v9057_v34, %v8546_v50  ;;  %v8166_v50 = vld [vmem:[#allocation25 + $0x1ac] sm:$0xf0]  ;;  %v8997_v48 = vld [vmem:[#allocation25 + $0x2b4] sm:$0xf] }
0x146e   : > { %6301 = vmatpush.bf16.msra.mxu2 %v8005_v32  ;;  %v8304_v32 = vld [vmem:[#allocation25 + $0x2b0] sm:$0xf] }
0x146f   : > { %6312 = vmatpush.bf16.msra.mxu3 %v8205_v47  ;;  %6323 = vmatpush.bf16.msrb.mxu0 %v8405_v12  ;;  %v8999_v47 = vld [vmem:[#allocation25 + $0x2c0] sm:$0xf0]  ;;  %v8932_v12 = vld [vmem:[#allocation25 + $0xac] sm:$0xf] }
0x1470   : > { %6340 = vmatpush.bf16.msrb.mxu1 %v8485_v38  ;;  %v8246_v38 = vld [vmem:[#allocation25 + $0x24c] sm:$0xf0]  ;;  %v8305_v9 = vor.u32 %v8999_v47, %v8304_v32  ;;  %v8049_v15 = vor.u32 %v8932_v12, %v8046_v5  ;;  %v8112_v32 = vld [vmem:[#allocation25 + $0x128] sm:$0xf]  ;;  %v8950_v47 = vld [vmem:[#allocation25 + $0x138] sm:$0xf0] }
0x1471   : > { %6265 = vmatmul.bf16.vlgmr.msrb.gmra.mxu3 %v12234_v53  ;;  %v8592_v12 = vld [vmem:[#allocation25 + $0x4e8] sm:$0xf]  ;;  %v8113_v51 = vor.u32 %v8950_v47, %v8112_v32 }
0x1472   : > { %6302 = vmatpush.bf16.msra.mxu2 %v7985_v57  ;;  %v8249_v57 = vor.u32 %v8982_v31, %v8246_v38  ;;  %v8169_v31 = vor.u32 %v8962_v61, %v8166_v50  ;;  %v8232_v61 = vld [vmem:[#allocation25 + $0x218] sm:$0xf]  ;;  %v8432_v50 = vld [vmem:[#allocation25 + $0x3a8] sm:$0xf] }
0x1473   : > { %6313 = vmatpush.bf16.msra.mxu3 %v8185_v26  ;;  %6324 = vmatpush.bf16.msrb.mxu0 %v8385_v25  ;;  %v8927_v26 = vld [vmem:[#allocation25 + $0x84] sm:$0xf]  ;;  %v8026_v25 = vld [vmem:[#allocation25 + $0x94] sm:$0xf0] }
0x1474   : > { %6341 = vmatpush.bf16.msrb.mxu1 %v8465_v55  ;;  %v9027_v55 = vld [vmem:[#allocation25 + $0x3a4] sm:$0xf]  ;;  %v8029_v29 = vor.u32 %v8927_v26, %v8026_v25  ;;  %v8092_v26 = vld [vmem:[#allocation25 + $0x100] sm:$0xf]  ;;  %v8945_v25 = vld [vmem:[#allocation25 + $0x110] sm:$0xf0] }
0x1475   : > { %v8429_v35 = vor.u32 %v9027_v55, %v8426_v24  ;;  %v8952_v55 = vld [vmem:[#allocation25 + $0x14c] sm:$0xf] }
0x1476   : > { %6303 = vmatpush.bf16.msra.mxu2 %v7965_v27  ;;  %v8922_v27 = vld [vmem:[#allocation25 + $0x5c] sm:$0xf] }
0x1477   : > { %6314 = vmatpush.bf16.msra.mxu3 %v8165_v16  ;;  %6325 = vmatpush.bf16.msrb.mxu0 %v8365_v11  ;;  %v8509_v16 = vor.u32 %v9047_v44, %v8506_v30  ;;  %v8972_v11 = vld [vmem:[#allocation25 + $0x1ec] sm:$0xf]  ;;  %v8009_v56 = vor.u32 %v8922_v27, %v8006_v0  ;;  %v8126_v44 = vld [vmem:[#allocation25 + $0x15c] sm:$0xf0]  ;;  %v9002_v30 = vld [vmem:[#allocation25 + $0x2dc] sm:$0xf] }
0x1478   : > { %6342 = vmatpush.bf16.msrb.mxu1 %v8445_v3  ;;  %v9022_v3 = vld [vmem:[#allocation25 + $0x37c] sm:$0xf]  ;;  %v8072_v27 = vld [vmem:[#allocation25 + $0xd8] sm:$0xf]  ;;  %v8272_v0 = vld [vmem:[#allocation25 + $0x268] sm:$0xf] }
0x1479   : > { %6278 = vmatmul.bf16.vlgmr.msra.gmra.mxu0 %v12237_v62  ;;  %6304 = vmatmul.bf16.vlgmr.msra.gmra.mxu2 %v12228_v33 }
0x147a   : > { %6348 = vmatpush.bf16.msrb.mxu2 %v8109_v6  ;;  %v8406_v6 = vld [vmem:[#allocation25 + $0x38c] sm:$0xf0] }
0x147b   : > { %6315 = vmatpush.bf16.msra.mxu3 %v8145_v17  ;;  %6326 = vmatpush.bf16.msrb.mxu0 %v8345_v13  ;;  %v8409_v18 = vor.u32 %v9022_v3, %v8406_v6  ;;  %v8967_v17 = vld [vmem:[#allocation25 + $0x1c4] sm:$0xf]  ;;  %v8186_v13 = vld [vmem:[#allocation25 + $0x1d4] sm:$0xf0]  ;;  %v8129_v3 = vor.u32 %v8952_v55, %v8126_v44  ;;  %v8920_v55 = vld [vmem:[#allocation25 + $0x48] sm:$0xf0] }
0x147c   : > { %6387 = vmatpush.bf16.msra.mxu1 %v8589_v10  ;;  %v8209_v10 = vor.u32 %v8972_v11, %v8206_v2  ;;  %v8189_v28 = vor.u32 %v8967_v17, %v8186_v13  ;;  %v8552_v11 = vld [vmem:[#allocation25 + $0x498] sm:$0xf]  ;;  %v9060_v2 = vld [vmem:[#allocation25 + $0x4a8] sm:$0xf0]  ;;  %v8935_v17 = vld [vmem:[#allocation25 + $0xc0] sm:$0xf0] }
0x147d   : > { %6343 = vmatmul.bf16.vlgmr.msrb.gmra.mxu1 %v12230_v41  ;;  %v8553_v22 = vor.u32 %v9060_v2, %v8552_v11  ;;  %v8532_v13 = vld [vmem:[#allocation25 + $0x470] sm:$0xf]  ;;  %v9020_v44 = vld [vmem:[#allocation25 + $0x368] sm:$0xf0]  ;;  %v8915_v2 = vld [vmem:[#allocation25 + $0x20] sm:$0xf0] }
0x147e   : > { %6349 = vmatpush.bf16.msrb.mxu2 %v8089_v4  ;;  %v9037_v4 = vld [vmem:[#allocation25 + $0x3f4] sm:$0xf] }
0x147f   : > { %6316 = vmatpush.bf16.msra.mxu3 %v8125_v46  ;;  %6327 = vmatpush.bf16.msrb.mxu0 %v8325_v63  ;;  %v8469_v34 = vor.u32 %v9037_v4, %v8466_v14  ;;  %v9012_v46 = vld [vmem:[#allocation25 + $0x32c] sm:$0xf]  ;;  %v8366_v63 = vld [vmem:[#allocation25 + $0x33c] sm:$0xf0] }
0x1480   : > { %6388 = vmatpush.bf16.msra.mxu1 %v8569_v45  ;;  %v8912_v45 = vld [vmem:[#allocation25 + $0xc] sm:$0xf]  ;;  %v8369_v38 = vor.u32 %v9012_v46, %v8366_v63  ;;  %v9030_v46 = vld [vmem:[#allocation25 + $0x3b8] sm:$0xf0]  ;;  %v8512_v63 = vld [vmem:[#allocation25 + $0x448] sm:$0xf] }
0x1481   : > { %v7969_v5 = vor.u32 %v8912_v45, %v7966_v39  ;;  %v8992_v14 = vld [vmem:[#allocation25 + $0x28c] sm:$0xf]  ;;  %v8533_v45 = vor.u32 %v9055_v23, %v8532_v13  ;;  %v8032_v39 = vld [vmem:[#allocation25 + $0x88] sm:$0xf]  ;;  %v9010_v13 = vld [vmem:[#allocation25 + $0x318] sm:$0xf0] }
0x1482   : > { %6350 = vmatpush.bf16.msrb.mxu2 %v8069_v49  ;;  %6317 = vmatmul.bf16.vlgmr.msra.gmra.mxu3 %v12234_v53  ;;  %v9032_v49 = vld [vmem:[#allocation25 + $0x3cc] sm:$0xf] }
0x1483   : > { %6361 = vmatpush.bf16.msrb.mxu3 %v8269_v8  ;;  %6328 = vmatpush.bf16.msrb.mxu0 %v8305_v9  ;;  %v8446_v8 = vld [vmem:[#allocation25 + $0x3dc] sm:$0xf0]  ;;  %v8146_v9 = vld [vmem:[#allocation25 + $0x184] sm:$0xf0] }
0x1484   : > { %6389 = vmatpush.bf16.msra.mxu1 %v8549_v7  ;;  %v9070_v7 = vld [vmem:[#allocation25 + $0x4f8] sm:$0xf0]  ;;  %v8449_v43 = vor.u32 %v9032_v49, %v8446_v8  ;;  %v8149_v21 = vor.u32 %v8957_v37, %v8146_v9  ;;  %v8412_v37 = vld [vmem:[#allocation25 + $0x380] sm:$0xf]  ;;  %v9025_v9 = vld [vmem:[#allocation25 + $0x390] sm:$0xf0] }
0x1485   : > { %v9050_v49 = vld [vmem:[#allocation25 + $0x458] sm:$0xf0]  ;;  %v9078_v23 = vld [vmem:[%s12446_s28 + $0x38] sm:$0xff] }
0x1486   : > { %6351 = vmatpush.bf16.msrb.mxu2 %v8049_v15  ;;  %v8593_v15 = vor.u32 %v9070_v7, %v8592_v12  ;;  %v8433_v12 = vor.u32 %v9030_v46, %v8432_v50  ;;  %v8012_v7 = vld [vmem:[#allocation25 + $0x60] sm:$0xf]  ;;  %v9000_v50 = vld [vmem:[#allocation25 + $0x2c8] sm:$0xf0] }
0x1487   : > { %6362 = vmatpush.bf16.msrb.mxu3 %v8249_v57  ;;  %6329 = vmatpush.bf16.msrb.mxu0 %v8285_v20  ;;  %v9007_v57 = vld [vmem:[#allocation25 + $0x304] sm:$0xf]  ;;  %v8326_v20 = vld [vmem:[#allocation25 + $0x2ec] sm:$0xf0]  ;;  %v9076_v46 = vld [vmem:[%s12446_s28 + $0x28] sm:$0xff] }
0x1488   : > { %6390 = vmatpush.bf16.msra.mxu1 %v8529_v1  ;;  %v8572_v1 = vld [vmem:[#allocation25 + $0x4c0] sm:$0xf]  ;;  %v8349_v24 = vor.u32 %v9007_v57, %v8346_v58  ;;  %v8329_v6 = vor.u32 %v9002_v30, %v8326_v20  ;;  %v8472_v30 = vld [vmem:[#allocation25 + $0x3f8] sm:$0xf]  ;;  %v9040_v20 = vld [vmem:[#allocation25 + $0x408] sm:$0xf0] }
0x1489   : > { %v8473_v11 = vor.u32 %v9040_v20, %v8472_v30 }
0x148a   : > { %6352 = vmatpush.bf16.msrb.mxu2 %v8029_v29  ;;  %6330 = vmatmul.bf16.vlgmr.msrb.gmra.mxu0 %v12237_v62  ;;  %v8093_v29 = vor.u32 %v8945_v25, %v8092_v26  ;;  %v8413_v26 = vor.u32 %v9025_v9, %v8412_v37  ;;  %v7992_v25 = vld [vmem:[#allocation25 + $0x38] sm:$0xf]  ;;  %v9093_v37 = vld [vmem:[%s12447_s11 + $0x70] sm:$0xff] }
0x148b   : > { %6363 = vmatpush.bf16.msrb.mxu3 %v8229_v36  ;;  %6374 = vmatpush.bf16.msra.mxu0 %v8429_v35  ;;  %v8573_v36 = vor.u32 %v9065_v60, %v8572_v1  ;;  %v8990_v35 = vld [vmem:[#allocation25 + $0x278] sm:$0xf0]  ;;  %v8192_v1 = vld [vmem:[#allocation25 + $0x1c8] sm:$0xf] }
0x148c   : > { %6391 = vmatpush.bf16.msra.mxu1 %v8509_v16  ;;  %v8940_v16 = vld [vmem:[#allocation25 + $0xe8] sm:$0xf0]  ;;  %v8273_v52 = vor.u32 %v8990_v35, %v8272_v0  ;;  %v8970_v60 = vld [vmem:[#allocation25 + $0x1d8] sm:$0xf0]  ;;  %v7972_v0 = vld [vmem:[#allocation25 + $0x10] sm:$0xf] }
0x148d   : > { %v8172_v35 = vld [vmem:[#allocation25 + $0x1a0] sm:$0xf] }
0x148e   : > { %6353 = vmatpush.bf16.msrb.mxu2 %v8009_v56  ;;  %v8306_v56 = vld [vmem:[#allocation25 + $0x2c4] sm:$0xf0] }
0x148f   : > { %6364 = vmatpush.bf16.msrb.mxu3 %v8209_v10  ;;  %6375 = vmatpush.bf16.msra.mxu0 %v8409_v18  ;;  %v8073_v10 = vor.u32 %v8940_v16, %v8072_v27  ;;  %v8252_v18 = vld [vmem:[#allocation25 + $0x240] sm:$0xf]  ;;  %v8309_v40 = vor.u32 %v8997_v48, %v8306_v56  ;;  %v8965_v16 = vld [vmem:[#allocation25 + $0x1b0] sm:$0xf0]  ;;  %v9035_v48 = vld [vmem:[#allocation25 + $0x3e0] sm:$0xf0] }
0x1490   : > { %6392 = vmatpush.bf16.msra.mxu1 %v8489_v54  ;;  %v8985_v54 = vld [vmem:[#allocation25 + $0x250] sm:$0xf0]  ;;  %v8173_v56 = vor.u32 %v8965_v16, %v8172_v35 }
0x1491   : > { %v8253_v4 = vor.u32 %v8985_v54, %v8252_v18  ;;  %v8960_v18 = vld [vmem:[#allocation25 + $0x188] sm:$0xf0] }
0x1492   : > { %6354 = vmatpush.bf16.msrb.mxu2 %v7989_v59  ;;  %v8286_v59 = vld [vmem:[#allocation25 + $0x29c] sm:$0xf0] }
0x1493   : > { %6365 = vmatpush.bf16.msrb.mxu3 %v8189_v28  ;;  %6376 = vmatpush.bf16.msra.mxu0 %v8389_v19  ;;  %v8053_v28 = vor.u32 %v8935_v17, %v8052_v42  ;;  %v8980_v19 = vld [vmem:[#allocation25 + $0x228] sm:$0xf0]  ;;  %v8289_v8 = vor.u32 %v8992_v14, %v8286_v59  ;;  %v8152_v42 = vld [vmem:[#allocation25 + $0x178] sm:$0xf]  ;;  %v8352_v17 = vld [vmem:[#allocation25 + $0x308] sm:$0xf] }
0x1494   : > { %6393 = vmatpush.bf16.msra.mxu1 %v8469_v34  ;;  %v8930_v34 = vld [vmem:[#allocation25 + $0x98] sm:$0xf0]  ;;  %v8233_v32 = vor.u32 %v8980_v19, %v8232_v61  ;;  %v8132_v14 = vld [vmem:[#allocation25 + $0x150] sm:$0xf]  ;;  %v8955_v59 = vld [vmem:[#allocation25 + $0x160] sm:$0xf0] }
0x1495   : > { %v8033_v47 = vor.u32 %v8930_v34, %v8032_v39  ;;  %v9077_v39 = vld [vmem:[%s12446_s28 + $0x30] sm:$0xff]  ;;  %v8133_v61 = vor.u32 %v8955_v59, %v8132_v14  ;;  %v8312_v34 = vld [vmem:[#allocation25 + $0x2b8] sm:$0xf] }
0x1496   : > { %6355 = vmatpush.bf16.msrb.mxu2 %v7969_v5  ;;  %v8212_v5 = vld [vmem:[#allocation25 + $0x1f0] sm:$0xf] }
0x1497   : > { %6366 = vmatpush.bf16.msrb.mxu3 %v8169_v31  ;;  %6377 = vmatpush.bf16.msra.mxu0 %v8369_v38  ;;  %v8975_v31 = vld [vmem:[#allocation25 + $0x200] sm:$0xf0]  ;;  %v8513_v38 = vor.u32 %v9050_v49, %v8512_v63  ;;  %v8313_v63 = vor.u32 %v9000_v50, %v8312_v34  ;;  %v8292_v49 = vld [vmem:[#allocation25 + $0x290] sm:$0xf] }
0x1498   : > { %6394 = vmatpush.bf16.msra.mxu1 %v8449_v43  ;;  %v8925_v43 = vld [vmem:[#allocation25 + $0x70] sm:$0xf0]  ;;  %v8213_v57 = vor.u32 %v8975_v31, %v8212_v5  ;;  %v9084_v5 = vld [vmem:[%s12447_s11 + $0x28] sm:$0xff]  ;;  %v9098_v34 = vld [vmem:[%s12447_s11 + $0x98] sm:$0xff] }
0x1499   : > { %6356 = vmatmul.bf16.vlgmr.msrb.gmra.mxu2 %v12228_v33  ;;  %v8013_v58 = vor.u32 %v8925_v43, %v8012_v7  ;;  %v9085_v7 = vld [vmem:[%s12447_s11 + $0x30] sm:$0xff]  ;;  %v9071_v31 = vld [vmem:[%s12446_s28] sm:$0xff]  ;;  %v9094_v43 = vld [vmem:[%s12447_s11 + $0x78] sm:$0xff] }
0x149a   : > { %6400 = vmatpush.bf16.msra.mxu2 %v8113_v51  ;;  %v8492_v51 = vld [vmem:[#allocation25 + $0x420] sm:$0xf] }
0x149b   : > { %6395 = vmatmul.bf16.vlgmr.msra.gmra.mxu1 %v12230_v41  ;;  %6367 = vmatpush.bf16.msrb.mxu3 %v8149_v21 }
0x149c   : > { %6439 = vmatpush.bf16.msrb.mxu1 %v8593_v15  ;;  %6378 = vmatpush.bf16.msra.mxu0 %v8349_v24  ;;  %v9045_v15 = vld [vmem:[#allocation25 + $0x430] sm:$0xf0]  ;;  %v8392_v24 = vld [vmem:[#allocation25 + $0x358] sm:$0xf] }
0x149d   : > { %v8493_v21 = vor.u32 %v9045_v15, %v8492_v51  ;;  %v8393_v27 = vor.u32 %v9020_v44, %v8392_v24  ;;  %v9081_v51 = vld [vmem:[%s12447_s11 + $0x10] sm:$0xff]  ;;  %v9090_v24 = vld [vmem:[%s12447_s11 + $0x58] sm:$0xff] }
0x149e   : > { %6401 = vmatpush.bf16.msra.mxu2 %v8093_v29  ;;  %v8193_v29 = vor.u32 %v8970_v60, %v8192_v1  ;;  %v12272_v15 = vld [vmem:[#allocation27] sm:$0x1f]  ;;  %v9079_v60 = vld [vmem:[%s12447_s11] sm:$0xff] }
0x149f   : > { %6368 = vmatpush.bf16.msrb.mxu3 %v8129_v3  ;;  %v8372_v3 = vld [vmem:[#allocation25 + $0x330] sm:$0xf]  ;;  %v5350_v1 = vperm.slane %v12272_v15, 0 }
0x14a0   : > { %6440 = vmatpush.bf16.msrb.mxu1 %v8573_v36  ;;  %6379 = vmatpush.bf16.msra.mxu0 %v8329_v6  ;;  %v7993_v36 = vor.u32 %v8920_v55, %v7992_v25  ;;  %v9015_v6 = vld [vmem:[#allocation25 + $0x340] sm:$0xf0] }
0x14a2   : > { %6402 = vmatpush.bf16.msra.mxu2 %v8073_v10  ;;  %6369 = vmatmul.bf16.vlgmr.msrb.gmra.mxu3 %v12234_v53  ;;  %v7973_v10 = vor.u32 %v8915_v2, %v7972_v0  ;;  %v9089_v0 = vld [vmem:[%s12447_s11 + $0x50] sm:$0xff] }
0x14a3   : > { %6413 = vmatpush.bf16.msra.mxu3 %v8273_v52  ;;  %v8452_v52 = vld [vmem:[#allocation25 + $0x3d0] sm:$0xf] }
0x14a4   : > { %6441 = vmatpush.bf16.msrb.mxu1 %v8553_v22  ;;  %6380 = vmatpush.bf16.msra.mxu0 %v8309_v40  ;;  %v8373_v22 = vor.u32 %v9015_v6, %v8372_v3  ;;  %v8453_v54 = vor.u32 %v9035_v48, %v8452_v52  ;;  %v8153_v40 = vor.u32 %v8960_v18, %v8152_v42  ;;  %v9088_v52 = vld [vmem:[%s12447_s11 + $0x48] sm:$0xff]  ;;  %v9102_v48 = vld [vmem:[%s12447_s11 + $0xb8] sm:$0xff]  ;;  %v9101_v42 = vld [vmem:[%s12447_s11 + $0xb0] sm:$0xff] }
0x14a6   : > { %6403 = vmatpush.bf16.msra.mxu2 %v8053_v28  ;;  %v8332_v28 = vld [vmem:[#allocation25 + $0x2e0] sm:$0xf] }
0x14a7   : > { %6414 = vmatpush.bf16.msra.mxu3 %v8253_v4  ;;  %v8353_v4 = vor.u32 %v9010_v13, %v8352_v17 }
0x14a8   : > { %6442 = vmatpush.bf16.msrb.mxu1 %v8533_v45  ;;  %6381 = vmatpush.bf16.msra.mxu0 %v8289_v8  ;;  %v9005_v45 = vld [vmem:[#allocation25 + $0x2f0] sm:$0xf0] }
0x14a9   : > { %v8333_v19 = vor.u32 %v9005_v45, %v8332_v28  ;;  %v9099_v45 = vld [vmem:[%s12447_s11 + $0xa0] sm:$0xff] }
0x14aa   : > { %6404 = vmatpush.bf16.msra.mxu2 %v8033_v47  ;;  %v9074_v47 = vld [vmem:[%s12446_s28 + $0x18] sm:$0xff] }
0x14ab   : > { %6415 = vmatpush.bf16.msra.mxu3 %v8233_v32  ;;  %6382 = vmatmul.bf16.vlgmr.msra.gmra.mxu0 %v12237_v62  ;;  %v9086_v32 = vld [vmem:[%s12447_s11 + $0x38] sm:$0xff] }
0x14ac   : > { %6426 = vmatpush.bf16.msrb.mxu0 %v8433_v12  ;;  %6443 = vmatpush.bf16.msrb.mxu1 %v8513_v38  ;;  %v9073_v12 = vld [vmem:[%s12446_s28 + $0x10] sm:$0xff]  ;;  %v9083_v38 = vld [vmem:[%s12447_s11 + $0x20] sm:$0xff] }
0x14ae   : > { %6405 = vmatpush.bf16.msra.mxu2 %v8013_v58  ;;  %v9080_v58 = vld [vmem:[%s12447_s11 + $0x8] sm:$0xff] }
0x14af   : > { %6416 = vmatpush.bf16.msra.mxu3 %v8213_v57 }
0x14b0   : > { %6427 = vmatpush.bf16.msrb.mxu0 %v8413_v26  ;;  %6444 = vmatpush.bf16.msrb.mxu1 %v8493_v21  ;;  %v9092_v26 = vld [vmem:[%s12447_s11 + $0x68] sm:$0xff]  ;;  %v9091_v21 = vld [vmem:[%s12447_s11 + $0x60] sm:$0xff] }
0x14b2   : > { %6406 = vmatpush.bf16.msra.mxu2 %v7993_v36 }
0x14b3   : > { %6417 = vmatpush.bf16.msra.mxu3 %v8193_v29 }
0x14b4   : > { %6428 = vmatpush.bf16.msrb.mxu0 %v8393_v27  ;;  %6445 = vmatpush.bf16.msrb.mxu1 %v8473_v11 }
0x14b6   : > { %6407 = vmatpush.bf16.msra.mxu2 %v7973_v10 }
0x14b7   : > { %6418 = vmatpush.bf16.msra.mxu3 %v8173_v56  ;;  %v5351_v56 = vperm.slane %v12272_v15, 1 }
0x14b8   : > { %6429 = vmatpush.bf16.msrb.mxu0 %v8373_v22  ;;  %6446 = vmatpush.bf16.msrb.mxu1 %v8453_v54  ;;  %v9087_v22 = vld [vmem:[%s12447_s11 + $0x40] sm:$0xff] }
0x14b9   : > { %6408 = vmatmul.bf16.vlgmr.msra.gmra.mxu2 %v12228_v33  ;;  %v8995_v33 = vld [vmem:[#allocation25 + $0x2a0] sm:$0xf0] }
0x14ba   : > { %6526 = vmatpush.bf16.msrb.mxu2 %v9078_v23  ;;  %v8293_v8 = vor.u32 %v8995_v33, %v8292_v49  ;;  %v9100_v23 = vld [vmem:[%s12447_s11 + $0xa8] sm:$0xff]  ;;  %v9097_v49 = vld [vmem:[%s12447_s11 + $0x90] sm:$0xff] }
0x14bb   : > { %6419 = vmatpush.bf16.msra.mxu3 %v8153_v40  ;;  %6447 = vmatmul.bf16.vlgmr.msrb.gmra.mxu1 %v12230_v41  ;;  %v9075_v41 = vld [vmem:[%s12446_s28 + $0x20] sm:$0xff] }
0x14bc   : > { %6430 = vmatpush.bf16.msrb.mxu0 %v8353_v4  ;;  %6830 = vmatpush.bf16.msra.mxu1 %v9102_v48 }
0x14be   : > { %6527 = vmatpush.bf16.msrb.mxu2 %v9077_v39 }
0x14bf   : > { %6420 = vmatpush.bf16.msra.mxu3 %v8133_v61 }
0x14c0   : > { %6431 = vmatpush.bf16.msrb.mxu0 %v8333_v19  ;;  %6831 = vmatpush.bf16.msra.mxu1 %v9101_v42 }
0x14c2   : > { %6528 = vmatpush.bf16.msrb.mxu2 %v9076_v46  ;;  %6421 = vmatmul.bf16.vlgmr.msra.gmra.mxu3 %v12234_v53  ;;  %v9072_v53 = vld [vmem:[%s12446_s28 + $0x8] sm:$0xff]  ;;  %v5352_v46 = vperm.slane %v12272_v15, 2 }
0x14c3   : > { %6804 = vmatpush.bf16.msrb.mxu3 %v9086_v32 }
0x14c4   : > { %6432 = vmatpush.bf16.msrb.mxu0 %v8313_v63  ;;  %6832 = vmatpush.bf16.msra.mxu1 %v9100_v23 }
0x14c6   : > { %6529 = vmatpush.bf16.msrb.mxu2 %v9075_v41 }
0x14c7   : > { %6805 = vmatpush.bf16.msrb.mxu3 %v9085_v7 }
0x14c8   : > { %6433 = vmatpush.bf16.msrb.mxu0 %v8293_v8  ;;  %6833 = vmatpush.bf16.msra.mxu1 %v9099_v45 }
0x14ca   : > { %6530 = vmatpush.bf16.msrb.mxu2 %v9074_v47 }
0x14cb   : > { %6434 = vmatmul.bf16.vlgmr.msrb.gmra.mxu0 %v12237_v62  ;;  %6806 = vmatpush.bf16.msrb.mxu3 %v9084_v5  ;;  %v9082_v62 = vld [vmem:[%s12447_s11 + $0x18] sm:$0xff]  ;;  %v9096_v5 = vld [vmem:[%s12447_s11 + $0x88] sm:$0xff] }
0x14cc   : > { %6817 = vmatpush.bf16.msra.mxu0 %v9094_v43  ;;  %6834 = vmatpush.bf16.msra.mxu1 %v9098_v34 }
0x14ce   : > { %6531 = vmatpush.bf16.msrb.mxu2 %v9073_v12 }
0x14cf   : > { %6807 = vmatpush.bf16.msrb.mxu3 %v9083_v38 }
0x14d0   : > { %6818 = vmatpush.bf16.msra.mxu0 %v9093_v37  ;;  %6835 = vmatpush.bf16.msra.mxu1 %v9097_v49  ;;  %v9109_v37 = vld [vmem:[%s12447_s11 + $0xf0] sm:$0xff] }
0x14d2   : > { %6532 = vmatpush.bf16.msrb.mxu2 %v9072_v53 }
0x14d3   : > { %6808 = vmatpush.bf16.msrb.mxu3 %v9082_v62  ;;  %v9095_v62 = vld [vmem:[%s12447_s11 + $0x80] sm:$0xff] }
0x14d4   : > { %6819 = vmatpush.bf16.msra.mxu0 %v9092_v26  ;;  %6836 = vmatpush.bf16.msra.mxu1 %v9096_v5  ;;  %v9111_v5 = vld [vmem:[%s12449_s16] sm:$0xff] }
0x14d6   : > { %6533 = vmatpush.bf16.msrb.mxu2 %v9071_v31  ;;  %v6240_v9 = vpop.f32.mrf.mxu1  ;;  %v9110_v31 = vld [vmem:[%s12447_s11 + $0xf8] sm:$0xff] }
0x14d7   : > { %6809 = vmatpush.bf16.msrb.mxu3 %v9081_v51  ;;  %v9108_v51 = vld [vmem:[%s12447_s11 + $0xe8] sm:$0xff] }
0x14d8   : > { %6820 = vmatpush.bf16.msra.mxu0 %v9091_v21  ;;  %6837 = vmatpush.bf16.msra.mxu1 %v9095_v62  ;;  %v9105_v21 = vld [vmem:[%s12447_s11 + $0xd0] sm:$0xff] }
0x14da   : > { %6843 = vmatpush.bf16.msra.mxu2 %v9110_v31  ;;  %v9410_v31 = vld [vmem:[#allocation28] ss:$0 sm:$0xff] }
0x14db   : > { %6810 = vmatpush.bf16.msrb.mxu3 %v9080_v58  ;;  %v9107_v58 = vld [vmem:[%s12447_s11 + $0xe0] sm:$0xff] }
0x14dc   : > { %v6201_v57 = vpop.f32.mrf.mxu2  ;;  %6821 = vmatpush.bf16.msra.mxu0 %v9090_v24 }
0x14dd   : > { %v6202_v55 = vadd.f32 %v6201_v57, %v5350_v1  ;;  %v5353_v1 = vperm.slane %v12272_v15, 3 }
0x14de   : > { %v6242_v25 = vpop.f32.mrf.mxu1  ;;  %6844 = vmatpush.bf16.msra.mxu2 %v9109_v37 }
0x14df   : > { %6811 = vmatpush.bf16.msrb.mxu3 %v9079_v60  ;;  %v9106_v25 = vld [vmem:[%s12447_s11 + $0xd8] sm:$0xff] }
0x14e0   : > { %6822 = vmatpush.bf16.msra.mxu0 %v9089_v0 }
0x14e2   : > { %6845 = vmatpush.bf16.msra.mxu2 %v9108_v51 }
0x14e4   : > { %v6203_v44 = vpop.f32.mrf.mxu2  ;;  %v6214_v30 = vpop.f32.mrf.mxu3  ;;  %6823 = vmatpush.bf16.msra.mxu0 %v9088_v52  ;;  %v5354_v52 = vperm.slane %v12272_v15, 4  ;;  %v9409_v15 = vld [vmem:[%s12448_s22] ss:$0 sm:$0xff] }
0x14e5   : > { %v6215_v20 = vadd.f32 %v6214_v30, %v6202_v55 }
0x14e6   : > { %v6227_v29 = vpop.f32.mrf.mxu0  ;;  %6846 = vmatpush.bf16.msra.mxu2 %v9107_v58 }
0x14e7   : > { %v6228_v36 = vadd.f32 %v6227_v29, %v6215_v20  ;;  %v6292_v27 = vpop.f32.mrf.mxu1 }
0x14e8   : > { %6824 = vmatpush.bf16.msra.mxu0 %v9087_v22 }
0x14e9   : > { %v6241_v35 = vadd.f32 %v6240_v9, %v6228_v36 }
0x14ea   : > { %6847 = vmatpush.bf16.msra.mxu2 %v9106_v25  ;;  %v9121_v25 = vld [vmem:[#allocation31 + $0x10] sm:$0xff] }
0x14eb   : > { %v6452_v16 = vmax.f32 %v6241_v35, 0.0 }
0x14ec   : > { %v6216_v11 = vpop.f32.mrf.mxu3  ;;  %v6253_v2 = vpop.f32.mrf.mxu2 }
0x14ed   : > { %v6457_v3 = vpack.c.bf16 %v6452_v16, %v6452_v16  ;;  %v6254_v18 = vadd.f32 %v6253_v2, %v5351_v56  ;;  %v9103_v16 = vld [vmem:[%s12447_s11 + $0xc0] sm:$0xff] }
0x14ee   : > { %v6229_v6 = vpop.f32.mrf.mxu0  ;;  %6848 = vmatpush.bf16.msra.mxu2 %v9105_v21  ;;  %v9411_v21 = vld [vmem:[#allocation30] ss:$0 sm:$0xff] }
0x14ef   : > { %v6294_v10 = vpop.f32.mrf.mxu1  ;;  %6534 = vmatmul.bf16.vlgmr.msrb.gmra.mxu2 %v6457_v3 }
0x14f4   : > { %v6255_v54 = vpop.f32.mrf.mxu2  ;;  %v6266_v17 = vpop.f32.mrf.mxu3 }
0x14f5   : > { %v6267_v13 = vadd.f32 %v6266_v17, %v6254_v18 }
0x14f6   : > { %v6279_v40 = vpop.f32.mrf.mxu0 }
0x14f7   : > { %v6280_v4 = vadd.f32 %v6279_v40, %v6267_v13 }
0x14f9   : > { %v6293_v14 = vadd.f32 %v6292_v27, %v6280_v4  ;;  %v9104_v27 = vld [vmem:[%s12447_s11 + $0xc8] sm:$0xff] }
0x14fa   : > { %v6344_v59 = vpop.f32.mrf.mxu1  ;;  %6849 = vmatpush.bf16.msra.mxu2 %v9104_v27 }
0x14fb   : > { %v6453_v28 = vmax.f32 %v6293_v14, 0.0  ;;  %v9120_v14 = vld [vmem:[#allocation31 + $0x8] sm:$0xff] }
0x14fc   : > { %v6268_v39 = vpop.f32.mrf.mxu3  ;;  %v6305_v19 = vpop.f32.mrf.mxu2  ;;  %7000 = vmatpush.bf16.msrb.mxu1 %v9120_v14 }
0x14fd   : > { %v6540_v61 = vpack.c.bf16 %v6453_v28, %v6453_v28  ;;  %v6306_v33 = vadd.f32 %v6305_v19, %v5352_v46 }
0x14fe   : > { %v6281_v50 = vpop.f32.mrf.mxu0  ;;  %6850 = vmatpush.bf16.msra.mxu2 %v9103_v16 }
0x14ff   : > { %6812 = vmatmul.bf16.vlgmr.msrb.gmra.mxu3 %v6540_v61 }
0x1502   : > { %v6346_v63 = vpop.f32.mrf.mxu1 }
0x1503   : > { %v9118_v63 = vld [vmem:[%s12449_s16 + $0x38] sm:$0xff] }
0x1504   : > { %v6307_v41 = vpop.f32.mrf.mxu2  ;;  %6926 = vmatpush.bf16.msra.mxu3 %v9118_v63 }
0x1505   : > { %v6318_v8 = vpop.f32.mrf.mxu3  ;;  %v9116_v41 = vld [vmem:[%s12449_s16 + $0x28] sm:$0xff] }
0x1506   : > { %v6319_v32 = vadd.f32 %v6318_v8, %v6306_v33  ;;  %v9117_v33 = vld [vmem:[%s12449_s16 + $0x30] sm:$0xff]  ;;  %v9115_v8 = vld [vmem:[%s12449_s16 + $0x20] sm:$0xff] }
0x1507   : > { %v6331_v47 = vpop.f32.mrf.mxu0 }
0x1508   : > { %v6332_v12 = vadd.f32 %v6331_v47, %v6319_v32  ;;  %6927 = vmatpush.bf16.msra.mxu3 %v9117_v33  ;;  %v9114_v32 = vld [vmem:[%s12449_s16 + $0x18] sm:$0xff]  ;;  %v9113_v47 = vld [vmem:[%s12449_s16 + $0x10] sm:$0xff] }
0x150a   : > { %v6345_v7 = vadd.f32 %v6344_v59, %v6332_v12  ;;  %v9119_v59 = vld [vmem:[#allocation31] sm:$0xff] }
0x150b   : > { %7001 = vmatpush.bf16.msrb.mxu1 %v9119_v59 }
0x150c   : > { %v6454_v53 = vmax.f32 %v6345_v7, 0.0  ;;  %6928 = vmatpush.bf16.msra.mxu3 %v9116_v41 }
0x150d   : > { %v6320_v38 = vpop.f32.mrf.mxu3 }
0x150e   : > { %v6541_v43 = vpack.c.bf16 %v6454_v53, %v6454_v53  ;;  %v9112_v53 = vld [vmem:[%s12449_s16 + $0x8] sm:$0xff] }
0x150f   : > { %v6333_v9 = vpop.f32.mrf.mxu0 }
0x1510   : > { %6825 = vmatmul.bf16.vlgmr.msra.gmra.mxu0 %v6541_v43  ;;  %6929 = vmatpush.bf16.msra.mxu3 %v9115_v8 }
0x1514   : > { %6930 = vmatpush.bf16.msra.mxu3 %v9114_v32 }
0x1518   : > { %v6396_v57 = vpop.f32.mrf.mxu1  ;;  %6931 = vmatpush.bf16.msra.mxu3 %v9113_v47 }
0x151c   : > { %v6357_v26 = vpop.f32.mrf.mxu2  ;;  %6932 = vmatpush.bf16.msra.mxu3 %v9112_v53 }
0x151d   : > { %v6358_v55 = vadd.f32 %v6357_v26, %v5353_v1  ;;  %v9122_v26 = vld [vmem:[#allocation31 + $0x18] sm:$0xff] }
0x151e   : > { %6972 = vmatpush.bf16.msrb.mxu0 %v9122_v26 }
0x1520   : > { %v6398_v60 = vpop.f32.mrf.mxu1  ;;  %6933 = vmatpush.bf16.msra.mxu3 %v9111_v5 }
0x1522   : > { %6973 = vmatpush.bf16.msrb.mxu0 %v9121_v25 }
0x1524   : > { %v6359_v24 = vpop.f32.mrf.mxu2 }
0x1525   : > { %v6370_v44 = vpop.f32.mrf.mxu3 }
0x1526   : > { %v6371_v30 = vadd.f32 %v6370_v44, %v6358_v55 }
0x1528   : > { %v6383_v20 = vpop.f32.mrf.mxu0 }
0x1529   : > { %v6384_v29 = vadd.f32 %v6383_v20, %v6371_v30 }
0x152b   : > { %v6397_v36 = vadd.f32 %v6396_v57, %v6384_v29  ;;  %v9412_v29 = vld [vmem:[#allocation33] ss:$0 sm:$0xff] }
0x152d   : > { %v6455_v0 = vmax.f32 %v6397_v36, 0.0  ;;  %v6372_v35 = vpop.f32.mrf.mxu3 }
0x152f   : > { %v6542_v11 = vpack.c.bf16 %v6455_v0, %v6455_v0 }
0x1530   : > { %v6385_v2 = vpop.f32.mrf.mxu0 }
0x1531   : > { %6838 = vmatmul.bf16.vlgmr.msra.gmra.mxu1 %v6542_v11 }
0x1538   : > { %v6448_v3 = vpop.f32.mrf.mxu1 }
0x153c   : > { %v6409_v6 = vpop.f32.mrf.mxu2 }
0x153d   : > { %v6410_v56 = vadd.f32 %v6409_v6, %v5354_v52 }
0x1540   : > { %v6450_v48 = vpop.f32.mrf.mxu1 }
0x1544   : > { %v6411_v22 = vpop.f32.mrf.mxu2 }
0x1545   : > { %v6422_v10 = vpop.f32.mrf.mxu3 }
0x1546   : > { %v6423_v42 = vadd.f32 %v6422_v10, %v6410_v56  ;;  %v12450_v56 = vlaneseq }
0x1548   : > { %v6435_v18 = vpop.f32.mrf.mxu0  ;;  %v7013_v10 = vand.u32 127, %v12450_v56 }
0x1549   : > { %v6436_v54 = vadd.f32 %v6435_v18, %v6423_v42 }
0x154a   : > { %vm7014_vm5 = vcmp.eq.s32.totalorder %v7013_v10, 0 }
0x154b   : > { %v6449_v17 = vadd.f32 %v6448_v3, %v6436_v54 }
0x154d   : > { %v6456_v13 = vmax.f32 %v6449_v17, 0.0  ;;  %v6424_v23 = vpop.f32.mrf.mxu3 }
0x154f   : > { %v6543_v40 = vpack.c.bf16 %v6456_v13, %v6456_v13 }
0x1550   : > { %v6437_v4 = vpop.f32.mrf.mxu0 }
0x1551   : > { %6851 = vmatmul.bf16.vlgmr.msra.gmra.mxu2 %v6543_v40 }
0x1572   : > { %v6535_v28 = vpop.f32.mrf.mxu2 }
0x1573   : > { %v6536_v45 = vadd.f32 %v9409_v15, %v6535_v28 }
0x1575   : > { %v6539_v39 = vmax.f32 %v6536_v45, 0.0 }
0x1577   : > { %v6940_v61 = vpack.c.bf16 %v6539_v39, %v6539_v39 }
0x1579   : > { %8803 = vmatmul.msk.bf16.vlgmr.msrb.gmra.mxu1 %vm1543_vm4, %v6940_v61 }
0x157a   : > { %v6537_v19 = vpop.f32.mrf.mxu2 }
0x1582   : > { %v6813_v34 = vpop.f32.mrf.mxu3 }
0x1583   : > { %v6814_v38 = vadd.f32 %v9410_v31, %v6813_v34 }
0x158a   : > { %v6815_v50 = vpop.f32.mrf.mxu3 }
0x158d   : > { %v6826_v46 = vpop.f32.mrf.mxu0 }
0x158e   : > { %v6827_v43 = vadd.f32 %v6826_v46, %v6814_v38 }
0x1595   : > { %v6828_v49 = vpop.f32.mrf.mxu0 }
0x15ae   : > { %v6839_v12 = vpop.f32.mrf.mxu1 }
0x15af   : > { %v6840_v62 = vadd.f32 %v6839_v12, %v6827_v43 }
0x15b6   : > { %v6841_v7 = vpop.f32.mrf.mxu1 }
0x15d4   : > { %v6852_v37 = vpop.f32.mrf.mxu2 }
0x15d5   : > { %v6853_v9 = vadd.f32 %v6852_v37, %v6840_v62 }
0x15d7   : > { %v6856_v51 = vmax.f32 %v6853_v9, 0.0 }
0x15d9   : > { %v6857_v57 = vpack.c.bf16 %v6856_v51, %v6856_v51 }
0x15db   : > { %6934 = vmatmul.bf16.vlgmr.msra.gmra.mxu3 %v6857_v57 }
0x15dc   : > { %v6854_v58 = vpop.f32.mrf.mxu2 }
0x15f6   : > { %v7003_v1 = vpop.f32.mrf.mxu1 }
0x15fe   : > { %v7005_v60 = vpop.f32.mrf.mxu1 }
0x165e   : > { %v6935_v55 = vpop.f32.mrf.mxu3 }
0x165f   : > { %v6936_v24 = vadd.f32 %v9411_v21, %v6935_v55 }
0x1661   : > { %v6939_v44 = vmax.f32 %v6936_v24, 0.0 }
0x1663   : > { %v6945_v30 = vpack.c.bf16 %v6939_v44, %v6939_v44 }
0x1665   : > { %8794 = vmatmul.msk.bf16.vlgmr.msrb.gmra.mxu0 %vm1543_vm4, %v6945_v30 }
0x1666   : > { %v6937_v20 = vpop.f32.mrf.mxu3 }
0x16e2   : > { %v6975_v36 = vpop.f32.mrf.mxu0 }
0x16e3   : > { %v7004_v27 = vadd.f32 %v7003_v1, %v6975_v36 }
0x16e5   : > { %v7011_v0 = vadd.f32 %v9412_v29, %v7004_v27 }
0x16e7   : > { %v7015_v35 = vsub.f32 0.0, %v7011_v0 }
0x16e9   : > { %v7016_v16 = vmul.f32 1.442695, %v7015_v35 }
0x16ea   : > { %v6977_v11 = vpop.f32.mrf.mxu0 }
0x16eb   : > { %9413 = vpow2.f32 %v7016_v16 }
0x16f1   : > { %v9414_v2 = vpop.eup %9413 }
0x16f2   : > { %v7018_v3 = vadd.f32 1.0, %v9414_v2 }
0x16f4   : > { %9415 = vrcp.f32 %v7018_v3  ;;  %v7030_v22 = vand.u32 2147483648, %v7018_v3  ;;  %v7028_v18 = vand.u32 2147483647, %v7018_v3  ;;  %vm7024_vm4 = vweird.f32 %v7018_v3 }
0x16f6   : > { %v7031_v17 = vor.u32 1.1754944e-38, %v7030_v22  ;;  %vm7029_vm7 = vcmp.eq.f32.partialorder %v7028_v18, 8.507059e+37 }
0x16fa   : > { %v9416_v6 = vpop.eup %9415 }
0x16fb   : > { %v7020_v52 = vmul.f32 %v9416_v6, %v7018_v3  ;;  %vm7025_vm1 = vweird.f32 %v9416_v6 }
0x16fc   : > { %vm7026_vm6 = vmor %vm7024_vm4, %vm7025_vm1 }
0x16fd   : > { %v7021_v48 = vsub.f32 1.0, %v7020_v52 }
0x16ff   : > { %v7022_v42 = vmul.f32 %v9416_v6, %v7021_v48 }
0x1701   : > { %v7023_v54 = vadd.f32 %v9416_v6, %v7022_v42 }
0x1703   : > { %v7027_v13 = vsel %vm7026_vm6, %v9416_v6, %v7023_v54 }
0x1704   : > { %v7032_v23 = vsel %vm7029_vm7, %v7031_v17, %v7027_v13 }
0x1705   : > { %v7036_v40 = vsel %vm7014_vm5, %v7032_v23, %v7011_v0 }
0x1706   : > { %7037 = vst [vmem:[%s1235_s23] sm:$0xf] %v7036_v40 }
0x1707 PF: > { %s12451_s8 = sld [smem:[#allocation63_spill]] }
0x170d   : > { %s80_s7 = sadd.s32 1, %s12451_s8  }
0x170e   : > { %p77_p3 = scmp.ge.s32.totalorder %s80_s7, 4  }
0x1710   :  { %79 = sbr.rel (!%p77_p3) target bundleno = 60 (0x3c), region = 312 }
0x1715   :  { %7057 = vsyncpa [#allocation3], 1 }
0x1716   :  { %7059 = vsyncpa [#allocation3 + $0x1], 1 }
0x1717   :  { %7060 = vsyncpa [#allocation5], 1 }
0x1718   :  { %7061 = vsyncpa [#allocation8], 1 }
0x1719   :  { %7062 = vsyncpa [#allocation11], 1 }
0x171a   :  { %7063 = vsyncpa [#allocation14], 1 }
0x171b   :  { %7064 = vsyncpa [#allocation17], 1 }
0x171c   :  { %7065 = vsyncpa [#allocation20], 1 }
0x171d   :  { %7066 = vsyncpa [#allocation23], 1 }
0x171e   :  { %7067 = vsyncpa [#allocation26], 1 }
0x171f   :  { %7068 = vsyncpa [#allocation29], 1 }
0x1720   :  { %7069 = vsyncpa [#allocation32], 1 }

</bundles_post_ra>
